<compile_context>
chip_gen: v5e
topology: v5e:2x2
jax: 0.10.0
libtpu: 0.0.40
codegen_flags: <defaults>
</compile_context>

<pallas_src>
import functools

import jax
import jax.numpy as jnp
from jax.experimental import pallas as pl
from jax.experimental.pallas import tpu as pltpu


# ---------------------------------------------------------------------------------------
# VMEM budget per generation (review item: don't hard-code 32 MiB)
# ---------------------------------------------------------------------------------------
@functools.lru_cache(maxsize=None)
def _vmem_limit_bytes():
    cap = 64 * 1024 * 1024  # conservative fallback (v7x physical VMEM per TC)
    try:
        info = pltpu.get_tpu_info()
        cap_attr = getattr(info, "vmem_capacity_bytes", None)
        if cap_attr:
            cap = int(cap_attr)
    except Exception:
        pass
    # ~75% of physical, capped at 100 MiB: ~96 MiB on v5e/v6e, ~48 MiB on v7x.
    return int(min(cap * 3 // 4, 100 * 1024 * 1024))


# ---------------------------------------------------------------------------------------
# Fused kernel: reflect-pad + 3x3 conv (K-folded bf16 MXU matmuls, f32 accum)
#               + BatchNorm (batch stats) + optional ReLU + optional residual add
# ---------------------------------------------------------------------------------------
def _conv3x3_bn_act_kernel(x_ref, w_ref, g_ref, b_ref, *rest,
                           relu, has_residual, eps):
    if has_residual:
        res_ref, o_ref = rest
    else:
        (o_ref,) = rest
        res_ref = None

    n, hh, ww, cout = o_ref.shape            # cout = output-channel tile
    cin = x_ref.shape[-1]
    k = 3 * cin
    m = n * hh * ww

    # ---- bf16 once, then in-kernel ReflectionPad2d(1) on rows -------------------------
    xb = x_ref[...].astype(jnp.bfloat16)                                   # (n,hh,ww,cin)
    xr = jnp.concatenate([xb[:, 1:2], xb, xb[:, hh - 2:hh - 1]], axis=1)   # (n,hh+2,ww,cin)

    # ---- three dx-shifted slabs built ONCE (column reflection folded in), K-folded ----
    #   dx=0 -> orig cols [-1..ww-2] (col -1 reflects to col 1)
    #   dx=1 -> orig cols [ 0..ww-1] (no shift)
    #   dx=2 -> orig cols [ 1..ww  ] (col ww reflects to col ww-2)
    sl = jnp.concatenate([xr[:, :, 1:2, :], xr[:, :, :ww - 1, :]], axis=2)
    sr = jnp.concatenate([xr[:, :, 1:, :], xr[:, :, ww - 2:ww - 1, :]], axis=2)
    xpk = jnp.concatenate([sl, xr, sr], axis=-1)                # (n, hh+2, ww, 3*cin)

    # ---- conv: 3 K-folded MXU matmuls (K = 3*cin), value-level accumulation chain -----
    y = jnp.dot(xpk[:, 0:hh].reshape(m, k), w_ref[0],
                preferred_element_type=jnp.float32)
    y = y + jnp.dot(xpk[:, 1:hh + 1].reshape(m, k), w_ref[1],
                    preferred_element_type=jnp.float32)
    y = y + jnp.dot(xpk[:, 2:hh + 2].reshape(m, k), w_ref[2],
                    preferred_element_type=jnp.float32)          # (m, cout) f32

    # ---- BatchNorm2d (train-mode batch stats, biased variance), fused sum/sum-sq ------
    inv_m = 1.0 / m
    s1 = jnp.sum(y, axis=0, keepdims=True)                       # (1, cout)
    s2 = jnp.sum(y * y, axis=0, keepdims=True)                   # (1, cout)
    mu = s1 * inv_m
    var = jnp.maximum(s2 * inv_m - mu * mu, 0.0)
    scale = g_ref[...] * jax.lax.rsqrt(var + eps)
    shift = b_ref[...] - mu * scale
    y = y * scale + shift

    if relu:
        y = jnp.maximum(y, 0.0)
    if has_residual:
        y = y + res_ref[...].reshape(m, cout)                    # fused skip add (f32)

    o_ref[...] = y.reshape(n, hh, ww, cout).astype(o_ref.dtype)


def fused_conv3x3_bn_act(x, w3k, gamma, beta, *, relu, residual=None,
                         out_dtype=jnp.float32, eps=1e-5):
    """x: (N,H,W,Cin) NHWC (f32 or bf16).  w3k: (3, 3*Cin, Cout) bf16 (K-folded HWIO).
    Returns (N,H,W,Cout) in `out_dtype`; reflect-pad / BN / ReLU / skip-add fused in."""
    n, hh, ww, cin = x.shape
    cout = w3k.shape[-1]
    assert w3k.shape == (3, 3 * cin, cout)
    assert hh >= 2 and ww >= 2
    # TODO(synk): non-multiple-of-16 W and non-multiple-of-128 C still compile but pay
    #             relayout cost; pad channels / tile H for odd real-world shapes.

    # Output-channel tiling: >=2 "parallel" steps whenever cout >= 256 (keeps both v7x
    # TensorCores busy); single step for cout <= 256-ish.  Per-channel BN stats are
    # unaffected by cout splitting.
    tile = 128 if (cout >= 256 and cout % 128 == 0) else cout
    grid = (cout // tile,)

    g2d = gamma.reshape(1, cout).astype(jnp.float32)
    b2d = beta.reshape(1, cout).astype(jnp.float32)

    in_specs = [
        # full (unpadded) activation; constant index_map -> fetched once, stays resident
        pl.BlockSpec((n, hh, ww, cin), lambda j: (0, 0, 0, 0)),
        pl.BlockSpec((3, 3 * cin, tile), lambda j: (0, 0, j)),
        pl.BlockSpec((1, tile), lambda j: (0, j)),
        pl.BlockSpec((1, tile), lambda j: (0, j)),
    ]
    args = [x, w3k, g2d, b2d]
    io_aliases = {}
    if residual is not None:
        assert residual.shape == (n, hh, ww, cout)
        assert residual.dtype == out_dtype, "aliased residual must match output dtype"
        in_specs.append(pl.BlockSpec((n, hh, ww, tile), lambda j: (0, 0, 0, j)))
        args.append(residual)
        io_aliases = {4: 0}      # write the skip-add result over the residual buffer

    kernel = functools.partial(_conv3x3_bn_act_kernel, relu=relu,
                               has_residual=residual is not None, eps=eps)
    return pl.pallas_call(
        kernel,
        out_shape=jax.ShapeDtypeStruct((n, hh, ww, cout), out_dtype),
        grid=grid,
        in_specs=in_specs,
        out_specs=pl.BlockSpec((n, hh, ww, tile), lambda j: (0, 0, 0, j)),
        input_output_aliases=io_aliases,
        compiler_params=pltpu.CompilerParams(
            dimension_semantics=("parallel",),
            vmem_limit_bytes=_vmem_limit_bytes()),
    )(*args)


# ---------------------------------------------------------------------------------------
# ResnetGeneratorBlock forward (NCHW in / NCHW out, like the PyTorch module)
# ---------------------------------------------------------------------------------------
@jax.jit
def resnet_block_forward(kparams, x_nchw):
    # TODO(synk): drop these two transposes (one HBM pass each) if the surrounding model
    #             can run NHWC end-to-end.
    x = jnp.transpose(x_nchw, (0, 2, 3, 1)).astype(jnp.float32)          # -> NHWC
    # intermediate activation in bf16: halves HBM traffic between the two launches
    h = fused_conv3x3_bn_act(x, kparams["w1"], kparams["g1"], kparams["b1"],
                             relu=True, out_dtype=jnp.bfloat16)
    out = fused_conv3x3_bn_act(h, kparams["w2"], kparams["g2"], kparams["b2"],
                               relu=False, residual=x, out_dtype=jnp.float32)
    return jnp.transpose(out, (0, 3, 1, 2))                              # -> NCHW


# ---------------------------------------------------------------------------------------
# Parameters
# ---------------------------------------------------------------------------------------
def init_params(key, dim):
    """Random parameters for ResnetGeneratorBlock(dim, BatchNorm2d, use_bias=False)."""
    ks = jax.random.split(key, 6)
    w1 = 0.05 * jax.random.normal(ks[0], (3, 3, dim, dim), jnp.float32)  # HWIO
    w2 = 0.05 * jax.random.normal(ks[1], (3, 3, dim, dim), jnp.float32)
    g1 = 1.0 + 0.1 * jax.random.normal(ks[2], (dim,), jnp.float32)
    b1 = 0.1 * jax.random.normal(ks[3], (dim,), jnp.float32)
    g2 = 1.0 + 0.1 * jax.random.normal(ks[4], (dim,), jnp.float32)
    b2 = 0.1 * jax.random.normal(ks[5], (dim,), jnp.float32)
    return {"w1": w1, "w2": w2, "g1": g1, "b1": b1, "g2": g2, "b2": b2}


def prepare_params(params):
    """One-time kernel-side weight prep: HWIO (3,3,Cin,Cout) -> K-folded (3, 3*Cin, Cout),
    cast to bf16 once (dx-major channel ordering matches the kernel's K-fold)."""
    def prep(w):
        kh, kw, cin, cout = w.shape
        return w.reshape(kh, kw * cin, cout).astype(jnp.bfloat16)
    return {"w1": prep(params["w1"]), "w2": prep(params["w2"]),
            "g1": params["g1"], "b1": params["b1"],
            "g2": params["g2"], "b2": params["b2"]}


# ---------------------------------------------------------------------------------------
# Plain-JAX reference (bf16 conv operands + f32 accumulation, mirroring the kernel)
# ---------------------------------------------------------------------------------------
def reference_block(params, x_nchw, eps=1e-5):
    x = jnp.transpose(x_nchw, (0, 2, 3, 1)).astype(jnp.float32)

    def conv_bn(inp, w, g, b, relu):
        xp = jnp.pad(inp.astype(jnp.float32), ((0, 0), (1, 1), (1, 1), (0, 0)),
                     mode="reflect")
        y = jax.lax.conv_general_dilated(
            xp.astype(jnp.bfloat16), w.astype(jnp.bfloat16),
            window_strides=(1, 1), padding="VALID",
            dimension_numbers=("NHWC", "HWIO", "NHWC"),
            preferred_element_type=jnp.float32)
        mu = jnp.mean(y, axis=(0, 1, 2))
        var = jnp.var(y, axis=(0, 1, 2))
        y = (y - mu) * jax.lax.rsqrt(var + eps) * g + b
        return jnp.maximum(y, 0.0) if relu else y

    h = conv_bn(x, params["w1"], params["g1"], params["b1"], True)
    h = conv_bn(h.astype(jnp.bfloat16), params["w2"], params["g2"], params["b2"], False)
    return jnp.transpose(x + h, (0, 3, 1, 2))


if __name__ == "__main__":
    # Small config: a resnet block at the generator bottleneck (dim channels), small spatial.
    dim, batch, H, W = 128, 2, 16, 16

    key = jax.random.PRNGKey(0)
    kx, kp = jax.random.split(key)
    x = jax.random.normal(kx, (batch, dim, H, W), jnp.float32)
    params = init_params(kp, dim)
    kparams = prepare_params(params)

    out = resnet_block_forward(kparams, x)
    out = jax.block_until_ready(out)

    assert out.shape == (batch, dim, H, W), out.shape
    assert bool(jnp.all(jnp.isfinite(out)))

    ref = reference_block(params, x)
    err = float(jnp.max(jnp.abs(out - ref)))
    assert err < 5e-2, f"max abs error vs reference: {err}"
    print("KERNEL_OK")
</pallas_src>

<mosaic_0001>
module attributes {stable_mosaic.version = 11 : i64} {
  func.func @_conv3x3_bn_act_kernel(%arg0: i32, %arg1: memref<2x16x16x128xf32, #tpu.memory_space<vmem>>, %arg2: memref<3x384x128xbf16, #tpu.memory_space<vmem>>, %arg3: memref<1x128xf32, #tpu.memory_space<vmem>>, %arg4: memref<1x128xf32, #tpu.memory_space<vmem>>, %arg5: memref<2x16x16x128xbf16, #tpu.memory_space<vmem>>) attributes {dimension_semantics = [#tpu.dimension_semantics<parallel>], iteration_bounds = array<i64: 1>, scalar_prefetch = 0 : i64, scratch_operands = 0 : i64, tpu.core_type = #tpu.core_type<tc>, window_params = [{pipeline_mode = #tpu.pipeline_mode<synchronous>, transform_indices = @transform_0, window_bounds = array<i64: 2, 16, 16, 128>}, {transform_indices = @transform_1, window_bounds = array<i64: 3, 384, 128>}, {transform_indices = @transform_2, window_bounds = array<i64: 1, 128>}, {transform_indices = @transform_3, window_bounds = array<i64: 1, 128>}, {transform_indices = @transform_4, window_bounds = array<i64: 2, 16, 16, 128>}]} {
    %c0 = arith.constant 0 : index
    %c0_0 = arith.constant 0 : index
    %c0_1 = arith.constant 0 : index
    %c0_2 = arith.constant 0 : index
    %0 = vector.load %arg1[%c0, %c0_0, %c0_1, %c0_2] : memref<2x16x16x128xf32, #tpu.memory_space<vmem>>, vector<2x16x16x128xf32>
    %1 = arith.truncf %0 : vector<2x16x16x128xf32> to vector<2x16x16x128xbf16>
    %2 = vector.extract_strided_slice %1 {offsets = [0, 1, 0, 0], sizes = [2, 1, 16, 128], strides = [1, 1, 1, 1]} : vector<2x16x16x128xbf16> to vector<2x1x16x128xbf16>
    %3 = vector.extract_strided_slice %1 {offsets = [0, 14, 0, 0], sizes = [2, 1, 16, 128], strides = [1, 1, 1, 1]} : vector<2x16x16x128xbf16> to vector<2x1x16x128xbf16>
    %4 = tpu.concatenate %2, %1, %3 in 1 : vector<2x1x16x128xbf16>, vector<2x16x16x128xbf16>, vector<2x1x16x128xbf16> -> vector<2x18x16x128xbf16>
    %5 = vector.extract_strided_slice %4 {offsets = [0, 0, 1, 0], sizes = [2, 18, 1, 128], strides = [1, 1, 1, 1]} : vector<2x18x16x128xbf16> to vector<2x18x1x128xbf16>
    %6 = vector.extract_strided_slice %4 {offsets = [0, 0, 0, 0], sizes = [2, 18, 15, 128], strides = [1, 1, 1, 1]} : vector<2x18x16x128xbf16> to vector<2x18x15x128xbf16>
    %7 = tpu.concatenate %5, %6 in 2 : vector<2x18x1x128xbf16>, vector<2x18x15x128xbf16> -> vector<2x18x16x128xbf16>
    %8 = vector.extract_strided_slice %4 {offsets = [0, 0, 1, 0], sizes = [2, 18, 15, 128], strides = [1, 1, 1, 1]} : vector<2x18x16x128xbf16> to vector<2x18x15x128xbf16>
    %9 = vector.extract_strided_slice %4 {offsets = [0, 0, 14, 0], sizes = [2, 18, 1, 128], strides = [1, 1, 1, 1]} : vector<2x18x16x128xbf16> to vector<2x18x1x128xbf16>
    %10 = tpu.concatenate %8, %9 in 2 : vector<2x18x15x128xbf16>, vector<2x18x1x128xbf16> -> vector<2x18x16x128xbf16>
    %11 = tpu.concatenate %7, %4, %10 in 3 : vector<2x18x16x128xbf16>, vector<2x18x16x128xbf16>, vector<2x18x16x128xbf16> -> vector<2x18x16x384xbf16>
    %12 = vector.extract_strided_slice %11 {offsets = [0, 0, 0, 0], sizes = [2, 16, 16, 384], strides = [1, 1, 1, 1]} : vector<2x18x16x384xbf16> to vector<2x16x16x384xbf16>
    %13 = vector.shape_cast %12 : vector<2x16x16x384xbf16> to vector<512x384xbf16>
    %c0_3 = arith.constant 0 : index
    %c0_4 = arith.constant 0 : index
    %c0_5 = arith.constant 0 : index
    %14 = vector.load %arg2[%c0_3, %c0_4, %c0_5] : memref<3x384x128xbf16, #tpu.memory_space<vmem>>, vector<1x384x128xbf16>
    %15 = vector.shape_cast %14 : vector<1x384x128xbf16> to vector<384x128xbf16>
    %cst = arith.constant dense<0.000000e+00> : vector<512x128xf32>
    %16 = tpu.matmul %13, %15, %cst {dimension_numbers = #tpu.dot_dimension_numbers<[1], [0], [0], [1], [0, 0, 1, 1], [], []>} : vector<512x384xbf16>, vector<384x128xbf16>, vector<512x128xf32> -> vector<512x128xf32>
    %17 = vector.extract_strided_slice %11 {offsets = [0, 1, 0, 0], sizes = [2, 16, 16, 384], strides = [1, 1, 1, 1]} : vector<2x18x16x384xbf16> to vector<2x16x16x384xbf16>
    %18 = vector.shape_cast %17 : vector<2x16x16x384xbf16> to vector<512x384xbf16>
    %c1 = arith.constant 1 : index
    %c0_6 = arith.constant 0 : index
    %c0_7 = arith.constant 0 : index
    %19 = vector.load %arg2[%c1, %c0_6, %c0_7] : memref<3x384x128xbf16, #tpu.memory_space<vmem>>, vector<1x384x128xbf16>
    %20 = vector.shape_cast %19 : vector<1x384x128xbf16> to vector<384x128xbf16>
    %cst_8 = arith.constant dense<0.000000e+00> : vector<512x128xf32>
    %21 = tpu.matmul %18, %20, %cst_8 {dimension_numbers = #tpu.dot_dimension_numbers<[1], [0], [0], [1], [0, 0, 1, 1], [], []>} : vector<512x384xbf16>, vector<384x128xbf16>, vector<512x128xf32> -> vector<512x128xf32>
    %22 = arith.addf %16, %21 : vector<512x128xf32>
    %23 = vector.extract_strided_slice %11 {offsets = [0, 2, 0, 0], sizes = [2, 16, 16, 384], strides = [1, 1, 1, 1]} : vector<2x18x16x384xbf16> to vector<2x16x16x384xbf16>
    %24 = vector.shape_cast %23 : vector<2x16x16x384xbf16> to vector<512x384xbf16>
    %c2 = arith.constant 2 : index
    %c0_9 = arith.constant 0 : index
    %c0_10 = arith.constant 0 : index
    %25 = vector.load %arg2[%c2, %c0_9, %c0_10] : memref<3x384x128xbf16, #tpu.memory_space<vmem>>, vector<1x384x128xbf16>
    %26 = vector.shape_cast %25 : vector<1x384x128xbf16> to vector<384x128xbf16>
    %cst_11 = arith.constant dense<0.000000e+00> : vector<512x128xf32>
    %27 = tpu.matmul %24, %26, %cst_11 {dimension_numbers = #tpu.dot_dimension_numbers<[1], [0], [0], [1], [0, 0, 1, 1], [], []>} : vector<512x384xbf16>, vector<384x128xbf16>, vector<512x128xf32> -> vector<512x128xf32>
    %28 = arith.addf %22, %27 : vector<512x128xf32>
    %cst_12 = arith.constant dense<0.000000e+00> : vector<128xf32>
    %29 = vector.multi_reduction <add>, %28, %cst_12 [0] : vector<512x128xf32> to vector<128xf32>
    %30 = vector.shape_cast %29 : vector<128xf32> to vector<1x128xf32>
    %31 = arith.mulf %28, %28 : vector<512x128xf32>
    %cst_13 = arith.constant dense<0.000000e+00> : vector<128xf32>
    %32 = vector.multi_reduction <add>, %31, %cst_13 [0] : vector<512x128xf32> to vector<128xf32>
    %33 = vector.shape_cast %32 : vector<128xf32> to vector<1x128xf32>
    %cst_14 = arith.constant 0.001953125 : f32
    %34 = vector.broadcast %cst_14 : f32 to vector<1x128xf32>
    %35 = arith.mulf %30, %34 : vector<1x128xf32>
    %cst_15 = arith.constant 0.001953125 : f32
    %36 = vector.broadcast %cst_15 : f32 to vector<1x128xf32>
    %37 = arith.mulf %33, %36 : vector<1x128xf32>
    %38 = arith.mulf %35, %35 : vector<1x128xf32>
    %39 = arith.subf %37, %38 : vector<1x128xf32>
    %cst_16 = arith.constant 0.000000e+00 : f32
    %40 = vector.broadcast %cst_16 : f32 to vector<1x128xf32>
    %41 = arith.maximumf %39, %40 : vector<1x128xf32>
    %c0_17 = arith.constant 0 : index
    %c0_18 = arith.constant 0 : index
    %42 = vector.load %arg3[%c0_17, %c0_18] : memref<1x128xf32, #tpu.memory_space<vmem>>, vector<1x128xf32>
    %cst_19 = arith.constant 9.99999974E-6 : f32
    %43 = vector.broadcast %cst_19 : f32 to vector<1x128xf32>
    %44 = arith.addf %41, %43 : vector<1x128xf32>
    %45 = math.rsqrt %44 : vector<1x128xf32>
    %46 = arith.mulf %42, %45 : vector<1x128xf32>
    %c0_20 = arith.constant 0 : index
    %c0_21 = arith.constant 0 : index
    %47 = vector.load %arg4[%c0_20, %c0_21] : memref<1x128xf32, #tpu.memory_space<vmem>>, vector<1x128xf32>
    %48 = arith.mulf %35, %46 : vector<1x128xf32>
    %49 = arith.subf %47, %48 : vector<1x128xf32>
    %50 = vector.broadcast %46 : vector<1x128xf32> to vector<512x128xf32>
    %51 = arith.mulf %28, %50 : vector<512x128xf32>
    %52 = vector.broadcast %49 : vector<1x128xf32> to vector<512x128xf32>
    %53 = arith.addf %51, %52 : vector<512x128xf32>
    %cst_22 = arith.constant 0.000000e+00 : f32
    %54 = vector.broadcast %cst_22 : f32 to vector<512x128xf32>
    %55 = arith.maximumf %53, %54 : vector<512x128xf32>
    %56 = vector.shape_cast %55 : vector<512x128xf32> to vector<2x16x16x128xf32>
    %57 = arith.truncf %56 : vector<2x16x16x128xf32> to vector<2x16x16x128xbf16>
    %c0_23 = arith.constant 0 : index
    %c0_24 = arith.constant 0 : index
    %c0_25 = arith.constant 0 : index
    %c0_26 = arith.constant 0 : index
    %58 = vector.load %arg5[%c0_23, %c0_24, %c0_25, %c0_26] : memref<2x16x16x128xbf16, #tpu.memory_space<vmem>>, vector<2x16x16x128xbf16>
    tpu.vector_store %arg5[%c0_23, %c0_24, %c0_25, %c0_26], %57 {strides = array<i32>} : memref<2x16x16x128xbf16, #tpu.memory_space<vmem>>, vector<2x16x16x128xbf16>,
    return
  }
  func.func @transform_0(%arg0: i32) -> (i32, i32, i32, i32) {
    %c0_i32 = arith.constant 0 : i32
    %c0_i32_0 = arith.constant 0 : i32
    %c0_i32_1 = arith.constant 0 : i32
    %c0_i32_2 = arith.constant 0 : i32
    %c0_i32_3 = arith.constant 0 : i32
    return %c0_i32, %c0_i32_0, %c0_i32_1, %c0_i32_2 : i32, i32, i32, i32
  }
  func.func @transform_1(%arg0: i32) -> (i32, i32, i32) {
    %c0_i32 = arith.constant 0 : i32
    %c0_i32_0 = arith.constant 0 : i32
    %c0_i32_1 = arith.constant 0 : i32
    return %c0_i32, %c0_i32_0, %arg0 : i32, i32, i32
  }
  func.func @transform_2(%arg0: i32) -> (i32, i32) {
    %c0_i32 = arith.constant 0 : i32
    %c0_i32_0 = arith.constant 0 : i32
    return %c0_i32, %arg0 : i32, i32
  }
  func.func @transform_3(%arg0: i32) -> (i32, i32) {
    %c0_i32 = arith.constant 0 : i32
    %c0_i32_0 = arith.constant 0 : i32
    return %c0_i32, %arg0 : i32, i32
  }
  func.func @transform_4(%arg0: i32) -> (i32, i32, i32, i32) {
    %c0_i32 = arith.constant 0 : i32
    %c0_i32_0 = arith.constant 0 : i32
    %c0_i32_1 = arith.constant 0 : i32
    %c0_i32_2 = arith.constant 0 : i32
    return %c0_i32, %c0_i32_0, %c0_i32_1, %arg0 : i32, i32, i32, i32
  }
}

module attributes {stable_mosaic.version = 11 : i64} {
  func.func @_conv3x3_bn_act_kernel(%arg0: i32, %arg1: memref<2x16x16x128xbf16, #tpu.memory_space<vmem>>, %arg2: memref<3x384x128xbf16, #tpu.memory_space<vmem>>, %arg3: memref<1x128xf32, #tpu.memory_space<vmem>>, %arg4: memref<1x128xf32, #tpu.memory_space<vmem>>, %arg5: memref<2x16x16x128xf32, #tpu.memory_space<vmem>>, %arg6: memref<2x16x16x128xf32, #tpu.memory_space<vmem>>) attributes {dimension_semantics = [#tpu.dimension_semantics<parallel>], iteration_bounds = array<i64: 1>, scalar_prefetch = 0 : i64, scratch_operands = 0 : i64, tpu.core_type = #tpu.core_type<tc>, window_params = [{pipeline_mode = #tpu.pipeline_mode<synchronous>, transform_indices = @transform_0, window_bounds = array<i64: 2, 16, 16, 128>}, {transform_indices = @transform_1, window_bounds = array<i64: 3, 384, 128>}, {transform_indices = @transform_2, window_bounds = array<i64: 1, 128>}, {transform_indices = @transform_3, window_bounds = array<i64: 1, 128>}, {transform_indices = @transform_4, window_bounds = array<i64: 2, 16, 16, 128>}, {transform_indices = @transform_5, window_bounds = array<i64: 2, 16, 16, 128>}]} {
    %c0 = arith.constant 0 : index
    %c0_0 = arith.constant 0 : index
    %c0_1 = arith.constant 0 : index
    %c0_2 = arith.constant 0 : index
    %0 = vector.load %arg1[%c0, %c0_0, %c0_1, %c0_2] : memref<2x16x16x128xbf16, #tpu.memory_space<vmem>>, vector<2x16x16x128xbf16>
    %1 = vector.extract_strided_slice %0 {offsets = [0, 1, 0, 0], sizes = [2, 1, 16, 128], strides = [1, 1, 1, 1]} : vector<2x16x16x128xbf16> to vector<2x1x16x128xbf16>
    %2 = vector.extract_strided_slice %0 {offsets = [0, 14, 0, 0], sizes = [2, 1, 16, 128], strides = [1, 1, 1, 1]} : vector<2x16x16x128xbf16> to vector<2x1x16x128xbf16>
    %3 = tpu.concatenate %1, %0, %2 in 1 : vector<2x1x16x128xbf16>, vector<2x16x16x128xbf16>, vector<2x1x16x128xbf16> -> vector<2x18x16x128xbf16>
    %4 = vector.extract_strided_slice %3 {offsets = [0, 0, 1, 0], sizes = [2, 18, 1, 128], strides = [1, 1, 1, 1]} : vector<2x18x16x128xbf16> to vector<2x18x1x128xbf16>
    %5 = vector.extract_strided_slice %3 {offsets = [0, 0, 0, 0], sizes = [2, 18, 15, 128], strides = [1, 1, 1, 1]} : vector<2x18x16x128xbf16> to vector<2x18x15x128xbf16>
    %6 = tpu.concatenate %4, %5 in 2 : vector<2x18x1x128xbf16>, vector<2x18x15x128xbf16> -> vector<2x18x16x128xbf16>
    %7 = vector.extract_strided_slice %3 {offsets = [0, 0, 1, 0], sizes = [2, 18, 15, 128], strides = [1, 1, 1, 1]} : vector<2x18x16x128xbf16> to vector<2x18x15x128xbf16>
    %8 = vector.extract_strided_slice %3 {offsets = [0, 0, 14, 0], sizes = [2, 18, 1, 128], strides = [1, 1, 1, 1]} : vector<2x18x16x128xbf16> to vector<2x18x1x128xbf16>
    %9 = tpu.concatenate %7, %8 in 2 : vector<2x18x15x128xbf16>, vector<2x18x1x128xbf16> -> vector<2x18x16x128xbf16>
    %10 = tpu.concatenate %6, %3, %9 in 3 : vector<2x18x16x128xbf16>, vector<2x18x16x128xbf16>, vector<2x18x16x128xbf16> -> vector<2x18x16x384xbf16>
    %11 = vector.extract_strided_slice %10 {offsets = [0, 0, 0, 0], sizes = [2, 16, 16, 384], strides = [1, 1, 1, 1]} : vector<2x18x16x384xbf16> to vector<2x16x16x384xbf16>
    %12 = vector.shape_cast %11 : vector<2x16x16x384xbf16> to vector<512x384xbf16>
    %c0_3 = arith.constant 0 : index
    %c0_4 = arith.constant 0 : index
    %c0_5 = arith.constant 0 : index
    %13 = vector.load %arg2[%c0_3, %c0_4, %c0_5] : memref<3x384x128xbf16, #tpu.memory_space<vmem>>, vector<1x384x128xbf16>
    %14 = vector.shape_cast %13 : vector<1x384x128xbf16> to vector<384x128xbf16>
    %cst = arith.constant dense<0.000000e+00> : vector<512x128xf32>
    %15 = tpu.matmul %12, %14, %cst {dimension_numbers = #tpu.dot_dimension_numbers<[1], [0], [0], [1], [0, 0, 1, 1], [], []>} : vector<512x384xbf16>, vector<384x128xbf16>, vector<512x128xf32> -> vector<512x128xf32>
    %16 = vector.extract_strided_slice %10 {offsets = [0, 1, 0, 0], sizes = [2, 16, 16, 384], strides = [1, 1, 1, 1]} : vector<2x18x16x384xbf16> to vector<2x16x16x384xbf16>
    %17 = vector.shape_cast %16 : vector<2x16x16x384xbf16> to vector<512x384xbf16>
    %c1 = arith.constant 1 : index
    %c0_6 = arith.constant 0 : index
    %c0_7 = arith.constant 0 : index
    %18 = vector.load %arg2[%c1, %c0_6, %c0_7] : memref<3x384x128xbf16, #tpu.memory_space<vmem>>, vector<1x384x128xbf16>
    %19 = vector.shape_cast %18 : vector<1x384x128xbf16> to vector<384x128xbf16>
    %cst_8 = arith.constant dense<0.000000e+00> : vector<512x128xf32>
    %20 = tpu.matmul %17, %19, %cst_8 {dimension_numbers = #tpu.dot_dimension_numbers<[1], [0], [0], [1], [0, 0, 1, 1], [], []>} : vector<512x384xbf16>, vector<384x128xbf16>, vector<512x128xf32> -> vector<512x128xf32>
    %21 = arith.addf %15, %20 : vector<512x128xf32>
    %22 = vector.extract_strided_slice %10 {offsets = [0, 2, 0, 0], sizes = [2, 16, 16, 384], strides = [1, 1, 1, 1]} : vector<2x18x16x384xbf16> to vector<2x16x16x384xbf16>
    %23 = vector.shape_cast %22 : vector<2x16x16x384xbf16> to vector<512x384xbf16>
    %c2 = arith.constant 2 : index
    %c0_9 = arith.constant 0 : index
    %c0_10 = arith.constant 0 : index
    %24 = vector.load %arg2[%c2, %c0_9, %c0_10] : memref<3x384x128xbf16, #tpu.memory_space<vmem>>, vector<1x384x128xbf16>
    %25 = vector.shape_cast %24 : vector<1x384x128xbf16> to vector<384x128xbf16>
    %cst_11 = arith.constant dense<0.000000e+00> : vector<512x128xf32>
    %26 = tpu.matmul %23, %25, %cst_11 {dimension_numbers = #tpu.dot_dimension_numbers<[1], [0], [0], [1], [0, 0, 1, 1], [], []>} : vector<512x384xbf16>, vector<384x128xbf16>, vector<512x128xf32> -> vector<512x128xf32>
    %27 = arith.addf %21, %26 : vector<512x128xf32>
    %cst_12 = arith.constant dense<0.000000e+00> : vector<128xf32>
    %28 = vector.multi_reduction <add>, %27, %cst_12 [0] : vector<512x128xf32> to vector<128xf32>
    %29 = vector.shape_cast %28 : vector<128xf32> to vector<1x128xf32>
    %30 = arith.mulf %27, %27 : vector<512x128xf32>
    %cst_13 = arith.constant dense<0.000000e+00> : vector<128xf32>
    %31 = vector.multi_reduction <add>, %30, %cst_13 [0] : vector<512x128xf32> to vector<128xf32>
    %32 = vector.shape_cast %31 : vector<128xf32> to vector<1x128xf32>
    %cst_14 = arith.constant 0.001953125 : f32
    %33 = vector.broadcast %cst_14 : f32 to vector<1x128xf32>
    %34 = arith.mulf %29, %33 : vector<1x128xf32>
    %cst_15 = arith.constant 0.001953125 : f32
    %35 = vector.broadcast %cst_15 : f32 to vector<1x128xf32>
    %36 = arith.mulf %32, %35 : vector<1x128xf32>
    %37 = arith.mulf %34, %34 : vector<1x128xf32>
    %38 = arith.subf %36, %37 : vector<1x128xf32>
    %cst_16 = arith.constant 0.000000e+00 : f32
    %39 = vector.broadcast %cst_16 : f32 to vector<1x128xf32>
    %40 = arith.maximumf %38, %39 : vector<1x128xf32>
    %c0_17 = arith.constant 0 : index
    %c0_18 = arith.constant 0 : index
    %41 = vector.load %arg3[%c0_17, %c0_18] : memref<1x128xf32, #tpu.memory_space<vmem>>, vector<1x128xf32>
    %cst_19 = arith.constant 9.99999974E-6 : f32
    %42 = vector.broadcast %cst_19 : f32 to vector<1x128xf32>
    %43 = arith.addf %40, %42 : vector<1x128xf32>
    %44 = math.rsqrt %43 : vector<1x128xf32>
    %45 = arith.mulf %41, %44 : vector<1x128xf32>
    %c0_20 = arith.constant 0 : index
    %c0_21 = arith.constant 0 : index
    %46 = vector.load %arg4[%c0_20, %c0_21] : memref<1x128xf32, #tpu.memory_space<vmem>>, vector<1x128xf32>
    %47 = arith.mulf %34, %45 : vector<1x128xf32>
    %48 = arith.subf %46, %47 : vector<1x128xf32>
    %49 = vector.broadcast %45 : vector<1x128xf32> to vector<512x128xf32>
    %50 = arith.mulf %27, %49 : vector<512x128xf32>
    %51 = vector.broadcast %48 : vector<1x128xf32> to vector<512x128xf32>
    %52 = arith.addf %50, %51 : vector<512x128xf32>
    %c0_22 = arith.constant 0 : index
    %c0_23 = arith.constant 0 : index
    %c0_24 = arith.constant 0 : index
    %c0_25 = arith.constant 0 : index
    %53 = vector.load %arg5[%c0_22, %c0_23, %c0_24, %c0_25] : memref<2x16x16x128xf32, #tpu.memory_space<vmem>>, vector<2x16x16x128xf32>
    %54 = vector.shape_cast %53 : vector<2x16x16x128xf32> to vector<512x128xf32>
    %55 = arith.addf %52, %54 : vector<512x128xf32>
    %56 = vector.shape_cast %55 : vector<512x128xf32> to vector<2x16x16x128xf32>
    %c0_26 = arith.constant 0 : index
    %c0_27 = arith.constant 0 : index
    %c0_28 = arith.constant 0 : index
    %c0_29 = arith.constant 0 : index
    %57 = vector.load %arg6[%c0_26, %c0_27, %c0_28, %c0_29] : memref<2x16x16x128xf32, #tpu.memory_space<vmem>>, vector<2x16x16x128xf32>
    tpu.vector_store %arg6[%c0_26, %c0_27, %c0_28, %c0_29], %56 {strides = array<i32>} : memref<2x16x16x128xf32, #tpu.memory_space<vmem>>, vector<2x16x16x128xf32>,
    return
  }
  func.func @transform_0(%arg0: i32) -> (i32, i32, i32, i32) {
    %c0_i32 = arith.constant 0 : i32
    %c0_i32_0 = arith.constant 0 : i32
    %c0_i32_1 = arith.constant 0 : i32
    %c0_i32_2 = arith.constant 0 : i32
    %c0_i32_3 = arith.constant 0 : i32
    return %c0_i32, %c0_i32_0, %c0_i32_1, %c0_i32_2 : i32, i32, i32, i32
  }
  func.func @transform_1(%arg0: i32) -> (i32, i32, i32) {
    %c0_i32 = arith.constant 0 : i32
    %c0_i32_0 = arith.constant 0 : i32
    %c0_i32_1 = arith.constant 0 : i32
    return %c0_i32, %c0_i32_0, %arg0 : i32, i32, i32
  }
  func.func @transform_2(%arg0: i32) -> (i32, i32) {
    %c0_i32 = arith.constant 0 : i32
    %c0_i32_0 = arith.constant 0 : i32
    return %c0_i32, %arg0 : i32, i32
  }
  func.func @transform_3(%arg0: i32) -> (i32, i32) {
    %c0_i32 = arith.constant 0 : i32
    %c0_i32_0 = arith.constant 0 : i32
    return %c0_i32, %arg0 : i32, i32
  }
  func.func @transform_4(%arg0: i32) -> (i32, i32, i32, i32) {
    %c0_i32 = arith.constant 0 : i32
    %c0_i32_0 = arith.constant 0 : i32
    %c0_i32_1 = arith.constant 0 : i32
    %c0_i32_2 = arith.constant 0 : i32
    return %c0_i32, %c0_i32_0, %c0_i32_1, %arg0 : i32, i32, i32, i32
  }
  func.func @transform_5(%arg0: i32) -> (i32, i32, i32, i32) {
    %c0_i32 = arith.constant 0 : i32
    %c0_i32_0 = arith.constant 0 : i32
    %c0_i32_1 = arith.constant 0 : i32
    %c0_i32_2 = arith.constant 0 : i32
    return %c0_i32, %c0_i32_0, %c0_i32_1, %arg0 : i32, i32, i32, i32
  }
}

</mosaic_0001>

<bundles_post_ra>
// kernel: resnet_block_forward.2
= control target key start
LH: loop header
LB: loop body
LE: loop exit
PB: predicated region body
PF: predicated region fallthrough
CT: control target
= control target key end

     0   :  { %vm721_vm0 = vcmask 1040384   ;;  %vm722_vm1 = vsmask.f32 256  ;;  %vm1044_vm3 = vcmask 1047552   ;;  %vm1045_vm4 = vsmask.f32 7424  ;;  %s7572_s1 = inlined_call_operand.vmem [shape: bf16[3,384,128], index: 1, kind: input, shape index: {}]   ;;  %s7573_s0 = inlined_call_operand.vmem [shape: f32[2,16,16,128], index: 0, kind: input, shape index: {}]   ;;  %s7574_s2 = inlined_call_operand.vmem [shape: f32[1,128], index: 2, kind: input, shape index: {}]   ;;  %s7575_s3 = inlined_call_operand.vmem [shape: f32[1,128], index: 3, kind: input, shape index: {}]   ;;  %s7576_s4 = inlined_call_operand.vmem [shape: bf16[2,16,16,128], index: 4, kind: output, shape index: {}]  }
   0x1   :  { %v4242_v0 = vld [vmem:[%s7572_s1 + $0xf8] sm:$0xff]  ;;  %v4241_v1 = vld [vmem:[%s7572_s1 + $0xf0] sm:$0xff]  ;;  %v17_v2 = vld [vmem:[%s7573_s0] sm:$0xff] }
   0x2   :  { %1352 = vmatpush.bf16.msra.mxu0 %v4242_v0  ;;  %4474 = vmatpush.bf16.msra.mxu1 %v4242_v0  ;;  %v18_v3 = vld [vmem:[%s7573_s0 + $0x8] sm:$0xff]  ;;  %v33_v4 = vld [vmem:[%s7573_s0 + $0x80] sm:$0xff]  ;;  %v81_v8 = vpack.c.bf16 %v17_v2, %v17_v2  ;;  %v4238_v30 = vld [vmem:[%s7572_s1 + $0xd8] sm:$0xff] }
   0x3   :  { %4475 = vmatpush.bf16.msra.mxu2 %v4242_v0  ;;  %4476 = vmatpush.bf16.msra.mxu3 %v4242_v0  ;;  %v34_v5 = vld [vmem:[%s7573_s0 + $0x88] sm:$0xff]  ;;  %v49_v6 = vld [vmem:[%s7573_s0 + $0x100] sm:$0xff]  ;;  %v82_v9 = vpack.c.bf16 %v18_v3, %v18_v3  ;;  %v97_v10 = vpack.c.bf16 %v33_v4, %v33_v4  ;;  %v19_v33 = vld [vmem:[%s7573_s0 + $0x10] sm:$0xff] }
   0x4   :  { %v50_v7 = vld [vmem:[%s7573_s0 + $0x108] sm:$0xff]  ;;  %v98_v11 = vpack.c.bf16 %v34_v5, %v34_v5  ;;  %v65_v12 = vld [vmem:[%s7573_s0 + $0x180] sm:$0xff]  ;;  %v113_v15 = vpack.c.bf16 %v49_v6, %v49_v6  ;;  %v4558_v19 = vunpack.c.l.b16 %v81_v8  ;;  %v20_v34 = vld [vmem:[%s7573_s0 + $0x18] sm:$0xff]  ;;  %v83_v47 = vpack.c.bf16 %v19_v33, %v19_v33 }
   0x5   :  { %v66_v13 = vld [vmem:[%s7573_s0 + $0x188] sm:$0xff]  ;;  %v114_v16 = vpack.c.bf16 %v50_v7, %v50_v7  ;;  %v129_v17 = vpack.c.bf16 %v65_v12, %v65_v12  ;;  %v4560_v20 = vunpack.c.l.b16 %v82_v9  ;;  %v4562_v21 = vunpack.c.l.b16 %v97_v10  ;;  %v4239_v23 = vld [vmem:[%s7572_s1 + $0xe0] sm:$0xff]  ;;  %v35_v37 = vld [vmem:[%s7573_s0 + $0x90] sm:$0xff] }
   0x6   :  { %1353 = vmatpush.bf16.msra.mxu0 %v4241_v1  ;;  %4477 = vmatpush.bf16.msra.mxu1 %v4241_v1  ;;  %v4240_v14 = vld [vmem:[%s7572_s1 + $0xe8] sm:$0xff]  ;;  %v130_v18 = vpack.c.bf16 %v66_v13, %v66_v13  ;;  %v4564_v22 = vunpack.c.l.b16 %v98_v11  ;;  %v4569_v24 = vunpack.c.l.b16 %v113_v15  ;;  %v36_v38 = vld [vmem:[%s7573_s0 + $0x98] sm:$0xff]  ;;  %v4237_v39 = vld [vmem:[%s7572_s1 + $0xd0] sm:$0xff]  ;;  %v210_v40 = vpack.c.b16 %v4558_v19, %v4558_v19 }
   0x7   :  { %4478 = vmatpush.bf16.msra.mxu2 %v4241_v1  ;;  %4479 = vmatpush.bf16.msra.mxu3 %v4241_v1  ;;  %v4571_v25 = vunpack.c.l.b16 %v114_v16  ;;  %v4573_v26 = vunpack.c.l.b16 %v129_v17  ;;  %v4579_v28 = vpack.c.b16 %v4560_v20, %v4558_v19  ;;  %v217_v41 = vpack.c.b16 %v4562_v21, %v4562_v21  ;;  %v51_v44 = vld [vmem:[%s7573_s0 + $0x110] sm:$0xff]  ;;  %v52_v49 = vld [vmem:[%s7573_s0 + $0x118] sm:$0xff]  ;;  %v4236_v60 = vld [vmem:[%s7572_s1 + $0xc8] sm:$0xff] }
   0x8   :  { %v4575_v27 = vunpack.c.l.b16 %v130_v18  ;;  %v4583_v29 = vpack.c.b16 %v4564_v22, %v4562_v21  ;;  %v226_v42 = vpack.c.b16 %v4569_v24, %v4569_v24  ;;  %v84_v48 = vpack.c.bf16 %v20_v34, %v20_v34  ;;  %v67_v50 = vld [vmem:[%s7573_s0 + $0x190] sm:$0xff]  ;;  %v68_v51 = vld [vmem:[%s7573_s0 + $0x198] sm:$0xff]  ;;  %v4235_v12 = vld [vmem:[%s7572_s1 + $0xc0] sm:$0xff] }
   0x9   :  { %7818 = vst [vmem:[#allocation2_spill] sm:$0xff] %v4571_v25  ;;  %v4590_v31 = vpack.c.b16 %v4571_v25, %v4569_v24  ;;  %v7592_v35 = vshrl.u32 %v4579_v28, 16  ;;  %v7593_v45 = vshll.u32 %v4579_v28, 16  ;;  %v233_v53 = vpack.c.b16 %v4573_v26, %v4573_v26  ;;  %vm4667_vm2 = vmand %vm721_vm0, %vm722_vm1  ;;  %v4258_v24 = vld [vmem:[%s7572_s1 + $0x178] sm:$0xff]  ;;  %v21_v34 = vld [vmem:[%s7573_s0 + $0x20] sm:$0xff] }
   0xa   :  { %1354 = vmatpush.bf16.msra.mxu0 %v4240_v14  ;;  %4480 = vmatpush.bf16.msra.mxu1 %v4240_v14  ;;  %7819 = vst [vmem:[#allocation3_spill] sm:$0xff] %v4575_v27  ;;  %v4594_v32 = vpack.c.b16 %v4575_v27, %v4573_v26  ;;  %v7587_v36 = vshrl.u32 %v4583_v29, 16  ;;  %v7588_v52 = vshll.u32 %v4583_v29, 16  ;;  %v99_v54 = vpack.c.bf16 %v35_v37, %v35_v37  ;;  %v4218_v26 = vld [vmem:[%s7572_s1 + $0x38] sm:$0xff]  ;;  %vm5513_vm5 = vmand %vm1044_vm3, %vm1045_vm4 }
   0xb   :  { %4481 = vmatpush.bf16.msra.mxu2 %v4240_v14  ;;  %4482 = vmatpush.bf16.msra.mxu3 %v4240_v14  ;;  %7820 = vst [vmem:[#allocation4_spill] sm:$0xff] %v4590_v31  ;;  %v7583_v43 = vshrl.u32 %v4590_v31, 16  ;;  %v100_v55 = vpack.c.bf16 %v36_v38, %v36_v38  ;;  %v475_v56 = vrot.slane %v7592_v35, 7  ;;  %v7584_v58 = vshll.u32 %v4590_v31, 16 }
   0xc   :  { %7821 = vst [vmem:[#allocation5_spill] sm:$0xff] %v4594_v32  ;;  %v7577_v46 = vshrl.u32 %v4594_v32, 16  ;;  %v524_v57 = vrot.slane %v7587_v36, 7  ;;  %v115_v59 = vpack.c.bf16 %v51_v44, %v51_v44  ;;  %v116_v62 = vpack.c.bf16 %v52_v49, %v52_v49  ;;  %v4250_v44 = vld [vmem:[%s7572_s1 + $0x138] sm:$0xff] }
   0xd   :  { %v587_v61 = vrot.slane %v7583_v43, 7  ;;  %v131_v63 = vpack.c.bf16 %v67_v50, %v67_v50  ;;  %v132_v0 = vpack.c.bf16 %v68_v51, %v68_v51  ;;  %v7580_v2 = vshll.u32 %v4594_v32, 16  ;;  %v4257_v50 = vld [vmem:[%s7572_s1 + $0x170] sm:$0xff]  ;;  %v72_v43 = vld [vmem:[%s7573_s0 + $0x1b8] sm:$0xff] }
   0xe   :  { %1355 = vmatpush.bf16.msra.mxu0 %v4239_v23  ;;  %4483 = vmatpush.bf16.msra.mxu1 %v4239_v23  ;;  %v636_v1 = vrot.slane %v7577_v46, 7  ;;  %v4650_v3 = vunpack.c.l.b16 %v83_v47  ;;  %v4652_v4 = vunpack.c.l.b16 %v84_v48  ;;  %v245_v5 = vshrl.u32 %v210_v40, 16  ;;  %v22_v40 = vld [vmem:[%s7573_s0 + $0x28] sm:$0xff]  ;;  %v4226_v47 = vld [vmem:[%s7572_s1 + $0x78] sm:$0xff]  ;;  %v4217_v51 = vld [vmem:[%s7572_s1 + $0x30] sm:$0xff] }
   0xf   :  { %4484 = vmatpush.bf16.msra.mxu2 %v4239_v23  ;;  %4485 = vmatpush.bf16.msra.mxu3 %v4239_v23  ;;  %v4654_v6 = vunpack.c.l.b16 %v99_v54  ;;  %v4656_v7 = vunpack.c.l.b16 %v100_v55  ;;  %v478_v8 = vor.u32 %v7593_v45, %v475_v56  ;;  %v266_v9 = vshrl.u32 %v217_v41, 16  ;;  %v4249_v54 = vld [vmem:[%s7572_s1 + $0x130] sm:$0xff] }
  0x10   :  { %v527_v10 = vor.u32 %v7588_v52, %v524_v57  ;;  %v293_v11 = vshrl.u32 %v226_v42, 16  ;;  %v4671_v14 = vunpack.c.l.b16 %v115_v59  ;;  %v4673_v15 = vunpack.c.l.b16 %v116_v62  ;;  %v38_v62 = vld [vmem:[%s7573_s0 + $0xa8] sm:$0xff] }
  0x11   :  { %v4675_v16 = vunpack.c.l.b16 %v131_v63  ;;  %v4677_v17 = vunpack.c.l.b16 %v132_v0  ;;  %v590_v18 = vor.u32 %v7584_v58, %v587_v61  ;;  %v314_v19 = vshrl.u32 %v233_v53, 16  ;;  %v37_v61 = vld [vmem:[%s7573_s0 + $0xa0] sm:$0xff] }
  0x12   :  { %1356 = vmatpush.bf16.msra.mxu0 %v4238_v30  ;;  %4486 = vmatpush.bf16.msra.mxu1 %v4238_v30  ;;  %7824 = vst [vmem:[#allocation6_spill] sm:$0xff] %v4673_v15  ;;  %v639_v21 = vor.u32 %v7580_v2, %v636_v1  ;;  %v4685_v23 = vpack.c.b16 %v4652_v4, %v4650_v3  ;;  %v4247_v2 = vld [vmem:[%s7572_s1 + $0x120] sm:$0xff]  ;;  %v7923_v13 = vshrl.u32 %v4579_v28, 16 }
  0x13   :  { %4487 = vmatpush.bf16.msra.mxu2 %v4238_v30  ;;  %4488 = vmatpush.bf16.msra.mxu3 %v4238_v30  ;;  %7825 = vst [vmem:[#allocation7_spill] sm:$0xff] %v4677_v17  ;;  %v4695_v30 = vpack.c.b16 %v4656_v7, %v4654_v6  ;;  %v4699_v33 = vsel %vm4667_vm2, %v245_v5, %v478_v8  ;;  %v53_v5 = vld [vmem:[%s7573_s0 + $0x120] sm:$0xff]  ;;  %v54_v8 = vld [vmem:[%s7573_s0 + $0x128] sm:$0xff] }
  0x14   :  { %7826 = vst [vmem:[#allocation8_spill] sm:$0xff] %v4685_v23  ;;  %v4706_v37 = vsel %vm4667_vm2, %v266_v9, %v527_v10  ;;  %v4710_v38 = vpack.c.b16 %v4673_v15, %v4671_v14  ;;  %v4721_v41 = vsel %vm4667_vm2, %v293_v11, %v590_v18  ;;  %v4725_v42 = vsel %vm4667_vm2, %v314_v19, %v639_v21  ;;  %v69_v9 = vld [vmem:[%s7573_s0 + $0x1a0] sm:$0xff]  ;;  %v70_v18 = vld [vmem:[%s7573_s0 + $0x1a8] sm:$0xff] }
  0x15   :  { %7829 = vst [vmem:[#allocation11_spill] sm:$0xff] %v4721_v41  ;;  %v7590_v48 = vshrl.u32 %v4685_v23, 16  ;;  %v7585_v49 = vshrl.u32 %v4695_v30, 16  ;;  %v85_v53 = vpack.c.bf16 %v21_v34, %v21_v34  ;;  %v86_v55 = vpack.c.bf16 %v22_v40, %v22_v40  ;;  %v4256_v19 = vld [vmem:[%s7572_s1 + $0x168] sm:$0xff]  ;;  %v4223_v58 = vld [vmem:[%s7572_s1 + $0x60] sm:$0xff] }
  0x16   :  { %1357 = vmatpush.bf16.msra.mxu0 %v4237_v39  ;;  %4489 = vmatpush.bf16.msra.mxu1 %v4237_v39  ;;  %7827 = vst [vmem:[#allocation9_spill] sm:$0xff] %v4710_v38  ;;  %v209_v56 = vpack.c.b16 %v4650_v3, %v4650_v3  ;;  %v7581_v57 = vshrl.u32 %v4710_v38, 16  ;;  %v7591_v0 = vshll.u32 %v4685_v23, 16  ;;  %v218_v1 = vpack.c.b16 %v4654_v6, %v4654_v6  ;;  %v4216_v21 = vld [vmem:[%s7572_s1 + $0x28] sm:$0xff] }
  0x17   :  { %4490 = vmatpush.bf16.msra.mxu2 %v4237_v39  ;;  %4491 = vmatpush.bf16.msra.mxu3 %v4237_v39  ;;  %v4714_v39 = vpack.c.b16 %v4677_v17, %v4675_v16  ;;  %7830 = vst [vmem:[#allocation12_spill] sm:$0xff] %v4725_v42  ;;  %v468_v63 = vrot.slane %v7590_v48, 7  ;;  %v7586_v3 = vshll.u32 %v4695_v30, 16  ;;  %v531_v10 = vrot.slane %v7585_v49, 7 }
  0x18   :  { %v225_v6 = vpack.c.b16 %v4671_v14, %v4671_v14  ;;  %v7582_v11 = vshll.u32 %v4710_v38, 16  ;;  %v234_v14 = vpack.c.b16 %v4675_v16, %v4675_v16  ;;  %v102_v34 = vpack.c.bf16 %v38_v62, %v38_v62  ;;  %v4248_v16 = vld [vmem:[%s7572_s1 + $0x128] sm:$0xff] }
  0x19   :  { %7828 = vst [vmem:[#allocation10_spill] sm:$0xff] %v4714_v39  ;;  %v7578_v59 = vshrl.u32 %v4714_v39, 16  ;;  %v580_v40 = vrot.slane %v7581_v57, 7  ;;  %v134_v46 = vpack.c.bf16 %v70_v18, %v70_v18  ;;  %v471_v62 = vor.u32 %v7591_v0, %v468_v63 }
  0x1a   :  { %1358 = vmatpush.bf16.msra.mxu0 %v4236_v60  ;;  %4492 = vmatpush.bf16.msra.mxu1 %v4236_v60  ;;  %v317_v18 = vshrl.u32 %v234_v14, 16 }
  0x1b   :  { %4493 = vmatpush.bf16.msra.mxu2 %v4236_v60  ;;  %4494 = vmatpush.bf16.msra.mxu3 %v4236_v60  ;;  %v4225_v60 = vld [vmem:[%s7572_s1 + $0x70] sm:$0xff] }
  0x1e   :  { %1359 = vmatpush.bf16.msra.mxu0 %v4235_v12  ;;  %4495 = vmatpush.bf16.msra.mxu1 %v4235_v12 }
  0x1f   :  { %4496 = vmatpush.bf16.msra.mxu2 %v4235_v12  ;;  %4497 = vmatpush.bf16.msra.mxu3 %v4235_v12  ;;  %v4781_v12 = vunpack.c.l.b16 %v85_v53  ;;  %v133_v53 = vpack.c.bf16 %v69_v9, %v69_v9  ;;  %v583_v9 = vor.u32 %v7582_v11, %v580_v40  ;;  %v71_v11 = vld [vmem:[%s7573_s0 + $0x1b0] sm:$0xff] }
  0x20   :  { %v135_v49 = vpack.c.bf16 %v71_v11, %v71_v11 }
  0x21   :  { %1360 = vmatmul.bf16.vlgmr.msra.gmra.mxu0 %v4699_v33  ;;  %1400 = vmatmul.bf16.vlgmr.msra.gmra.mxu1 %v4706_v37 }
  0x22   :  { %1440 = vmatmul.bf16.vlgmr.msra.gmra.mxu2 %v4721_v41  ;;  %1480 = vmatmul.bf16.vlgmr.msra.gmra.mxu3 %v4725_v42 }
  0x23   :  { %1690 = vmatpush.bf16.msrb.mxu2 %v4258_v24  ;;  %2003 = vmatpush.bf16.msrb.mxu3 %v4218_v26  ;;  %v4794_v24 = vunpack.c.l.b16 %v86_v55  ;;  %v101_v26 = vpack.c.bf16 %v37_v61, %v37_v61  ;;  %v4224_v55 = vld [vmem:[%s7572_s1 + $0x68] sm:$0xff]  ;;  %v242_v61 = vshrl.u32 %v209_v56, 16 }
  0x24   :  { %1521 = vmatpush.bf16.msrb.mxu1 %v4250_v44  ;;  %2172 = vmatpush.bf16.msrb.mxu0 %v4226_v47  ;;  %v643_v44 = vrot.slane %v7578_v59, 7  ;;  %v7579_v47 = vshll.u32 %v4714_v39, 16  ;;  %v269_v59 = vshrl.u32 %v218_v1, 16 }
  0x25   :  { %v4821_v63 = vpack.c.b16 %v4794_v24, %v4781_v12  ;;  %v4837_v14 = vsel %vm4667_vm2, %v242_v61, %v471_v62  ;;  %v55_v61 = vld [vmem:[%s7573_s0 + $0x130] sm:$0xff]  ;;  %v56_v62 = vld [vmem:[%s7573_s0 + $0x138] sm:$0xff] }
  0x26   :  { %v646_v56 = vor.u32 %v7579_v47, %v643_v44  ;;  %7835 = vst [vmem:[#allocation17_spill] sm:$0xff] %v4837_v14  ;;  %v4215_v47 = vld [vmem:[%s7572_s1 + $0x20] sm:$0xff]  ;;  %v119_v48 = vpack.c.bf16 %v55_v61, %v55_v61  ;;  %v120_v0 = vpack.c.bf16 %v56_v62, %v56_v62 }
  0x27   :  { %1691 = vmatpush.bf16.msrb.mxu2 %v4257_v50  ;;  %2004 = vmatpush.bf16.msrb.mxu3 %v4217_v51  ;;  %v117_v50 = vpack.c.bf16 %v53_v5, %v53_v5  ;;  %v118_v51 = vpack.c.bf16 %v54_v8, %v54_v8  ;;  %v4811_v5 = vunpack.c.l.b16 %v101_v26  ;;  %v4813_v8 = vunpack.c.l.b16 %v102_v34  ;;  %7831 = vst [vmem:[#allocation13_spill] sm:$0xff] %v4821_v63 }
  0x28   :  { %1522 = vmatpush.bf16.msrb.mxu1 %v4249_v54  ;;  %2173 = vmatpush.bf16.msrb.mxu0 %v4225_v60  ;;  %v534_v54 = vor.u32 %v7586_v3, %v531_v10  ;;  %v290_v60 = vshrl.u32 %v225_v6, 16  ;;  %v4827_v10 = vunpack.c.l.b16 %v133_v53  ;;  %v4829_v6 = vunpack.c.l.b16 %v134_v46  ;;  %v39_v53 = vld [vmem:[%s7573_s0 + $0xb0] sm:$0xff] }
  0x29   :  { %v4823_v1 = vunpack.c.l.b16 %v117_v50  ;;  %v4849_v46 = vsel %vm4667_vm2, %v317_v18, %v646_v56  ;;  %v7589_v40 = vshrl.u32 %v4821_v63, 16  ;;  %v4255_v56 = vld [vmem:[%s7572_s1 + $0x160] sm:$0xff]  ;;  %v103_v36 = vpack.c.bf16 %v39_v53, %v39_v53 }
  0x2a   :  { %7833 = vst [vmem:[#allocation15_spill] sm:$0xff] %v4829_v6  ;;  %v4841_v26 = vsel %vm4667_vm2, %v269_v59, %v534_v54  ;;  %v4845_v34 = vsel %vm4667_vm2, %v290_v60, %v583_v9  ;;  %v4858_v50 = vpack.c.b16 %v4829_v6, %v4827_v10  ;;  %v23_v59 = vld [vmem:[%s7573_s0 + $0x30] sm:$0xff]  ;;  %v211_v54 = vpack.c.b16 %v4781_v12, %v4781_v12 }
  0x2b   :  { %1692 = vmatpush.bf16.msrb.mxu2 %v4256_v19  ;;  %2005 = vmatpush.bf16.msrb.mxu3 %v4216_v21  ;;  %v4825_v19 = vunpack.c.l.b16 %v118_v51  ;;  %v4833_v21 = vpack.c.b16 %v4813_v8, %v4811_v5  ;;  %7836 = vst [vmem:[#allocation18_spill] sm:$0xff] %v4845_v34  ;;  %v24_v51 = vld [vmem:[%s7573_s0 + $0x38] sm:$0xff]  ;;  %v7599_v60 = vshll.u32 %v4821_v63, 16  ;;  %v219_v9 = vpack.c.b16 %v4811_v5, %v4811_v5 }
  0x2c   :  { %1523 = vmatpush.bf16.msrb.mxu1 %v4248_v16  ;;  %2174 = vmatpush.bf16.msrb.mxu0 %v4224_v55  ;;  %7837 = vst [vmem:[#allocation19_spill] sm:$0xff] %v4849_v46  ;;  %v40_v55 = vld [vmem:[%s7573_s0 + $0xb8] sm:$0xff]  ;;  %v87_v18 = vpack.c.bf16 %v23_v59, %v23_v59  ;;  %v482_v12 = vrot.slane %v7589_v40, 7  ;;  %v7594_v5 = vshrl.u32 %v4858_v50, 16  ;;  %v88_v59 = vpack.c.bf16 %v24_v51, %v24_v51 }
  0x2d   :  { %7832 = vst [vmem:[#allocation14_spill] sm:$0xff] %v4825_v19  ;;  %v4854_v44 = vpack.c.b16 %v4825_v19, %v4823_v1  ;;  %v7596_v16 = vshrl.u32 %v4833_v21, 16  ;;  %v227_v3 = vpack.c.b16 %v4823_v1, %v4823_v1  ;;  %v235_v51 = vpack.c.b16 %v4827_v10, %v4827_v10 }
  0x2e   :  { %7834 = vst [vmem:[#allocation16_spill] sm:$0xff] %v4833_v21  ;;  %v104_v40 = vpack.c.bf16 %v40_v55, %v40_v55  ;;  %v4918_v45 = vunpack.c.l.b16 %v87_v18  ;;  %v136_v1 = vpack.c.bf16 %v72_v43, %v72_v43  ;;  %v7597_v53 = vshll.u32 %v4858_v50, 16 }
  0x2f   :  { %7838 = vst [vmem:[#allocation20_spill] sm:$0xff] %v4854_v44  ;;  %v7595_v57 = vshrl.u32 %v4854_v44, 16  ;;  %1693 = vmatpush.bf16.msrb.mxu2 %v4255_v56  ;;  %2006 = vmatpush.bf16.msrb.mxu3 %v4215_v47  ;;  %v538_v52 = vrot.slane %v7596_v16, 7  ;;  %v7598_v35 = vshll.u32 %v4854_v44, 16  ;;  %v650_v47 = vrot.slane %v7594_v5, 7 }
  0x30   :  { %7839 = vst [vmem:[#allocation21_spill] sm:$0xff] %v4858_v50  ;;  %1524 = vmatpush.bf16.msrb.mxu1 %v4247_v2  ;;  %2175 = vmatpush.bf16.msrb.mxu0 %v4223_v58  ;;  %v4925_v56 = vunpack.c.l.b16 %v88_v59  ;;  %v248_v55 = vshrl.u32 %v211_v54, 16  ;;  %v485_v58 = vor.u32 %v7599_v60, %v482_v12  ;;  %v272_v2 = vshrl.u32 %v219_v9, 16 }
  0x31   :  { %1365 = vmatmul.bf16.gmra.mxu0 %v4837_v14  ;;  %1405 = vmatmul.bf16.gmra.mxu1 %v4841_v26  ;;  %v594_v10 = vrot.slane %v7595_v57, 7  ;;  %v4929_v61 = vunpack.c.l.b16 %v103_v36  ;;  %v4931_v62 = vunpack.c.l.b16 %v104_v40  ;;  %v4933_v43 = vunpack.c.l.b16 %v119_v48 }
  0x32   :  { %1445 = vmatmul.bf16.gmra.mxu2 %v4845_v34  ;;  %1485 = vmatmul.bf16.gmra.mxu3 %v4849_v46  ;;  %v4935_v11 = vunpack.c.l.b16 %v120_v0  ;;  %v7842_v18 = vshll.u32 %v4833_v21, 16  ;;  %v296_v57 = vshrl.u32 %v227_v3, 16  ;;  %v4939_v16 = vunpack.c.l.b16 %v135_v49 }
  0x33   :  { %7840 = vst [vmem:[#allocation22_spill] sm:$0xff] %v4931_v62  ;;  %v4941_v59 = vunpack.c.l.b16 %v136_v1  ;;  %v597_v54 = vor.u32 %v7598_v35, %v594_v10  ;;  %v320_v9 = vshrl.u32 %v235_v51, 16  ;;  %v653_v36 = vor.u32 %v7597_v53, %v650_v47  ;;  %v25_v10 = vld [vmem:[%s7573_s0 + $0x40] sm:$0xff]  ;;  %v4246_v53 = vld [vmem:[%s7572_s1 + $0x118] sm:$0xff]  ;;  %v58_v47 = vld [vmem:[%s7573_s0 + $0x148] sm:$0xff] }
  0x34   :  { %7841 = vst [vmem:[#allocation23_spill] sm:$0xff] %v4935_v11  ;;  %v541_v5 = vor.u32 %v7842_v18, %v538_v52  ;;  %v4949_v48 = vpack.c.b16 %v4925_v56, %v4918_v45  ;;  %v4953_v0 = vpack.c.b16 %v4931_v62, %v4929_v61  ;;  %v4957_v52 = vpack.c.b16 %v4935_v11, %v4933_v43 }
  0x35   :  { %7843 = vst [vmem:[#allocation24_spill] sm:$0xff] %v4941_v59  ;;  %v4961_v49 = vsel %vm4667_vm2, %v248_v55, %v485_v58  ;;  %v4969_v40 = vpack.c.b16 %v4941_v59, %v4939_v16  ;;  %v4973_v12 = vsel %vm4667_vm2, %v296_v57, %v597_v54  ;;  %v4977_v51 = vsel %vm4667_vm2, %v320_v9, %v653_v36  ;;  %v41_v55 = vld [vmem:[%s7573_s0 + $0xc0] sm:$0xff]  ;;  %v42_v58 = vld [vmem:[%s7573_s0 + $0xc8] sm:$0xff]  ;;  %v4254_v9 = vld [vmem:[%s7572_s1 + $0x158] sm:$0xff] }
  0x36   :  { %7844 = vst [vmem:[#allocation25_spill] sm:$0xff] %v4949_v48  ;;  %v4965_v3 = vsel %vm4667_vm2, %v272_v2, %v541_v5  ;;  %v7602_v1 = vshrl.u32 %v4949_v48, 16  ;;  %v26_v5 = vld [vmem:[%s7573_s0 + $0x48] sm:$0xff]  ;;  %v212_v2 = vpack.c.b16 %v4918_v45, %v4918_v45  ;;  %v4214_v36 = vld [vmem:[%s7572_s1 + $0x18] sm:$0xff]  ;;  %v220_v45 = vpack.c.b16 %v4929_v61, %v4929_v61  ;;  %v57_v54 = vld [vmem:[%s7573_s0 + $0x140] sm:$0xff]  ;;  %1694 = vmatpush.bf16.msrb.mxu2 %v4254_v9 }
  0x37   :  { %7845 = vst [vmem:[#allocation26_spill] sm:$0xff] %v4953_v0  ;;  %v89_v60 = vpack.c.bf16 %v25_v10, %v25_v10  ;;  %v90_v18 = vpack.c.bf16 %v26_v5, %v26_v5  ;;  %v4222_v57 = vld [vmem:[%s7572_s1 + $0x58] sm:$0xff]  ;;  %v105_v61 = vpack.c.bf16 %v41_v55, %v41_v55  ;;  %v106_v10 = vpack.c.bf16 %v42_v58, %v42_v58  ;;  %v73_v5 = vld [vmem:[%s7573_s0 + $0x1c0] sm:$0xff]  ;;  %v74_v59 = vld [vmem:[%s7573_s0 + $0x1c8] sm:$0xff] }
  0x38   :  { %7846 = vst [vmem:[#allocation27_spill] sm:$0xff] %v4957_v52  ;;  %v489_v35 = vrot.slane %v7602_v1, 7  ;;  %v228_v1 = vpack.c.b16 %v4933_v43, %v4933_v43  ;;  %2007 = vmatpush.bf16.msrb.mxu3 %v4214_v36  ;;  %v7852_v46 = vshrl.u32 %v4953_v0, 16  ;;  %v236_v55 = vpack.c.b16 %v4939_v16, %v4939_v16  ;;  %1525 = vmatpush.bf16.msrb.mxu1 %v4246_v53 }
  0x39   :  { %7847 = vst [vmem:[#allocation28_spill] sm:$0xff] %v4961_v49  ;;  %2176 = vmatpush.bf16.msrb.mxu0 %v4222_v57  ;;  %v7854_v58 = vshrl.u32 %v4969_v40, 16  ;;  %v121_v9 = vpack.c.bf16 %v57_v54, %v57_v54  ;;  %v122_v36 = vpack.c.bf16 %v58_v47, %v58_v47  ;;  %v5043_v17 = vunpack.c.l.b16 %v89_v60 }
  0x3a   :  { %7848 = vst [vmem:[#allocation29_spill] sm:$0xff] %v4965_v3  ;;  %v545_v50 = vrot.slane %v7852_v46, 7  ;;  %v5045_v46 = vunpack.c.l.b16 %v90_v18  ;;  %v137_v32 = vpack.c.bf16 %v73_v5, %v73_v5  ;;  %v251_v27 = vshrl.u32 %v212_v2, 16 }
  0x3b   :  { %7849 = vst [vmem:[#allocation30_spill] sm:$0xff] %v4969_v40  ;;  %v657_v42 = vrot.slane %v7854_v58, 7  ;;  %v5047_v43 = vunpack.c.l.b16 %v105_v61  ;;  %v7856_v16 = vshll.u32 %v4949_v48, 16  ;;  %v275_v57 = vshrl.u32 %v220_v45, 16 }
  0x3c   :  { %7850 = vst [vmem:[#allocation31_spill] sm:$0xff] %v4973_v12  ;;  %v7857_v58 = vshll.u32 %v4953_v0, 16  ;;  %v299_v54 = vshrl.u32 %v228_v1, 16  ;;  %v7858_v60 = vshll.u32 %v4957_v52, 16  ;;  %v323_v18 = vshrl.u32 %v236_v55, 16 }
  0x3d   :  { %7851 = vst [vmem:[#allocation32_spill] sm:$0xff] %v4977_v51  ;;  %v492_v53 = vor.u32 %v7856_v16, %v489_v35  ;;  %v5057_v11 = vunpack.c.l.b16 %v121_v9  ;;  %v7860_v2 = vshll.u32 %v4969_v40, 16  ;;  %v5067_v35 = vunpack.c.l.b16 %v137_v32  ;;  %v27_v9 = vld [vmem:[%s7573_s0 + $0x50] sm:$0xff]  ;;  %v44_v16 = vld [vmem:[%s7573_s0 + $0xd8] sm:$0xff] }
  0x3e   :  { %v548_v39 = vor.u32 %v7857_v58, %v545_v50  ;;  %v213_v58 = vpack.c.b16 %v5043_v17, %v5043_v17  ;;  %v91_v40 = vpack.c.bf16 %v27_v9, %v27_v9 }
  0x3f   :  { %v660_v61 = vor.u32 %v7860_v2, %v657_v42  ;;  %v229_v19 = vpack.c.b16 %v5057_v11, %v5057_v11 }
  0x40   :  { %v5081_v1 = vsel %vm4667_vm2, %v275_v57, %v548_v39  ;;  %v60_v57 = vld [vmem:[%s7573_s0 + $0x158] sm:$0xff]  ;;  %v75_v39 = vld [vmem:[%s7573_s0 + $0x1d0] sm:$0xff] }
  0x41   :  { %1370 = vmatmul.bf16.gmra.mxu0 %v4961_v49  ;;  %1410 = vmatmul.bf16.gmra.mxu1 %v4965_v3  ;;  %7865 = vst [vmem:[#allocation39_spill] sm:$0xff] %v5081_v1  ;;  %v5093_v5 = vsel %vm4667_vm2, %v323_v18, %v660_v61  ;;  %v4245_v18 = vld [vmem:[%s7572_s1 + $0x110] sm:$0xff]  ;;  %v124_v44 = vpack.c.bf16 %v60_v57, %v60_v57  ;;  %v254_v57 = vshrl.u32 %v213_v58, 16 }
  0x42   :  { %1450 = vmatmul.bf16.gmra.mxu2 %v4973_v12  ;;  %1490 = vmatmul.bf16.gmra.mxu3 %v4977_v51  ;;  %v7853_v51 = vshrl.u32 %v4957_v52, 16  ;;  %v5049_v12 = vunpack.c.l.b16 %v106_v10  ;;  %v5065_v10 = vpack.c.b16 %v5045_v46, %v5043_v17  ;;  %7868 = vst [vmem:[#allocation42_spill] sm:$0xff] %v5093_v5  ;;  %v221_v17 = vpack.c.b16 %v5047_v43, %v5047_v43 }
  0x43   :  { %1526 = vmatpush.bf16.msrb.mxu1 %v4245_v18  ;;  %v139_v34 = vpack.c.bf16 %v75_v39, %v75_v39 }
  0x44   :  { %v601_v6 = vrot.slane %v7853_v51, 7  ;;  %v138_v51 = vpack.c.bf16 %v74_v59, %v74_v59  ;;  %7855 = vst [vmem:[#allocation33_spill] sm:$0xff] %v5049_v12  ;;  %v5059_v59 = vunpack.c.l.b16 %v122_v36  ;;  %v5073_v50 = vpack.c.b16 %v5049_v12, %v5047_v43  ;;  %v28_v36 = vld [vmem:[%s7573_s0 + $0x58] sm:$0xff] }
  0x45   :  { %7861 = vst [vmem:[#allocation35_spill] sm:$0xff] %v5065_v10  ;;  %v7623_v55 = vshrl.u32 %v5065_v10, 16  ;;  %v278_v18 = vshrl.u32 %v221_v17, 16  ;;  %v5179_v58 = vunpack.c.l.b16 %v139_v34 }
  0x46   :  { %v604_v47 = vor.u32 %v7858_v60, %v601_v6  ;;  %7859 = vst [vmem:[#allocation34_spill] sm:$0xff] %v5059_v59  ;;  %v5069_v45 = vunpack.c.l.b16 %v138_v51  ;;  %v5077_v6 = vsel %vm4667_vm2, %v251_v27, %v492_v53  ;;  %v5085_v42 = vpack.c.b16 %v5059_v59, %v5057_v11  ;;  %v43_v51 = vld [vmem:[%s7573_s0 + $0xd0] sm:$0xff] }
  0x47   :  { %7863 = vst [vmem:[#allocation37_spill] sm:$0xff] %v5073_v50  ;;  %v59_v53 = vld [vmem:[%s7573_s0 + $0x150] sm:$0xff]  ;;  %v496_v2 = vrot.slane %v7623_v55, 7  ;;  %v7870_v55 = vshrl.u32 %v5073_v50, 16  ;;  %v107_v43 = vpack.c.bf16 %v43_v51, %v43_v51  ;;  %v108_v59 = vpack.c.bf16 %v44_v16, %v44_v16 }
  0x48   :  { %7862 = vst [vmem:[#allocation36_spill] sm:$0xff] %v5069_v45  ;;  %v5089_v32 = vsel %vm4667_vm2, %v299_v54, %v604_v47  ;;  %v5098_v27 = vpack.c.b16 %v5069_v45, %v5067_v35  ;;  %v4253_v60 = vld [vmem:[%s7572_s1 + $0x150] sm:$0xff]  ;;  %v7639_v54 = vshll.u32 %v5073_v50, 16  ;;  %v123_v52 = vpack.c.bf16 %v59_v53, %v59_v53 }
  0x49   :  { %7864 = vst [vmem:[#allocation38_spill] sm:$0xff] %v5077_v6  ;;  %v4213_v47 = vld [vmem:[%s7572_s1 + $0x10] sm:$0xff]  ;;  %v552_v61 = vrot.slane %v7870_v55, 7  ;;  %1695 = vmatpush.bf16.msrb.mxu2 %v4253_v60  ;;  %v7871_v41 = vshrl.u32 %v5085_v42, 16  ;;  %v7638_v9 = vshll.u32 %v5085_v42, 16  ;;  %v5165_v11 = vunpack.c.l.b16 %v91_v40 }
  0x4a   :  { %7866 = vst [vmem:[#allocation40_spill] sm:$0xff] %v5085_v42  ;;  %v4221_v45 = vld [vmem:[%s7572_s1 + $0x50] sm:$0xff]  ;;  %2008 = vmatpush.bf16.msrb.mxu3 %v4213_v47  ;;  %v7872_v51 = vshrl.u32 %v5098_v27, 16  ;;  %v5173_v39 = vunpack.c.l.b16 %v123_v52  ;;  %v302_v40 = vshrl.u32 %v229_v19, 16  ;;  %v77_v42 = vld [vmem:[%s7573_s0 + $0x1e0] sm:$0xff]  ;;  %v238_v38 = vpack.c.b16 %v5179_v58, %v5179_v58 }
  0x4b   :  { %7867 = vst [vmem:[#allocation41_spill] sm:$0xff] %v5089_v32  ;;  %2177 = vmatpush.bf16.msrb.mxu0 %v4221_v45  ;;  %v608_v15 = vrot.slane %v7871_v41, 7  ;;  %v7873_v45 = vshll.u32 %v5065_v10, 16  ;;  %v5169_v41 = vunpack.c.l.b16 %v107_v43 }
  0x4c   :  { %7869 = vst [vmem:[#allocation43_spill] sm:$0xff] %v5098_v27  ;;  %v664_v16 = vrot.slane %v7872_v51, 7  ;;  %v555_v51 = vor.u32 %v7639_v54, %v552_v61  ;;  %v4212_v54 = vld [vmem:[%s7572_s1 + $0x8] sm:$0xff] }
  0x4d   :  { %v499_v60 = vor.u32 %v7873_v45, %v496_v2  ;;  %v45_v45 = vld [vmem:[%s7573_s0 + $0xe0] sm:$0xff] }
  0x4e   :  { %2009 = vmatpush.bf16.msrb.mxu3 %v4212_v54 }
  0x4f   :  { %v5201_v19 = vsel %vm4667_vm2, %v254_v57, %v499_v60  ;;  %v30_v57 = vld [vmem:[%s7573_s0 + $0x68] sm:$0xff]  ;;  %v222_v60 = vpack.c.b16 %v5169_v41, %v5169_v41 }
  0x50   :  { %7881 = vst [vmem:[#allocation50_spill] sm:$0xff] %v5201_v19 }
  0x51   :  { %1375 = vmatmul.bf16.gmra.mxu0 %v5077_v6  ;;  %1415 = vmatmul.bf16.gmra.mxu1 %v5081_v1 }
  0x52   :  { %1455 = vmatmul.bf16.gmra.mxu2 %v5089_v32  ;;  %1495 = vmatmul.bf16.gmra.mxu3 %v5093_v5  ;;  %v76_v5 = vld [vmem:[%s7573_s0 + $0x1d8] sm:$0xff]  ;;  %v92_v32 = vpack.c.bf16 %v28_v36, %v28_v36  ;;  %v237_v36 = vpack.c.b16 %v5067_v35, %v5067_v35  ;;  %v5175_v35 = vunpack.c.l.b16 %v124_v44 }
  0x53   :  { %v140_v55 = vpack.c.bf16 %v76_v5, %v76_v5  ;;  %v5171_v5 = vunpack.c.l.b16 %v108_v59  ;;  %v7877_v59 = vshll.u32 %v5098_v27, 16 }
  0x54   :  { %v5167_v47 = vunpack.c.l.b16 %v92_v32  ;;  %7875 = vst [vmem:[#allocation45_spill] sm:$0xff] %v5175_v35  ;;  %v611_v32 = vor.u32 %v7638_v9, %v608_v15  ;;  %v326_v2 = vshrl.u32 %v237_v36, 16  ;;  %v5197_v34 = vpack.c.b16 %v5175_v35, %v5173_v39  ;;  %v4252_v9 = vld [vmem:[%s7572_s1 + $0x148] sm:$0xff] }
  0x55   :  { %7874 = vst [vmem:[#allocation44_spill] sm:$0xff] %v5171_v5  ;;  %v5181_v53 = vunpack.c.l.b16 %v140_v55  ;;  %v667_v43 = vor.u32 %v7877_v59, %v664_v16  ;;  %v5193_v52 = vpack.c.b16 %v5171_v5, %v5169_v41  ;;  %v5205_v15 = vsel %vm4667_vm2, %v278_v18, %v555_v51  ;;  %v29_v16 = vld [vmem:[%s7573_s0 + $0x60] sm:$0xff]  ;;  %v46_v51 = vld [vmem:[%s7573_s0 + $0xe8] sm:$0xff]  ;;  %1696 = vmatpush.bf16.msrb.mxu2 %v4252_v9 }
  0x56   :  { %v5189_v44 = vpack.c.b16 %v5167_v47, %v5165_v11  ;;  %7880 = vst [vmem:[#allocation49_spill] sm:$0xff] %v5197_v34  ;;  %v5213_v17 = vsel %vm4667_vm2, %v302_v40, %v611_v32  ;;  %v61_v40 = vld [vmem:[%s7573_s0 + $0x160] sm:$0xff]  ;;  %v62_v32 = vld [vmem:[%s7573_s0 + $0x168] sm:$0xff]  ;;  %v94_v36 = vpack.c.bf16 %v30_v57, %v30_v57  ;;  %v109_v59 = vpack.c.bf16 %v45_v45, %v45_v45 }
  0x57   :  { %7876 = vst [vmem:[#allocation46_spill] sm:$0xff] %v5181_v53  ;;  %v5209_v61 = vpack.c.b16 %v5181_v53, %v5179_v58  ;;  %v5217_v55 = vsel %vm4667_vm2, %v326_v2, %v667_v43  ;;  %v214_v2 = vpack.c.b16 %v5165_v11, %v5165_v11  ;;  %v4244_v18 = vld [vmem:[%s7572_s1 + $0x108] sm:$0xff]  ;;  %v93_v11 = vpack.c.bf16 %v29_v16, %v29_v16 }
  0x58   :  { %7878 = vst [vmem:[#allocation47_spill] sm:$0xff] %v5189_v44  ;;  %v4220_v43 = vld [vmem:[%s7572_s1 + $0x48] sm:$0xff]  ;;  %v110_v27 = vpack.c.bf16 %v46_v51, %v46_v51  ;;  %v126_v35 = vpack.c.bf16 %v62_v32, %v62_v32  ;;  %v7887_v16 = vshrl.u32 %v5193_v52, 16  ;;  %v7888_v51 = vshrl.u32 %v5197_v34, 16  ;;  %1527 = vmatpush.bf16.msrb.mxu1 %v4244_v18 }
  0x59   :  { %7879 = vst [vmem:[#allocation48_spill] sm:$0xff] %v5193_v52  ;;  %v78_v41 = vld [vmem:[%s7573_s0 + $0x1e8] sm:$0xff]  ;;  %2178 = vmatpush.bf16.msrb.mxu0 %v4220_v43  ;;  %v7889_v54 = vshrl.u32 %v5209_v61, 16  ;;  %v5283_v31 = vunpack.c.l.b16 %v93_v11  ;;  %v5285_v45 = vunpack.c.l.b16 %v94_v36  ;;  %v257_v58 = vshrl.u32 %v214_v2, 16 }
  0x5a   :  { %7882 = vst [vmem:[#allocation51_spill] sm:$0xff] %v5205_v15  ;;  %v559_v57 = vrot.slane %v7887_v16, 7  ;;  %v142_v25 = vpack.c.bf16 %v78_v41, %v78_v41  ;;  %v5289_v18 = vunpack.c.l.b16 %v110_v27  ;;  %v7892_v32 = vshll.u32 %v5189_v44, 16 }
  0x5b   :  { %7883 = vst [vmem:[#allocation52_spill] sm:$0xff] %v5209_v61  ;;  %v671_v9 = vrot.slane %v7889_v54, 7  ;;  %v281_v5 = vshrl.u32 %v222_v60, 16  ;;  %v7893_v11 = vshll.u32 %v5193_v52, 16  ;;  %v7895_v27 = vshll.u32 %v5209_v61, 16 }
  0x5c   :  { %7884 = vst [vmem:[#allocation53_spill] sm:$0xff] %v5213_v17  ;;  %v5309_v2 = vunpack.c.l.b16 %v142_v25 }
  0x5d   :  { %7885 = vst [vmem:[#allocation54_spill] sm:$0xff] %v5217_v55  ;;  %v562_v16 = vor.u32 %v7893_v11, %v559_v57  ;;  %v674_v1 = vor.u32 %v7895_v27, %v671_v9  ;;  %v4251_v11 = vld [vmem:[%s7572_s1 + $0x140] sm:$0xff]  ;;  %v64_v9 = vld [vmem:[%s7573_s0 + $0x178] sm:$0xff] }
  0x5e   :  { %7890 = vst [vmem:[#allocation55_spill] sm:$0xff] %v5289_v18  ;;  %1697 = vmatpush.bf16.msrb.mxu2 %v4251_v11  ;;  %v128_v52 = vpack.c.bf16 %v64_v9, %v64_v9 }
  0x5f   :  { %7897 = vst [vmem:[#allocation58_spill] sm:$0xff] %v5309_v2  ;;  %v5325_v57 = vsel %vm4667_vm2, %v281_v5, %v562_v16  ;;  %v31_v5 = vld [vmem:[%s7573_s0 + $0x70] sm:$0xff] }
  0x60   :  { %7900 = vst [vmem:[#allocation61_spill] sm:$0xff] %v5325_v57  ;;  %v47_v16 = vld [vmem:[%s7573_s0 + $0xf0] sm:$0xff] }
  0x61   :  { %1380 = vmatmul.bf16.gmra.mxu0 %v5201_v19  ;;  %1420 = vmatmul.bf16.gmra.mxu1 %v5205_v15  ;;  %v5287_v15 = vunpack.c.l.b16 %v109_v59  ;;  %v329_v59 = vshrl.u32 %v238_v38, 16 }
  0x62   :  { %1460 = vmatmul.bf16.gmra.mxu2 %v5213_v17  ;;  %1500 = vmatmul.bf16.gmra.mxu3 %v5217_v55  ;;  %v7886_v55 = vshrl.u32 %v5189_v44, 16  ;;  %v125_v17 = vpack.c.bf16 %v61_v40, %v61_v40  ;;  %v615_v40 = vrot.slane %v7888_v51, 7  ;;  %v5293_v51 = vunpack.c.l.b16 %v126_v35 }
  0x63   :  { %v5305_v35 = vpack.c.b16 %v5285_v45, %v5283_v31 }
  0x64   :  { %v503_v53 = vrot.slane %v7886_v55, 7  ;;  %v230_v55 = vpack.c.b16 %v5173_v39, %v5173_v39  ;;  %v141_v39 = vpack.c.bf16 %v77_v42, %v77_v42  ;;  %v5291_v43 = vunpack.c.l.b16 %v125_v17  ;;  %7891 = vst [vmem:[#allocation56_spill] sm:$0xff] %v5293_v51 }
  0x65   :  { %v7894_v42 = vshll.u32 %v5197_v34, 16  ;;  %7896 = vst [vmem:[#allocation57_spill] sm:$0xff] %v5305_v35  ;;  %v95_v34 = vpack.c.bf16 %v31_v5, %v31_v5 }
  0x66   :  { %v506_v54 = vor.u32 %v7892_v32, %v503_v53  ;;  %v305_v36 = vshrl.u32 %v230_v55, 16  ;;  %v5307_v17 = vunpack.c.l.b16 %v141_v39  ;;  %v5313_v53 = vpack.c.b16 %v5289_v18, %v5287_v15  ;;  %v63_v39 = vld [vmem:[%s7573_s0 + $0x170] sm:$0xff] }
  0x67   :  { %v618_v41 = vor.u32 %v7894_v42, %v615_v40  ;;  %v5317_v60 = vpack.c.b16 %v5293_v51, %v5291_v43  ;;  %v5333_v55 = vsel %vm4667_vm2, %v329_v59, %v674_v1  ;;  %v7662_v40 = vshrl.u32 %v5305_v35, 16  ;;  %v32_v1 = vld [vmem:[%s7573_s0 + $0x78] sm:$0xff]  ;;  %v4243_v42 = vld [vmem:[%s7572_s1 + $0x100] sm:$0xff] }
  0x68   :  { %v5321_v38 = vsel %vm4667_vm2, %v257_v58, %v506_v54  ;;  %7902 = vst [vmem:[#allocation63_spill] sm:$0xff] %v5333_v55  ;;  %v5338_v32 = vpack.c.b16 %v5309_v2, %v5307_v17  ;;  %v48_v58 = vld [vmem:[%s7573_s0 + $0xf8] sm:$0xff]  ;;  %v215_v54 = vpack.c.b16 %v5283_v31, %v5283_v31  ;;  %v223_v31 = vpack.c.b16 %v5287_v15, %v5287_v15 }
  0x69   :  { %7898 = vst [vmem:[#allocation59_spill] sm:$0xff] %v5317_v60  ;;  %v5329_v25 = vsel %vm4667_vm2, %v305_v36, %v618_v41  ;;  %v4211_v36 = vld [vmem:[%s7572_s1] sm:$0xff]  ;;  %v510_v41 = vrot.slane %v7662_v40, 7  ;;  %v7904_v40 = vshrl.u32 %v5313_v53, 16  ;;  %v231_v15 = vpack.c.b16 %v5291_v43, %v5291_v43  ;;  %v80_v51 = vld [vmem:[%s7573_s0 + $0x1f8] sm:$0xff]  ;;  %1528 = vmatpush.bf16.msrb.mxu1 %v4243_v42 }
  0x6a   :  { %7899 = vst [vmem:[#allocation60_spill] sm:$0xff] %v5321_v38  ;;  %v7905_v27 = vshrl.u32 %v5317_v60, 16  ;;  %2010 = vmatpush.bf16.msrb.mxu3 %v4211_v36  ;;  %v239_v2 = vpack.c.b16 %v5307_v17, %v5307_v17  ;;  %v96_v43 = vpack.c.bf16 %v32_v1, %v32_v1  ;;  %v127_v18 = vpack.c.bf16 %v63_v39, %v63_v39 }
  0x6b   :  { %7901 = vst [vmem:[#allocation62_spill] sm:$0xff] %v5329_v25  ;;  %v566_v59 = vrot.slane %v7904_v40, 7  ;;  %v7906_v50 = vshrl.u32 %v5338_v32, 16  ;;  %v7684_v3 = vshll.u32 %v5338_v32, 16  ;;  %v144_v36 = vpack.c.bf16 %v80_v51, %v80_v51 }
  0x6c   :  { %7903 = vst [vmem:[#allocation64_spill] sm:$0xff] %v5338_v32  ;;  %v622_v61 = vrot.slane %v7905_v27, 7  ;;  %v111_v27 = vpack.c.bf16 %v47_v16, %v47_v16  ;;  %v260_v0 = vshrl.u32 %v215_v54, 16  ;;  %v7907_v40 = vshll.u32 %v5305_v35, 16 }
  0x6d   :  { %v678_v12 = vrot.slane %v7906_v50, 7  ;;  %v284_v17 = vshrl.u32 %v223_v31, 16  ;;  %v7908_v5 = vshll.u32 %v5313_v53, 16  ;;  %v7909_v16 = vshll.u32 %v5317_v60, 16 }
  0x6e   :  { %v513_v62 = vor.u32 %v7907_v40, %v510_v41  ;;  %v184_v9 = vunpack.c.l.b16 %v95_v34  ;;  %v192_v50 = vunpack.c.l.b16 %v111_v27  ;;  %v5413_v51 = vunpack.c.l.b16 %v128_v52  ;;  %v4274_v27 = vld [vmem:[%s7572_s1 + $0x1f8] sm:$0xff] }
  0x6f   :  { %v569_v1 = vor.u32 %v7908_v5, %v566_v59  ;;  %v625_v39 = vor.u32 %v7909_v16, %v622_v61  ;;  %v332_v54 = vshrl.u32 %v239_v2, 16  ;;  %v681_v41 = vor.u32 %v7684_v3, %v678_v12  ;;  %2872 = vmatpush.bf16.msra.mxu3 %v4274_v27 }
  0x70   :  { %v5417_v40 = vunpack.c.l.b16 %v144_v36  ;;  %v5424_v34 = vsel %vm4667_vm2, %v260_v0, %v513_v62  ;;  %v216_v36 = vpack.c.b16 %v184_v9, %v184_v9 }
  0x71   :  { %1385 = vmatmul.bf16.gmra.mxu0 %v5321_v38  ;;  %1425 = vmatmul.bf16.gmra.mxu1 %v5325_v57  ;;  %v112_v57 = vpack.c.bf16 %v48_v58, %v48_v58  ;;  %v5409_v58 = vunpack.c.l.b16 %v96_v43  ;;  %7912 = vst [vmem:[#allocation67_spill] sm:$0xff] %v5424_v34  ;;  %v5428_v61 = vsel %vm4667_vm2, %v284_v17, %v569_v1  ;;  %v4266_v43 = vld [vmem:[%s7572_s1 + $0x1b8] sm:$0xff] }
  0x72   :  { %1465 = vmatmul.bf16.gmra.mxu2 %v5329_v25  ;;  %1505 = vmatmul.bf16.gmra.mxu3 %v5333_v55  ;;  %v4219_v55 = vld [vmem:[%s7572_s1 + $0x40] sm:$0xff]  ;;  %v79_v25 = vld [vmem:[%s7573_s0 + $0x1f0] sm:$0xff]  ;;  %7910 = vst [vmem:[#allocation65_spill] sm:$0xff] %v5417_v40  ;;  %v5442_v2 = vsel %vm4667_vm2, %v332_v54, %v681_v41  ;;  %v224_v1 = vpack.c.b16 %v192_v50, %v192_v50  ;;  %v4234_v41 = vld [vmem:[%s7572_s1 + $0xb8] sm:$0xff] }
  0x73   :  { %2179 = vmatpush.bf16.msrb.mxu0 %v4219_v55  ;;  %v143_v11 = vpack.c.bf16 %v79_v25, %v79_v25  ;;  %v308_v55 = vshrl.u32 %v231_v15, 16  ;;  %v5411_v42 = vunpack.c.l.b16 %v112_v57  ;;  %v200_v25 = vunpack.c.l.b16 %v127_v18  ;;  %7916 = vst [vmem:[#allocation71_spill] sm:$0xff] %v5442_v2  ;;  %2703 = vmatpush.bf16.msra.mxu2 %v4266_v43 }
  0x74   :  { %v5420_v59 = vpack.c.b16 %v5409_v58, %v184_v9  ;;  %v4282_v9 = vld [vmem:[%s7572_s1 + $0x238] sm:$0xff]  ;;  %2341 = vmatpush.bf16.msra.mxu1 %v4234_v41 }
  0x75   :  { %v208_v31 = vunpack.c.l.b16 %v143_v11  ;;  %v5431_v52 = vpack.c.b16 %v5411_v42, %v192_v50  ;;  %v5434_v18 = vpack.c.b16 %v5413_v51, %v200_v25  ;;  %v5438_v12 = vsel %vm4667_vm2, %v308_v55, %v625_v39 }
  0x76   :  { %7911 = vst [vmem:[#allocation66_spill] sm:$0xff] %v5420_v59  ;;  %v7687_v0 = vshrl.u32 %v5420_v59, 16  ;;  %v7695_v5 = vshll.u32 %v5420_v59, 16  ;;  %v232_v39 = vpack.c.b16 %v200_v25, %v200_v25  ;;  %v263_v25 = vshrl.u32 %v216_v36, 16 }
  0x77   :  { %7913 = vst [vmem:[#allocation68_spill] sm:$0xff] %v5431_v52  ;;  %v5445_v62 = vpack.c.b16 %v5417_v40, %v208_v31  ;;  %v7686_v57 = vshrl.u32 %v5431_v52, 16  ;;  %v7685_v15 = vshrl.u32 %v5434_v18, 16  ;;  %v7694_v16 = vshll.u32 %v5431_v52, 16  ;;  %3041 = vmatpush.bf16.msra.mxu0 %v4282_v9 }
  0x78   :  { %7914 = vst [vmem:[#allocation69_spill] sm:$0xff] %v5434_v18  ;;  %v517_v17 = vrot.slane %v7687_v0, 7  ;;  %v7693_v43 = vshll.u32 %v5434_v18, 16  ;;  %v240_v50 = vpack.c.b16 %v208_v31, %v208_v31  ;;  %v852_v9 = vpack.c.b16 %v4652_v4, %v4652_v4 }
  0x79   :  { %7915 = vst [vmem:[#allocation70_spill] sm:$0xff] %v5438_v12  ;;  %v7691_v11 = vshrl.u32 %v5445_v62, 16  ;;  %v573_v55 = vrot.slane %v7686_v57, 7  ;;  %v629_v54 = vrot.slane %v7685_v15, 7  ;;  %v7692_v3 = vshll.u32 %v5445_v62, 16 }
  0x7a   :  { %7917 = vst [vmem:[#allocation72_spill] sm:$0xff] %v5445_v62  ;;  %v520_v15 = vor.u32 %v7695_v5, %v517_v17  ;;  %v287_v57 = vshrl.u32 %v224_v1, 16  ;;  %v335_v31 = vshrl.u32 %v240_v50, 16 }
  0x7b   :  { %v685_v27 = vrot.slane %v7691_v11, 7  ;;  %v576_v0 = vor.u32 %v7694_v16, %v573_v55  ;;  %v632_v40 = vor.u32 %v7693_v43, %v629_v54 }
  0x7c   :  { %v5489_v41 = vsel %vm4667_vm2, %v263_v25, %v520_v15 }
  0x7d   :  { %v688_v11 = vor.u32 %v7692_v3, %v685_v27  ;;  %7918 = vst [vmem:[#allocation73_spill] sm:$0xff] %v5489_v41  ;;  %v5493_v36 = vsel %vm4667_vm2, %v287_v57, %v576_v0  ;;  %v853_v0 = vpack.c.b16 %v4560_v20, %v4560_v20  ;;  %v7922_v57 = vshll.u32 %v4579_v28, 16 }
  0x7e   :  { %7919 = vst [vmem:[#allocation74_spill] sm:$0xff] %v5493_v36 }
  0x7f   :  { %v5501_v1 = vsel %vm4667_vm2, %v335_v31, %v688_v11  ;;  %v758_v15 = vrot.slane %v7922_v57, 1 }
  0x80   :  { %7921 = vst [vmem:[#allocation76_spill] sm:$0xff] %v5501_v1 }
  0x81   :  { %1390 = vmatmul.bf16.gmra.mxu0 %v5424_v34  ;;  %1430 = vmatmul.bf16.gmra.mxu1 %v5428_v61 }
  0x82   :  { %1470 = vmatmul.bf16.gmra.mxu2 %v5438_v12  ;;  %1510 = vmatmul.bf16.gmra.mxu3 %v5442_v2  ;;  %v311_v2 = vshrl.u32 %v232_v39, 16 }
  0x84   :  { %v5497_v17 = vsel %vm4667_vm2, %v311_v2, %v632_v40  ;;  %v889_v40 = vshll.u32 %v853_v0, 16  ;;  %v759_v2 = vor.u32 %v758_v15, %v7923_v13  ;;  %v7929_v0 = vshll.u32 %v4685_v23, 16 }
  0x85   :  { %7920 = vst [vmem:[#allocation75_spill] sm:$0xff] %v5497_v17  ;;  %v885_v15 = vshll.u32 %v852_v9, 16  ;;  %v854_v9 = vpack.c.b16 %v4794_v24, %v4794_v24 }
  0x86   :  { %v891_v11 = vrot.slane %v889_v40, 4  ;;  %v756_v57 = vrot.slane %v7929_v0, 1  ;;  %v7930_v40 = vshrl.u32 %v4685_v23, 16 }
  0x87   :  { %v893_v5 = vshll.u32 %v854_v9, 16  ;;  %v4273_v9 = vld [vmem:[%s7572_s1 + $0x1f0] sm:$0xff] }
  0x88   :  { %v5523_v20 = vsel %vm5513_vm5, %v759_v2, %v891_v11  ;;  %v757_v13 = vor.u32 %v756_v57, %v7930_v40  ;;  %v887_v2 = vrot.slane %v885_v15, 4  ;;  %2873 = vmatpush.bf16.msra.mxu3 %v4273_v9 }
  0x89   :  { %7926 = vst [vmem:[#allocation77_spill] sm:$0xff] %v5523_v20 }
  0x8a   :  { %v5553_v16 = vsel %vm5513_vm5, %v757_v13, %v887_v2  ;;  %v7936_v13 = vshll.u32 %v4821_v63, 16 }
  0x8b   :  { %7933 = vst [vmem:[#allocation82_spill] sm:$0xff] %v5553_v16 }
  0x8c   :  { %v760_v2 = vrot.slane %v7936_v13, 1 }
  0x91   :  { %1395 = vmatmul.bf16.gmra.mxu0 %v5489_v41  ;;  %1435 = vmatmul.bf16.gmra.mxu1 %v5493_v36  ;;  %v895_v36 = vrot.slane %v893_v5, 4  ;;  %v4265_v5 = vld [vmem:[%s7572_s1 + $0x1b0] sm:$0xff] }
  0x92   :  { %1475 = vmatmul.bf16.gmra.mxu2 %v5497_v17  ;;  %1515 = vmatmul.bf16.gmra.mxu3 %v5501_v1 }
  0x93   :  { %2704 = vmatpush.bf16.msra.mxu2 %v4265_v5 }
  0x9e   :  { %v5517_v39 = vpop.f32.mrf.mxu0  ;;  %v5519_v54 = vpop.f32.mrf.mxu1 }
  0xa1   :  { %1529 = vmatmul.bf16.vlgmr.msrb.gmra.mxu1 %v4579_v28  ;;  %2180 = vmatmul.bf16.vlgmr.msrb.gmra.mxu0 %v4685_v23 }
  0xa2   :  { %1698 = vmatmul.bf16.vlgmr.msrb.gmra.mxu2 %v5523_v20  ;;  %2011 = vmatmul.bf16.vlgmr.msrb.gmra.mxu3 %v4837_v14 }
  0xa5   :  { %v5531_v50 = vpop.f32.mrf.mxu2  ;;  %v5533_v27 = vpop.f32.mrf.mxu3 }
  0xa6   :  { %7927 = vst [vmem:[#allocation78_spill] sm:$0xff] %v5531_v50  ;;  %v5535_v25 = vpop.f32.mrf.mxu0  ;;  %v5537_v31 = vpop.f32.mrf.mxu1 }
  0xa7   :  { %7928 = vst [vmem:[#allocation79_spill] sm:$0xff] %v5533_v27 }
  0xad   :  { %v5543_v11 = vpop.f32.mrf.mxu2  ;;  %v5545_v3 = vpop.f32.mrf.mxu3 }
  0xae   :  { %7931 = vst [vmem:[#allocation80_spill] sm:$0xff] %v5543_v11  ;;  %v5547_v4 = vpop.f32.mrf.mxu0  ;;  %v5549_v43 = vpop.f32.mrf.mxu1 }
  0xaf   :  { %7932 = vst [vmem:[#allocation81_spill] sm:$0xff] %v5545_v3 }
  0xb1   :  { %1534 = vmatmul.bf16.gmra.mxu1 %v4685_v23  ;;  %2185 = vmatmul.bf16.gmra.mxu0 %v4579_v28  ;;  %v7937_v28 = vshrl.u32 %v4821_v63, 16 }
  0xb2   :  { %1703 = vmatmul.bf16.gmra.mxu2 %v5553_v16  ;;  %2016 = vmatmul.bf16.gmra.mxu3 %v4699_v33 }
  0xb3   :  { %v761_v1 = vor.u32 %v760_v2, %v7937_v28 }
  0xb5   :  { %v5561_v0 = vpop.f32.mrf.mxu2  ;;  %v5563_v57 = vpop.f32.mrf.mxu3 }
  0xb6   :  { %7934 = vst [vmem:[#allocation83_spill] sm:$0xff] %v5561_v0  ;;  %v5565_v15 = vpop.f32.mrf.mxu0  ;;  %v5567_v40 = vpop.f32.mrf.mxu1 }
  0xb7   :  { %7935 = vst [vmem:[#allocation84_spill] sm:$0xff] %v5563_v57  ;;  %v5583_v57 = vsel %vm5513_vm5, %v761_v1, %v895_v36  ;;  %v855_v36 = vpack.c.b16 %v4925_v56, %v4925_v56  ;;  %v7943_v56 = vshll.u32 %v4949_v48, 16 }
  0xb8   :  { %7940 = vst [vmem:[#allocation87_spill] sm:$0xff] %v5583_v57 }
  0xb9   :  { %v762_v5 = vrot.slane %v7943_v56, 1  ;;  %v897_v9 = vshll.u32 %v855_v36, 16 }
  0xbd   :  { %v5573_v33 = vpop.f32.mrf.mxu2  ;;  %v5575_v20 = vpop.f32.mrf.mxu3 }
  0xbe   :  { %7938 = vst [vmem:[#allocation85_spill] sm:$0xff] %v5573_v33  ;;  %v5577_v24 = vpop.f32.mrf.mxu0  ;;  %v5579_v3 = vpop.f32.mrf.mxu1 }
  0xbf   :  { %7939 = vst [vmem:[#allocation86_spill] sm:$0xff] %v5575_v20  ;;  %v4233_v20 = vld [vmem:[%s7572_s1 + $0xb0] sm:$0xff] }
  0xc0   :  { %2342 = vmatpush.bf16.msra.mxu1 %v4233_v20  ;;  %v856_v20 = vpack.c.b16 %v5045_v46, %v5045_v46 }
  0xc1   :  { %1539 = vmatmul.bf16.gmra.mxu1 %v4821_v63  ;;  %2190 = vmatmul.bf16.gmra.mxu0 %v4685_v23  ;;  %v899_v23 = vrot.slane %v897_v9, 4  ;;  %v7951_v9 = vshrl.u32 %v5065_v10, 16 }
  0xc2   :  { %1708 = vmatmul.bf16.gmra.mxu2 %v5583_v57  ;;  %2021 = vmatmul.bf16.gmra.mxu3 %v4837_v14  ;;  %v4281_v57 = vld [vmem:[%s7572_s1 + $0x230] sm:$0xff] }
  0xc3   :  { %3042 = vmatpush.bf16.msra.mxu0 %v4281_v57 }
  0xc5   :  { %v5597_v1 = vpop.f32.mrf.mxu2  ;;  %v5599_v13 = vpop.f32.mrf.mxu3 }
  0xc6   :  { %7941 = vst [vmem:[#allocation88_spill] sm:$0xff] %v5597_v1  ;;  %v5601_v2 = vpop.f32.mrf.mxu0  ;;  %v5603_v28 = vpop.f32.mrf.mxu1 }
  0xc7   :  { %7942 = vst [vmem:[#allocation89_spill] sm:$0xff] %v5599_v13  ;;  %v7944_v13 = vshrl.u32 %v4949_v48, 16 }
  0xc9   :  { %v763_v27 = vor.u32 %v762_v5, %v7944_v13  ;;  %v901_v5 = vshll.u32 %v856_v20, 16  ;;  %v857_v20 = vpack.c.b16 %v5167_v47, %v5167_v47 }
  0xcb   :  { %v5625_v1 = vsel %vm5513_vm5, %v763_v27, %v899_v23  ;;  %v7950_v23 = vshll.u32 %v5065_v10, 16 }
  0xcc   :  { %7947 = vst [vmem:[#allocation92_spill] sm:$0xff] %v5625_v1 }
  0xcd   :  { %v5615_v14 = vpop.f32.mrf.mxu2  ;;  %v5617_v16 = vpop.f32.mrf.mxu3  ;;  %v764_v27 = vrot.slane %v7950_v23, 1 }
  0xce   :  { %7945 = vst [vmem:[#allocation90_spill] sm:$0xff] %v5615_v14  ;;  %v5619_v62 = vpop.f32.mrf.mxu0  ;;  %v5621_v32 = vpop.f32.mrf.mxu1 }
  0xcf   :  { %7946 = vst [vmem:[#allocation91_spill] sm:$0xff] %v5617_v16  ;;  %v765_v16 = vor.u32 %v764_v27, %v7951_v9 }
  0xd1   :  { %1544 = vmatmul.bf16.gmra.mxu1 %v4949_v48  ;;  %2195 = vmatmul.bf16.gmra.mxu0 %v4821_v63 }
  0xd2   :  { %1713 = vmatmul.bf16.gmra.mxu2 %v5625_v1  ;;  %2026 = vmatmul.bf16.gmra.mxu3 %v4961_v49  ;;  %v903_v1 = vrot.slane %v901_v5, 4 }
  0xd5   :  { %v5633_v57 = vpop.f32.mrf.mxu2  ;;  %v5635_v36 = vpop.f32.mrf.mxu3 }
  0xd6   :  { %7948 = vst [vmem:[#allocation93_spill] sm:$0xff] %v5633_v57  ;;  %v5637_v13 = vpop.f32.mrf.mxu0  ;;  %v5639_v56 = vpop.f32.mrf.mxu1 }
  0xd7   :  { %7949 = vst [vmem:[#allocation94_spill] sm:$0xff] %v5635_v36  ;;  %v5655_v36 = vsel %vm5513_vm5, %v765_v16, %v903_v1  ;;  %v7957_v16 = vshll.u32 %v5189_v44, 16 }
  0xd8   :  { %7954 = vst [vmem:[#allocation97_spill] sm:$0xff] %v5655_v36 }
  0xd9   :  { %v766_v1 = vrot.slane %v7957_v16, 1 }
  0xdd   :  { %v5645_v63 = vpop.f32.mrf.mxu2  ;;  %v5647_v49 = vpop.f32.mrf.mxu3 }
  0xde   :  { %7952 = vst [vmem:[#allocation95_spill] sm:$0xff] %v5645_v63  ;;  %v5649_v46 = vpop.f32.mrf.mxu0  ;;  %v5651_v57 = vpop.f32.mrf.mxu1 }
  0xdf   :  { %7953 = vst [vmem:[#allocation96_spill] sm:$0xff] %v5647_v49  ;;  %v905_v49 = vshll.u32 %v857_v20, 16 }
  0xe1   :  { %1549 = vmatmul.bf16.gmra.mxu1 %v5065_v10  ;;  %2200 = vmatmul.bf16.gmra.mxu0 %v4949_v48  ;;  %v7958_v48 = vshrl.u32 %v5189_v44, 16  ;;  %v907_v63 = vrot.slane %v905_v49, 4 }
  0xe2   :  { %1718 = vmatmul.bf16.gmra.mxu2 %v5655_v36  ;;  %2031 = vmatmul.bf16.gmra.mxu3 %v5077_v6 }
  0xe3   :  { %v767_v36 = vor.u32 %v766_v1, %v7958_v48  ;;  %v858_v48 = vpack.c.b16 %v5285_v45, %v5285_v45 }
  0xe5   :  { %v5663_v23 = vpop.f32.mrf.mxu2  ;;  %v5665_v27 = vpop.f32.mrf.mxu3 }
  0xe6   :  { %7955 = vst [vmem:[#allocation98_spill] sm:$0xff] %v5663_v23  ;;  %v5667_v5 = vpop.f32.mrf.mxu0  ;;  %v5669_v9 = vpop.f32.mrf.mxu1 }
  0xe7   :  { %7956 = vst [vmem:[#allocation99_spill] sm:$0xff] %v5665_v27  ;;  %v5685_v27 = vsel %vm5513_vm5, %v767_v36, %v907_v63  ;;  %v7964_v63 = vshll.u32 %v5305_v35, 16 }
  0xe8   :  { %7961 = vst [vmem:[#allocation102_spill] sm:$0xff] %v5685_v27 }
  0xe9   :  { %v768_v36 = vrot.slane %v7964_v63, 1 }
  0xed   :  { %v5675_v6 = vpop.f32.mrf.mxu2  ;;  %v5677_v14 = vpop.f32.mrf.mxu3 }
  0xee   :  { %7959 = vst [vmem:[#allocation100_spill] sm:$0xff] %v5675_v6  ;;  %v5679_v47 = vpop.f32.mrf.mxu0  ;;  %v5681_v23 = vpop.f32.mrf.mxu1 }
  0xef   :  { %7960 = vst [vmem:[#allocation101_spill] sm:$0xff] %v5677_v14  ;;  %v909_v14 = vshll.u32 %v858_v48, 16 }
  0xf1   :  { %1554 = vmatmul.bf16.gmra.mxu1 %v5189_v44  ;;  %2205 = vmatmul.bf16.gmra.mxu0 %v5065_v10  ;;  %v7965_v10 = vshrl.u32 %v5305_v35, 16  ;;  %v911_v6 = vrot.slane %v909_v14, 4  ;;  %v4264_v14 = vld [vmem:[%s7572_s1 + $0x1a8] sm:$0xff] }
  0xf2   :  { %1723 = vmatmul.bf16.gmra.mxu2 %v5685_v27  ;;  %2036 = vmatmul.bf16.gmra.mxu3 %v5201_v19 }
  0xf3   :  { %v769_v27 = vor.u32 %v768_v36, %v7965_v10  ;;  %v4272_v10 = vld [vmem:[%s7572_s1 + $0x1e8] sm:$0xff]  ;;  %2705 = vmatpush.bf16.msra.mxu2 %v4264_v14  ;;  %v7972_v14 = vshrl.u32 %v5420_v59, 16 }
  0xf4   :  { %2874 = vmatpush.bf16.msra.mxu3 %v4272_v10 }
  0xf5   :  { %v5693_v49 = vpop.f32.mrf.mxu2  ;;  %v5695_v20 = vpop.f32.mrf.mxu3 }
  0xf6   :  { %7962 = vst [vmem:[#allocation103_spill] sm:$0xff] %v5693_v49  ;;  %v5697_v16 = vpop.f32.mrf.mxu0  ;;  %v5699_v1 = vpop.f32.mrf.mxu1 }
  0xf7   :  { %7963 = vst [vmem:[#allocation104_spill] sm:$0xff] %v5695_v20  ;;  %v5715_v20 = vsel %vm5513_vm5, %v769_v27, %v911_v6  ;;  %v859_v6 = vpack.c.b16 %v5409_v58, %v5409_v58  ;;  %v4280_v58 = vld [vmem:[%s7572_s1 + $0x228] sm:$0xff] }
  0xf8   :  { %7968 = vst [vmem:[#allocation107_spill] sm:$0xff] %v5715_v20  ;;  %3043 = vmatpush.bf16.msra.mxu0 %v4280_v58 }
  0xfd   :  { %v5705_v19 = vpop.f32.mrf.mxu2  ;;  %v5707_v33 = vpop.f32.mrf.mxu3 }
  0xfe   :  { %7966 = vst [vmem:[#allocation105_spill] sm:$0xff] %v5705_v19  ;;  %v5709_v45 = vpop.f32.mrf.mxu0  ;;  %v5711_v49 = vpop.f32.mrf.mxu1 }
  0xff   :  { %7967 = vst [vmem:[#allocation106_spill] sm:$0xff] %v5707_v33  ;;  %v7971_v33 = vshll.u32 %v5420_v59, 16 }
 0x101   :  { %1559 = vmatmul.bf16.gmra.mxu1 %v5305_v35  ;;  %2210 = vmatmul.bf16.gmra.mxu0 %v5189_v44  ;;  %v913_v44 = vshll.u32 %v859_v6, 16 }
 0x102   :  { %1728 = vmatmul.bf16.gmra.mxu2 %v5715_v20  ;;  %2041 = vmatmul.bf16.gmra.mxu3 %v5321_v38  ;;  %v770_v20 = vrot.slane %v7971_v33, 1  ;;  %v4232_v38 = vld [vmem:[%s7572_s1 + $0xa8] sm:$0xff] }
 0x103   :  { %2343 = vmatpush.bf16.msra.mxu1 %v4232_v38 }
 0x104   :  { %v771_v10 = vor.u32 %v770_v20, %v7972_v14 }
 0x105   :  { %v5729_v27 = vpop.f32.mrf.mxu2  ;;  %v5731_v48 = vpop.f32.mrf.mxu3 }
 0x106   :  { %7969 = vst [vmem:[#allocation108_spill] sm:$0xff] %v5729_v27  ;;  %v5733_v63 = vpop.f32.mrf.mxu0  ;;  %v5735_v36 = vpop.f32.mrf.mxu1 }
 0x107   :  { %7970 = vst [vmem:[#allocation109_spill] sm:$0xff] %v5731_v48  ;;  %v915_v48 = vrot.slane %v913_v44, 4  ;;  %v860_v44 = vpack.c.b16 %v4564_v22, %v4564_v22 }
 0x109   :  { %v5757_v0 = vsel %vm5513_vm5, %v771_v10, %v915_v48  ;;  %v7980_v48 = vshll.u32 %v4583_v29, 16 }
 0x10a   :  { %7976 = vst [vmem:[#allocation113_spill] sm:$0xff] %v5757_v0 }
 0x10b   :  { %v772_v10 = vrot.slane %v7980_v48, 1 }
 0x10d   :  { %v5747_v27 = vpop.f32.mrf.mxu2  ;;  %v5749_v19 = vpop.f32.mrf.mxu3 }
 0x10e   :  { %7973 = vst [vmem:[#allocation110_spill] sm:$0xff] %v5747_v27  ;;  %v5751_v33 = vpop.f32.mrf.mxu0  ;;  %v5753_v6 = vpop.f32.mrf.mxu1 }
 0x10f   :  { %7974 = vst [vmem:[#allocation111_spill] sm:$0xff] %v5749_v19  ;;  %v917_v19 = vshll.u32 %v860_v44, 16 }
 0x110   :  { %7975 = vst [vmem:[#allocation112_spill] sm:$0xff] %v5753_v6 }
 0x111   :  { %1564 = vmatmul.bf16.gmra.mxu1 %v5420_v59  ;;  %2215 = vmatmul.bf16.gmra.mxu0 %v5305_v35  ;;  %v7981_v35 = vshrl.u32 %v4583_v29, 16  ;;  %v919_v27 = vrot.slane %v917_v19, 4  ;;  %v861_v19 = vpack.c.b16 %v4656_v7, %v4656_v7 }
 0x112   :  { %1733 = vmatmul.bf16.gmra.mxu2 %v5757_v0  ;;  %2046 = vmatmul.bf16.gmra.mxu3 %v5424_v34 }
 0x113   :  { %v773_v0 = vor.u32 %v772_v10, %v7981_v35  ;;  %v921_v50 = vshll.u32 %v861_v19, 16 }
 0x115   :  { %v5765_v38 = vpop.f32.mrf.mxu2  ;;  %v5767_v20 = vpop.f32.mrf.mxu3 }
 0x116   :  { %7977 = vst [vmem:[#allocation114_spill] sm:$0xff] %v5765_v38  ;;  %v5769_v58 = vpop.f32.mrf.mxu0  ;;  %v5771_v14 = vpop.f32.mrf.mxu1 }
 0x117   :  { %7978 = vst [vmem:[#allocation115_spill] sm:$0xff] %v5767_v20  ;;  %v5783_v20 = vsel %vm5513_vm5, %v773_v0, %v919_v27  ;;  %v7985_v0 = vshll.u32 %v4695_v30, 16 }
 0x118   :  { %7979 = vst [vmem:[#allocation116_spill] sm:$0xff] %v5771_v14  ;;  %v923_v14 = vrot.slane %v921_v50, 4  ;;  %v862_v50 = vpack.c.b16 %v4813_v8, %v4813_v8 }
 0x119   :  { %7984 = vst [vmem:[#allocation119_spill] sm:$0xff] %v5783_v20  ;;  %v774_v27 = vrot.slane %v7985_v0, 1 }
 0x11d   :  { %v5777_v34 = vpop.f32.mrf.mxu2  ;;  %v5779_v11 = vpop.f32.mrf.mxu3 }
 0x11e   :  { %7982 = vst [vmem:[#allocation117_spill] sm:$0xff] %v5777_v34  ;;  %v1530_v22 = vpop.f32.mrf.mxu1  ;;  %v2181_v38 = vpop.f32.mrf.mxu0 }
 0x11f   :  { %7983 = vst [vmem:[#allocation118_spill] sm:$0xff] %v5779_v11  ;;  %v1531_v35 = vadd.f32 %v1530_v22, %v5517_v39 }
 0x121   :  { %1569 = vmatmul.bf16.gmra.mxu1 %v4583_v29  ;;  %2220 = vmatmul.bf16.gmra.mxu0 %v5420_v59 }
 0x122   :  { %1738 = vmatmul.bf16.gmra.mxu2 %v5783_v20  ;;  %2051 = vmatmul.bf16.gmra.mxu3 %v5489_v41  ;;  %v7986_v20 = vshrl.u32 %v4695_v30, 16 }
 0x124   :  { %v775_v41 = vor.u32 %v774_v27, %v7986_v20 }
 0x125   :  { %v1699_v44 = vpop.f32.mrf.mxu2  ;;  %v2012_v48 = vpop.f32.mrf.mxu3 }
 0x126   :  { %v1700_v10 = vadd.f32 %v1699_v44, %v1531_v35  ;;  %v1532_v11 = vpop.f32.mrf.mxu1  ;;  %v2183_v34 = vpop.f32.mrf.mxu0  ;;  %v5801_v44 = vsel %vm5513_vm5, %v775_v41, %v923_v14  ;;  %v7987_v14 = vshll.u32 %v4833_v21, 16 }
 0x127   :  { %v1533_v7 = vadd.f32 %v1532_v11, %v5535_v25 }
 0x128   :  { %v2013_v17 = vadd.f32 %v2012_v48, %v1700_v10  ;;  %v776_v19 = vrot.slane %v7987_v14, 1  ;;  %v925_v48 = vshll.u32 %v862_v50, 16 }
 0x12a   :  { %v5794_v59 = vadd.f32 %v2181_v38, %v2013_v17 }
 0x12d   :  { %v1701_v6 = vpop.f32.mrf.mxu2  ;;  %v2014_v39 = vpop.f32.mrf.mxu3 }
 0x12e   :  { %v1702_v22 = vadd.f32 %v1701_v6, %v1533_v7  ;;  %v1535_v12 = vpop.f32.mrf.mxu1  ;;  %v2186_v35 = vpop.f32.mrf.mxu0 }
 0x12f   :  { %v1536_v25 = vadd.f32 %v1535_v12, %v5547_v4 }
 0x130   :  { %v2015_v0 = vadd.f32 %v2014_v39, %v1702_v22  ;;  %v927_v39 = vrot.slane %v925_v48, 4 }
 0x131   :  { %1574 = vmatmul.bf16.gmra.mxu1 %v4695_v30  ;;  %2225 = vmatmul.bf16.gmra.mxu0 %v4583_v29 }
 0x132   :  { %1743 = vmatmul.bf16.gmra.mxu2 %v5801_v44  ;;  %2056 = vmatmul.bf16.gmra.mxu3 %v4706_v37  ;;  %v5807_v17 = vadd.f32 %v2183_v34, %v2015_v0  ;;  %v7988_v34 = vshrl.u32 %v4833_v21, 16 }
 0x134   :  { %v777_v7 = vor.u32 %v776_v19, %v7988_v34 }
 0x135   :  { %v1704_v11 = vpop.f32.mrf.mxu2  ;;  %v2017_v6 = vpop.f32.mrf.mxu3 }
 0x136   :  { %v1705_v41 = vadd.f32 %v1704_v11, %v1536_v25  ;;  %v1537_v38 = vpop.f32.mrf.mxu1  ;;  %v2188_v20 = vpop.f32.mrf.mxu0  ;;  %v5821_v11 = vsel %vm5513_vm5, %v777_v7, %v927_v39  ;;  %v7991_v39 = vld [vmem:[#allocation26_spill] sm:$0xff] }
 0x137   :  { %v1538_v8 = vadd.f32 %v1537_v38, %v5565_v15  ;;  %v4263_v15 = vld [vmem:[%s7572_s1 + $0x1a0] sm:$0xff] }
 0x138   :  { %v2018_v10 = vadd.f32 %v2017_v6, %v1705_v41  ;;  %v7990_v6 = vld [vmem:[#allocation22_spill] sm:$0xff]  ;;  %2706 = vmatpush.bf16.msra.mxu2 %v4263_v15 }
 0x139   :  { %v863_v41 = vpack.c.b16 %v7990_v6, %v7990_v6 }
 0x13a   :  { %v5814_v27 = vadd.f32 %v2186_v35, %v2018_v10  ;;  %v4271_v35 = vld [vmem:[%s7572_s1 + $0x1e0] sm:$0xff] }
 0x13b   :  { %2875 = vmatpush.bf16.msra.mxu3 %v4271_v35 }
 0x13d   :  { %v1706_v22 = vpop.f32.mrf.mxu2  ;;  %v2019_v12 = vpop.f32.mrf.mxu3 }
 0x13e   :  { %v1707_v4 = vadd.f32 %v1706_v22, %v1538_v8  ;;  %v1540_v0 = vpop.f32.mrf.mxu1  ;;  %v2191_v25 = vpop.f32.mrf.mxu0  ;;  %v7992_v8 = vshll.u32 %v7991_v39, 16 }
 0x13f   :  { %v1541_v38 = vadd.f32 %v1540_v0, %v5577_v24  ;;  %v4279_v24 = vld [vmem:[%s7572_s1 + $0x220] sm:$0xff] }
 0x140   :  { %v2020_v14 = vadd.f32 %v2019_v12, %v1707_v4  ;;  %v778_v22 = vrot.slane %v7992_v8, 1  ;;  %v929_v12 = vshll.u32 %v863_v41, 16  ;;  %3044 = vmatpush.bf16.msra.mxu0 %v4279_v24 }
 0x141   :  { %1579 = vmatmul.bf16.gmra.mxu1 %v4833_v21  ;;  %2230 = vmatmul.bf16.gmra.mxu0 %v4695_v30 }
 0x142   :  { %1748 = vmatmul.bf16.gmra.mxu2 %v5821_v11  ;;  %2061 = vmatmul.bf16.gmra.mxu3 %v4841_v26  ;;  %v5833_v50 = vadd.f32 %v2188_v20, %v2020_v14  ;;  %v4231_v20 = vld [vmem:[%s7572_s1 + $0xa0] sm:$0xff]  ;;  %v7994_v14 = vshrl.u32 %v7991_v39, 16  ;;  %v931_v35 = vrot.slane %v929_v12, 4 }
 0x143   :  { %2344 = vmatpush.bf16.msra.mxu1 %v4231_v20 }
 0x144   :  { %7989 = vst [vmem:[#allocation120_spill] sm:$0xff] %v5833_v50  ;;  %v779_v15 = vor.u32 %v778_v22, %v7994_v14 }
 0x145   :  { %v1709_v19 = vpop.f32.mrf.mxu2  ;;  %v2022_v48 = vpop.f32.mrf.mxu3 }
 0x146   :  { %v1710_v10 = vadd.f32 %v1709_v19, %v1541_v38  ;;  %v1542_v34 = vpop.f32.mrf.mxu1  ;;  %v2193_v7 = vpop.f32.mrf.mxu0  ;;  %v5853_v8 = vsel %vm5513_vm5, %v779_v15, %v931_v35  ;;  %v7999_v35 = vld [vmem:[#allocation37_spill] sm:$0xff] }
 0x147   :  { %v1543_v6 = vadd.f32 %v1542_v34, %v5601_v2  ;;  %7995 = vst [vmem:[#allocation26_spill] sm:$0xff] %v5853_v8  ;;  %v7998_v2 = vld [vmem:[#allocation33_spill] sm:$0xff] }
 0x148   :  { %v2023_v4 = vadd.f32 %v2022_v48, %v1710_v10  ;;  %v864_v34 = vpack.c.b16 %v7998_v2, %v7998_v2 }
 0x14a   :  { %v5846_v0 = vadd.f32 %v2191_v25, %v2023_v4  ;;  %v7996_v25 = vld [vmem:[#allocation29_spill] sm:$0xff] }
 0x14c   :  { %7993 = vst [vmem:[#allocation22_spill] sm:$0xff] %v5846_v0 }
 0x14d   :  { %v1711_v41 = vpop.f32.mrf.mxu2  ;;  %v2024_v38 = vpop.f32.mrf.mxu3 }
 0x14e   :  { %v1712_v19 = vadd.f32 %v1711_v41, %v1543_v6  ;;  %v1545_v48 = vpop.f32.mrf.mxu1  ;;  %v2196_v10 = vpop.f32.mrf.mxu0  ;;  %v8000_v6 = vshll.u32 %v7999_v35, 16 }
 0x14f   :  { %v1546_v12 = vadd.f32 %v1545_v48, %v5619_v62 }
 0x150   :  { %v2025_v50 = vadd.f32 %v2024_v38, %v1712_v19  ;;  %v780_v41 = vrot.slane %v8000_v6, 1  ;;  %v933_v38 = vshll.u32 %v864_v34, 16 }
 0x151   :  { %1584 = vmatmul.bf16.gmra.mxu1 %v7991_v39  ;;  %2235 = vmatmul.bf16.gmra.mxu0 %v4833_v21 }
 0x152   :  { %1753 = vmatmul.bf16.gmra.mxu2 %v5853_v8  ;;  %2066 = vmatmul.bf16.gmra.mxu3 %v7996_v25  ;;  %v5859_v22 = vadd.f32 %v2193_v7, %v2025_v50  ;;  %v8002_v50 = vshrl.u32 %v7999_v35, 16 }
 0x154   :  { %7997 = vst [vmem:[#allocation29_spill] sm:$0xff] %v5859_v22  ;;  %v781_v7 = vor.u32 %v780_v41, %v8002_v50  ;;  %v935_v22 = vrot.slane %v933_v38, 4 }
 0x155   :  { %v1714_v4 = vpop.f32.mrf.mxu2  ;;  %v2027_v20 = vpop.f32.mrf.mxu3 }
 0x156   :  { %v1715_v24 = vadd.f32 %v1714_v4, %v1546_v12  ;;  %v1547_v14 = vpop.f32.mrf.mxu1  ;;  %v2198_v15 = vpop.f32.mrf.mxu0  ;;  %v5873_v4 = vsel %vm5513_vm5, %v781_v7, %v935_v22 }
 0x157   :  { %v1548_v2 = vadd.f32 %v1547_v14, %v5637_v13  ;;  %8003 = vst [vmem:[#allocation37_spill] sm:$0xff] %v5873_v4  ;;  %v8006_v13 = vld [vmem:[#allocation44_spill] sm:$0xff] }
 0x158   :  { %v2028_v19 = vadd.f32 %v2027_v20, %v1715_v24 }
 0x15a   :  { %v5866_v8 = vadd.f32 %v2196_v10, %v2028_v19  ;;  %v8004_v10 = vld [vmem:[#allocation39_spill] sm:$0xff]  ;;  %v8007_v19 = vld [vmem:[#allocation48_spill] sm:$0xff] }
 0x15b   :  { %v8008_v50 = vshll.u32 %v8007_v19, 16 }
 0x15c   :  { %8001 = vst [vmem:[#allocation33_spill] sm:$0xff] %v5866_v8 }
 0x15d   :  { %v1716_v0 = vpop.f32.mrf.mxu2  ;;  %v2029_v62 = vpop.f32.mrf.mxu3  ;;  %v782_v7 = vrot.slane %v8008_v50, 1 }
 0x15e   :  { %v1717_v48 = vadd.f32 %v1716_v0, %v1548_v2  ;;  %v1550_v21 = vpop.f32.mrf.mxu1  ;;  %v2201_v12 = vpop.f32.mrf.mxu0  ;;  %v865_v0 = vpack.c.b16 %v8006_v13, %v8006_v13 }
 0x15f   :  { %v1551_v20 = vadd.f32 %v1550_v21, %v5649_v46 }
 0x160   :  { %v2030_v6 = vadd.f32 %v2029_v62, %v1717_v48  ;;  %v937_v2 = vshll.u32 %v865_v0, 16 }
 0x161   :  { %1589 = vmatmul.bf16.gmra.mxu1 %v7999_v35  ;;  %2240 = vmatmul.bf16.gmra.mxu0 %v7991_v39 }
 0x162   :  { %1758 = vmatmul.bf16.gmra.mxu2 %v5873_v4  ;;  %2071 = vmatmul.bf16.gmra.mxu3 %v8004_v10  ;;  %v5879_v34 = vadd.f32 %v2198_v15, %v2030_v6  ;;  %v8009_v15 = vshrl.u32 %v8007_v19, 16 }
 0x164   :  { %8005 = vst [vmem:[#allocation39_spill] sm:$0xff] %v5879_v34  ;;  %v783_v6 = vor.u32 %v782_v7, %v8009_v15  ;;  %v939_v34 = vrot.slane %v937_v2, 4 }
 0x165   :  { %v1719_v24 = vpop.f32.mrf.mxu2  ;;  %v2032_v14 = vpop.f32.mrf.mxu3 }
 0x166   :  { %v1720_v22 = vadd.f32 %v1719_v24, %v1551_v20  ;;  %v1552_v41 = vpop.f32.mrf.mxu1  ;;  %v2203_v38 = vpop.f32.mrf.mxu0  ;;  %v5893_v24 = vsel %vm5513_vm5, %v783_v6, %v939_v34 }
 0x167   :  { %v1553_v13 = vadd.f32 %v1552_v41, %v5667_v5  ;;  %8010 = vst [vmem:[#allocation44_spill] sm:$0xff] %v5893_v24  ;;  %v8013_v5 = vld [vmem:[#allocation55_spill] sm:$0xff] }
 0x168   :  { %v2033_v62 = vadd.f32 %v2032_v14, %v1720_v22 }
 0x16a   :  { %v5886_v48 = vadd.f32 %v2201_v12, %v2033_v62  ;;  %v8011_v12 = vld [vmem:[#allocation51_spill] sm:$0xff]  ;;  %v8014_v62 = vshll.u32 %v5313_v53, 16 }
 0x16c   :  { %v784_v15 = vrot.slane %v8014_v62, 1 }
 0x16d   :  { %v1721_v4 = vpop.f32.mrf.mxu2  ;;  %v2034_v21 = vpop.f32.mrf.mxu3 }
 0x16e   :  { %v1722_v46 = vadd.f32 %v1721_v4, %v1553_v13  ;;  %v1555_v8 = vpop.f32.mrf.mxu1  ;;  %v2206_v20 = vpop.f32.mrf.mxu0  ;;  %v866_v4 = vpack.c.b16 %v8013_v5, %v8013_v5 }
 0x16f   :  { %v1556_v14 = vadd.f32 %v1555_v8, %v5679_v47 }
 0x170   :  { %v2035_v50 = vadd.f32 %v2034_v21, %v1722_v46  ;;  %v941_v6 = vshll.u32 %v866_v4, 16 }
 0x171   :  { %1594 = vmatmul.bf16.gmra.mxu1 %v8007_v19  ;;  %2245 = vmatmul.bf16.gmra.mxu0 %v7999_v35 }
 0x172   :  { %1763 = vmatmul.bf16.gmra.mxu2 %v5893_v24  ;;  %2076 = vmatmul.bf16.gmra.mxu3 %v8011_v12  ;;  %v5899_v0 = vadd.f32 %v2203_v38, %v2035_v50  ;;  %v8015_v38 = vshrl.u32 %v5313_v53, 16  ;;  %v943_v50 = vrot.slane %v941_v6, 4 }
 0x174   :  { %8012 = vst [vmem:[#allocation48_spill] sm:$0xff] %v5899_v0  ;;  %v785_v46 = vor.u32 %v784_v15, %v8015_v38 }
 0x175   :  { %v1724_v22 = vpop.f32.mrf.mxu2  ;;  %v2037_v41 = vpop.f32.mrf.mxu3 }
 0x176   :  { %v1725_v34 = vadd.f32 %v1724_v22, %v1556_v14  ;;  %v1557_v7 = vpop.f32.mrf.mxu1  ;;  %v2208_v2 = vpop.f32.mrf.mxu0  ;;  %v5913_v22 = vsel %vm5513_vm5, %v785_v46, %v943_v50  ;;  %v8017_v46 = vshll.u32 %v5431_v52, 16 }
 0x177   :  { %v1558_v5 = vadd.f32 %v1557_v7, %v5697_v16  ;;  %v4262_v16 = vld [vmem:[%s7572_s1 + $0x198] sm:$0xff] }
 0x178   :  { %v2038_v13 = vadd.f32 %v2037_v41, %v1725_v34  ;;  %v867_v41 = vpack.c.b16 %v5411_v42, %v5411_v42  ;;  %2707 = vmatpush.bf16.msra.mxu2 %v4262_v16  ;;  %v786_v50 = vrot.slane %v8017_v46, 1  ;;  %v4278_v42 = vld [vmem:[%s7572_s1 + $0x218] sm:$0xff] }
 0x179   :  { %3045 = vmatpush.bf16.msra.mxu0 %v4278_v42 }
 0x17a   :  { %v5906_v21 = vadd.f32 %v2206_v20, %v2038_v13  ;;  %v8016_v20 = vld [vmem:[#allocation61_spill] sm:$0xff] }
 0x17d   :  { %v1726_v0 = vpop.f32.mrf.mxu2  ;;  %v2039_v47 = vpop.f32.mrf.mxu3 }
 0x17e   :  { %v1727_v8 = vadd.f32 %v1726_v0, %v1558_v5  ;;  %v1560_v24 = vpop.f32.mrf.mxu1  ;;  %v2211_v14 = vpop.f32.mrf.mxu0  ;;  %v4270_v0 = vld [vmem:[%s7572_s1 + $0x1d8] sm:$0xff]  ;;  %v945_v5 = vshll.u32 %v867_v41, 16 }
 0x17f   :  { %v1561_v34 = vadd.f32 %v1560_v24, %v5709_v45  ;;  %2876 = vmatpush.bf16.msra.mxu3 %v4270_v0  ;;  %v8018_v24 = vshrl.u32 %v5431_v52, 16 }
 0x180   :  { %v2040_v62 = vadd.f32 %v2039_v47, %v1727_v8 }
 0x181   :  { %1599 = vmatmul.bf16.gmra.mxu1 %v5313_v53  ;;  %2250 = vmatmul.bf16.gmra.mxu0 %v8007_v19  ;;  %v787_v8 = vor.u32 %v786_v50, %v8018_v24 }
 0x182   :  { %1768 = vmatmul.bf16.gmra.mxu2 %v5913_v22  ;;  %2081 = vmatmul.bf16.gmra.mxu3 %v8016_v20  ;;  %v5925_v4 = vadd.f32 %v2208_v2, %v2040_v62  ;;  %v4230_v2 = vld [vmem:[%s7572_s1 + $0x98] sm:$0xff]  ;;  %v947_v62 = vrot.slane %v945_v5, 4 }
 0x183   :  { %2345 = vmatpush.bf16.msra.mxu1 %v4230_v2 }
 0x185   :  { %v1729_v7 = vpop.f32.mrf.mxu2  ;;  %v2042_v15 = vpop.f32.mrf.mxu3 }
 0x186   :  { %v1730_v6 = vadd.f32 %v1729_v7, %v1561_v34  ;;  %v1562_v13 = vpop.f32.mrf.mxu1  ;;  %v2213_v38 = vpop.f32.mrf.mxu0 }
 0x187   :  { %v1563_v16 = vadd.f32 %v1562_v13, %v5733_v63  ;;  %v8021_v63 = vld [vmem:[#allocation2_spill] sm:$0xff] }
 0x188   :  { %v2043_v47 = vadd.f32 %v2042_v15, %v1730_v6  ;;  %v5945_v6 = vsel %vm5513_vm5, %v787_v8, %v947_v62  ;;  %v869_v13 = vpack.c.b16 %v8021_v63, %v8021_v63  ;;  %v8022_v8 = vld [vmem:[#allocation4_spill] sm:$0xff] }
 0x189   :  { %8019 = vst [vmem:[#allocation51_spill] sm:$0xff] %v5945_v6  ;;  %v8023_v62 = vshll.u32 %v8022_v8, 16 }
 0x18a   :  { %v5938_v45 = vadd.f32 %v2211_v14, %v2043_v47 }
 0x18d   :  { %v1731_v0 = vpop.f32.mrf.mxu2  ;;  %v2044_v41 = vpop.f32.mrf.mxu3 }
 0x18e   :  { %v1732_v34 = vadd.f32 %v1731_v0, %v1563_v16  ;;  %v1565_v7 = vpop.f32.mrf.mxu1  ;;  %v2216_v15 = vpop.f32.mrf.mxu0  ;;  %v790_v16 = vrot.slane %v8023_v62, 1  ;;  %v953_v0 = vshll.u32 %v869_v13, 16  ;;  %v8028_v13 = vld [vmem:[#allocation18_spill] sm:$0xff] }
 0x18f   :  { %v1566_v50 = vadd.f32 %v1565_v7, %v5751_v33 }
 0x190   :  { %v2045_v46 = vadd.f32 %v2044_v41, %v1732_v34 }
 0x191   :  { %1604 = vmatmul.bf16.gmra.mxu1 %v5431_v52  ;;  %2255 = vmatmul.bf16.gmra.mxu0 %v5313_v53 }
 0x192   :  { %1773 = vmatmul.bf16.gmra.mxu2 %v5945_v6  ;;  %2086 = vmatmul.bf16.gmra.mxu3 %v5428_v61  ;;  %v5951_v14 = vadd.f32 %v2213_v38, %v2045_v46  ;;  %v8025_v38 = vshrl.u32 %v8022_v8, 16 }
 0x194   :  { %8020 = vst [vmem:[#allocation55_spill] sm:$0xff] %v5951_v14  ;;  %v791_v46 = vor.u32 %v790_v16, %v8025_v38  ;;  %v955_v14 = vrot.slane %v953_v0, 4 }
 0x195   :  { %v1734_v5 = vpop.f32.mrf.mxu2  ;;  %v2047_v47 = vpop.f32.mrf.mxu3 }
 0x196   :  { %v1735_v2 = vadd.f32 %v1734_v5, %v1566_v50  ;;  %v1567_v42 = vpop.f32.mrf.mxu1  ;;  %v2218_v24 = vpop.f32.mrf.mxu0  ;;  %v5965_v5 = vsel %vm5513_vm5, %v791_v46, %v955_v14 }
 0x197   :  { %v1568_v63 = vadd.f32 %v1567_v42, %v5769_v58  ;;  %8026 = vst [vmem:[#allocation2_spill] sm:$0xff] %v5965_v5  ;;  %v8030_v58 = vld [vmem:[#allocation6_spill] sm:$0xff] }
 0x198   :  { %v2048_v41 = vadd.f32 %v2047_v47, %v1735_v2 }
 0x19a   :  { %v5958_v34 = vadd.f32 %v2216_v15, %v2048_v41  ;;  %v8027_v15 = vld [vmem:[#allocation9_spill] sm:$0xff] }
 0x19b   :  { %v8031_v38 = vshll.u32 %v8027_v15, 16 }
 0x19c   :  { %8024 = vst [vmem:[#allocation61_spill] sm:$0xff] %v5958_v34 }
 0x19d   :  { %v1736_v52 = vpop.f32.mrf.mxu2  ;;  %v2049_v33 = vpop.f32.mrf.mxu3  ;;  %v788_v46 = vrot.slane %v8031_v38, 1 }
 0x19e   :  { %v1737_v7 = vadd.f32 %v1736_v52, %v1568_v63  ;;  %v1570_v6 = vpop.f32.mrf.mxu1  ;;  %v2221_v50 = vpop.f32.mrf.mxu0  ;;  %v868_v52 = vpack.c.b16 %v8030_v58, %v8030_v58 }
 0x19f   :  { %v1571_v2 = vadd.f32 %v1570_v6, %v5519_v54 }
 0x1a0   :  { %v2050_v62 = vadd.f32 %v2049_v33, %v1737_v7  ;;  %v949_v63 = vshll.u32 %v868_v52, 16 }
 0x1a1   :  { %1609 = vmatmul.bf16.gmra.mxu1 %v8022_v8  ;;  %2260 = vmatmul.bf16.gmra.mxu0 %v8027_v15 }
 0x1a2   :  { %1778 = vmatmul.bf16.gmra.mxu2 %v5965_v5  ;;  %2091 = vmatmul.bf16.gmra.mxu3 %v8028_v13  ;;  %v5971_v47 = vadd.f32 %v2218_v24, %v2050_v62  ;;  %v8032_v24 = vshrl.u32 %v8027_v15, 16  ;;  %v951_v5 = vrot.slane %v949_v63, 4 }
 0x1a4   :  { %8029 = vst [vmem:[#allocation4_spill] sm:$0xff] %v5971_v47  ;;  %v789_v62 = vor.u32 %v788_v46, %v8032_v24 }
 0x1a5   :  { %v1739_v42 = vpop.f32.mrf.mxu2  ;;  %v2052_v16 = vpop.f32.mrf.mxu3 }
 0x1a6   :  { %v1740_v14 = vadd.f32 %v1739_v42, %v1571_v2  ;;  %v1572_v0 = vpop.f32.mrf.mxu1  ;;  %v2223_v41 = vpop.f32.mrf.mxu0  ;;  %v5985_v42 = vsel %vm5513_vm5, %v789_v62, %v951_v5 }
 0x1a7   :  { %v1573_v58 = vadd.f32 %v1572_v0, %v5537_v31  ;;  %v8035_v31 = vld [vmem:[#allocation14_spill] sm:$0xff] }
 0x1a8   :  { %v2053_v33 = vadd.f32 %v2052_v16, %v1740_v14 }
 0x1aa   :  { %v5978_v7 = vadd.f32 %v2221_v50, %v2053_v33  ;;  %v8033_v50 = vld [vmem:[#allocation11_spill] sm:$0xff]  ;;  %v8036_v33 = vld [vmem:[#allocation20_spill] sm:$0xff] }
 0x1ab   :  { %v8037_v24 = vshll.u32 %v8036_v33, 16 }
 0x1ad   :  { %v1741_v47 = vpop.f32.mrf.mxu2  ;;  %v2054_v54 = vpop.f32.mrf.mxu3  ;;  %v792_v62 = vrot.slane %v8037_v24, 1 }
 0x1ae   :  { %v1742_v6 = vadd.f32 %v1741_v47, %v1573_v58  ;;  %v1575_v34 = vpop.f32.mrf.mxu1  ;;  %v2226_v2 = vpop.f32.mrf.mxu0  ;;  %v870_v47 = vpack.c.b16 %v8035_v31, %v8035_v31 }
 0x1af   :  { %v1576_v16 = vadd.f32 %v1575_v34, %v5549_v43 }
 0x1b0   :  { %v2055_v38 = vadd.f32 %v2054_v54, %v1742_v6 }
 0x1b1   :  { %1614 = vmatmul.bf16.gmra.mxu1 %v8027_v15  ;;  %2265 = vmatmul.bf16.gmra.mxu0 %v8022_v8  ;;  %v957_v8 = vshll.u32 %v870_v47, 16 }
 0x1b2   :  { %1783 = vmatmul.bf16.gmra.mxu2 %v5985_v42  ;;  %2096 = vmatmul.bf16.gmra.mxu3 %v8033_v50  ;;  %v5991_v52 = vadd.f32 %v2223_v41, %v2055_v38  ;;  %v8038_v41 = vshrl.u32 %v8036_v33, 16 }
 0x1b3   :  { %v959_v38 = vrot.slane %v957_v8, 4 }
 0x1b4   :  { %8034 = vst [vmem:[#allocation9_spill] sm:$0xff] %v5991_v52  ;;  %v793_v6 = vor.u32 %v792_v62, %v8038_v41 }
 0x1b5   :  { %v1744_v14 = vpop.f32.mrf.mxu2  ;;  %v2057_v0 = vpop.f32.mrf.mxu3 }
 0x1b6   :  { %v1745_v5 = vadd.f32 %v1744_v14, %v1576_v16  ;;  %v1577_v46 = vpop.f32.mrf.mxu1  ;;  %v2228_v63 = vpop.f32.mrf.mxu0  ;;  %v6005_v14 = vsel %vm5513_vm5, %v793_v6, %v959_v38  ;;  %v8041_v38 = vld [vmem:[#allocation27_spill] sm:$0xff] }
 0x1b7   :  { %v1578_v50 = vadd.f32 %v1577_v46, %v5567_v40  ;;  %v4261_v40 = vld [vmem:[%s7572_s1 + $0x190] sm:$0xff] }
 0x1b8   :  { %v2058_v58 = vadd.f32 %v2057_v0, %v1745_v5  ;;  %v8040_v0 = vld [vmem:[#allocation23_spill] sm:$0xff]  ;;  %2708 = vmatpush.bf16.msra.mxu2 %v4261_v40 }
 0x1b9   :  { %v871_v5 = vpack.c.b16 %v8040_v0, %v8040_v0 }
 0x1ba   :  { %v5998_v54 = vadd.f32 %v2226_v2, %v2058_v58  ;;  %v4269_v2 = vld [vmem:[%s7572_s1 + $0x1d0] sm:$0xff] }
 0x1bb   :  { %2877 = vmatpush.bf16.msra.mxu3 %v4269_v2 }
 0x1bd   :  { %v1746_v31 = vpop.f32.mrf.mxu2  ;;  %v2059_v43 = vpop.f32.mrf.mxu3 }
 0x1be   :  { %v1747_v34 = vadd.f32 %v1746_v31, %v1578_v50  ;;  %v1580_v52 = vpop.f32.mrf.mxu1  ;;  %v2231_v16 = vpop.f32.mrf.mxu0  ;;  %v8042_v50 = vshll.u32 %v8041_v38, 16 }
 0x1bf   :  { %v1581_v46 = vadd.f32 %v1580_v52, %v5579_v3  ;;  %v4277_v3 = vld [vmem:[%s7572_s1 + $0x210] sm:$0xff] }
 0x1c0   :  { %v2060_v24 = vadd.f32 %v2059_v43, %v1747_v34  ;;  %v794_v31 = vrot.slane %v8042_v50, 1  ;;  %v961_v43 = vshll.u32 %v871_v5, 16  ;;  %3046 = vmatpush.bf16.msra.mxu0 %v4277_v3 }
 0x1c1   :  { %1619 = vmatmul.bf16.gmra.mxu1 %v8036_v33  ;;  %2270 = vmatmul.bf16.gmra.mxu0 %v8027_v15 }
 0x1c2   :  { %1788 = vmatmul.bf16.gmra.mxu2 %v6005_v14  ;;  %2101 = vmatmul.bf16.gmra.mxu3 %v8028_v13  ;;  %v6017_v47 = vadd.f32 %v2228_v63, %v2060_v24  ;;  %v4229_v63 = vld [vmem:[%s7572_s1 + $0x90] sm:$0xff]  ;;  %v8044_v24 = vshrl.u32 %v8041_v38, 16  ;;  %v963_v2 = vrot.slane %v961_v43, 4 }
 0x1c3   :  { %2346 = vmatpush.bf16.msra.mxu1 %v4229_v63 }
 0x1c4   :  { %8039 = vst [vmem:[#allocation18_spill] sm:$0xff] %v6017_v47  ;;  %v795_v40 = vor.u32 %v794_v31, %v8044_v24 }
 0x1c5   :  { %v1749_v62 = vpop.f32.mrf.mxu2  ;;  %v2062_v8 = vpop.f32.mrf.mxu3 }
 0x1c6   :  { %v1750_v58 = vadd.f32 %v1749_v62, %v1581_v46  ;;  %v1582_v41 = vpop.f32.mrf.mxu1  ;;  %v2233_v6 = vpop.f32.mrf.mxu0  ;;  %v6037_v50 = vsel %vm5513_vm5, %v795_v40, %v963_v2  ;;  %v8049_v2 = vld [vmem:[#allocation40_spill] sm:$0xff] }
 0x1c7   :  { %v1583_v0 = vadd.f32 %v1582_v41, %v5603_v28  ;;  %8045 = vst [vmem:[#allocation11_spill] sm:$0xff] %v6037_v50  ;;  %v8048_v28 = vld [vmem:[#allocation34_spill] sm:$0xff] }
 0x1c8   :  { %v2063_v34 = vadd.f32 %v2062_v8, %v1750_v58  ;;  %v872_v41 = vpack.c.b16 %v8048_v28, %v8048_v28 }
 0x1ca   :  { %v6030_v52 = vadd.f32 %v2231_v16, %v2063_v34  ;;  %v8046_v16 = vld [vmem:[#allocation31_spill] sm:$0xff] }
 0x1cc   :  { %8043 = vst [vmem:[#allocation6_spill] sm:$0xff] %v6030_v52 }
 0x1cd   :  { %v1751_v5 = vpop.f32.mrf.mxu2  ;;  %v2064_v46 = vpop.f32.mrf.mxu3 }
 0x1ce   :  { %v1752_v62 = vadd.f32 %v1751_v5, %v1583_v0  ;;  %v1585_v8 = vpop.f32.mrf.mxu1  ;;  %v2236_v58 = vpop.f32.mrf.mxu0  ;;  %v8050_v0 = vshll.u32 %v8049_v2, 16 }
 0x1cf   :  { %v1586_v43 = vadd.f32 %v1585_v8, %v5621_v32 }
 0x1d0   :  { %v2065_v47 = vadd.f32 %v2064_v46, %v1752_v62  ;;  %v796_v5 = vrot.slane %v8050_v0, 1  ;;  %v965_v46 = vshll.u32 %v872_v41, 16 }
 0x1d1   :  { %1624 = vmatmul.bf16.gmra.mxu1 %v8041_v38  ;;  %2275 = vmatmul.bf16.gmra.mxu0 %v8036_v33 }
 0x1d2   :  { %1793 = vmatmul.bf16.gmra.mxu2 %v6037_v50  ;;  %2106 = vmatmul.bf16.gmra.mxu3 %v8046_v16  ;;  %v6043_v31 = vadd.f32 %v2233_v6, %v2065_v47  ;;  %v8052_v47 = vshrl.u32 %v8049_v2, 16 }
 0x1d4   :  { %8047 = vst [vmem:[#allocation14_spill] sm:$0xff] %v6043_v31  ;;  %v797_v6 = vor.u32 %v796_v5, %v8052_v47  ;;  %v967_v31 = vrot.slane %v965_v46, 4 }
 0x1d5   :  { %v1754_v34 = vpop.f32.mrf.mxu2  ;;  %v2067_v63 = vpop.f32.mrf.mxu3 }
 0x1d6   :  { %v1755_v3 = vadd.f32 %v1754_v34, %v1586_v43  ;;  %v1587_v24 = vpop.f32.mrf.mxu1  ;;  %v2238_v40 = vpop.f32.mrf.mxu0  ;;  %v6057_v34 = vsel %vm5513_vm5, %v797_v6, %v967_v31 }
 0x1d7   :  { %v1588_v28 = vadd.f32 %v1587_v24, %v5639_v56  ;;  %8053 = vst [vmem:[#allocation27_spill] sm:$0xff] %v6057_v34  ;;  %v8056_v56 = vld [vmem:[#allocation45_spill] sm:$0xff] }
 0x1d8   :  { %v2068_v62 = vadd.f32 %v2067_v63, %v1755_v3 }
 0x1da   :  { %v6050_v50 = vadd.f32 %v2236_v58, %v2068_v62  ;;  %v8054_v58 = vld [vmem:[#allocation41_spill] sm:$0xff] }
 0x1db   :  { %v8057_v62 = vld [vmem:[#allocation49_spill] sm:$0xff] }
 0x1dc   :  { %8051 = vst [vmem:[#allocation23_spill] sm:$0xff] %v6050_v50  ;;  %v8058_v47 = vshll.u32 %v8057_v62, 16 }
 0x1dd   :  { %v1756_v52 = vpop.f32.mrf.mxu2  ;;  %v2069_v32 = vpop.f32.mrf.mxu3 }
 0x1de   :  { %v1757_v8 = vadd.f32 %v1756_v52, %v1588_v28  ;;  %v1590_v33 = vpop.f32.mrf.mxu1  ;;  %v2241_v43 = vpop.f32.mrf.mxu0  ;;  %v873_v52 = vpack.c.b16 %v8056_v56, %v8056_v56  ;;  %v798_v6 = vrot.slane %v8058_v47, 1 }
 0x1df   :  { %v1591_v63 = vadd.f32 %v1590_v33, %v5651_v57 }
 0x1e0   :  { %v2070_v0 = vadd.f32 %v2069_v32, %v1757_v8  ;;  %v969_v28 = vshll.u32 %v873_v52, 16 }
 0x1e1   :  { %1629 = vmatmul.bf16.gmra.mxu1 %v8049_v2  ;;  %2280 = vmatmul.bf16.gmra.mxu0 %v8041_v38 }
 0x1e2   :  { %1798 = vmatmul.bf16.gmra.mxu2 %v6057_v34  ;;  %2111 = vmatmul.bf16.gmra.mxu3 %v8054_v58  ;;  %v6063_v41 = vadd.f32 %v2238_v40, %v2070_v0  ;;  %v8059_v40 = vshrl.u32 %v8057_v62, 16 }
 0x1e4   :  { %8055 = vst [vmem:[#allocation31_spill] sm:$0xff] %v6063_v41  ;;  %v799_v0 = vor.u32 %v798_v6, %v8059_v40  ;;  %v971_v41 = vrot.slane %v969_v28, 4 }
 0x1e5   :  { %v1759_v3 = vpop.f32.mrf.mxu2  ;;  %v2072_v24 = vpop.f32.mrf.mxu3 }
 0x1e6   :  { %v1760_v31 = vadd.f32 %v1759_v3, %v1591_v63  ;;  %v1592_v5 = vpop.f32.mrf.mxu1  ;;  %v2243_v46 = vpop.f32.mrf.mxu0  ;;  %v6077_v3 = vsel %vm5513_vm5, %v799_v0, %v971_v41 }
 0x1e7   :  { %v1593_v56 = vadd.f32 %v1592_v5, %v5669_v9  ;;  %8060 = vst [vmem:[#allocation34_spill] sm:$0xff] %v6077_v3  ;;  %v8063_v9 = vld [vmem:[#allocation56_spill] sm:$0xff] }
 0x1e8   :  { %v2073_v32 = vadd.f32 %v2072_v24, %v1760_v31 }
 0x1ea   :  { %v6070_v8 = vadd.f32 %v2241_v43, %v2073_v32  ;;  %v8061_v43 = vld [vmem:[#allocation53_spill] sm:$0xff]  ;;  %v8064_v32 = vshll.u32 %v5317_v60, 16 }
 0x1ec   :  { %v800_v40 = vrot.slane %v8064_v32, 1 }
 0x1ed   :  { %v1761_v34 = vpop.f32.mrf.mxu2  ;;  %v2074_v57 = vpop.f32.mrf.mxu3 }
 0x1ee   :  { %v1762_v33 = vadd.f32 %v1761_v34, %v1593_v56  ;;  %v1595_v50 = vpop.f32.mrf.mxu1  ;;  %v2246_v63 = vpop.f32.mrf.mxu0  ;;  %v874_v34 = vpack.c.b16 %v8063_v9, %v8063_v9 }
 0x1ef   :  { %v1596_v24 = vadd.f32 %v1595_v50, %v5681_v23 }
 0x1f0   :  { %v2075_v47 = vadd.f32 %v2074_v57, %v1762_v33  ;;  %v973_v0 = vshll.u32 %v874_v34, 16 }
 0x1f1   :  { %1634 = vmatmul.bf16.gmra.mxu1 %v8057_v62  ;;  %2285 = vmatmul.bf16.gmra.mxu0 %v8049_v2 }
 0x1f2   :  { %1803 = vmatmul.bf16.gmra.mxu2 %v6077_v3  ;;  %2116 = vmatmul.bf16.gmra.mxu3 %v8061_v43  ;;  %v6083_v52 = vadd.f32 %v2243_v46, %v2075_v47  ;;  %v8065_v46 = vshrl.u32 %v5317_v60, 16  ;;  %v975_v47 = vrot.slane %v973_v0, 4 }
 0x1f4   :  { %8062 = vst [vmem:[#allocation40_spill] sm:$0xff] %v6083_v52  ;;  %v801_v33 = vor.u32 %v800_v40, %v8065_v46 }
 0x1f5   :  { %v1764_v31 = vpop.f32.mrf.mxu2  ;;  %v2077_v5 = vpop.f32.mrf.mxu3 }
 0x1f6   :  { %v1765_v41 = vadd.f32 %v1764_v31, %v1596_v24  ;;  %v1597_v6 = vpop.f32.mrf.mxu1  ;;  %v2248_v28 = vpop.f32.mrf.mxu0  ;;  %v6097_v31 = vsel %vm5513_vm5, %v801_v33, %v975_v47  ;;  %v8068_v33 = vshll.u32 %v5434_v18, 16 }
 0x1f7   :  { %v1598_v9 = vadd.f32 %v1597_v6, %v5699_v1  ;;  %v4260_v1 = vld [vmem:[%s7572_s1 + $0x188] sm:$0xff] }
 0x1f8   :  { %v2078_v56 = vadd.f32 %v2077_v5, %v1765_v41  ;;  %v875_v5 = vpack.c.b16 %v5413_v51, %v5413_v51  ;;  %2709 = vmatpush.bf16.msra.mxu2 %v4260_v1  ;;  %v802_v47 = vrot.slane %v8068_v33, 1  ;;  %v4276_v51 = vld [vmem:[%s7572_s1 + $0x208] sm:$0xff] }
 0x1f9   :  { %3047 = vmatpush.bf16.msra.mxu0 %v4276_v51 }
 0x1fa   :  { %v6090_v57 = vadd.f32 %v2246_v63, %v2078_v56  ;;  %v8066_v63 = vld [vmem:[#allocation62_spill] sm:$0xff] }
 0x1fd   :  { %v1766_v52 = vpop.f32.mrf.mxu2  ;;  %v2079_v23 = vpop.f32.mrf.mxu3 }
 0x1fe   :  { %v1767_v50 = vadd.f32 %v1766_v52, %v1598_v9  ;;  %v1600_v3 = vpop.f32.mrf.mxu1  ;;  %v2251_v24 = vpop.f32.mrf.mxu0  ;;  %v4268_v52 = vld [vmem:[%s7572_s1 + $0x1c8] sm:$0xff]  ;;  %v977_v9 = vshll.u32 %v875_v5, 16 }
 0x1ff   :  { %v1601_v41 = vadd.f32 %v1600_v3, %v5711_v49  ;;  %2878 = vmatpush.bf16.msra.mxu3 %v4268_v52  ;;  %v8070_v3 = vshrl.u32 %v5434_v18, 16 }
 0x200   :  { %v2080_v32 = vadd.f32 %v2079_v23, %v1767_v50 }
 0x201   :  { %1639 = vmatmul.bf16.gmra.mxu1 %v5317_v60  ;;  %2290 = vmatmul.bf16.gmra.mxu0 %v8057_v62  ;;  %v803_v50 = vor.u32 %v802_v47, %v8070_v3 }
 0x202   :  { %1808 = vmatmul.bf16.gmra.mxu2 %v6097_v31  ;;  %2121 = vmatmul.bf16.gmra.mxu3 %v8066_v63  ;;  %v6109_v34 = vadd.f32 %v2248_v28, %v2080_v32  ;;  %v4228_v28 = vld [vmem:[%s7572_s1 + $0x88] sm:$0xff]  ;;  %v979_v32 = vrot.slane %v977_v9, 4  ;;  %v8075_v9 = vld [vmem:[#allocation112_spill] sm:$0xff] }
 0x203   :  { %2347 = vmatpush.bf16.msra.mxu1 %v4228_v28 }
 0x204   :  { %8067 = vst [vmem:[#allocation41_spill] sm:$0xff] %v6109_v34  ;;  %v8080_v34 = vld [vmem:[#allocation116_spill] sm:$0xff] }
 0x205   :  { %v1769_v6 = vpop.f32.mrf.mxu2  ;;  %v2082_v40 = vpop.f32.mrf.mxu3 }
 0x206   :  { %v1770_v0 = vadd.f32 %v1769_v6, %v1601_v41  ;;  %v1602_v56 = vpop.f32.mrf.mxu1  ;;  %v2253_v46 = vpop.f32.mrf.mxu0 }
 0x207   :  { %v1603_v1 = vadd.f32 %v1602_v56, %v5735_v36  ;;  %v8074_v36 = vld [vmem:[#allocation3_spill] sm:$0xff] }
 0x208   :  { %v2083_v23 = vadd.f32 %v2082_v40, %v1770_v0  ;;  %v6129_v0 = vsel %vm5513_vm5, %v803_v50, %v979_v32  ;;  %v876_v56 = vpack.c.b16 %v8074_v36, %v8074_v36 }
 0x209   :  { %8071 = vst [vmem:[#allocation49_spill] sm:$0xff] %v6129_v0 }
 0x20a   :  { %v6122_v49 = vadd.f32 %v2251_v24, %v2083_v23  ;;  %v8072_v24 = vld [vmem:[#allocation70_spill] sm:$0xff] }
 0x20c   :  { %8069 = vst [vmem:[#allocation45_spill] sm:$0xff] %v6122_v49 }
 0x20d   :  { %v1771_v52 = vpop.f32.mrf.mxu2  ;;  %v2084_v5 = vpop.f32.mrf.mxu3 }
 0x20e   :  { %v1772_v41 = vadd.f32 %v1771_v52, %v1603_v1  ;;  %v1605_v6 = vpop.f32.mrf.mxu1  ;;  %v2256_v40 = vpop.f32.mrf.mxu0  ;;  %v8076_v1 = vld [vmem:[#allocation5_spill] sm:$0xff] }
 0x20f   :  { %v1606_v23 = vadd.f32 %v1605_v6, %v8075_v9  ;;  %v8077_v52 = vshll.u32 %v8076_v1, 16 }
 0x210   :  { %v2085_v33 = vadd.f32 %v2084_v5, %v1772_v41  ;;  %v981_v41 = vshll.u32 %v876_v56, 16  ;;  %v8085_v56 = vld [vmem:[#allocation78_spill] sm:$0xff] }
 0x211   :  { %1644 = vmatmul.bf16.gmra.mxu1 %v5434_v18  ;;  %2295 = vmatmul.bf16.gmra.mxu0 %v5317_v60  ;;  %v804_v5 = vrot.slane %v8077_v52, 1 }
 0x212   :  { %1813 = vmatmul.bf16.gmra.mxu2 %v6129_v0  ;;  %2126 = vmatmul.bf16.gmra.mxu3 %v8072_v24  ;;  %v6135_v47 = vadd.f32 %v2253_v46, %v2085_v33  ;;  %v8079_v46 = vshrl.u32 %v8076_v1, 16 }
 0x214   :  { %8073 = vst [vmem:[#allocation53_spill] sm:$0xff] %v6135_v47  ;;  %v805_v33 = vor.u32 %v804_v5, %v8079_v46  ;;  %v983_v47 = vrot.slane %v981_v41, 4  ;;  %v8086_v46 = vld [vmem:[#allocation10_spill] sm:$0xff] }
 0x215   :  { %v1774_v28 = vpop.f32.mrf.mxu2  ;;  %v2087_v51 = vpop.f32.mrf.mxu3 }
 0x216   :  { %v1775_v3 = vadd.f32 %v1774_v28, %v1606_v23  ;;  %v1607_v50 = vpop.f32.mrf.mxu1  ;;  %v2258_v32 = vpop.f32.mrf.mxu0  ;;  %v6149_v28 = vsel %vm5513_vm5, %v805_v33, %v983_v47  ;;  %v8087_v33 = vshll.u32 %v8086_v46, 16 }
 0x217   :  { %v1608_v36 = vadd.f32 %v1607_v50, %v8080_v34  ;;  %8081 = vst [vmem:[#allocation62_spill] sm:$0xff] %v6149_v28  ;;  %v8084_v34 = vld [vmem:[#allocation7_spill] sm:$0xff] }
 0x218   :  { %v2088_v49 = vadd.f32 %v2087_v51, %v1775_v3 }
 0x21a   :  { %v6142_v0 = vadd.f32 %v2256_v40, %v2088_v49  ;;  %v8082_v49 = vld [vmem:[#allocation75_spill] sm:$0xff] }
 0x21c   :  { %8078 = vst [vmem:[#allocation56_spill] sm:$0xff] %v6142_v0  ;;  %v8090_v0 = vld [vmem:[#allocation80_spill] sm:$0xff] }
 0x21d   :  { %v1776_v60 = vpop.f32.mrf.mxu2  ;;  %v2089_v6 = vpop.f32.mrf.mxu3 }
 0x21e   :  { %v1777_v9 = vadd.f32 %v1776_v60, %v1608_v36  ;;  %v1610_v24 = vpop.f32.mrf.mxu1  ;;  %v2261_v23 = vpop.f32.mrf.mxu0  ;;  %v877_v60 = vpack.c.b16 %v8084_v34, %v8084_v34  ;;  %v806_v36 = vrot.slane %v8087_v33, 1 }
 0x21f   :  { %v1611_v51 = vadd.f32 %v1610_v24, %v8085_v56 }
 0x220   :  { %v2090_v52 = vadd.f32 %v2089_v6, %v1777_v9  ;;  %v985_v6 = vshll.u32 %v877_v60, 16 }
 0x221   :  { %1649 = vmatmul.bf16.gmra.mxu1 %v8076_v1  ;;  %2300 = vmatmul.bf16.gmra.mxu0 %v5434_v18 }
 0x222   :  { %1818 = vmatmul.bf16.gmra.mxu2 %v6149_v28  ;;  %2131 = vmatmul.bf16.gmra.mxu3 %v8082_v49  ;;  %v6155_v40 = vadd.f32 %v2258_v32, %v2090_v52  ;;  %v8089_v32 = vshrl.u32 %v8086_v46, 16 }
 0x224   :  { %8083 = vst [vmem:[#allocation3_spill] sm:$0xff] %v6155_v40  ;;  %v807_v52 = vor.u32 %v806_v36, %v8089_v32  ;;  %v987_v40 = vrot.slane %v985_v6, 4  ;;  %v8096_v32 = vld [vmem:[#allocation21_spill] sm:$0xff] }
 0x225   :  { %v1779_v3 = vpop.f32.mrf.mxu2  ;;  %v2092_v50 = vpop.f32.mrf.mxu3 }
 0x226   :  { %v1780_v47 = vadd.f32 %v1779_v3, %v1611_v51  ;;  %v1612_v5 = vpop.f32.mrf.mxu1  ;;  %v2263_v41 = vpop.f32.mrf.mxu0  ;;  %v6169_v3 = vsel %vm5513_vm5, %v807_v52, %v987_v40  ;;  %v8097_v52 = vshll.u32 %v8096_v32, 16 }
 0x227   :  { %v1613_v34 = vadd.f32 %v1612_v5, %v8090_v0  ;;  %8091 = vst [vmem:[#allocation116_spill] sm:$0xff] %v6169_v3  ;;  %v8094_v0 = vld [vmem:[#allocation15_spill] sm:$0xff] }
 0x228   :  { %v2093_v9 = vadd.f32 %v2092_v50, %v1780_v47  ;;  %v8095_v50 = vld [vmem:[#allocation83_spill] sm:$0xff] }
 0x22a   :  { %v6162_v28 = vadd.f32 %v2261_v23, %v2093_v9  ;;  %v8092_v23 = vld [vmem:[#allocation12_spill] sm:$0xff] }
 0x22c   :  { %8088 = vst [vmem:[#allocation112_spill] sm:$0xff] %v6162_v28  ;;  %v8100_v28 = vld [vmem:[#allocation85_spill] sm:$0xff] }
 0x22d   :  { %v1781_v18 = vpop.f32.mrf.mxu2  ;;  %v2094_v24 = vpop.f32.mrf.mxu3 }
 0x22e   :  { %v1782_v56 = vadd.f32 %v1781_v18, %v1613_v34  ;;  %v1615_v49 = vpop.f32.mrf.mxu1  ;;  %v2266_v51 = vpop.f32.mrf.mxu0  ;;  %v878_v18 = vpack.c.b16 %v8094_v0, %v8094_v0  ;;  %v808_v34 = vrot.slane %v8097_v52, 1 }
 0x22f   :  { %v1616_v47 = vadd.f32 %v1615_v49, %v8095_v50 }
 0x230   :  { %v2095_v33 = vadd.f32 %v2094_v24, %v1782_v56  ;;  %v989_v24 = vshll.u32 %v878_v18, 16 }
 0x231   :  { %1654 = vmatmul.bf16.gmra.mxu1 %v8086_v46  ;;  %2305 = vmatmul.bf16.gmra.mxu0 %v8076_v1 }
 0x232   :  { %1823 = vmatmul.bf16.gmra.mxu2 %v6169_v3  ;;  %2136 = vmatmul.bf16.gmra.mxu3 %v8092_v23  ;;  %v6175_v60 = vadd.f32 %v2263_v41, %v2095_v33  ;;  %v8099_v41 = vshrl.u32 %v8096_v32, 16 }
 0x234   :  { %8093 = vst [vmem:[#allocation7_spill] sm:$0xff] %v6175_v60  ;;  %v809_v33 = vor.u32 %v808_v34, %v8099_v41  ;;  %v991_v60 = vrot.slane %v989_v24, 4 }
 0x235   :  { %v1784_v5 = vpop.f32.mrf.mxu2  ;;  %v2097_v36 = vpop.f32.mrf.mxu3 }
 0x236   :  { %v1785_v40 = vadd.f32 %v1784_v5, %v1616_v47  ;;  %v1617_v6 = vpop.f32.mrf.mxu1  ;;  %v2268_v9 = vpop.f32.mrf.mxu0  ;;  %v6189_v5 = vsel %vm5513_vm5, %v809_v33, %v991_v60  ;;  %v8104_v60 = vld [vmem:[#allocation24_spill] sm:$0xff] }
 0x237   :  { %v1618_v0 = vadd.f32 %v1617_v6, %v8100_v28  ;;  %8101 = vst [vmem:[#allocation80_spill] sm:$0xff] %v6189_v5  ;;  %v4259_v28 = vld [vmem:[%s7572_s1 + $0x180] sm:$0xff] }
 0x238   :  { %v2098_v56 = vadd.f32 %v2097_v36, %v1785_v40  ;;  %v879_v36 = vpack.c.b16 %v8104_v60, %v8104_v60  ;;  %v8105_v40 = vld [vmem:[#allocation88_spill] sm:$0xff]  ;;  %2710 = vmatpush.bf16.msra.mxu2 %v4259_v28 }
 0x23a   :  { %v6182_v3 = vadd.f32 %v2266_v51, %v2098_v56  ;;  %v8102_v51 = vld [vmem:[#allocation19_spill] sm:$0xff] }
 0x23c   :  { %8098 = vst [vmem:[#allocation78_spill] sm:$0xff] %v6182_v3 }
 0x23d   :  { %v1786_v1 = vpop.f32.mrf.mxu2  ;;  %v2099_v49 = vpop.f32.mrf.mxu3 }
 0x23e   :  { %v1787_v50 = vadd.f32 %v1786_v1, %v1618_v0  ;;  %v1620_v23 = vpop.f32.mrf.mxu1  ;;  %v2271_v47 = vpop.f32.mrf.mxu0  ;;  %v4267_v1 = vld [vmem:[%s7572_s1 + $0x1c0] sm:$0xff] }
 0x23f   :  { %v1621_v6 = vadd.f32 %v1620_v23, %v8105_v40  ;;  %2879 = vmatpush.bf16.msra.mxu3 %v4267_v1  ;;  %v8106_v0 = vld [vmem:[#allocation30_spill] sm:$0xff] }
 0x240   :  { %v2100_v52 = vadd.f32 %v2099_v49, %v1787_v50  ;;  %v8107_v49 = vshll.u32 %v8106_v0, 16  ;;  %v4275_v23 = vld [vmem:[%s7572_s1 + $0x200] sm:$0xff]  ;;  %v8109_v28 = vshrl.u32 %v8106_v0, 16 }
 0x241   :  { %1659 = vmatmul.bf16.gmra.mxu1 %v8096_v32  ;;  %2310 = vmatmul.bf16.gmra.mxu0 %v8086_v46  ;;  %v8110_v40 = vld [vmem:[#allocation90_spill] sm:$0xff] }
 0x242   :  { %1828 = vmatmul.bf16.gmra.mxu2 %v6189_v5  ;;  %2141 = vmatmul.bf16.gmra.mxu3 %v8102_v51  ;;  %v6201_v18 = vadd.f32 %v2268_v9, %v2100_v52  ;;  %v810_v50 = vrot.slane %v8107_v49, 1  ;;  %v993_v5 = vshll.u32 %v879_v36, 16  ;;  %v4227_v9 = vld [vmem:[%s7572_s1 + $0x80] sm:$0xff] }
 0x243   :  { %2348 = vmatpush.bf16.msra.mxu1 %v4227_v9  ;;  %3048 = vmatpush.bf16.msra.mxu0 %v4275_v23 }
 0x244   :  { %8103 = vst [vmem:[#allocation15_spill] sm:$0xff] %v6201_v18  ;;  %v811_v1 = vor.u32 %v810_v50, %v8109_v28  ;;  %v995_v60 = vrot.slane %v993_v5, 4  ;;  %v8114_v5 = vld [vmem:[#allocation36_spill] sm:$0xff]  ;;  %v8115_v50 = vld [vmem:[#allocation93_spill] sm:$0xff] }
 0x245   :  { %v1789_v34 = vpop.f32.mrf.mxu2  ;;  %v2102_v24 = vpop.f32.mrf.mxu3 }
 0x246   :  { %v1790_v56 = vadd.f32 %v1789_v34, %v1621_v6  ;;  %v1622_v41 = vpop.f32.mrf.mxu1  ;;  %v2273_v33 = vpop.f32.mrf.mxu0  ;;  %v6221_v18 = vsel %vm5513_vm5, %v811_v1, %v995_v60 }
 0x247   :  { %v1623_v6 = vadd.f32 %v1622_v41, %v8110_v40  ;;  %8111 = vst [vmem:[#allocation85_spill] sm:$0xff] %v6221_v18  ;;  %v880_v41 = vpack.c.b16 %v8114_v5, %v8114_v5 }
 0x248   :  { %v2103_v3 = vadd.f32 %v2102_v24, %v1790_v56 }
 0x24a   :  { %v6214_v52 = vadd.f32 %v2271_v47, %v2103_v3  ;;  %v8112_v3 = vld [vmem:[#allocation32_spill] sm:$0xff] }
 0x24c   :  { %8108 = vst [vmem:[#allocation83_spill] sm:$0xff] %v6214_v52 }
 0x24d   :  { %v1791_v36 = vpop.f32.mrf.mxu2  ;;  %v2104_v34 = vpop.f32.mrf.mxu3 }
 0x24e   :  { %v1792_v24 = vadd.f32 %v1791_v36, %v1623_v6  ;;  %v1625_v56 = vpop.f32.mrf.mxu1  ;;  %v2276_v49 = vpop.f32.mrf.mxu0  ;;  %v8116_v6 = vld [vmem:[#allocation43_spill] sm:$0xff] }
 0x24f   :  { %v1626_v9 = vadd.f32 %v1625_v56, %v8115_v50  ;;  %v8117_v36 = vshll.u32 %v8116_v6, 16 }
 0x250   :  { %v2105_v46 = vadd.f32 %v2104_v34, %v1792_v24  ;;  %v997_v24 = vshll.u32 %v880_v41, 16  ;;  %v8125_v41 = vld [vmem:[#allocation98_spill] sm:$0xff] }
 0x251   :  { %1664 = vmatmul.bf16.gmra.mxu1 %v8106_v0  ;;  %2315 = vmatmul.bf16.gmra.mxu0 %v8096_v32  ;;  %v812_v34 = vrot.slane %v8117_v36, 1  ;;  %v8120_v32 = vld [vmem:[#allocation95_spill] sm:$0xff] }
 0x252   :  { %1833 = vmatmul.bf16.gmra.mxu2 %v6221_v18  ;;  %2146 = vmatmul.bf16.gmra.mxu3 %v8112_v3  ;;  %v6227_v47 = vadd.f32 %v2273_v33, %v2105_v46  ;;  %v8119_v46 = vshrl.u32 %v8116_v6, 16 }
 0x254   :  { %8113 = vst [vmem:[#allocation24_spill] sm:$0xff] %v6227_v47  ;;  %v813_v33 = vor.u32 %v812_v34, %v8119_v46  ;;  %v999_v47 = vrot.slane %v997_v24, 4  ;;  %v8126_v46 = vld [vmem:[#allocation52_spill] sm:$0xff] }
 0x255   :  { %v1794_v23 = vpop.f32.mrf.mxu2  ;;  %v2107_v28 = vpop.f32.mrf.mxu3 }
 0x256   :  { %v1795_v1 = vadd.f32 %v1794_v23, %v1626_v9  ;;  %v1627_v60 = vpop.f32.mrf.mxu1  ;;  %v2278_v40 = vpop.f32.mrf.mxu0  ;;  %v6241_v23 = vsel %vm5513_vm5, %v813_v33, %v999_v47  ;;  %v8127_v33 = vshll.u32 %v8126_v46, 16 }
 0x257   :  { %v1628_v5 = vadd.f32 %v1627_v60, %v8120_v32  ;;  %8121 = vst [vmem:[#allocation90_spill] sm:$0xff] %v6241_v23  ;;  %v8124_v32 = vld [vmem:[#allocation46_spill] sm:$0xff] }
 0x258   :  { %v2108_v52 = vadd.f32 %v2107_v28, %v1795_v1 }
 0x25a   :  { %v6234_v18 = vadd.f32 %v2276_v49, %v2108_v52  ;;  %v8122_v52 = vld [vmem:[#allocation42_spill] sm:$0xff] }
 0x25c   :  { %8118 = vst [vmem:[#allocation88_spill] sm:$0xff] %v6234_v18  ;;  %v8130_v18 = vld [vmem:[#allocation100_spill] sm:$0xff] }
 0x25d   :  { %v1796_v3 = vpop.f32.mrf.mxu2  ;;  %v2109_v56 = vpop.f32.mrf.mxu3 }
 0x25e   :  { %v1797_v50 = vadd.f32 %v1796_v3, %v1628_v5  ;;  %v1630_v51 = vpop.f32.mrf.mxu1  ;;  %v2281_v9 = vpop.f32.mrf.mxu0  ;;  %v881_v3 = vpack.c.b16 %v8124_v32, %v8124_v32  ;;  %v814_v5 = vrot.slane %v8127_v33, 1 }
 0x25f   :  { %v1631_v28 = vadd.f32 %v1630_v51, %v8125_v41 }
 0x260   :  { %v2110_v36 = vadd.f32 %v2109_v56, %v1797_v50  ;;  %v1001_v56 = vshll.u32 %v881_v3, 16 }
 0x261   :  { %1669 = vmatmul.bf16.gmra.mxu1 %v8116_v6  ;;  %2320 = vmatmul.bf16.gmra.mxu0 %v8106_v0 }
 0x262   :  { %1838 = vmatmul.bf16.gmra.mxu2 %v6241_v23  ;;  %2151 = vmatmul.bf16.gmra.mxu3 %v8122_v52  ;;  %v6247_v49 = vadd.f32 %v2278_v40, %v2110_v36  ;;  %v8129_v40 = vshrl.u32 %v8126_v46, 16 }
 0x264   :  { %8123 = vst [vmem:[#allocation36_spill] sm:$0xff] %v6247_v49  ;;  %v815_v36 = vor.u32 %v814_v5, %v8129_v40  ;;  %v1003_v49 = vrot.slane %v1001_v56, 4  ;;  %v8136_v40 = vld [vmem:[#allocation64_spill] sm:$0xff] }
 0x265   :  { %v1799_v1 = vpop.f32.mrf.mxu2  ;;  %v2112_v60 = vpop.f32.mrf.mxu3 }
 0x266   :  { %v1800_v47 = vadd.f32 %v1799_v1, %v1631_v28  ;;  %v1632_v34 = vpop.f32.mrf.mxu1  ;;  %v2283_v24 = vpop.f32.mrf.mxu0  ;;  %v6261_v1 = vsel %vm5513_vm5, %v815_v36, %v1003_v49  ;;  %v8137_v36 = vshll.u32 %v8136_v40, 16 }
 0x267   :  { %v1633_v32 = vadd.f32 %v1632_v34, %v8130_v18  ;;  %8131 = vst [vmem:[#allocation95_spill] sm:$0xff] %v6261_v1  ;;  %v8134_v18 = vld [vmem:[#allocation58_spill] sm:$0xff] }
 0x268   :  { %v2113_v50 = vadd.f32 %v2112_v60, %v1800_v47  ;;  %v8135_v60 = vld [vmem:[#allocation103_spill] sm:$0xff] }
 0x26a   :  { %v6254_v23 = vadd.f32 %v2281_v9, %v2113_v50  ;;  %v8132_v9 = vld [vmem:[#allocation54_spill] sm:$0xff] }
 0x26c   :  { %8128 = vst [vmem:[#allocation93_spill] sm:$0xff] %v6254_v23  ;;  %v8140_v23 = vld [vmem:[#allocation105_spill] sm:$0xff] }
 0x26d   :  { %v1801_v0 = vpop.f32.mrf.mxu2  ;;  %v2114_v51 = vpop.f32.mrf.mxu3 }
 0x26e   :  { %v1802_v41 = vadd.f32 %v1801_v0, %v1633_v32  ;;  %v1635_v52 = vpop.f32.mrf.mxu1  ;;  %v2286_v28 = vpop.f32.mrf.mxu0  ;;  %v882_v0 = vpack.c.b16 %v8134_v18, %v8134_v18  ;;  %v816_v32 = vrot.slane %v8137_v36, 1 }
 0x26f   :  { %v1636_v47 = vadd.f32 %v1635_v52, %v8135_v60 }
 0x270   :  { %v2115_v33 = vadd.f32 %v2114_v51, %v1802_v41  ;;  %v1005_v51 = vshll.u32 %v882_v0, 16 }
 0x271   :  { %1674 = vmatmul.bf16.gmra.mxu1 %v8126_v46  ;;  %2325 = vmatmul.bf16.gmra.mxu0 %v8116_v6 }
 0x272   :  { %1843 = vmatmul.bf16.gmra.mxu2 %v6261_v1  ;;  %2156 = vmatmul.bf16.gmra.mxu3 %v8132_v9  ;;  %v6267_v3 = vadd.f32 %v2283_v24, %v2115_v33  ;;  %v8139_v24 = vshrl.u32 %v8136_v40, 16 }
 0x274   :  { %8133 = vst [vmem:[#allocation46_spill] sm:$0xff] %v6267_v3  ;;  %v817_v33 = vor.u32 %v816_v32, %v8139_v24  ;;  %v1007_v3 = vrot.slane %v1005_v51, 4  ;;  %v8146_v24 = vld [vmem:[#allocation72_spill] sm:$0xff] }
 0x275   :  { %v1804_v34 = vpop.f32.mrf.mxu2  ;;  %v2117_v5 = vpop.f32.mrf.mxu3 }
 0x276   :  { %v1805_v49 = vadd.f32 %v1804_v34, %v1636_v47  ;;  %v1637_v56 = vpop.f32.mrf.mxu1  ;;  %v2288_v50 = vpop.f32.mrf.mxu0  ;;  %v6281_v34 = vsel %vm5513_vm5, %v817_v33, %v1007_v3  ;;  %v8147_v33 = vshll.u32 %v8146_v24, 16 }
 0x277   :  { %v1638_v18 = vadd.f32 %v1637_v56, %v8140_v23  ;;  %8141 = vst [vmem:[#allocation100_spill] sm:$0xff] %v6281_v34  ;;  %v8144_v23 = vld [vmem:[#allocation65_spill] sm:$0xff] }
 0x278   :  { %v2118_v41 = vadd.f32 %v2117_v5, %v1805_v49  ;;  %v8145_v5 = vld [vmem:[#allocation108_spill] sm:$0xff] }
 0x27a   :  { %v6274_v1 = vadd.f32 %v2286_v28, %v2118_v41  ;;  %v8142_v28 = vld [vmem:[#allocation63_spill] sm:$0xff] }
 0x27c   :  { %8138 = vst [vmem:[#allocation98_spill] sm:$0xff] %v6274_v1  ;;  %v8150_v1 = vld [vmem:[#allocation110_spill] sm:$0xff] }
 0x27d   :  { %v1806_v6 = vpop.f32.mrf.mxu2  ;;  %v2119_v52 = vpop.f32.mrf.mxu3 }
 0x27e   :  { %v1807_v60 = vadd.f32 %v1806_v6, %v1638_v18  ;;  %v1640_v9 = vpop.f32.mrf.mxu1  ;;  %v2291_v47 = vpop.f32.mrf.mxu0  ;;  %v883_v6 = vpack.c.b16 %v8144_v23, %v8144_v23  ;;  %v818_v18 = vrot.slane %v8147_v33, 1 }
 0x27f   :  { %v1641_v49 = vadd.f32 %v1640_v9, %v8145_v5 }
 0x280   :  { %v2120_v36 = vadd.f32 %v2119_v52, %v1807_v60  ;;  %v1009_v52 = vshll.u32 %v883_v6, 16 }
 0x281   :  { %1679 = vmatmul.bf16.gmra.mxu1 %v8136_v40  ;;  %2330 = vmatmul.bf16.gmra.mxu0 %v8126_v46 }
 0x282   :  { %1848 = vmatmul.bf16.gmra.mxu2 %v6281_v34  ;;  %2161 = vmatmul.bf16.gmra.mxu3 %v8142_v28  ;;  %v6287_v0 = vadd.f32 %v2288_v50, %v2120_v36  ;;  %v8149_v50 = vshrl.u32 %v8146_v24, 16 }
 0x284   :  { %8143 = vst [vmem:[#allocation58_spill] sm:$0xff] %v6287_v0  ;;  %v819_v36 = vor.u32 %v818_v18, %v8149_v50  ;;  %v1011_v0 = vrot.slane %v1009_v52, 4 }
 0x285   :  { %v1809_v56 = vpop.f32.mrf.mxu2  ;;  %v2122_v32 = vpop.f32.mrf.mxu3 }
 0x286   :  { %v1810_v3 = vadd.f32 %v1809_v56, %v1641_v49  ;;  %v1642_v51 = vpop.f32.mrf.mxu1  ;;  %v2293_v41 = vpop.f32.mrf.mxu0  ;;  %v6301_v56 = vsel %vm5513_vm5, %v819_v36, %v1011_v0 }
 0x287   :  { %v1643_v23 = vadd.f32 %v1642_v51, %v8150_v1  ;;  %8151 = vst [vmem:[#allocation105_spill] sm:$0xff] %v6301_v56  ;;  %v8154_v1 = vld [vmem:[#allocation114_spill] sm:$0xff] }
 0x288   :  { %v2123_v60 = vadd.f32 %v2122_v32, %v1810_v3 }
 0x28a   :  { %v6294_v34 = vadd.f32 %v2291_v47, %v2123_v60  ;;  %v8152_v47 = vld [vmem:[#allocation71_spill] sm:$0xff]  ;;  %v8156_v60 = vld [vmem:[#allocation117_spill] sm:$0xff] }
 0x28c   :  { %8148 = vst [vmem:[#allocation103_spill] sm:$0xff] %v6294_v34 }
 0x28d   :  { %v1811_v46 = vpop.f32.mrf.mxu2  ;;  %v2124_v9 = vpop.f32.mrf.mxu3 }
 0x28e   :  { %v1812_v5 = vadd.f32 %v1811_v46, %v1643_v23  ;;  %v1645_v28 = vpop.f32.mrf.mxu1  ;;  %v2296_v49 = vpop.f32.mrf.mxu0 }
 0x28f   :  { %v1646_v32 = vadd.f32 %v1645_v28, %v8154_v1  ;;  %v8158_v28 = vld [vmem:[#allocation17_spill] sm:$0xff] }
 0x290   :  { %v2125_v33 = vadd.f32 %v2124_v9, %v1812_v5 }
 0x291   :  { %1684 = vmatmul.bf16.gmra.mxu1 %v8146_v24  ;;  %2335 = vmatmul.bf16.gmra.mxu0 %v8136_v40 }
 0x292   :  { %1853 = vmatmul.bf16.gmra.mxu2 %v6301_v56  ;;  %2166 = vmatmul.bf16.gmra.mxu3 %v8152_v47  ;;  %v6307_v6 = vadd.f32 %v2293_v41, %v2125_v33  ;;  %v8157_v41 = vld [vmem:[#allocation82_spill] sm:$0xff]  ;;  %v8159_v33 = vld [vmem:[#allocation8_spill] sm:$0xff] }
 0x294   :  { %8153 = vst [vmem:[#allocation65_spill] sm:$0xff] %v6307_v6 }
 0x295   :  { %v1814_v46 = vpop.f32.mrf.mxu2  ;;  %v2127_v3 = vpop.f32.mrf.mxu3 }
 0x296   :  { %v1815_v51 = vadd.f32 %v1814_v46, %v1646_v32  ;;  %v1647_v18 = vpop.f32.mrf.mxu1  ;;  %v2298_v55 = vpop.f32.mrf.mxu0 }
 0x297   :  { %v1648_v50 = vadd.f32 %v1647_v18, %v8156_v60 }
 0x298   :  { %v2128_v0 = vadd.f32 %v2127_v3, %v1815_v51 }
 0x29a   :  { %v6310_v52 = vadd.f32 %v2296_v49, %v2128_v0  ;;  %v8161_v49 = vld [vmem:[#allocation79_spill] sm:$0xff] }
 0x29c   :  { %8155 = vst [vmem:[#allocation108_spill] sm:$0xff] %v6310_v52 }
 0x29d   :  { %v1816_v36 = vpop.f32.mrf.mxu2  ;;  %v2129_v23 = vpop.f32.mrf.mxu3 }
 0x29e   :  { %v1817_v9 = vadd.f32 %v1816_v36, %v1648_v50  ;;  %v1650_v5 = vpop.f32.mrf.mxu1  ;;  %v2301_v24 = vpop.f32.mrf.mxu0  ;;  %v8163_v36 = vld [vmem:[#allocation81_spill] sm:$0xff] }
 0x29f   :  { %v1651_v32 = vadd.f32 %v1650_v5, %v8161_v49  ;;  %v8166_v5 = vld [vmem:[#allocation28_spill] sm:$0xff]  ;;  %v8167_v49 = vld [vmem:[#allocation13_spill] sm:$0xff] }
 0x2a0   :  { %v2130_v56 = vadd.f32 %v2129_v23, %v1817_v9 }
 0x2a1   :  { %2349 = vmatmul.bf16.vlgmr.msra.gmra.mxu1 %v8157_v41  ;;  %3049 = vmatmul.bf16.vlgmr.msra.gmra.mxu0 %v8157_v41 }
 0x2a2   :  { %2711 = vmatmul.bf16.vlgmr.msra.gmra.mxu2 %v8158_v28  ;;  %2880 = vmatmul.bf16.vlgmr.msra.gmra.mxu3 %v8159_v33  ;;  %v6317_v1 = vadd.f32 %v2298_v55, %v2130_v56  ;;  %v8164_v56 = vld [vmem:[#allocation77_spill] sm:$0xff]  ;;  %v8165_v55 = vld [vmem:[#allocation87_spill] sm:$0xff] }
 0x2a4   :  { %8160 = vst [vmem:[#allocation110_spill] sm:$0xff] %v6317_v1 }
 0x2a5   :  { %v1819_v46 = vpop.f32.mrf.mxu2  ;;  %v2132_v3 = vpop.f32.mrf.mxu3 }
 0x2a6   :  { %v1820_v51 = vadd.f32 %v1819_v46, %v1651_v32  ;;  %v1652_v18 = vpop.f32.mrf.mxu1  ;;  %v2303_v0 = vpop.f32.mrf.mxu0 }
 0x2a7   :  { %v1653_v23 = vadd.f32 %v1652_v18, %v8163_v36 }
 0x2a8   :  { %v2133_v60 = vadd.f32 %v2132_v3, %v1820_v51 }
 0x2aa   :  { %v6320_v50 = vadd.f32 %v2301_v24, %v2133_v60  ;;  %v8169_v24 = vld [vmem:[#allocation84_spill] sm:$0xff] }
 0x2ac   :  { %8162 = vst [vmem:[#allocation71_spill] sm:$0xff] %v6320_v50 }
 0x2ad   :  { %v1821_v9 = vpop.f32.mrf.mxu2  ;;  %v2134_v52 = vpop.f32.mrf.mxu3 }
 0x2ae   :  { %v1822_v6 = vadd.f32 %v1821_v9, %v1653_v23  ;;  %v1655_v28 = vpop.f32.mrf.mxu1  ;;  %v2306_v34 = vpop.f32.mrf.mxu0 }
 0x2af   :  { %v1656_v46 = vadd.f32 %v1655_v28, %v8169_v24  ;;  %v8173_v28 = vld [vmem:[#allocation38_spill] sm:$0xff] }
 0x2b0   :  { %v2135_v33 = vadd.f32 %v2134_v52, %v1822_v6  ;;  %v8171_v6 = vld [vmem:[#allocation86_spill] sm:$0xff] }
 0x2b1   :  { %2354 = vmatmul.bf16.gmra.mxu1 %v8164_v56  ;;  %3054 = vmatmul.bf16.gmra.mxu0 %v8165_v55 }
 0x2b2   :  { %2716 = vmatmul.bf16.gmra.mxu2 %v8166_v5  ;;  %2885 = vmatmul.bf16.gmra.mxu3 %v8167_v49  ;;  %v6327_v32 = vadd.f32 %v2303_v0, %v2135_v33  ;;  %v8172_v0 = vld [vmem:[#allocation92_spill] sm:$0xff]  ;;  %v8174_v33 = vld [vmem:[#allocation25_spill] sm:$0xff] }
 0x2b4   :  { %8168 = vst [vmem:[#allocation114_spill] sm:$0xff] %v6327_v32 }
 0x2b5   :  { %v1824_v3 = vpop.f32.mrf.mxu2  ;;  %v2137_v51 = vpop.f32.mrf.mxu3 }
 0x2b6   :  { %v1825_v18 = vadd.f32 %v1824_v3, %v1656_v46  ;;  %v1657_v60 = vpop.f32.mrf.mxu1  ;;  %v2308_v36 = vpop.f32.mrf.mxu0 }
 0x2b7   :  { %v1658_v52 = vadd.f32 %v1657_v60, %v8171_v6 }
 0x2b8   :  { %v2138_v23 = vadd.f32 %v2137_v51, %v1825_v18 }
 0x2ba   :  { %v6330_v9 = vadd.f32 %v2306_v34, %v2138_v23  ;;  %v8176_v34 = vld [vmem:[#allocation89_spill] sm:$0xff] }
 0x2bc   :  { %8170 = vst [vmem:[#allocation117_spill] sm:$0xff] %v6330_v9 }
 0x2bd   :  { %v1826_v56 = vpop.f32.mrf.mxu2  ;;  %v2139_v50 = vpop.f32.mrf.mxu3 }
 0x2be   :  { %v1827_v1 = vadd.f32 %v1826_v56, %v1658_v52  ;;  %v1660_v5 = vpop.f32.mrf.mxu1  ;;  %v2311_v40 = vpop.f32.mrf.mxu0 }
 0x2bf   :  { %v1661_v46 = vadd.f32 %v1660_v5, %v8176_v34  ;;  %v8180_v5 = vld [vmem:[#allocation50_spill] sm:$0xff] }
 0x2c0   :  { %v2140_v49 = vadd.f32 %v2139_v50, %v1827_v1  ;;  %v8178_v1 = vld [vmem:[#allocation91_spill] sm:$0xff] }
 0x2c1   :  { %2359 = vmatmul.bf16.gmra.mxu1 %v8157_v41  ;;  %3059 = vmatmul.bf16.gmra.mxu0 %v8172_v0 }
 0x2c2   :  { %2721 = vmatmul.bf16.gmra.mxu2 %v8173_v28  ;;  %2890 = vmatmul.bf16.gmra.mxu3 %v8174_v33  ;;  %v6337_v24 = vadd.f32 %v2308_v36, %v2140_v49  ;;  %v8179_v36 = vld [vmem:[#allocation97_spill] sm:$0xff]  ;;  %v8181_v49 = vld [vmem:[#allocation35_spill] sm:$0xff] }
 0x2c4   :  { %8175 = vst [vmem:[#allocation82_spill] sm:$0xff] %v6337_v24 }
 0x2c5   :  { %v1829_v3 = vpop.f32.mrf.mxu2  ;;  %v2142_v51 = vpop.f32.mrf.mxu3 }
 0x2c6   :  { %v1830_v18 = vadd.f32 %v1829_v3, %v1661_v46  ;;  %v1662_v60 = vpop.f32.mrf.mxu1  ;;  %v2313_v23 = vpop.f32.mrf.mxu0 }
 0x2c7   :  { %v1663_v41 = vadd.f32 %v1662_v60, %v8178_v1 }
 0x2c8   :  { %v2143_v6 = vadd.f32 %v2142_v51, %v1830_v18 }
 0x2ca   :  { %v6340_v52 = vadd.f32 %v2311_v40, %v2143_v6  ;;  %v8183_v40 = vld [vmem:[#allocation94_spill] sm:$0xff] }
 0x2cc   :  { %8177 = vst [vmem:[#allocation17_spill] sm:$0xff] %v6340_v52 }
 0x2cd   :  { %v1831_v50 = vpop.f32.mrf.mxu2  ;;  %v2144_v56 = vpop.f32.mrf.mxu3 }
 0x2ce   :  { %v1832_v9 = vadd.f32 %v1831_v50, %v1663_v41  ;;  %v1665_v28 = vpop.f32.mrf.mxu1  ;;  %v2316_v32 = vpop.f32.mrf.mxu0 }
 0x2cf   :  { %v1666_v46 = vadd.f32 %v1665_v28, %v8183_v40  ;;  %v8187_v28 = vld [vmem:[#allocation60_spill] sm:$0xff] }
 0x2d0   :  { %v2145_v33 = vadd.f32 %v2144_v56, %v1832_v9  ;;  %v8185_v9 = vld [vmem:[#allocation96_spill] sm:$0xff] }
 0x2d1   :  { %2364 = vmatmul.bf16.gmra.mxu1 %v8165_v55  ;;  %3064 = vmatmul.bf16.gmra.mxu0 %v8179_v36 }
 0x2d2   :  { %2726 = vmatmul.bf16.gmra.mxu2 %v8180_v5  ;;  %2895 = vmatmul.bf16.gmra.mxu3 %v8181_v49  ;;  %v6347_v34 = vadd.f32 %v2313_v23, %v2145_v33  ;;  %v8186_v23 = vld [vmem:[#allocation102_spill] sm:$0xff]  ;;  %v8188_v33 = vld [vmem:[#allocation47_spill] sm:$0xff] }
 0x2d4   :  { %8182 = vst [vmem:[#allocation8_spill] sm:$0xff] %v6347_v34 }
 0x2d5   :  { %v1834_v3 = vpop.f32.mrf.mxu2  ;;  %v2147_v51 = vpop.f32.mrf.mxu3 }
 0x2d6   :  { %v1835_v18 = vadd.f32 %v1834_v3, %v1666_v46  ;;  %v1667_v60 = vpop.f32.mrf.mxu1  ;;  %v2318_v6 = vpop.f32.mrf.mxu0 }
 0x2d7   :  { %v1668_v55 = vadd.f32 %v1667_v60, %v8185_v9 }
 0x2d8   :  { %v2148_v1 = vadd.f32 %v2147_v51, %v1835_v18 }
 0x2da   :  { %v6350_v41 = vadd.f32 %v2316_v32, %v2148_v1  ;;  %v8190_v32 = vld [vmem:[#allocation99_spill] sm:$0xff] }
 0x2dc   :  { %8184 = vst [vmem:[#allocation79_spill] sm:$0xff] %v6350_v41 }
 0x2dd   :  { %v1836_v50 = vpop.f32.mrf.mxu2  ;;  %v2149_v56 = vpop.f32.mrf.mxu3 }
 0x2de   :  { %v1837_v52 = vadd.f32 %v1836_v50, %v1668_v55  ;;  %v1670_v5 = vpop.f32.mrf.mxu1  ;;  %v2321_v24 = vpop.f32.mrf.mxu0 }
 0x2df   :  { %v1671_v46 = vadd.f32 %v1670_v5, %v8190_v32  ;;  %v8194_v5 = vld [vmem:[#allocation67_spill] sm:$0xff] }
 0x2e0   :  { %v2150_v49 = vadd.f32 %v2149_v56, %v1837_v52  ;;  %v8192_v52 = vld [vmem:[#allocation101_spill] sm:$0xff] }
 0x2e1   :  { %2369 = vmatmul.bf16.gmra.mxu1 %v8172_v0  ;;  %3069 = vmatmul.bf16.gmra.mxu0 %v8186_v23 }
 0x2e2   :  { %2731 = vmatmul.bf16.gmra.mxu2 %v8187_v28  ;;  %2900 = vmatmul.bf16.gmra.mxu3 %v8188_v33  ;;  %v6357_v40 = vadd.f32 %v2318_v6, %v2150_v49  ;;  %v8193_v6 = vld [vmem:[#allocation107_spill] sm:$0xff]  ;;  %v8195_v49 = vld [vmem:[#allocation57_spill] sm:$0xff] }
 0x2e4   :  { %8189 = vst [vmem:[#allocation81_spill] sm:$0xff] %v6357_v40 }
 0x2e5   :  { %v1839_v3 = vpop.f32.mrf.mxu2  ;;  %v2152_v51 = vpop.f32.mrf.mxu3 }
 0x2e6   :  { %v1840_v18 = vadd.f32 %v1839_v3, %v1671_v46  ;;  %v1672_v60 = vpop.f32.mrf.mxu1  ;;  %v2323_v1 = vpop.f32.mrf.mxu0 }
 0x2e7   :  { %v1673_v0 = vadd.f32 %v1672_v60, %v8192_v52 }
 0x2e8   :  { %v2153_v9 = vadd.f32 %v2152_v51, %v1840_v18 }
 0x2ea   :  { %v6360_v55 = vadd.f32 %v2321_v24, %v2153_v9  ;;  %v8197_v24 = vld [vmem:[#allocation104_spill] sm:$0xff] }
 0x2ec   :  { %8191 = vst [vmem:[#allocation77_spill] sm:$0xff] %v6360_v55 }
 0x2ed   :  { %v1841_v50 = vpop.f32.mrf.mxu2  ;;  %v2154_v56 = vpop.f32.mrf.mxu3 }
 0x2ee   :  { %v1842_v41 = vadd.f32 %v1841_v50, %v1673_v0  ;;  %v1675_v28 = vpop.f32.mrf.mxu1  ;;  %v2326_v34 = vpop.f32.mrf.mxu0 }
 0x2ef   :  { %v1676_v46 = vadd.f32 %v1675_v28, %v8197_v24  ;;  %v8201_v28 = vld [vmem:[#allocation73_spill] sm:$0xff] }
 0x2f0   :  { %v2155_v33 = vadd.f32 %v2154_v56, %v1842_v41  ;;  %v8199_v41 = vld [vmem:[#allocation106_spill] sm:$0xff] }
 0x2f1   :  { %2374 = vmatmul.bf16.gmra.mxu1 %v8179_v36  ;;  %3074 = vmatmul.bf16.gmra.mxu0 %v8193_v6 }
 0x2f2   :  { %2736 = vmatmul.bf16.gmra.mxu2 %v8194_v5  ;;  %2905 = vmatmul.bf16.gmra.mxu3 %v8195_v49  ;;  %v6367_v32 = vadd.f32 %v2323_v1, %v2155_v33  ;;  %v8200_v1 = vld [vmem:[#allocation113_spill] sm:$0xff]  ;;  %v8202_v33 = vld [vmem:[#allocation66_spill] sm:$0xff] }
 0x2f4   :  { %8196 = vst [vmem:[#allocation87_spill] sm:$0xff] %v6367_v32 }
 0x2f5   :  { %v1844_v3 = vpop.f32.mrf.mxu2  ;;  %v2157_v51 = vpop.f32.mrf.mxu3 }
 0x2f6   :  { %v1845_v18 = vadd.f32 %v1844_v3, %v1676_v46  ;;  %v1677_v60 = vpop.f32.mrf.mxu1  ;;  %v2328_v9 = vpop.f32.mrf.mxu0 }
 0x2f7   :  { %v1678_v36 = vadd.f32 %v1677_v60, %v8199_v41 }
 0x2f8   :  { %v2158_v52 = vadd.f32 %v2157_v51, %v1845_v18 }
 0x2fa   :  { %v6370_v0 = vadd.f32 %v2326_v34, %v2158_v52  ;;  %v8204_v34 = vld [vmem:[#allocation109_spill] sm:$0xff] }
 0x2fc   :  { %8198 = vst [vmem:[#allocation28_spill] sm:$0xff] %v6370_v0 }
 0x2fd   :  { %v1846_v50 = vpop.f32.mrf.mxu2  ;;  %v2159_v56 = vpop.f32.mrf.mxu3 }
 0x2fe   :  { %v1847_v55 = vadd.f32 %v1846_v50, %v1678_v36  ;;  %v1680_v5 = vpop.f32.mrf.mxu1  ;;  %v2331_v40 = vpop.f32.mrf.mxu0 }
 0x2ff   :  { %v1681_v46 = vadd.f32 %v1680_v5, %v8204_v34 }
 0x300   :  { %v2160_v49 = vadd.f32 %v2159_v56, %v1847_v55  ;;  %v8206_v55 = vld [vmem:[#allocation111_spill] sm:$0xff] }
 0x301   :  { %2379 = vmatmul.bf16.gmra.mxu1 %v8186_v23  ;;  %3079 = vmatmul.bf16.gmra.mxu0 %v8200_v1 }
 0x302   :  { %2741 = vmatmul.bf16.gmra.mxu2 %v8201_v28  ;;  %2910 = vmatmul.bf16.gmra.mxu3 %v8202_v33  ;;  %v6377_v24 = vadd.f32 %v2328_v9, %v2160_v49  ;;  %v8207_v9 = vld [vmem:[#allocation119_spill] sm:$0xff] }
 0x304   :  { %8203 = vst [vmem:[#allocation13_spill] sm:$0xff] %v6377_v24 }
 0x305   :  { %v1849_v3 = vpop.f32.mrf.mxu2  ;;  %v2162_v51 = vpop.f32.mrf.mxu3 }
 0x306   :  { %v1850_v18 = vadd.f32 %v1849_v3, %v1681_v46  ;;  %v1682_v60 = vpop.f32.mrf.mxu1  ;;  %v2333_v52 = vpop.f32.mrf.mxu0 }
 0x307   :  { %v1683_v23 = vadd.f32 %v1682_v60, %v8206_v55 }
 0x308   :  { %v2163_v41 = vadd.f32 %v2162_v51, %v1850_v18 }
 0x30a   :  { %v6380_v36 = vadd.f32 %v2331_v40, %v2163_v41  ;;  %v8209_v40 = vld [vmem:[#allocation115_spill] sm:$0xff] }
 0x30c   :  { %8205 = vst [vmem:[#allocation84_spill] sm:$0xff] %v6380_v36 }
 0x30d   :  { %v1851_v50 = vpop.f32.mrf.mxu2  ;;  %v2164_v56 = vpop.f32.mrf.mxu3 }
 0x30e   :  { %v1852_v0 = vadd.f32 %v1851_v50, %v1683_v23  ;;  %v1685_v28 = vpop.f32.mrf.mxu1  ;;  %v2336_v32 = vpop.f32.mrf.mxu0 }
 0x30f   :  { %v1686_v49 = vadd.f32 %v1685_v28, %v8209_v40 }
 0x310   :  { %v2165_v33 = vadd.f32 %v2164_v56, %v1852_v0  ;;  %v8211_v0 = vld [vmem:[#allocation118_spill] sm:$0xff] }
 0x311   :  { %2384 = vmatmul.bf16.gmra.mxu1 %v8193_v6  ;;  %3084 = vmatmul.bf16.gmra.mxu0 %v8207_v9 }
 0x312   :  { %2746 = vmatmul.bf16.gmra.mxu2 %v4706_v37  ;;  %2915 = vmatmul.bf16.gmra.mxu3 %v4583_v29  ;;  %v6387_v5 = vadd.f32 %v2333_v52, %v2165_v33 }
 0x314   :  { %8208 = vst [vmem:[#allocation86_spill] sm:$0xff] %v6387_v5 }
 0x315   :  { %v1854_v34 = vpop.f32.mrf.mxu2  ;;  %v2167_v46 = vpop.f32.mrf.mxu3 }
 0x316   :  { %v1855_v3 = vadd.f32 %v1854_v34, %v1686_v49  ;;  %v1687_v51 = vpop.f32.mrf.mxu1  ;;  %v2338_v18 = vpop.f32.mrf.mxu0 }
 0x317   :  { %v1688_v6 = vadd.f32 %v1687_v51, %v8211_v0 }
 0x318   :  { %v2168_v60 = vadd.f32 %v2167_v46, %v1855_v3 }
 0x31a   :  { %v6390_v41 = vadd.f32 %v2336_v32, %v2168_v60 }
 0x31c   :  { %8210 = vst [vmem:[#allocation92_spill] sm:$0xff] %v6390_v41 }
 0x31d   :  { %v1856_v55 = vpop.f32.mrf.mxu2  ;;  %v2169_v23 = vpop.f32.mrf.mxu3 }
 0x31e   :  { %v1857_v50 = vadd.f32 %v1856_v55, %v1688_v6  ;;  %v2350_v37 = vpop.f32.mrf.mxu1  ;;  %v3050_v56 = vpop.f32.mrf.mxu0 }
 0x31f   :  { %v2351_v29 = vadd.f32 %v2350_v37, %v5794_v59 }
 0x320   :  { %v2170_v52 = vadd.f32 %v2169_v23, %v1857_v50 }
 0x321   :  { %2389 = vmatmul.bf16.gmra.mxu1 %v8200_v1  ;;  %3089 = vmatmul.bf16.gmra.mxu0 %v5801_v44 }
 0x322   :  { %2751 = vmatmul.bf16.gmra.mxu2 %v4841_v26  ;;  %2920 = vmatmul.bf16.gmra.mxu3 %v4695_v30  ;;  %v6398_v32 = vadd.f32 %v2338_v18, %v2170_v52 }
 0x324   :  { %8212 = vst [vmem:[#allocation38_spill] sm:$0xff] %v6398_v32 }
 0x325   :  { %v2712_v28 = vpop.f32.mrf.mxu2  ;;  %v2881_v33 = vpop.f32.mrf.mxu3 }
 0x326   :  { %v2882_v40 = vadd.f32 %v2881_v33, %v2712_v28  ;;  %v2352_v49 = vpop.f32.mrf.mxu1  ;;  %v3052_v34 = vpop.f32.mrf.mxu0 }
 0x327   :  { %v2353_v46 = vadd.f32 %v2352_v49, %v5807_v17  ;;  %v8214_v17 = vld [vmem:[#allocation16_spill] sm:$0xff] }
 0x328   :  { %v3051_v3 = vadd.f32 %v3050_v56, %v2882_v40 }
 0x32a   :  { %v6401_v59 = vadd.f32 %v3051_v3, %v2351_v29  ;;  %v8215_v29 = vld [vmem:[#allocation120_spill] sm:$0xff] }
 0x32d   :  { %v2714_v51 = vpop.f32.mrf.mxu2  ;;  %v2883_v1 = vpop.f32.mrf.mxu3 }
 0x32e   :  { %v2884_v60 = vadd.f32 %v2883_v1, %v2714_v51  ;;  %v2355_v0 = vpop.f32.mrf.mxu1  ;;  %v3055_v6 = vpop.f32.mrf.mxu0  ;;  %v8217_v51 = vld [vmem:[#allocation26_spill] sm:$0xff] }
 0x32f   :  { %v2356_v26 = vadd.f32 %v2355_v0, %v5814_v27 }
 0x330   :  { %v3053_v30 = vadd.f32 %v3052_v34, %v2884_v60 }
 0x331   :  { %2394 = vmatmul.bf16.gmra.mxu1 %v8207_v9  ;;  %3094 = vmatmul.bf16.gmra.mxu0 %v5821_v11 }
 0x332   :  { %v6406_v18 = vadd.f32 %v3053_v30, %v2353_v46  ;;  %2756 = vmatmul.bf16.gmra.mxu2 %v7996_v25  ;;  %2925 = vmatmul.bf16.gmra.mxu3 %v8214_v17  ;;  %v8216_v46 = vld [vmem:[#allocation22_spill] sm:$0xff]  ;;  %v8218_v17 = vld [vmem:[#allocation29_spill] sm:$0xff] }
 0x334   :  { %8213 = vst [vmem:[#allocation25_spill] sm:$0xff] %v6406_v18 }
 0x335   :  { %v2717_v55 = vpop.f32.mrf.mxu2  ;;  %v2886_v23 = vpop.f32.mrf.mxu3 }
 0x336   :  { %v2887_v50 = vadd.f32 %v2886_v23, %v2717_v55  ;;  %v2357_v37 = vpop.f32.mrf.mxu1  ;;  %v3057_v56 = vpop.f32.mrf.mxu0 }
 0x337   :  { %v2358_v52 = vadd.f32 %v2357_v37, %v8215_v29 }
 0x338   :  { %v3056_v28 = vadd.f32 %v3055_v6, %v2887_v50 }
 0x33a   :  { %v6411_v27 = vadd.f32 %v3056_v28, %v2356_v26  ;;  %v8220_v28 = vld [vmem:[#allocation33_spill] sm:$0xff] }
 0x33d   :  { %v2719_v33 = vpop.f32.mrf.mxu2  ;;  %v2888_v9 = vpop.f32.mrf.mxu3 }
 0x33e   :  { %v2889_v40 = vadd.f32 %v2888_v9, %v2719_v33  ;;  %v2360_v49 = vpop.f32.mrf.mxu1  ;;  %v3060_v34 = vpop.f32.mrf.mxu0 }
 0x33f   :  { %v2361_v3 = vadd.f32 %v2360_v49, %v8216_v46 }
 0x340   :  { %v3058_v25 = vadd.f32 %v3057_v56, %v2889_v40 }
 0x341   :  { %2399 = vmatmul.bf16.gmra.mxu1 %v5801_v44  ;;  %3099 = vmatmul.bf16.gmra.mxu0 %v8217_v51 }
 0x342   :  { %v6416_v1 = vadd.f32 %v3058_v25, %v2358_v52  ;;  %2761 = vmatmul.bf16.gmra.mxu2 %v8004_v10  ;;  %2930 = vmatmul.bf16.gmra.mxu3 %v7991_v39  ;;  %v8221_v39 = vld [vmem:[#allocation37_spill] sm:$0xff]  ;;  %v8222_v25 = vld [vmem:[#allocation39_spill] sm:$0xff] }
 0x345   :  { %v2722_v60 = vpop.f32.mrf.mxu2  ;;  %v2891_v0 = vpop.f32.mrf.mxu3 }
 0x346   :  { %v2892_v6 = vadd.f32 %v2891_v0, %v2722_v60  ;;  %v2362_v26 = vpop.f32.mrf.mxu1  ;;  %v3062_v30 = vpop.f32.mrf.mxu0 }
 0x347   :  { %v2363_v55 = vadd.f32 %v2362_v26, %v8218_v17 }
 0x348   :  { %v3061_v23 = vadd.f32 %v3060_v34, %v2892_v6 }
 0x34a   :  { %v6421_v50 = vadd.f32 %v3061_v23, %v2361_v3 }
 0x34c   :  { %8219 = vst [vmem:[#allocation89_spill] sm:$0xff] %v6421_v50 }
 0x34d   :  { %v2724_v37 = vpop.f32.mrf.mxu2  ;;  %v2893_v44 = vpop.f32.mrf.mxu3 }
 0x34e   :  { %v2894_v56 = vadd.f32 %v2893_v44, %v2724_v37  ;;  %v2365_v29 = vpop.f32.mrf.mxu1  ;;  %v3065_v52 = vpop.f32.mrf.mxu0 }
 0x34f   :  { %v2366_v33 = vadd.f32 %v2365_v29, %v8220_v28 }
 0x350   :  { %v3063_v10 = vadd.f32 %v3062_v30, %v2894_v56 }
 0x351   :  { %2404 = vmatmul.bf16.gmra.mxu1 %v5821_v11  ;;  %3104 = vmatmul.bf16.gmra.mxu0 %v8221_v39 }
 0x352   :  { %v6426_v9 = vadd.f32 %v3063_v10, %v2363_v55  ;;  %2766 = vmatmul.bf16.gmra.mxu2 %v8011_v12  ;;  %2935 = vmatmul.bf16.gmra.mxu3 %v7999_v35  ;;  %v8223_v35 = vld [vmem:[#allocation44_spill] sm:$0xff] }
 0x355   :  { %v2727_v40 = vpop.f32.mrf.mxu2  ;;  %v2896_v49 = vpop.f32.mrf.mxu3 }
 0x356   :  { %v2897_v34 = vadd.f32 %v2896_v49, %v2727_v40  ;;  %v2367_v46 = vpop.f32.mrf.mxu1  ;;  %v3067_v3 = vpop.f32.mrf.mxu0 }
 0x357   :  { %v2368_v60 = vadd.f32 %v2367_v46, %v8222_v25 }
 0x358   :  { %v3066_v0 = vadd.f32 %v3065_v52, %v2897_v34 }
 0x35a   :  { %v6431_v6 = vadd.f32 %v3066_v0, %v2366_v33  ;;  %v8224_v33 = vld [vmem:[#allocation48_spill] sm:$0xff] }
 0x35d   :  { %v2729_v26 = vpop.f32.mrf.mxu2  ;;  %v2898_v11 = vpop.f32.mrf.mxu3 }
 0x35e   :  { %v2899_v30 = vadd.f32 %v2898_v11, %v2729_v26  ;;  %v2370_v17 = vpop.f32.mrf.mxu1  ;;  %v3070_v55 = vpop.f32.mrf.mxu0 }
 0x35f   :  { %v2371_v23 = vadd.f32 %v2370_v17, %v5886_v48 }
 0x360   :  { %v3068_v12 = vadd.f32 %v3067_v3, %v2899_v30 }
 0x361   :  { %2409 = vmatmul.bf16.gmra.mxu1 %v8217_v51  ;;  %3109 = vmatmul.bf16.gmra.mxu0 %v8223_v35 }
 0x362   :  { %v6436_v37 = vadd.f32 %v3068_v12, %v2368_v60  ;;  %2771 = vmatmul.bf16.gmra.mxu2 %v8016_v20  ;;  %2940 = vmatmul.bf16.gmra.mxu3 %v8007_v19 }
 0x365   :  { %v2732_v44 = vpop.f32.mrf.mxu2  ;;  %v2901_v56 = vpop.f32.mrf.mxu3 }
 0x366   :  { %v2902_v29 = vadd.f32 %v2901_v56, %v2732_v44  ;;  %v2372_v52 = vpop.f32.mrf.mxu1  ;;  %v3072_v28 = vpop.f32.mrf.mxu0 }
 0x367   :  { %v2373_v10 = vadd.f32 %v2372_v52, %v8224_v33 }
 0x368   :  { %v3071_v40 = vadd.f32 %v3070_v55, %v2902_v29 }
 0x36a   :  { %v6441_v48 = vadd.f32 %v3071_v40, %v2371_v23 }
 0x36c   :  { %8225 = vst [vmem:[#allocation91_spill] sm:$0xff] %v6441_v48 }
 0x36d   :  { %v2734_v49 = vpop.f32.mrf.mxu2  ;;  %v2903_v51 = vpop.f32.mrf.mxu3 }
 0x36e   :  { %v2904_v34 = vadd.f32 %v2903_v51, %v2734_v49  ;;  %v2375_v46 = vpop.f32.mrf.mxu1  ;;  %v3075_v3 = vpop.f32.mrf.mxu0 }
 0x36f   :  { %v2376_v25 = vadd.f32 %v2375_v46, %v5906_v21 }
 0x370   :  { %v3073_v20 = vadd.f32 %v3072_v28, %v2904_v34  ;;  %v8226_v28 = vld [vmem:[#allocation51_spill] sm:$0xff] }
 0x371   :  { %2414 = vmatmul.bf16.gmra.mxu1 %v8221_v39  ;;  %3114 = vmatmul.bf16.gmra.mxu0 %v5913_v22 }
 0x372   :  { %v6446_v19 = vadd.f32 %v3073_v20, %v2373_v10  ;;  %2776 = vmatmul.bf16.gmra.mxu2 %v5428_v61  ;;  %2945 = vmatmul.bf16.gmra.mxu3 %v5313_v53  ;;  %v8227_v10 = vld [vmem:[#allocation74_spill] sm:$0xff] }
 0x375   :  { %v2737_v60 = vpop.f32.mrf.mxu2  ;;  %v2906_v0 = vpop.f32.mrf.mxu3 }
 0x376   :  { %v2907_v26 = vadd.f32 %v2906_v0, %v2737_v60  ;;  %v2377_v11 = vpop.f32.mrf.mxu1  ;;  %v3077_v30 = vpop.f32.mrf.mxu0 }
 0x377   :  { %v2378_v17 = vadd.f32 %v2377_v11, %v5925_v4  ;;  %v8228_v4 = vld [vmem:[#allocation68_spill] sm:$0xff] }
 0x378   :  { %v3076_v55 = vadd.f32 %v3075_v3, %v2907_v26  ;;  %v8229_v3 = vld [vmem:[#allocation55_spill] sm:$0xff] }
 0x37a   :  { %v6451_v21 = vadd.f32 %v3076_v55, %v2376_v25 }
 0x37d   :  { %v2739_v23 = vpop.f32.mrf.mxu2  ;;  %v2908_v39 = vpop.f32.mrf.mxu3 }
 0x37e   :  { %v2909_v12 = vadd.f32 %v2908_v39, %v2739_v23  ;;  %v2380_v44 = vpop.f32.mrf.mxu1  ;;  %v3080_v56 = vpop.f32.mrf.mxu0 }
 0x37f   :  { %v2381_v29 = vadd.f32 %v2380_v44, %v5938_v45 }
 0x380   :  { %v3078_v52 = vadd.f32 %v3077_v30, %v2909_v12  ;;  %v8231_v30 = vld [vmem:[#allocation61_spill] sm:$0xff] }
 0x381   :  { %2419 = vmatmul.bf16.gmra.mxu1 %v8223_v35  ;;  %3119 = vmatmul.bf16.gmra.mxu0 %v8226_v28 }
 0x382   :  { %v6456_v33 = vadd.f32 %v3078_v52, %v2378_v17  ;;  %2781 = vmatmul.bf16.gmra.mxu2 %v8227_v10  ;;  %2950 = vmatmul.bf16.gmra.mxu3 %v8228_v4  ;;  %v8232_v52 = vld [vmem:[#allocation4_spill] sm:$0xff] }
 0x385   :  { %v2742_v40 = vpop.f32.mrf.mxu2  ;;  %v2911_v49 = vpop.f32.mrf.mxu3 }
 0x386   :  { %v2912_v51 = vadd.f32 %v2911_v49, %v2742_v40  ;;  %v2382_v34 = vpop.f32.mrf.mxu1  ;;  %v3082_v46 = vpop.f32.mrf.mxu0 }
 0x387   :  { %v2383_v25 = vadd.f32 %v2382_v34, %v8229_v3 }
 0x388   :  { %v3081_v20 = vadd.f32 %v3080_v56, %v2912_v51 }
 0x38a   :  { %v6461_v45 = vadd.f32 %v3081_v20, %v2381_v29 }
 0x38c   :  { %8230 = vst [vmem:[#allocation97_spill] sm:$0xff] %v6461_v45 }
 0x38d   :  { %v2744_v60 = vpop.f32.mrf.mxu2  ;;  %v2913_v35 = vpop.f32.mrf.mxu3 }
 0x38e   :  { %v2914_v0 = vadd.f32 %v2913_v35, %v2744_v60  ;;  %v2385_v26 = vpop.f32.mrf.mxu1  ;;  %v3085_v11 = vpop.f32.mrf.mxu0 }
 0x38f   :  { %v2386_v17 = vadd.f32 %v2385_v26, %v8231_v30 }
 0x390   :  { %v3083_v55 = vadd.f32 %v3082_v46, %v2914_v0  ;;  %v8233_v0 = vld [vmem:[#allocation9_spill] sm:$0xff] }
 0x391   :  { %2424 = vmatmul.bf16.gmra.mxu1 %v5913_v22  ;;  %3124 = vmatmul.bf16.gmra.mxu0 %v5913_v22 }
 0x392   :  { %v6466_v23 = vadd.f32 %v3083_v55, %v2383_v25  ;;  %2786 = vmatmul.bf16.gmra.mxu2 %v5428_v61  ;;  %2955 = vmatmul.bf16.gmra.mxu3 %v5313_v53 }
 0x395   :  { %v2747_v39 = vpop.f32.mrf.mxu2  ;;  %v2916_v12 = vpop.f32.mrf.mxu3 }
 0x396   :  { %v2917_v44 = vadd.f32 %v2916_v12, %v2747_v39  ;;  %v2387_v56 = vpop.f32.mrf.mxu1  ;;  %v3087_v29 = vpop.f32.mrf.mxu0 }
 0x397   :  { %v2388_v28 = vadd.f32 %v2387_v56, %v8232_v52  ;;  %v8235_v56 = vld [vmem:[#allocation2_spill] sm:$0xff] }
 0x398   :  { %v3086_v10 = vadd.f32 %v3085_v11, %v2917_v44 }
 0x39a   :  { %v6471_v4 = vadd.f32 %v3086_v10, %v2386_v17 }
 0x39d   :  { %v2749_v40 = vpop.f32.mrf.mxu2  ;;  %v2918_v49 = vpop.f32.mrf.mxu3 }
 0x39e   :  { %v2919_v51 = vadd.f32 %v2918_v49, %v2749_v40  ;;  %v2390_v22 = vpop.f32.mrf.mxu1  ;;  %v3090_v34 = vpop.f32.mrf.mxu0 }
 0x39f   :  { %v2391_v46 = vadd.f32 %v2390_v22, %v5978_v7 }
 0x3a0   :  { %v3088_v61 = vadd.f32 %v3087_v29, %v2919_v51  ;;  %v8237_v29 = vld [vmem:[#allocation20_spill] sm:$0xff]  ;;  %v8238_v51 = vld [vmem:[#allocation18_spill] sm:$0xff] }
 0x3a1   :  { %2429 = vmatmul.bf16.gmra.mxu1 %v5985_v42  ;;  %3129 = vmatmul.bf16.gmra.mxu0 %v5985_v42 }
 0x3a2   :  { %v6476_v53 = vadd.f32 %v3088_v61, %v2388_v28  ;;  %2791 = vmatmul.bf16.gmra.mxu2 %v8028_v13  ;;  %2960 = vmatmul.bf16.gmra.mxu3 %v8027_v15 }
 0x3a5   :  { %v2752_v3 = vpop.f32.mrf.mxu2  ;;  %v2921_v25 = vpop.f32.mrf.mxu3 }
 0x3a6   :  { %v2922_v20 = vadd.f32 %v2921_v25, %v2752_v3  ;;  %v2392_v60 = vpop.f32.mrf.mxu1  ;;  %v3092_v35 = vpop.f32.mrf.mxu0 }
 0x3a7   :  { %v2393_v26 = vadd.f32 %v2392_v60, %v8233_v0  ;;  %v8240_v60 = vld [vmem:[#allocation6_spill] sm:$0xff]  ;;  %v8241_v0 = vld [vmem:[#allocation11_spill] sm:$0xff] }
 0x3a8   :  { %v3091_v11 = vadd.f32 %v3090_v34, %v2922_v20 }
 0x3aa   :  { %v6481_v7 = vadd.f32 %v3091_v11, %v2391_v46 }
 0x3ac   :  { %8234 = vst [vmem:[#allocation50_spill] sm:$0xff] %v6481_v7 }
 0x3ad   :  { %v2754_v30 = vpop.f32.mrf.mxu2  ;;  %v2923_v17 = vpop.f32.mrf.mxu3 }
 0x3ae   :  { %v2924_v55 = vadd.f32 %v2923_v17, %v2754_v30  ;;  %v2395_v39 = vpop.f32.mrf.mxu1  ;;  %v3095_v12 = vpop.f32.mrf.mxu0 }
 0x3af   :  { %v2396_v44 = vadd.f32 %v2395_v39, %v5998_v54 }
 0x3b0   :  { %v3093_v13 = vadd.f32 %v3092_v35, %v2924_v55 }
 0x3b1   :  { %2434 = vmatmul.bf16.gmra.mxu1 %v8235_v56  ;;  %3134 = vmatmul.bf16.gmra.mxu0 %v6005_v14 }
 0x3b2   :  { %v6486_v15 = vadd.f32 %v3093_v13, %v2393_v26  ;;  %2796 = vmatmul.bf16.gmra.mxu2 %v8046_v16  ;;  %2965 = vmatmul.bf16.gmra.mxu3 %v8237_v29 }
 0x3b4   :  { %8236 = vst [vmem:[#allocation35_spill] sm:$0xff] %v6486_v15 }
 0x3b5   :  { %v2757_v52 = vpop.f32.mrf.mxu2  ;;  %v2926_v28 = vpop.f32.mrf.mxu3 }
 0x3b6   :  { %v2927_v10 = vadd.f32 %v2926_v28, %v2757_v52  ;;  %v2397_v40 = vpop.f32.mrf.mxu1  ;;  %v3097_v49 = vpop.f32.mrf.mxu0 }
 0x3b7   :  { %v2398_v22 = vadd.f32 %v2397_v40, %v8238_v51  ;;  %v8245_v40 = vld [vmem:[#allocation23_spill] sm:$0xff] }
 0x3b8   :  { %v3096_v34 = vadd.f32 %v3095_v12, %v2927_v10  ;;  %v8243_v12 = vld [vmem:[#allocation14_spill] sm:$0xff] }
 0x3ba   :  { %v6491_v54 = vadd.f32 %v3096_v34, %v2396_v44 }
 0x3bc   :  { %8239 = vst [vmem:[#allocation94_spill] sm:$0xff] %v6491_v54 }
 0x3bd   :  { %v2759_v46 = vpop.f32.mrf.mxu2  ;;  %v2928_v61 = vpop.f32.mrf.mxu3 }
 0x3be   :  { %v2929_v3 = vadd.f32 %v2928_v61, %v2759_v46  ;;  %v2400_v25 = vpop.f32.mrf.mxu1  ;;  %v3100_v20 = vpop.f32.mrf.mxu0 }
 0x3bf   :  { %v2401_v35 = vadd.f32 %v2400_v25, %v8240_v60  ;;  %v8248_v25 = vld [vmem:[#allocation31_spill] sm:$0xff] }
 0x3c0   :  { %v3098_v16 = vadd.f32 %v3097_v49, %v2929_v3 }
 0x3c1   :  { %2439 = vmatmul.bf16.gmra.mxu1 %v5985_v42  ;;  %3139 = vmatmul.bf16.gmra.mxu0 %v8241_v0 }
 0x3c2   :  { %v6496_v26 = vadd.f32 %v3098_v16, %v2398_v22  ;;  %2801 = vmatmul.bf16.gmra.mxu2 %v8054_v58  ;;  %2970 = vmatmul.bf16.gmra.mxu3 %v8041_v38  ;;  %v8246_v38 = vld [vmem:[#allocation27_spill] sm:$0xff] }
 0x3c4   :  { %8242 = vst [vmem:[#allocation96_spill] sm:$0xff] %v6496_v26 }
 0x3c5   :  { %v2762_v11 = vpop.f32.mrf.mxu2  ;;  %v2931_v30 = vpop.f32.mrf.mxu3 }
 0x3c6   :  { %v2932_v17 = vadd.f32 %v2931_v30, %v2762_v11  ;;  %v2402_v55 = vpop.f32.mrf.mxu1  ;;  %v3102_v39 = vpop.f32.mrf.mxu0 }
 0x3c7   :  { %v2403_v44 = vadd.f32 %v2402_v55, %v8243_v12 }
 0x3c8   :  { %v3101_v13 = vadd.f32 %v3100_v20, %v2932_v17 }
 0x3ca   :  { %v6501_v56 = vadd.f32 %v3101_v13, %v2401_v35 }
 0x3cc   :  { %8244 = vst [vmem:[#allocation102_spill] sm:$0xff] %v6501_v56 }
 0x3cd   :  { %v2764_v29 = vpop.f32.mrf.mxu2  ;;  %v2933_v42 = vpop.f32.mrf.mxu3 }
 0x3ce   :  { %v2934_v52 = vadd.f32 %v2933_v42, %v2764_v29  ;;  %v2405_v28 = vpop.f32.mrf.mxu1  ;;  %v3105_v10 = vpop.f32.mrf.mxu0 }
 0x3cf   :  { %v2406_v49 = vadd.f32 %v2405_v28, %v8245_v40 }
 0x3d0   :  { %v3103_v58 = vadd.f32 %v3102_v39, %v2934_v52  ;;  %v8252_v52 = vld [vmem:[#allocation40_spill] sm:$0xff] }
 0x3d1   :  { %2444 = vmatmul.bf16.gmra.mxu1 %v6005_v14  ;;  %3144 = vmatmul.bf16.gmra.mxu0 %v8246_v38 }
 0x3d2   :  { %v6506_v51 = vadd.f32 %v3103_v58, %v2403_v44  ;;  %2806 = vmatmul.bf16.gmra.mxu2 %v8061_v43  ;;  %2975 = vmatmul.bf16.gmra.mxu3 %v8049_v2  ;;  %v8250_v2 = vld [vmem:[#allocation34_spill] sm:$0xff] }
 0x3d4   :  { %8247 = vst [vmem:[#allocation60_spill] sm:$0xff] %v6506_v51 }
 0x3d5   :  { %v2767_v22 = vpop.f32.mrf.mxu2  ;;  %v2936_v34 = vpop.f32.mrf.mxu3 }
 0x3d6   :  { %v2937_v46 = vadd.f32 %v2936_v34, %v2767_v22  ;;  %v2407_v61 = vpop.f32.mrf.mxu1  ;;  %v3107_v3 = vpop.f32.mrf.mxu0 }
 0x3d7   :  { %v2408_v20 = vadd.f32 %v2407_v61, %v8248_v25  ;;  %v8256_v61 = vld [vmem:[#allocation59_spill] sm:$0xff] }
 0x3d8   :  { %v3106_v60 = vadd.f32 %v3105_v10, %v2937_v46  ;;  %v8255_v46 = vld [vmem:[#allocation70_spill] sm:$0xff] }
 0x3da   :  { %v6511_v35 = vadd.f32 %v3106_v60, %v2406_v49 }
 0x3dc   :  { %8249 = vst [vmem:[#allocation47_spill] sm:$0xff] %v6511_v35 }
 0x3dd   :  { %v2769_v16 = vpop.f32.mrf.mxu2  ;;  %v2938_v14 = vpop.f32.mrf.mxu3 }
 0x3de   :  { %v2939_v11 = vadd.f32 %v2938_v14, %v2769_v16  ;;  %v2410_v30 = vpop.f32.mrf.mxu1  ;;  %v3110_v17 = vpop.f32.mrf.mxu0  ;;  %v8257_v14 = vld [vmem:[#allocation41_spill] sm:$0xff] }
 0x3df   :  { %v2411_v55 = vadd.f32 %v2410_v30, %v6070_v8 }
 0x3e0   :  { %v3108_v43 = vadd.f32 %v3107_v3, %v2939_v11 }
 0x3e1   :  { %2449 = vmatmul.bf16.gmra.mxu1 %v8241_v0  ;;  %3149 = vmatmul.bf16.gmra.mxu0 %v8250_v2 }
 0x3e2   :  { %v6516_v39 = vadd.f32 %v3108_v43, %v2408_v20  ;;  %2811 = vmatmul.bf16.gmra.mxu2 %v8066_v63  ;;  %2980 = vmatmul.bf16.gmra.mxu3 %v8057_v62 }
 0x3e4   :  { %8251 = vst [vmem:[#allocation99_spill] sm:$0xff] %v6516_v39 }
 0x3e5   :  { %v2772_v12 = vpop.f32.mrf.mxu2  ;;  %v2941_v44 = vpop.f32.mrf.mxu3 }
 0x3e6   :  { %v2942_v13 = vadd.f32 %v2941_v44, %v2772_v12  ;;  %v2412_v29 = vpop.f32.mrf.mxu1  ;;  %v3112_v42 = vpop.f32.mrf.mxu0  ;;  %v8259_v44 = vld [vmem:[#allocation45_spill] sm:$0xff] }
 0x3e7   :  { %v2413_v28 = vadd.f32 %v2412_v29, %v8252_v52 }
 0x3e8   :  { %v3111_v10 = vadd.f32 %v3110_v17, %v2942_v13 }
 0x3ea   :  { %v6521_v8 = vadd.f32 %v3111_v10, %v2411_v55  ;;  %v8263_v10 = vld [vmem:[#allocation69_spill] sm:$0xff] }
 0x3ec   :  { %8253 = vst [vmem:[#allocation101_spill] sm:$0xff] %v6521_v8 }
 0x3ed   :  { %v2774_v40 = vpop.f32.mrf.mxu2  ;;  %v2943_v0 = vpop.f32.mrf.mxu3 }
 0x3ee   :  { %v2944_v49 = vadd.f32 %v2943_v0, %v2774_v40  ;;  %v2415_v58 = vpop.f32.mrf.mxu1  ;;  %v3115_v22 = vpop.f32.mrf.mxu0 }
 0x3ef   :  { %v2416_v34 = vadd.f32 %v2415_v58, %v6090_v57 }
 0x3f0   :  { %v3113_v63 = vadd.f32 %v3112_v42, %v2944_v49  ;;  %v8260_v42 = vld [vmem:[#allocation49_spill] sm:$0xff] }
 0x3f1   :  { %2454 = vmatmul.bf16.gmra.mxu1 %v8246_v38  ;;  %3154 = vmatmul.bf16.gmra.mxu0 %v6097_v31 }
 0x3f2   :  { %v6526_v62 = vadd.f32 %v3113_v63, %v2413_v28  ;;  %2816 = vmatmul.bf16.gmra.mxu2 %v8255_v46  ;;  %2985 = vmatmul.bf16.gmra.mxu3 %v8256_v61  ;;  %v8262_v28 = vld [vmem:[#allocation75_spill] sm:$0xff] }
 0x3f4   :  { %8254 = vst [vmem:[#allocation107_spill] sm:$0xff] %v6526_v62 }
 0x3f5   :  { %v2777_v3 = vpop.f32.mrf.mxu2  ;;  %v2946_v25 = vpop.f32.mrf.mxu3 }
 0x3f6   :  { %v2947_v20 = vadd.f32 %v2946_v25, %v2777_v3  ;;  %v2417_v60 = vpop.f32.mrf.mxu1  ;;  %v3117_v16 = vpop.f32.mrf.mxu0 }
 0x3f7   :  { %v2418_v11 = vadd.f32 %v2417_v60, %v8257_v14 }
 0x3f8   :  { %v3116_v30 = vadd.f32 %v3115_v22, %v2947_v20 }
 0x3fa   :  { %v6531_v57 = vadd.f32 %v3116_v30, %v2416_v34  ;;  %v8264_v34 = vld [vmem:[#allocation53_spill] sm:$0xff]  ;;  %v8267_v30 = vld [vmem:[#allocation62_spill] sm:$0xff] }
 0x3fc   :  { %8258 = vst [vmem:[#allocation67_spill] sm:$0xff] %v6531_v57 }
 0x3fd   :  { %v2779_v17 = vpop.f32.mrf.mxu2  ;;  %v2948_v38 = vpop.f32.mrf.mxu3 }
 0x3fe   :  { %v2949_v55 = vadd.f32 %v2948_v38, %v2779_v17  ;;  %v2420_v43 = vpop.f32.mrf.mxu1  ;;  %v3120_v12 = vpop.f32.mrf.mxu0  ;;  %v8269_v38 = vld [vmem:[#allocation12_spill] sm:$0xff] }
 0x3ff   :  { %v2421_v13 = vadd.f32 %v2420_v43, %v8259_v44 }
 0x400   :  { %v3118_v29 = vadd.f32 %v3117_v16, %v2949_v55  ;;  %v8266_v16 = vld [vmem:[#allocation56_spill] sm:$0xff]  ;;  %v8270_v55 = vld [vmem:[#allocation5_spill] sm:$0xff] }
 0x401   :  { %2459 = vmatmul.bf16.gmra.mxu1 %v8250_v2  ;;  %3159 = vmatmul.bf16.gmra.mxu0 %v8260_v42 }
 0x402   :  { %v6536_v52 = vadd.f32 %v3118_v29, %v2418_v11  ;;  %2821 = vmatmul.bf16.gmra.mxu2 %v8262_v28  ;;  %2990 = vmatmul.bf16.gmra.mxu3 %v8263_v10  ;;  %v8271_v28 = vld [vmem:[#allocation3_spill] sm:$0xff] }
 0x404   :  { %8261 = vst [vmem:[#allocation57_spill] sm:$0xff] %v6536_v52 }
 0x405   :  { %v2782_v40 = vpop.f32.mrf.mxu2  ;;  %v2951_v0 = vpop.f32.mrf.mxu3 }
 0x406   :  { %v2952_v49 = vadd.f32 %v2951_v0, %v2782_v40  ;;  %v2422_v58 = vpop.f32.mrf.mxu1  ;;  %v3122_v22 = vpop.f32.mrf.mxu0 }
 0x407   :  { %v2423_v63 = vadd.f32 %v2422_v58, %v8264_v34 }
 0x408   :  { %v3121_v46 = vadd.f32 %v3120_v12, %v2952_v49 }
 0x40a   :  { %v6541_v61 = vadd.f32 %v3121_v46, %v2421_v13 }
 0x40c   :  { %8265 = vst [vmem:[#allocation104_spill] sm:$0xff] %v6541_v61 }
 0x40d   :  { %v2784_v3 = vpop.f32.mrf.mxu2  ;;  %v2953_v2 = vpop.f32.mrf.mxu3 }
 0x40e   :  { %v2954_v25 = vadd.f32 %v2953_v2, %v2784_v3  ;;  %v2425_v20 = vpop.f32.mrf.mxu1  ;;  %v3125_v60 = vpop.f32.mrf.mxu0  ;;  %v8274_v2 = vld [vmem:[#allocation116_spill] sm:$0xff] }
 0x40f   :  { %v2426_v14 = vadd.f32 %v2425_v20, %v8266_v16  ;;  %v8276_v20 = vld [vmem:[#allocation19_spill] sm:$0xff]  ;;  %v8277_v16 = vld [vmem:[#allocation10_spill] sm:$0xff] }
 0x410   :  { %v3123_v11 = vadd.f32 %v3122_v22, %v2954_v25 }
 0x411   :  { %2464 = vmatmul.bf16.gmra.mxu1 %v6097_v31  ;;  %3164 = vmatmul.bf16.gmra.mxu0 %v8267_v30 }
 0x412   :  { %v6546_v17 = vadd.f32 %v3123_v11, %v2423_v63  ;;  %2826 = vmatmul.bf16.gmra.mxu2 %v8269_v38  ;;  %2995 = vmatmul.bf16.gmra.mxu3 %v8270_v55  ;;  %v8273_v63 = vld [vmem:[#allocation112_spill] sm:$0xff] }
 0x414   :  { %8268 = vst [vmem:[#allocation106_spill] sm:$0xff] %v6546_v17 }
 0x415   :  { %v2787_v43 = vpop.f32.mrf.mxu2  ;;  %v2956_v12 = vpop.f32.mrf.mxu3 }
 0x416   :  { %v2957_v44 = vadd.f32 %v2956_v12, %v2787_v43  ;;  %v2427_v13 = vpop.f32.mrf.mxu1  ;;  %v3127_v29 = vpop.f32.mrf.mxu0  ;;  %v8278_v43 = vld [vmem:[#allocation7_spill] sm:$0xff] }
 0x417   :  { %v2428_v10 = vadd.f32 %v2427_v13, %v8271_v28 }
 0x418   :  { %v3126_v40 = vadd.f32 %v3125_v60, %v2957_v44 }
 0x41a   :  { %v6551_v0 = vadd.f32 %v3126_v40, %v2426_v14 }
 0x41c   :  { %8272 = vst [vmem:[#allocation113_spill] sm:$0xff] %v6551_v0 }
 0x41d   :  { %v2789_v49 = vpop.f32.mrf.mxu2  ;;  %v2958_v31 = vpop.f32.mrf.mxu3 }
 0x41e   :  { %v2959_v58 = vadd.f32 %v2958_v31, %v2789_v49  ;;  %v2430_v22 = vpop.f32.mrf.mxu1  ;;  %v3130_v34 = vpop.f32.mrf.mxu0  ;;  %v8280_v49 = vld [vmem:[#allocation78_spill] sm:$0xff] }
 0x41f   :  { %v2431_v46 = vadd.f32 %v2430_v22, %v8273_v63  ;;  %v8281_v22 = vld [vmem:[#allocation80_spill] sm:$0xff] }
 0x420   :  { %v3128_v3 = vadd.f32 %v3127_v29, %v2959_v58 }
 0x421   :  { %2469 = vmatmul.bf16.gmra.mxu1 %v8260_v42  ;;  %3169 = vmatmul.bf16.gmra.mxu0 %v8274_v2 }
 0x422   :  { %v6556_v25 = vadd.f32 %v3128_v3, %v2428_v10  ;;  %2831 = vmatmul.bf16.gmra.mxu2 %v8276_v20  ;;  %3000 = vmatmul.bf16.gmra.mxu3 %v8277_v16  ;;  %v8283_v3 = vld [vmem:[#allocation32_spill] sm:$0xff]  ;;  %v8284_v20 = vld [vmem:[#allocation21_spill] sm:$0xff] }
 0x424   :  { %8275 = vst [vmem:[#allocation73_spill] sm:$0xff] %v6556_v25 }
 0x425   :  { %v2792_v60 = vpop.f32.mrf.mxu2  ;;  %v2961_v14 = vpop.f32.mrf.mxu3 }
 0x426   :  { %v2962_v11 = vadd.f32 %v2961_v14, %v2792_v60  ;;  %v2432_v38 = vpop.f32.mrf.mxu1  ;;  %v3132_v55 = vpop.f32.mrf.mxu0 }
 0x427   :  { %v2433_v12 = vadd.f32 %v2432_v38, %v8278_v43 }
 0x428   :  { %v3131_v44 = vadd.f32 %v3130_v34, %v2962_v11  ;;  %v8285_v11 = vld [vmem:[#allocation15_spill] sm:$0xff] }
 0x42a   :  { %v6561_v13 = vadd.f32 %v3131_v44, %v2431_v46 }
 0x42c   :  { %8279 = vst [vmem:[#allocation66_spill] sm:$0xff] %v6561_v13 }
 0x42d   :  { %v2794_v29 = vpop.f32.mrf.mxu2  ;;  %v2963_v42 = vpop.f32.mrf.mxu3 }
 0x42e   :  { %v2964_v28 = vadd.f32 %v2963_v42, %v2794_v29  ;;  %v2435_v40 = vpop.f32.mrf.mxu1  ;;  %v3135_v10 = vpop.f32.mrf.mxu0 }
 0x42f   :  { %v2436_v31 = vadd.f32 %v2435_v40, %v8280_v49 }
 0x430   :  { %v3133_v58 = vadd.f32 %v3132_v55, %v2964_v28  ;;  %v8287_v28 = vld [vmem:[#allocation83_spill] sm:$0xff] }
 0x431   :  { %2474 = vmatmul.bf16.gmra.mxu1 %v8267_v30  ;;  %3174 = vmatmul.bf16.gmra.mxu0 %v8281_v22 }
 0x432   :  { %v6566_v63 = vadd.f32 %v3133_v58, %v2433_v12  ;;  %2836 = vmatmul.bf16.gmra.mxu2 %v8283_v3  ;;  %3005 = vmatmul.bf16.gmra.mxu3 %v8284_v20  ;;  %v8288_v58 = vld [vmem:[#allocation85_spill] sm:$0xff]  ;;  %v8290_v20 = vld [vmem:[#allocation42_spill] sm:$0xff] }
 0x434   :  { %8282 = vst [vmem:[#allocation109_spill] sm:$0xff] %v6566_v63 }
 0x435   :  { %v2797_v34 = vpop.f32.mrf.mxu2  ;;  %v2966_v46 = vpop.f32.mrf.mxu3 }
 0x436   :  { %v2967_v16 = vadd.f32 %v2966_v46, %v2797_v34  ;;  %v2437_v60 = vpop.f32.mrf.mxu1  ;;  %v3137_v14 = vpop.f32.mrf.mxu0  ;;  %v8291_v34 = vld [vmem:[#allocation30_spill] sm:$0xff] }
 0x437   :  { %v2438_v38 = vadd.f32 %v2437_v60, %v8285_v11  ;;  %v8292_v11 = vld [vmem:[#allocation24_spill] sm:$0xff] }
 0x438   :  { %v3136_v43 = vadd.f32 %v3135_v10, %v2967_v16 }
 0x43a   :  { %v6571_v44 = vadd.f32 %v3136_v43, %v2436_v31 }
 0x43c   :  { %8286 = vst [vmem:[#allocation111_spill] sm:$0xff] %v6571_v44 }
 0x43d   :  { %v2799_v55 = vpop.f32.mrf.mxu2  ;;  %v2968_v30 = vpop.f32.mrf.mxu3 }
 0x43e   :  { %v2969_v29 = vadd.f32 %v2968_v30, %v2799_v55  ;;  %v2440_v42 = vpop.f32.mrf.mxu1  ;;  %v3140_v12 = vpop.f32.mrf.mxu0 }
 0x43f   :  { %v2441_v40 = vadd.f32 %v2440_v42, %v8287_v28  ;;  %v8294_v28 = vld [vmem:[#allocation88_spill] sm:$0xff] }
 0x440   :  { %v3138_v49 = vadd.f32 %v3137_v14, %v2969_v29 }
 0x441   :  { %2479 = vmatmul.bf16.gmra.mxu1 %v8274_v2  ;;  %3179 = vmatmul.bf16.gmra.mxu0 %v8288_v58 }
 0x442   :  { %v6576_v3 = vadd.f32 %v3138_v49, %v2438_v38  ;;  %2841 = vmatmul.bf16.gmra.mxu2 %v8290_v20  ;;  %3010 = vmatmul.bf16.gmra.mxu3 %v8291_v34  ;;  %v8295_v34 = vld [vmem:[#allocation90_spill] sm:$0xff] }
 0x444   :  { %8289 = vst [vmem:[#allocation119_spill] sm:$0xff] %v6576_v3 }
 0x445   :  { %v2802_v10 = vpop.f32.mrf.mxu2  ;;  %v2971_v31 = vpop.f32.mrf.mxu3 }
 0x446   :  { %v2972_v46 = vadd.f32 %v2971_v31, %v2802_v10  ;;  %v2442_v16 = vpop.f32.mrf.mxu1  ;;  %v3142_v60 = vpop.f32.mrf.mxu0  ;;  %v8297_v31 = vld [vmem:[#allocation54_spill] sm:$0xff] }
 0x447   :  { %v2443_v43 = vadd.f32 %v2442_v16, %v8292_v11  ;;  %v8298_v16 = vld [vmem:[#allocation43_spill] sm:$0xff] }
 0x448   :  { %v3141_v55 = vadd.f32 %v3140_v12, %v2972_v46 }
 0x44a   :  { %v6581_v30 = vadd.f32 %v3141_v55, %v2441_v40 }
 0x44c   :  { %8293 = vst [vmem:[#allocation115_spill] sm:$0xff] %v6581_v30 }
 0x44d   :  { %v2804_v14 = vpop.f32.mrf.mxu2  ;;  %v2973_v2 = vpop.f32.mrf.mxu3 }
 0x44e   :  { %v2974_v29 = vadd.f32 %v2973_v2, %v2804_v14  ;;  %v2445_v42 = vpop.f32.mrf.mxu1  ;;  %v3145_v38 = vpop.f32.mrf.mxu0  ;;  %v8299_v14 = vld [vmem:[#allocation36_spill] sm:$0xff] }
 0x44f   :  { %v2446_v49 = vadd.f32 %v2445_v42, %v8294_v28 }
 0x450   :  { %v3143_v20 = vadd.f32 %v3142_v60, %v2974_v29 }
 0x451   :  { %2484 = vmatmul.bf16.gmra.mxu1 %v8281_v22  ;;  %3184 = vmatmul.bf16.gmra.mxu0 %v8295_v34 }
 0x452   :  { %v6586_v10 = vadd.f32 %v3143_v20, %v2443_v43  ;;  %2846 = vmatmul.bf16.gmra.mxu2 %v8297_v31  ;;  %3015 = vmatmul.bf16.gmra.mxu3 %v8298_v16  ;;  %v8301_v20 = vld [vmem:[#allocation93_spill] sm:$0xff]  ;;  %v8302_v16 = vld [vmem:[#allocation95_spill] sm:$0xff] }
 0x454   :  { %8296 = vst [vmem:[#allocation118_spill] sm:$0xff] %v6586_v10 }
 0x455   :  { %v2807_v12 = vpop.f32.mrf.mxu2  ;;  %v2976_v40 = vpop.f32.mrf.mxu3 }
 0x456   :  { %v2977_v46 = vadd.f32 %v2976_v40, %v2807_v12  ;;  %v2447_v11 = vpop.f32.mrf.mxu1  ;;  %v3147_v55 = vpop.f32.mrf.mxu0  ;;  %v8304_v40 = vld [vmem:[#allocation63_spill] sm:$0xff] }
 0x457   :  { %v2448_v2 = vadd.f32 %v2447_v11, %v8299_v14  ;;  %v8305_v11 = vld [vmem:[#allocation52_spill] sm:$0xff] }
 0x458   :  { %v3146_v32 = vadd.f32 %v3145_v38, %v2977_v46 }
 0x45a   :  { %v6591_v42 = vadd.f32 %v3146_v32, %v2446_v49 }
 0x45c   :  { %8300 = vst [vmem:[#allocation16_spill] sm:$0xff] %v6591_v42 }
 0x45d   :  { %v2809_v60 = vpop.f32.mrf.mxu2  ;;  %v2978_v22 = vpop.f32.mrf.mxu3 }
 0x45e   :  { %v2979_v29 = vadd.f32 %v2978_v22, %v2809_v60  ;;  %v2450_v28 = vpop.f32.mrf.mxu1  ;;  %v3150_v43 = vpop.f32.mrf.mxu0  ;;  %v8306_v60 = vld [vmem:[#allocation46_spill] sm:$0xff] }
 0x45f   :  { %v2451_v41 = vadd.f32 %v2450_v28, %v8301_v20 }
 0x460   :  { %v3148_v31 = vadd.f32 %v3147_v55, %v2979_v29 }
 0x461   :  { %2489 = vmatmul.bf16.gmra.mxu1 %v8288_v58  ;;  %3189 = vmatmul.bf16.gmra.mxu0 %v8302_v16 }
 0x462   :  { %v6596_v12 = vadd.f32 %v3148_v31, %v2448_v2  ;;  %2851 = vmatmul.bf16.gmra.mxu2 %v8304_v40  ;;  %3020 = vmatmul.bf16.gmra.mxu3 %v8305_v11  ;;  %v8308_v31 = vld [vmem:[#allocation98_spill] sm:$0xff]  ;;  %v8309_v11 = vld [vmem:[#allocation100_spill] sm:$0xff] }
 0x464   :  { %8303 = vst [vmem:[#allocation120_spill] sm:$0xff] %v6596_v12 }
 0x465   :  { %v2812_v32 = vpop.f32.mrf.mxu2  ;;  %v2981_v38 = vpop.f32.mrf.mxu3 }
 0x466   :  { %v2982_v49 = vadd.f32 %v2981_v38, %v2812_v32  ;;  %v2452_v46 = vpop.f32.mrf.mxu1  ;;  %v3152_v14 = vpop.f32.mrf.mxu0  ;;  %v8311_v38 = vld [vmem:[#allocation64_spill] sm:$0xff] }
 0x467   :  { %v2453_v22 = vadd.f32 %v2452_v46, %v8306_v60  ;;  %v8312_v60 = vld [vmem:[#allocation58_spill] sm:$0xff] }
 0x468   :  { %v3151_v5 = vadd.f32 %v3150_v43, %v2982_v49 }
 0x46a   :  { %v6601_v28 = vadd.f32 %v3151_v5, %v2451_v41 }
 0x46c   :  { %8307 = vst [vmem:[#allocation22_spill] sm:$0xff] %v6601_v28  ;;  %v8315_v28 = vld [vmem:[#allocation105_spill] sm:$0xff] }
 0x46d   :  { %v2814_v55 = vpop.f32.mrf.mxu2  ;;  %v2983_v58 = vpop.f32.mrf.mxu3 }
 0x46e   :  { %v2984_v29 = vadd.f32 %v2983_v58, %v2814_v55  ;;  %v2455_v20 = vpop.f32.mrf.mxu1  ;;  %v3155_v2 = vpop.f32.mrf.mxu0 }
 0x46f   :  { %v2456_v36 = vadd.f32 %v2455_v20, %v8308_v31 }
 0x470   :  { %v3153_v40 = vadd.f32 %v3152_v14, %v2984_v29 }
 0x471   :  { %2494 = vmatmul.bf16.gmra.mxu1 %v8295_v34  ;;  %3194 = vmatmul.bf16.gmra.mxu0 %v8309_v11 }
 0x472   :  { %v6606_v32 = vadd.f32 %v3153_v40, %v2453_v22  ;;  %2856 = vmatmul.bf16.gmra.mxu2 %v8152_v47  ;;  %3025 = vmatmul.bf16.gmra.mxu3 %v8311_v38  ;;  %v8314_v40 = vld [vmem:[#allocation103_spill] sm:$0xff] }
 0x474   :  { %8310 = vst [vmem:[#allocation26_spill] sm:$0xff] %v6606_v32 }
 0x475   :  { %v2817_v5 = vpop.f32.mrf.mxu2  ;;  %v2986_v41 = vpop.f32.mrf.mxu3 }
 0x476   :  { %v2987_v43 = vadd.f32 %v2986_v41, %v2817_v5  ;;  %v2457_v49 = vpop.f32.mrf.mxu1  ;;  %v3157_v46 = vpop.f32.mrf.mxu0  ;;  %v8316_v41 = vld [vmem:[#allocation76_spill] sm:$0xff] }
 0x477   :  { %v2458_v55 = vadd.f32 %v2457_v49, %v8312_v60  ;;  %v8317_v49 = vld [vmem:[#allocation72_spill] sm:$0xff] }
 0x478   :  { %v3156_v58 = vadd.f32 %v3155_v2, %v2987_v43 }
 0x47a   :  { %v6611_v20 = vadd.f32 %v3156_v58, %v2456_v36 }
 0x47c   :  { %8313 = vst [vmem:[#allocation29_spill] sm:$0xff] %v6611_v20 }
 0x47d   :  { %v2819_v14 = vpop.f32.mrf.mxu2  ;;  %v2988_v34 = vpop.f32.mrf.mxu3 }
 0x47e   :  { %v2989_v29 = vadd.f32 %v2988_v34, %v2819_v14  ;;  %v2460_v31 = vpop.f32.mrf.mxu1  ;;  %v3160_v22 = vpop.f32.mrf.mxu0  ;;  %v8318_v14 = vld [vmem:[#allocation65_spill] sm:$0xff] }
 0x47f   :  { %v2461_v24 = vadd.f32 %v2460_v31, %v8314_v40 }
 0x480   :  { %v3158_v32 = vadd.f32 %v3157_v46, %v2989_v29 }
 0x481   :  { %2499 = vmatmul.bf16.gmra.mxu1 %v8302_v16  ;;  %3199 = vmatmul.bf16.gmra.mxu0 %v8315_v28 }
 0x482   :  { %v6616_v5 = vadd.f32 %v3158_v32, %v2458_v55  ;;  %2861 = vmatmul.bf16.gmra.mxu2 %v8316_v41  ;;  %3030 = vmatmul.bf16.gmra.mxu3 %v8317_v49  ;;  %v8320_v55 = vld [vmem:[#allocation108_spill] sm:$0xff] }
 0x485   :  { %v2822_v36 = vpop.f32.mrf.mxu2  ;;  %v2991_v2 = vpop.f32.mrf.mxu3 }
 0x486   :  { %v2992_v43 = vadd.f32 %v2991_v2, %v2822_v36  ;;  %v2462_v60 = vpop.f32.mrf.mxu1  ;;  %v3162_v58 = vpop.f32.mrf.mxu0 }
 0x487   :  { %v2463_v34 = vadd.f32 %v2462_v60, %v8318_v14 }
 0x488   :  { %v3161_v20 = vadd.f32 %v3160_v22, %v2992_v43  ;;  %v8322_v43 = vld [vmem:[#allocation110_spill] sm:$0xff] }
 0x48a   :  { %v6621_v31 = vadd.f32 %v3161_v20, %v2461_v24 }
 0x48c   :  { %8319 = vst [vmem:[#allocation33_spill] sm:$0xff] %v6621_v31 }
 0x48d   :  { %v2824_v46 = vpop.f32.mrf.mxu2  ;;  %v2993_v16 = vpop.f32.mrf.mxu3 }
 0x48e   :  { %v2994_v29 = vadd.f32 %v2993_v16, %v2824_v46  ;;  %v2465_v28 = vpop.f32.mrf.mxu1  ;;  %v3165_v32 = vpop.f32.mrf.mxu0 }
 0x48f   :  { %v2466_v40 = vadd.f32 %v2465_v28, %v8320_v55  ;;  %v8324_v28 = vld [vmem:[#allocation71_spill] sm:$0xff] }
 0x490   :  { %v3163_v41 = vadd.f32 %v3162_v58, %v2994_v29 }
 0x491   :  { %2504 = vmatmul.bf16.gmra.mxu1 %v8309_v11  ;;  %3204 = vmatmul.bf16.gmra.mxu0 %v8309_v11 }
 0x492   :  { %v6626_v49 = vadd.f32 %v3163_v41, %v2463_v34  ;;  %2866 = vmatmul.bf16.gmra.mxu2 %v8152_v47  ;;  %3035 = vmatmul.bf16.gmra.mxu3 %v8311_v38  ;;  %v3344_v38 = vmul.f32 %v6406_v18, %v6406_v18 }
 0x494   :  { %8321 = vst [vmem:[#allocation37_spill] sm:$0xff] %v6626_v49 }
 0x495   :  { %v2827_v24 = vpop.f32.mrf.mxu2  ;;  %v2996_v20 = vpop.f32.mrf.mxu3 }
 0x496   :  { %v2997_v22 = vadd.f32 %v2996_v20, %v2827_v24  ;;  %v2467_v36 = vpop.f32.mrf.mxu1  ;;  %v3167_v2 = vpop.f32.mrf.mxu0 }
 0x497   :  { %v2468_v60 = vadd.f32 %v2467_v36, %v8322_v43 }
 0x498   :  { %v3166_v14 = vadd.f32 %v3165_v32, %v2997_v22  ;;  %v3343_v32 = vmul.f32 %v6401_v59, %v6401_v59 }
 0x49a   :  { %v6631_v46 = vadd.f32 %v3166_v14, %v2466_v40  ;;  %v3345_v40 = vmul.f32 %v6411_v27, %v6411_v27  ;;  %v3274_v14 = vadd.f32 %v6406_v18, %v6401_v59  ;;  %v3348_v18 = vmul.f32 %v6426_v9, %v6426_v9 }
 0x49c   :  { %8323 = vst [vmem:[#allocation39_spill] sm:$0xff] %v6631_v46 }
 0x49d   :  { %v2829_v58 = vpop.f32.mrf.mxu2  ;;  %v2998_v16 = vpop.f32.mrf.mxu3 }
 0x49e   :  { %v2999_v29 = vadd.f32 %v2998_v16, %v2829_v58  ;;  %v2470_v11 = vpop.f32.mrf.mxu1  ;;  %v3170_v34 = vpop.f32.mrf.mxu0  ;;  %v3407_v58 = vadd.f32 %v3344_v38, %v3343_v32  ;;  %v3346_v16 = vmul.f32 %v6416_v1, %v6416_v1 }
 0x49f   :  { %v2471_v55 = vadd.f32 %v2470_v11, %v8324_v28  ;;  %v3275_v11 = vadd.f32 %v3274_v14, %v6411_v27 }
 0x4a0   :  { %v3168_v47 = vadd.f32 %v3167_v2, %v2999_v29  ;;  %v8326_v2 = vld [vmem:[#allocation114_spill] sm:$0xff]  ;;  %v3408_v28 = vadd.f32 %v3407_v58, %v3345_v40  ;;  %v8327_v58 = vld [vmem:[#allocation117_spill] sm:$0xff] }
 0x4a2   :  { %v6634_v41 = vadd.f32 %v3168_v47, %v2468_v60  ;;  %v3347_v47 = vmul.f32 %v6421_v50, %v6421_v50 }
 0x4a4   :  { %8325 = vst [vmem:[#allocation44_spill] sm:$0xff] %v6634_v41 }
 0x4a5   :  { %v2832_v24 = vpop.f32.mrf.mxu2  ;;  %v3001_v20 = vpop.f32.mrf.mxu3 }
 0x4a6   :  { %v3002_v22 = vadd.f32 %v3001_v20, %v2832_v24  ;;  %v2472_v36 = vpop.f32.mrf.mxu1  ;;  %v3172_v43 = vpop.f32.mrf.mxu0  ;;  %v3276_v24 = vadd.f32 %v3275_v11, %v6416_v1  ;;  %v3409_v20 = vadd.f32 %v3408_v28, %v3346_v16  ;;  %v3350_v16 = vmul.f32 %v6436_v37, %v6436_v37 }
 0x4a7   :  { %v2473_v60 = vadd.f32 %v2472_v36, %v8326_v2 }
 0x4a8   :  { %v3171_v29 = vadd.f32 %v3170_v34, %v3002_v22  ;;  %v3277_v38 = vadd.f32 %v3276_v24, %v6421_v50  ;;  %v3410_v2 = vadd.f32 %v3409_v20, %v3347_v47  ;;  %v3349_v34 = vmul.f32 %v6431_v6, %v6431_v6 }
 0x4a9   :  { %v3351_v47 = vmul.f32 %v6441_v48, %v6441_v48 }
 0x4aa   :  { %v6650_v41 = vadd.f32 %v3171_v29, %v2471_v55  ;;  %v3278_v55 = vadd.f32 %v3277_v38, %v6426_v9  ;;  %v3411_v11 = vadd.f32 %v3410_v2, %v3348_v18  ;;  %v3352_v38 = vmul.f32 %v6446_v19, %v6446_v19 }
 0x4ac   :  { %v3279_v24 = vadd.f32 %v3278_v55, %v6431_v6  ;;  %v3412_v50 = vadd.f32 %v3411_v11, %v3349_v34  ;;  %v8328_v11 = vld [vmem:[#allocation82_spill] sm:$0xff] }
 0x4ad   :  { %v2834_v32 = vpop.f32.mrf.mxu2  ;;  %v3003_v36 = vpop.f32.mrf.mxu3 }
 0x4ae   :  { %v3004_v40 = vadd.f32 %v3003_v36, %v2834_v32  ;;  %v2475_v22 = vpop.f32.mrf.mxu1  ;;  %v3175_v14 = vpop.f32.mrf.mxu0  ;;  %v3280_v32 = vadd.f32 %v3279_v24, %v6436_v37  ;;  %v3413_v36 = vadd.f32 %v3412_v50, %v3350_v16  ;;  %v3354_v50 = vmul.f32 %v6456_v33, %v6456_v33 }
 0x4af   :  { %v2476_v29 = vadd.f32 %v2475_v22, %v8327_v58 }
 0x4b0   :  { %v3173_v28 = vadd.f32 %v3172_v43, %v3004_v40  ;;  %v3281_v18 = vadd.f32 %v3280_v32, %v6441_v48  ;;  %v3414_v58 = vadd.f32 %v3413_v36, %v3351_v47  ;;  %v3353_v43 = vmul.f32 %v6451_v21, %v6451_v21 }
 0x4b1   :  { %v3355_v47 = vmul.f32 %v6461_v45, %v6461_v45 }
 0x4b2   :  { %v6665_v20 = vadd.f32 %v3173_v28, %v2473_v60  ;;  %v3282_v60 = vadd.f32 %v3281_v18, %v6446_v19  ;;  %v3415_v24 = vadd.f32 %v3414_v58, %v3352_v38  ;;  %v3356_v18 = vmul.f32 %v6466_v23, %v6466_v23 }
 0x4b4   :  { %v3283_v32 = vadd.f32 %v3282_v60, %v6451_v21  ;;  %v3416_v48 = vadd.f32 %v3415_v24, %v3353_v43  ;;  %v8329_v24 = vld [vmem:[#allocation17_spill] sm:$0xff] }
 0x4b5   :  { %v2837_v2 = vpop.f32.mrf.mxu2  ;;  %v3006_v22 = vpop.f32.mrf.mxu3 }
 0x4b6   :  { %v3007_v34 = vadd.f32 %v3006_v22, %v2837_v2  ;;  %v2477_v40 = vpop.f32.mrf.mxu1  ;;  %v3177_v55 = vpop.f32.mrf.mxu0  ;;  %v3284_v2 = vadd.f32 %v3283_v32, %v6456_v33  ;;  %v3417_v22 = vadd.f32 %v3416_v48, %v3354_v50  ;;  %v3358_v48 = vmul.f32 %v6476_v53, %v6476_v53 }
 0x4b7   :  { %v2478_v28 = vadd.f32 %v2477_v40, %v8328_v11 }
 0x4b8   :  { %v3176_v16 = vadd.f32 %v3175_v14, %v3007_v34  ;;  %v3285_v38 = vadd.f32 %v3284_v2, %v6461_v45  ;;  %v3418_v11 = vadd.f32 %v3417_v22, %v3355_v47  ;;  %v3357_v14 = vmul.f32 %v6471_v4, %v6471_v4 }
 0x4b9   :  { %v3359_v47 = vmul.f32 %v6481_v7, %v6481_v7 }
 0x4ba   :  { %v6680_v36 = vadd.f32 %v3176_v16, %v2476_v29  ;;  %v3286_v29 = vadd.f32 %v3285_v38, %v6466_v23  ;;  %v3419_v32 = vadd.f32 %v3418_v11, %v3356_v18  ;;  %v3360_v38 = vmul.f32 %v6486_v15, %v6486_v15 }
 0x4bc   :  { %v3287_v2 = vadd.f32 %v3286_v29, %v6471_v4  ;;  %v3420_v45 = vadd.f32 %v3419_v32, %v3357_v14 }
 0x4bd   :  { %v2839_v58 = vpop.f32.mrf.mxu2  ;;  %v3008_v40 = vpop.f32.mrf.mxu3 }
 0x4be   :  { %v3009_v43 = vadd.f32 %v3008_v40, %v2839_v58  ;;  %v2480_v34 = vpop.f32.mrf.mxu1  ;;  %v3180_v60 = vpop.f32.mrf.mxu0  ;;  %v3288_v58 = vadd.f32 %v3287_v2, %v6476_v53  ;;  %v3421_v40 = vadd.f32 %v3420_v45, %v3358_v48  ;;  %v3362_v45 = vmul.f32 %v6496_v26, %v6496_v26 }
 0x4bf   :  { %v2481_v16 = vadd.f32 %v2480_v34, %v8329_v24 }
 0x4c0   :  { %v3178_v50 = vadd.f32 %v3177_v55, %v3009_v43  ;;  %v3289_v18 = vadd.f32 %v3288_v58, %v6481_v7  ;;  %v3422_v24 = vadd.f32 %v3421_v40, %v3359_v47  ;;  %v3361_v55 = vmul.f32 %v6491_v54, %v6491_v54 }
 0x4c1   :  { %v3363_v47 = vmul.f32 %v6501_v56, %v6501_v56 }
 0x4c2   :  { %v6695_v22 = vadd.f32 %v3178_v50, %v2478_v28  ;;  %v3290_v28 = vadd.f32 %v3289_v18, %v6486_v15  ;;  %v3423_v32 = vadd.f32 %v3422_v24, %v3360_v38 }
 0x4c4   :  { %v3291_v50 = vadd.f32 %v3290_v28, %v6491_v54  ;;  %v3424_v2 = vadd.f32 %v3423_v32, %v3361_v55  ;;  %v3365_v55 = vmul.f32 %v6511_v35, %v6511_v35 }
 0x4c5   :  { %v2842_v11 = vpop.f32.mrf.mxu2  ;;  %v3011_v34 = vpop.f32.mrf.mxu3 }
 0x4c6   :  { %v3012_v14 = vadd.f32 %v3011_v34, %v2842_v11  ;;  %v6703_v43 = vpop.f32.mrf.mxu1  ;;  %v6705_v29 = vpop.f32.mrf.mxu0  ;;  %v3292_v40 = vadd.f32 %v3291_v50, %v6496_v26  ;;  %v3425_v11 = vadd.f32 %v3424_v2, %v3362_v45  ;;  %v3364_v34 = vmul.f32 %v6506_v51, %v6506_v51 }
 0x4c7   :  { %v3366_v45 = vmul.f32 %v6516_v39, %v6516_v39  ;;  %v3367_v2 = vmul.f32 %v6521_v8, %v6521_v8 }
 0x4c8   :  { %v3181_v48 = vadd.f32 %v3180_v60, %v3012_v14  ;;  %v3293_v38 = vadd.f32 %v3292_v40, %v6501_v56  ;;  %v3426_v60 = vadd.f32 %v3425_v11, %v3363_v47  ;;  %v3368_v11 = vmul.f32 %v6526_v62, %v6526_v62 }
 0x4ca   :  { %v6713_v58 = vadd.f32 %v3181_v48, %v2481_v16  ;;  %v3294_v28 = vadd.f32 %v3293_v38, %v6506_v51  ;;  %v3427_v32 = vadd.f32 %v3426_v60, %v3364_v34  ;;  %v3369_v60 = vmul.f32 %v6531_v57, %v6531_v57 }
 0x4cc   :  { %v3295_v48 = vadd.f32 %v3294_v28, %v6511_v35  ;;  %v3428_v50 = vadd.f32 %v3427_v32, %v3365_v55 }
 0x4cd   :  { %v6719_v18 = vpop.f32.mrf.mxu2  ;;  %v6721_v24 = vpop.f32.mrf.mxu3 }
 0x4ce   :  { %v6725_v14 = vpop.f32.mrf.mxu1  ;;  %v6727_v16 = vpop.f32.mrf.mxu0  ;;  %v3296_v47 = vadd.f32 %v3295_v48, %v6516_v39  ;;  %v3429_v40 = vadd.f32 %v3428_v50, %v3366_v45  ;;  %v3370_v48 = vmul.f32 %v6536_v52, %v6536_v52  ;;  %v3372_v39 = vmul.f32 %v6546_v17, %v6546_v17 }
 0x4d0   :  { %v3297_v56 = vadd.f32 %v3296_v47, %v6521_v8  ;;  %v3430_v38 = vadd.f32 %v3429_v40, %v3367_v2  ;;  %v3371_v8 = vmul.f32 %v6541_v61, %v6541_v61 }
 0x4d2   :  { %v3298_v32 = vadd.f32 %v3297_v56, %v6526_v62  ;;  %v3431_v45 = vadd.f32 %v3430_v38, %v3368_v11  ;;  %v3373_v38 = vmul.f32 %v6551_v0, %v6551_v0 }
 0x4d4   :  { %v3299_v50 = vadd.f32 %v3298_v32, %v6531_v57  ;;  %v3432_v47 = vadd.f32 %v3431_v45, %v3369_v60 }
 0x4d5   :  { %v6739_v26 = vpop.f32.mrf.mxu2  ;;  %v6741_v34 = vpop.f32.mrf.mxu3 }
 0x4d6   :  { %v6745_v55 = vpop.f32.mrf.mxu1  ;;  %v6747_v28 = vpop.f32.mrf.mxu0  ;;  %v3300_v2 = vadd.f32 %v3299_v50, %v6536_v52  ;;  %v3433_v40 = vadd.f32 %v3432_v47, %v3370_v48  ;;  %v3374_v50 = vmul.f32 %v6556_v25, %v6556_v25  ;;  %v3376_v52 = vmul.f32 %v6566_v63, %v6566_v63 }
 0x4d8   :  { %v3301_v35 = vadd.f32 %v3300_v2, %v6541_v61  ;;  %v3434_v11 = vadd.f32 %v3433_v40, %v3371_v8  ;;  %v3375_v61 = vmul.f32 %v6561_v13, %v6561_v13 }
 0x4da   :  { %v3302_v45 = vadd.f32 %v3301_v35, %v6546_v17  ;;  %v3435_v48 = vadd.f32 %v3434_v11, %v3372_v39  ;;  %v3377_v11 = vmul.f32 %v6571_v44, %v6571_v44 }
 0x4dc   :  { %v3303_v47 = vadd.f32 %v3302_v45, %v6551_v0  ;;  %v3436_v2 = vadd.f32 %v3435_v48, %v3373_v38 }
 0x4dd   :  { %v6759_v51 = vpop.f32.mrf.mxu2  ;;  %v6761_v56 = vpop.f32.mrf.mxu3 }
 0x4de   :  { %v6765_v60 = vpop.f32.mrf.mxu1  ;;  %v6767_v32 = vpop.f32.mrf.mxu0  ;;  %v3304_v8 = vadd.f32 %v3303_v47, %v6556_v25  ;;  %v3437_v40 = vadd.f32 %v3436_v2, %v3374_v50  ;;  %v3378_v47 = vmul.f32 %v6576_v3, %v6576_v3  ;;  %v3380_v25 = vmul.f32 %v6586_v10, %v6586_v10 }
 0x4e0   :  { %v3305_v57 = vadd.f32 %v3304_v8, %v6561_v13  ;;  %v3438_v39 = vadd.f32 %v3437_v40, %v3375_v61  ;;  %v3379_v13 = vmul.f32 %v6581_v30, %v6581_v30 }
 0x4e2   :  { %v3306_v48 = vadd.f32 %v3305_v57, %v6566_v63  ;;  %v3439_v50 = vadd.f32 %v3438_v39, %v3376_v52  ;;  %v3381_v39 = vmul.f32 %v6591_v42, %v6591_v42 }
 0x4e4   :  { %v3307_v2 = vadd.f32 %v3306_v48, %v6571_v44  ;;  %v3440_v8 = vadd.f32 %v3439_v50, %v3377_v11  ;;  %v8331_v44 = vld [vmem:[#allocation26_spill] sm:$0xff] }
 0x4e5   :  { %v6779_v62 = vpop.f32.mrf.mxu2  ;;  %v6781_v35 = vpop.f32.mrf.mxu3  ;;  %v3384_v63 = vmul.f32 %v8331_v44, %v8331_v44 }
 0x4e6   :  { %v6785_v38 = vpop.f32.mrf.mxu1  ;;  %v6787_v45 = vpop.f32.mrf.mxu0  ;;  %v3308_v61 = vadd.f32 %v3307_v2, %v6576_v3  ;;  %v3441_v40 = vadd.f32 %v3440_v8, %v3378_v47  ;;  %v3382_v2 = vmul.f32 %v6596_v12, %v6596_v12 }
 0x4e8   :  { %v3309_v0 = vadd.f32 %v3308_v61, %v6581_v30  ;;  %v3442_v52 = vadd.f32 %v3441_v40, %v3379_v13  ;;  %v8330_v30 = vld [vmem:[#allocation22_spill] sm:$0xff] }
 0x4e9   :  { %v3383_v3 = vmul.f32 %v8330_v30, %v8330_v30 }
 0x4ea   :  { %v3310_v50 = vadd.f32 %v3309_v0, %v6586_v10  ;;  %v3443_v47 = vadd.f32 %v3442_v52, %v3380_v25  ;;  %v8332_v52 = vld [vmem:[#allocation29_spill] sm:$0xff] }
 0x4eb   :  { %v3385_v10 = vmul.f32 %v8332_v52, %v8332_v52 }
 0x4ec   :  { %v3311_v8 = vadd.f32 %v3310_v50, %v6591_v42  ;;  %v3444_v61 = vadd.f32 %v3443_v47, %v3381_v39 }
 0x4ed   :  { %v6799_v17 = vpop.f32.mrf.mxu2  ;;  %v6801_v57 = vpop.f32.mrf.mxu3 }
 0x4ee   :  { %v6805_v11 = vpop.f32.mrf.mxu1  ;;  %v6807_v48 = vpop.f32.mrf.mxu0  ;;  %v3312_v13 = vadd.f32 %v3311_v8, %v6596_v12  ;;  %v3445_v40 = vadd.f32 %v3444_v61, %v3382_v2  ;;  %v3386_v2 = vmul.f32 %v6616_v5, %v6616_v5 }
 0x4f0   :  { %v3313_v54 = vadd.f32 %v3312_v13, %v8330_v30  ;;  %v3446_v25 = vadd.f32 %v3445_v40, %v3383_v3  ;;  %v3387_v13 = vmul.f32 %v6621_v31, %v6621_v31  ;;  %v3388_v30 = vmul.f32 %v6626_v49, %v6626_v49 }
 0x4f2   :  { %v3314_v50 = vadd.f32 %v3313_v54, %v8331_v44  ;;  %v3447_v47 = vadd.f32 %v3446_v25, %v3384_v63  ;;  %v3389_v25 = vmul.f32 %v6631_v46, %v6631_v46 }
 0x4f4   :  { %v3315_v8 = vadd.f32 %v3314_v50, %v8332_v52  ;;  %v3448_v61 = vadd.f32 %v3447_v47, %v3385_v10  ;;  %v8333_v47 = vld [vmem:[#allocation44_spill] sm:$0xff] }
 0x4f5   :  { %v2857_v15 = vpop.f32.mrf.mxu2  ;;  %v3026_v0 = vpop.f32.mrf.mxu3 }
 0x4f6   :  { %v6821_v7 = vpop.f32.mrf.mxu1  ;;  %v6823_v39 = vpop.f32.mrf.mxu0  ;;  %v3316_v3 = vadd.f32 %v3315_v8, %v6616_v5  ;;  %v3449_v40 = vadd.f32 %v3448_v61, %v3386_v2  ;;  %v3390_v8 = vmul.f32 %v8333_v47, %v8333_v47  ;;  %v3014_v2 = vadd.f32 %v6721_v24, %v6719_v18 }
 0x4f7   :  { %v3019_v24 = vadd.f32 %v6761_v56, %v6759_v51  ;;  %v3394_v51 = vmul.f32 %v6695_v22, %v6695_v22 }
 0x4f8   :  { %v3317_v12 = vadd.f32 %v3316_v3, %v6621_v31  ;;  %v3450_v63 = vadd.f32 %v3449_v40, %v3387_v13  ;;  %v3391_v13 = vmul.f32 %v6650_v41, %v6650_v41  ;;  %v3017_v40 = vadd.f32 %v6741_v34, %v6739_v26  ;;  %v8334_v26 = vld [vmem:[#allocation8_spill] sm:$0xff] }
 0x4f9   :  { %v2483_v34 = vadd.f32 %v6703_v43, %v8334_v26  ;;  %v3024_v43 = vadd.f32 %v6801_v57, %v6799_v17 }
 0x4fa   :  { %v3318_v10 = vadd.f32 %v3317_v12, %v6626_v49  ;;  %v3451_v50 = vadd.f32 %v3450_v63, %v3388_v30  ;;  %v3392_v63 = vmul.f32 %v6665_v20, %v6665_v20  ;;  %v3183_v49 = vadd.f32 %v6705_v29, %v3014_v2 }
 0x4fb   :  { %v3022_v29 = vadd.f32 %v6781_v35, %v6779_v62  ;;  %v3395_v62 = vmul.f32 %v6713_v58, %v6713_v58 }
 0x4fc   :  { %v3319_v3 = vadd.f32 %v3318_v10, %v6631_v46  ;;  %v3452_v31 = vadd.f32 %v3451_v50, %v3389_v25  ;;  %v3393_v46 = vmul.f32 %v6680_v36, %v6680_v36  ;;  %v6868_v56 = vadd.f32 %v3183_v49, %v2483_v34  ;;  %v8336_v49 = vld [vmem:[#allocation81_spill] sm:$0xff] }
 0x4fd   :  { %v2859_v42 = vpop.f32.mrf.mxu2  ;;  %v3028_v54 = vpop.f32.mrf.mxu3  ;;  %v3193_v34 = vadd.f32 %v6787_v45, %v3024_v43 }
 0x4fe   :  { %v6837_v44 = vpop.f32.mrf.mxu1  ;;  %v6844_v61 = vpop.f32.mrf.mxu0  ;;  %v3320_v12 = vadd.f32 %v3319_v3, %v8333_v47  ;;  %v3453_v30 = vadd.f32 %v3452_v31, %v3390_v8  ;;  %v3186_v31 = vadd.f32 %v6727_v16, %v3017_v40  ;;  %v8335_v3 = vld [vmem:[#allocation79_spill] sm:$0xff]  ;;  %v3396_v17 = vmul.f32 %v6868_v56, %v6868_v56 }
 0x500   :  { %v3321_v18 = vadd.f32 %v3320_v12, %v6650_v41  ;;  %v3454_v50 = vadd.f32 %v3453_v30, %v3391_v13  ;;  %v2486_v13 = vadd.f32 %v6725_v14, %v8335_v3  ;;  %v3188_v30 = vadd.f32 %v6747_v28, %v3019_v24 }
 0x501   :  { %v3191_v14 = vadd.f32 %v6767_v32, %v3022_v29  ;;  %v8338_v29 = vld [vmem:[#allocation87_spill] sm:$0xff] }
 0x502   :  { %v3322_v8 = vadd.f32 %v3321_v18, %v6665_v20  ;;  %v3455_v2 = vadd.f32 %v3454_v50, %v3392_v63  ;;  %v6878_v35 = vadd.f32 %v3186_v31, %v2486_v13  ;;  %v2488_v18 = vadd.f32 %v6745_v55, %v8336_v49 }
 0x503   :  { %v3027_v50 = vadd.f32 %v3026_v0, %v2857_v15  ;;  %v3029_v31 = vadd.f32 %v3028_v54, %v2859_v42 }
 0x504   :  { %v3323_v16 = vadd.f32 %v3322_v8, %v6680_v36  ;;  %v3456_v40 = vadd.f32 %v3455_v2, %v3393_v46  ;;  %v6886_v57 = vadd.f32 %v3188_v30, %v2488_v18  ;;  %v8337_v46 = vld [vmem:[#allocation77_spill] sm:$0xff]  ;;  %v3397_v15 = vmul.f32 %v6878_v35, %v6878_v35  ;;  %v8339_v30 = vld [vmem:[#allocation28_spill] sm:$0xff] }
 0x505   :  { %v2862_v25 = vpop.f32.mrf.mxu2  ;;  %v3031_v10 = vpop.f32.mrf.mxu3  ;;  %v2491_v26 = vadd.f32 %v6765_v60, %v8337_v46  ;;  %v3196_v3 = vadd.f32 %v6807_v48, %v3027_v50  ;;  %v2496_v43 = vadd.f32 %v6805_v11, %v8339_v30 }
 0x506   :  { %v2502_v12 = vpop.f32.mrf.mxu1  ;;  %v3202_v63 = vpop.f32.mrf.mxu0  ;;  %v3324_v28 = vadd.f32 %v3323_v16, %v6695_v22  ;;  %v3457_v24 = vadd.f32 %v3456_v40, %v3394_v51  ;;  %v2493_v51 = vadd.f32 %v6785_v38, %v8338_v29  ;;  %v3032_v13 = vadd.f32 %v3031_v10, %v2862_v25  ;;  %v8340_v10 = vld [vmem:[#allocation13_spill] sm:$0xff] }
 0x507   :  { %v6894_v0 = vadd.f32 %v3191_v14, %v2491_v26  ;;  %v3398_v42 = vmul.f32 %v6886_v57, %v6886_v57  ;;  %v3198_v16 = vadd.f32 %v6823_v39, %v3029_v31  ;;  %v6910_v25 = vadd.f32 %v3196_v3, %v2496_v43 }
 0x508   :  { %v3325_v55 = vadd.f32 %v3324_v28, %v6713_v58  ;;  %v3458_v32 = vadd.f32 %v3457_v24, %v3395_v62  ;;  %v6902_v54 = vadd.f32 %v3193_v34, %v2493_v51  ;;  %v2498_v18 = vadd.f32 %v6821_v7, %v8340_v10 }
 0x509   :  { %v3399_v48 = vmul.f32 %v6894_v0, %v6894_v0  ;;  %v3201_v14 = vadd.f32 %v6844_v61, %v3032_v13  ;;  %v3401_v61 = vmul.f32 %v6910_v25, %v6910_v25 }
 0x50a   :  { %v3326_v60 = vadd.f32 %v3325_v55, %v6868_v56  ;;  %v3459_v45 = vadd.f32 %v3458_v32, %v3396_v17  ;;  %v3400_v39 = vmul.f32 %v6902_v54, %v6902_v54  ;;  %v6918_v24 = vadd.f32 %v3198_v16, %v2498_v18  ;;  %v8341_v17 = vld [vmem:[#allocation84_spill] sm:$0xff] }
 0x50b   :  { %v2501_v46 = vadd.f32 %v6837_v44, %v8341_v17 }
 0x50c   :  { %v3327_v40 = vadd.f32 %v3326_v60, %v6878_v35  ;;  %v3460_v62 = vadd.f32 %v3459_v45, %v3397_v15  ;;  %v8342_v15 = vld [vmem:[#allocation86_spill] sm:$0xff]  ;;  %v3402_v44 = vmul.f32 %v6918_v24, %v6918_v24 }
 0x50d   :  { %v2864_v8 = vpop.f32.mrf.mxu2  ;;  %v3033_v2 = vpop.f32.mrf.mxu3  ;;  %v6925_v55 = vadd.f32 %v3201_v14, %v2501_v46  ;;  %v2503_v29 = vadd.f32 %v2502_v12, %v8342_v15 }
 0x50e   :  { %v3034_v38 = vadd.f32 %v3033_v2, %v2864_v8  ;;  %v2505_v49 = vpop.f32.mrf.mxu1  ;;  %v3328_v50 = vadd.f32 %v3327_v40, %v6886_v57  ;;  %v3205_v11 = vpop.f32.mrf.mxu0  ;;  %v3461_v28 = vadd.f32 %v3460_v62, %v3398_v42 }
 0x50f   :  { %v3403_v30 = vmul.f32 %v6925_v55, %v6925_v55 }
 0x510   :  { %v3329_v31 = vadd.f32 %v3328_v50, %v6894_v0  ;;  %v3203_v8 = vadd.f32 %v3202_v63, %v3034_v38  ;;  %v3462_v2 = vadd.f32 %v3461_v28, %v3399_v48  ;;  %v8343_v63 = vld [vmem:[#allocation92_spill] sm:$0xff]  ;;  %v8344_v28 = vld [vmem:[#allocation38_spill] sm:$0xff] }
 0x511   :  { %v2506_v45 = vadd.f32 %v2505_v49, %v8343_v63 }
 0x512   :  { %v3330_v32 = vadd.f32 %v3329_v31, %v6902_v54  ;;  %v3463_v3 = vadd.f32 %v3462_v2, %v3400_v39  ;;  %v6932_v60 = vadd.f32 %v3203_v8, %v2503_v29 }
 0x514   :  { %v3331_v13 = vadd.f32 %v3330_v32, %v6910_v25  ;;  %v3464_v42 = vadd.f32 %v3463_v3, %v3401_v61  ;;  %v3404_v10 = vmul.f32 %v6932_v60, %v6932_v60 }
 0x515   :  { %v2867_v26 = vpop.f32.mrf.mxu2  ;;  %v3036_v34 = vpop.f32.mrf.mxu3 }
 0x516   :  { %v3037_v7 = vadd.f32 %v3036_v34, %v2867_v26  ;;  %v3332_v43 = vadd.f32 %v3331_v13, %v6918_v24  ;;  %v2507_v12 = vpop.f32.mrf.mxu1  ;;  %v3465_v40 = vadd.f32 %v3464_v42, %v3402_v44  ;;  %v3207_v49 = vpop.f32.mrf.mxu0 }
 0x517   :  { %v2508_v39 = vadd.f32 %v2507_v12, %v8344_v28  ;;  %v3481_v28 = vld [vmem:[%s7574_s2] sm:$0x1] }
 0x518   :  { %v3206_v51 = vadd.f32 %v3205_v11, %v3037_v7  ;;  %v3333_v48 = vadd.f32 %v3332_v43, %v6925_v55  ;;  %v3466_v14 = vadd.f32 %v3465_v40, %v3403_v30 }
 0x51a   :  { %v6938_v16 = vadd.f32 %v3206_v51, %v2506_v45  ;;  %v3334_v50 = vadd.f32 %v3333_v48, %v6932_v60  ;;  %v3467_v46 = vadd.f32 %v3466_v14, %v3404_v10 }
 0x51c   :  { %v3405_v11 = vmul.f32 %v6938_v16, %v6938_v16  ;;  %v3335_v26 = vadd.f32 %v3334_v50, %v6938_v16 }
 0x51d   :  { %v2869_v62 = vpop.f32.mrf.mxu2  ;;  %v3038_v38 = vpop.f32.mrf.mxu3 }
 0x51e   :  { %v3039_v18 = vadd.f32 %v3038_v38, %v2869_v62  ;;  %v3468_v31 = vadd.f32 %v3467_v46, %v3405_v11 }
 0x520   :  { %v3208_v17 = vadd.f32 %v3207_v49, %v3039_v18 }
 0x522   :  { %v3273_v34 = vadd.f32 %v3208_v17, %v2508_v39 }
 0x524   :  { %v3336_v8 = vadd.f32 %v3335_v26, %v3273_v34  ;;  %v3406_v7 = vmul.f32 %v3273_v34, %v3273_v34 }
 0x526   :  { %v3337_v2 = vrot.slane %v3336_v8, 4  ;;  %v3469_v61 = vadd.f32 %v3468_v31, %v3406_v7  ;;  %v3494_v31 = vld [vmem:[%s7575_s3] sm:$0x1] }
 0x528   :  { %v3338_v32 = vadd.f32 %v3337_v2, %v3336_v8  ;;  %v3470_v15 = vrot.slane %v3469_v61, 4 }
 0x52a   :  { %v3339_v29 = vrot.slane %v3338_v32, 2  ;;  %v3471_v51 = vadd.f32 %v3470_v15, %v3469_v61  ;;  %v8345_v61 = vld [vmem:[#allocation25_spill] sm:$0xff] }
 0x52c   :  { %v3340_v3 = vadd.f32 %v3339_v29, %v3338_v32  ;;  %v3472_v44 = vrot.slane %v3471_v51, 2 }
 0x52e   :  { %v3341_v13 = vrot.slane %v3340_v3, 1  ;;  %v3473_v63 = vadd.f32 %v3472_v44, %v3471_v51  ;;  %v8346_v51 = vld [vmem:[#allocation89_spill] sm:$0xff]  ;;  %v8347_v44 = vld [vmem:[#allocation91_spill] sm:$0xff] }
 0x530   :  { %v3342_v45 = vadd.f32 %v3341_v13, %v3340_v3  ;;  %v3474_v42 = vrot.slane %v3473_v63, 1 }
 0x532   :  { %v3475_v30 = vadd.f32 %v3474_v42, %v3473_v63  ;;  %v3476_v43 = vmul.f32 0.001953125, %v3342_v45  ;;  %v8348_v63 = vld [vmem:[#allocation97_spill] sm:$0xff]  ;;  %v8349_v42 = vld [vmem:[#allocation50_spill] sm:$0xff] }
 0x534   :  { %v3477_v12 = vmul.f32 0.001953125, %v3475_v30  ;;  %v3478_v40 = vmul.f32 %v3476_v43, %v3476_v43  ;;  %v8350_v30 = vld [vmem:[#allocation35_spill] sm:$0xff] }
 0x536   :  { %v3479_v62 = vsub.f32 %v3477_v12, %v3478_v40  ;;  %v8351_v12 = vld [vmem:[#allocation94_spill] sm:$0xff]  ;;  %v8352_v40 = vld [vmem:[#allocation96_spill] sm:$0xff] }
 0x538   :  { %v3480_v38 = vmax.f32 %v3479_v62, 0.0  ;;  %v8353_v62 = vld [vmem:[#allocation102_spill] sm:$0xff] }
 0x53a   :  { %v3482_v48 = vadd.f32 1e-05, %v3480_v38  ;;  %v8354_v38 = vld [vmem:[#allocation60_spill] sm:$0xff] }
 0x53c   :  { %4498 = vrsqrt.f32 %v3482_v48  ;;  %vm3489_vm7 = vweird.f32 %v3482_v48 }
 0x542   :  { %v4499_v10 = vpop.eup %4498 }
 0x543   :  { %v3484_v18 = vmul.f32 %v4499_v10, %v3482_v48  ;;  %vm3490_vm6 = vweird.f32 %v4499_v10 }
 0x544   :  { %vm3491_vm8 = vmor %vm3489_vm7, %vm3490_vm6 }
 0x545   :  { %v3485_v14 = vmul.f32 %v4499_v10, %v3484_v18 }
 0x547   :  { %v3486_v49 = vmul.f32 0.5, %v3485_v14  ;;  %v8356_v14 = vld [vmem:[#allocation99_spill] sm:$0xff] }
 0x549   :  { %v3487_v50 = vsub.f32 1.5, %v3486_v49 }
 0x54b   :  { %v3488_v11 = vmul.f32 %v4499_v10, %v3487_v50  ;;  %v8357_v50 = vld [vmem:[#allocation101_spill] sm:$0xff] }
 0x54d   :  { %v3492_v39 = vsel %vm3491_vm8, %v4499_v10, %v3488_v11  ;;  %v8355_v10 = vld [vmem:[#allocation47_spill] sm:$0xff] }
 0x54e   :  { %v3493_v17 = vmul.f32 %v3492_v39, %v3481_v28  ;;  %v8358_v28 = vld [vmem:[#allocation107_spill] sm:$0xff] }
 0x550   :  { %v6951_v46 = vperm.slane %v3493_v17, 0  ;;  %v3495_v26 = vmul.f32 %v3493_v17, %v3476_v43  ;;  %v8359_v17 = vld [vmem:[#allocation67_spill] sm:$0xff] }
 0x552   :  { %v3563_v8 = vmul.f32 %v6951_v46, %v3273_v34  ;;  %v3496_v7 = vsub.f32 %v3494_v31, %v3495_v26  ;;  %v6959_v2 = vmul.f32 %v6951_v46, %v6401_v59  ;;  %v6963_v32 = vmul.f32 %v6951_v46, %v8345_v61  ;;  %v8360_v31 = vld [vmem:[#allocation57_spill] sm:$0xff] }
 0x553   :  { %v6967_v15 = vmul.f32 %v6951_v46, %v6411_v27  ;;  %v6971_v29 = vmul.f32 %v6951_v46, %v6416_v1  ;;  %v6975_v34 = vmul.f32 %v6951_v46, %v8346_v51  ;;  %v6979_v59 = vmul.f32 %v6951_v46, %v6426_v9  ;;  %v8361_v51 = vld [vmem:[#allocation104_spill] sm:$0xff] }
 0x554   :  { %v6983_v3 = vmul.f32 %v6951_v46, %v6431_v6  ;;  %v6987_v27 = vmul.f32 %v6951_v46, %v6436_v37  ;;  %v6991_v1 = vmul.f32 %v6951_v46, %v8347_v44  ;;  %v6995_v13 = vmul.f32 %v6951_v46, %v6446_v19 }
 0x555   :  { %v6999_v9 = vmul.f32 %v6951_v46, %v6451_v21  ;;  %v7003_v6 = vmul.f32 %v6951_v46, %v6456_v33  ;;  %v7007_v37 = vmul.f32 %v6951_v46, %v8348_v63  ;;  %v7011_v45 = vmul.f32 %v6951_v46, %v6466_v23  ;;  %v8362_v63 = vld [vmem:[#allocation106_spill] sm:$0xff] }
 0x556   :  { %v7015_v19 = vmul.f32 %v6951_v46, %v6471_v4  ;;  %v7019_v21 = vmul.f32 %v6951_v46, %v6476_v53  ;;  %v7023_v33 = vmul.f32 %v6951_v46, %v8349_v42  ;;  %v7027_v43 = vmul.f32 %v6951_v46, %v8350_v30  ;;  %v8363_v30 = vld [vmem:[#allocation113_spill] sm:$0xff] }
 0x557   :  { %v7031_v23 = vmul.f32 %v6951_v46, %v8351_v12  ;;  %v7035_v4 = vmul.f32 %v6951_v46, %v8352_v40  ;;  %v7039_v53 = vmul.f32 %v6951_v46, %v8353_v62  ;;  %v7043_v48 = vmul.f32 %v6951_v46, %v8354_v38  ;;  %v8364_v40 = vld [vmem:[#allocation73_spill] sm:$0xff]  ;;  %v8365_v38 = vld [vmem:[#allocation66_spill] sm:$0xff] }
 0x558   :  { %v7047_v18 = vmul.f32 %v6951_v46, %v8355_v10  ;;  %v7051_v49 = vmul.f32 %v6951_v46, %v8356_v14  ;;  %v7055_v11 = vmul.f32 %v6951_v46, %v8357_v50  ;;  %v7059_v39 = vmul.f32 %v6951_v46, %v8358_v28  ;;  %v8367_v14 = vld [vmem:[#allocation109_spill] sm:$0xff]  ;;  %v8369_v28 = vld [vmem:[#allocation111_spill] sm:$0xff] }
 0x559   :  { %v7063_v26 = vmul.f32 %v6951_v46, %v8359_v17  ;;  %v7067_v61 = vmul.f32 %v6951_v46, %v8360_v31  ;;  %v7071_v44 = vmul.f32 %v6951_v46, %v8361_v51  ;;  %v7075_v42 = vmul.f32 %v6951_v46, %v8362_v63  ;;  %v8371_v31 = vld [vmem:[#allocation119_spill] sm:$0xff] }
 0x55a   :  { %v7079_v12 = vmul.f32 %v6951_v46, %v8363_v30  ;;  %v7083_v62 = vmul.f32 %v6951_v46, %v8364_v40  ;;  %v7087_v10 = vmul.f32 %v6951_v46, %v8365_v38  ;;  %v7091_v50 = vmul.f32 %v6951_v46, %v8367_v14  ;;  %v8373_v63 = vld [vmem:[#allocation115_spill] sm:$0xff]  ;;  %v8374_v40 = vld [vmem:[#allocation118_spill] sm:$0xff] }
 0x55b   :  { %v7095_v17 = vmul.f32 %v6951_v46, %v8369_v28  ;;  %v7099_v51 = vmul.f32 %v6951_v46, %v8371_v31  ;;  %v7103_v30 = vmul.f32 %v6951_v46, %v8373_v63  ;;  %v7107_v38 = vmul.f32 %v6951_v46, %v8374_v40 }
 0x55c   :  { %8366 = vst [vmem:[#allocation48_spill] sm:$0xff] %v7087_v10  ;;  %v8376_v10 = vld [vmem:[#allocation16_spill] sm:$0xff]  ;;  %v7127_v40 = vmul.f32 %v6951_v46, %v8332_v52  ;;  %v7149_v52 = vmul.f32 %v6951_v46, %v8333_v47  ;;  %v7169_v47 = vmul.f32 %v6951_v46, %v6713_v58  ;;  %v7189_v58 = vmul.f32 %v6951_v46, %v6902_v54 }
 0x55d   :  { %8368 = vst [vmem:[#allocation51_spill] sm:$0xff] %v7091_v50  ;;  %v7111_v14 = vmul.f32 %v6951_v46, %v8376_v10  ;;  %v8377_v50 = vld [vmem:[#allocation120_spill] sm:$0xff]  ;;  %v7133_v10 = vmul.f32 %v6951_v46, %v6616_v5  ;;  %v7153_v5 = vmul.f32 %v6951_v46, %v6650_v41  ;;  %v7173_v41 = vmul.f32 %v6951_v46, %v6868_v56 }
 0x55e   :  { %8370 = vst [vmem:[#allocation74_spill] sm:$0xff] %v7095_v17  ;;  %v7115_v28 = vmul.f32 %v6951_v46, %v8377_v50  ;;  %v8379_v17 = vld [vmem:[#allocation22_spill] sm:$0xff]  ;;  %v8383_v50 = vld [vmem:[#allocation33_spill] sm:$0xff]  ;;  %v7196_v56 = vmul.f32 %v6951_v46, %v6910_v25  ;;  %v3562_v54 = vmul.f32 %v6951_v46, %v6938_v16 }
 0x55f   :  { %8372 = vst [vmem:[#allocation68_spill] sm:$0xff] %v7099_v51  ;;  %v7119_v31 = vmul.f32 %v6951_v46, %v8379_v17  ;;  %v8381_v51 = vld [vmem:[#allocation26_spill] sm:$0xff]  ;;  %v8384_v17 = vld [vmem:[#allocation37_spill] sm:$0xff] }
 0x560   :  { %8375 = vst [vmem:[#allocation55_spill] sm:$0xff] %v7107_v38  ;;  %v7123_v63 = vmul.f32 %v6951_v46, %v8381_v51  ;;  %v7129_v38 = vperm.slane %v3496_v7, 0  ;;  %v8385_v51 = vld [vmem:[#allocation39_spill] sm:$0xff]  ;;  %v7157_v7 = vmul.f32 %v6951_v46, %v6665_v20  ;;  %v7177_v20 = vmul.f32 %v6951_v46, %v6878_v35 }
 0x561   :  { %8378 = vst [vmem:[#allocation61_spill] sm:$0xff] %v7115_v28  ;;  %v7137_v28 = vmul.f32 %v6951_v46, %v8383_v50  ;;  %v7161_v50 = vmul.f32 %v6951_v46, %v6680_v36  ;;  %v7181_v36 = vmul.f32 %v6951_v46, %v6886_v57  ;;  %v7200_v35 = vmul.f32 %v6951_v46, %v6918_v24 }
 0x562   :  { %8380 = vst [vmem:[#allocation4_spill] sm:$0xff] %v7119_v31  ;;  %v7141_v31 = vmul.f32 %v6951_v46, %v8384_v17  ;;  %v7165_v17 = vmul.f32 %v6951_v46, %v6695_v22  ;;  %v7185_v22 = vmul.f32 %v6951_v46, %v6894_v0  ;;  %v7204_v57 = vmul.f32 %v6951_v46, %v6925_v55 }
 0x563   :  { %8382 = vst [vmem:[#allocation9_spill] sm:$0xff] %v7123_v63  ;;  %v7145_v63 = vmul.f32 %v6951_v46, %v8385_v51  ;;  %v7192_v51 = vadd.f32 %v7129_v38, %v3563_v8  ;;  %v7208_v0 = vmul.f32 %v6951_v46, %v6932_v60  ;;  %v3567_v8 = vadd.f32 %v7129_v38, %v6959_v2 }
 0x564   :  { %8386 = vst [vmem:[#allocation2_spill] sm:$0xff] %v7173_v41  ;;  %v3568_v25 = vadd.f32 %v7129_v38, %v6963_v32  ;;  %v3569_v24 = vadd.f32 %v7129_v38, %v6967_v15  ;;  %v3570_v55 = vadd.f32 %v7129_v38, %v6971_v29  ;;  %v3572_v60 = vadd.f32 %v7129_v38, %v6979_v59 }
 0x565   :  { %8387 = vst [vmem:[#allocation20_spill] sm:$0xff] %v7177_v20  ;;  %v3573_v16 = vadd.f32 %v7129_v38, %v6983_v3  ;;  %v3574_v46 = vadd.f32 %v7129_v38, %v6987_v27  ;;  %v7230_v2 = vadd.f32 %v7129_v38, %v6991_v1  ;;  %v7234_v32 = vadd.f32 %v7129_v38, %v6995_v13 }
 0x566   :  { %8388 = vst [vmem:[#allocation18_spill] sm:$0xff] %v7181_v36  ;;  %v7238_v15 = vadd.f32 %v7129_v38, %v6999_v9  ;;  %v7242_v29 = vadd.f32 %v7129_v38, %v7003_v6  ;;  %v7250_v59 = vadd.f32 %v7129_v38, %v7011_v45  ;;  %v7254_v3 = vadd.f32 %v7129_v38, %v7015_v19 }
 0x567   :  { %8389 = vst [vmem:[#allocation6_spill] sm:$0xff] %v7185_v22  ;;  %v7258_v27 = vadd.f32 %v7129_v38, %v7019_v21  ;;  %v7262_v1 = vadd.f32 %v7129_v38, %v7023_v33  ;;  %v7266_v13 = vadd.f32 %v7129_v38, %v7027_v43  ;;  %v7270_v9 = vadd.f32 %v7129_v38, %v7031_v23 }
 0x568   :  { %8390 = vst [vmem:[#allocation11_spill] sm:$0xff] %v7189_v58  ;;  %v7274_v6 = vadd.f32 %v7129_v38, %v7035_v4  ;;  %v7282_v45 = vadd.f32 %v7129_v38, %v7043_v48  ;;  %v7286_v19 = vadd.f32 %v7129_v38, %v7047_v18  ;;  %v7290_v21 = vadd.f32 %v7129_v38, %v7051_v49 }
 0x569   :  { %8391 = vst [vmem:[#allocation14_spill] sm:$0xff] %v7196_v56  ;;  %v7294_v33 = vadd.f32 %v7129_v38, %v7055_v11  ;;  %v7298_v43 = vadd.f32 %v7129_v38, %v7059_v39  ;;  %v7302_v23 = vadd.f32 %v7129_v38, %v7063_v26  ;;  %v7306_v4 = vadd.f32 %v7129_v38, %v7067_v61  ;;  %v8395_v11 = vld [vmem:[#allocation48_spill] sm:$0xff]  ;;  %v8396_v26 = vld [vmem:[#allocation51_spill] sm:$0xff]  ;;  %v8402_v56 = vld [vmem:[#allocation61_spill] sm:$0xff] }
 0x56a   :  { %8392 = vst [vmem:[#allocation23_spill] sm:$0xff] %v7200_v35  ;;  %v7314_v48 = vadd.f32 %v7129_v38, %v7075_v42  ;;  %v7318_v18 = vadd.f32 %v7129_v38, %v7079_v12  ;;  %v7322_v49 = vadd.f32 %v7129_v38, %v7083_v62  ;;  %v7326_v39 = vadd.f32 %v7129_v38, %v8395_v11  ;;  %v8400_v35 = vld [vmem:[#allocation55_spill] sm:$0xff]  ;;  %v8404_v58 = vld [vmem:[#allocation4_spill] sm:$0xff] }
 0x56b   :  { %8393 = vst [vmem:[#allocation27_spill] sm:$0xff] %v7204_v57  ;;  %v3571_v57 = vadd.f32 %v7129_v38, %v6975_v34  ;;  %v7246_v34 = vadd.f32 %v7129_v38, %v7007_v37  ;;  %v7278_v37 = vadd.f32 %v7129_v38, %v7039_v53  ;;  %v7310_v53 = vadd.f32 %v7129_v38, %v7071_v44  ;;  %v8397_v44 = vld [vmem:[#allocation74_spill] sm:$0xff] }
 0x56c   :  { %8394 = vst [vmem:[#allocation31_spill] sm:$0xff] %v7208_v0  ;;  %v7330_v61 = vadd.f32 %v7129_v38, %v8396_v26  ;;  %v7334_v42 = vadd.f32 %v7129_v38, %v8397_v44  ;;  %v8398_v0 = vld [vmem:[#allocation68_spill] sm:$0xff]  ;;  %v7342_v62 = vadd.f32 %v7129_v38, %v7103_v30  ;;  %v7346_v11 = vadd.f32 %v7129_v38, %v8400_v35  ;;  %v8405_v35 = vld [vmem:[#allocation9_spill] sm:$0xff] }
 0x56d   :  { %v7338_v12 = vadd.f32 %v7129_v38, %v8398_v0  ;;  %v7350_v26 = vadd.f32 %v7129_v38, %v7111_v14  ;;  %v7354_v44 = vadd.f32 %v7129_v38, %v8402_v56  ;;  %v7358_v0 = vadd.f32 %v7129_v38, %v8404_v58 }
 0x56e   :  { %8399 = vst [vmem:[#allocation34_spill] sm:$0xff] %v7342_v62  ;;  %v3631_v22 = vmax.f32 %v3567_v8, 0.0  ;;  %v3632_v36 = vmax.f32 %v3568_v25, 0.0  ;;  %v3633_v30 = vmax.f32 %v3569_v24, 0.0  ;;  %v3634_v20 = vmax.f32 %v3570_v55, 0.0 }
 0x56f   :  { %8401 = vst [vmem:[#allocation40_spill] sm:$0xff] %v7346_v11  ;;  %v3635_v62 = vmax.f32 %v3571_v57, 0.0  ;;  %v3636_v41 = vmax.f32 %v3572_v60, 0.0  ;;  %v7362_v11 = vadd.f32 %v7129_v38, %v8405_v35  ;;  %v7366_v14 = vadd.f32 %v7129_v38, %v7127_v40 }
 0x570   :  { %8403 = vst [vmem:[#allocation70_spill] sm:$0xff] %v7354_v44  ;;  %v3637_v56 = vmax.f32 %v3573_v16, 0.0  ;;  %v3638_v44 = vmax.f32 %v3574_v46, 0.0  ;;  %v7370_v58 = vadd.f32 %v7129_v38, %v7133_v10  ;;  %v7374_v8 = vadd.f32 %v7129_v38, %v7137_v28 }
 0x571   :  { %v3639_v57 = vmax.f32 %v7230_v2, 0.0  ;;  %v3640_v25 = vmax.f32 %v7234_v32, 0.0  ;;  %v3629_v24 = vadd.f32 %v7129_v38, %v3562_v54  ;;  %v3641_v55 = vmax.f32 %v7238_v15, 0.0 }
 0x572   :  { %v3642_v40 = vmax.f32 %v7242_v29, 0.0  ;;  %v3643_v60 = vmax.f32 %v7246_v34, 0.0  ;;  %v3644_v16 = vmax.f32 %v7250_v59, 0.0  ;;  %v4286_v10 = vpack.c.bf16 %v3632_v36, %v3631_v22 }
 0x573   :  { %v4291_v46 = vpack.c.bf16 %v3634_v20, %v3633_v30  ;;  %v4296_v35 = vpack.c.bf16 %v3636_v41, %v3635_v62  ;;  %v7385_v28 = vadd.f32 %v7129_v38, %v7141_v31  ;;  %v3645_v2 = vmax.f32 %v7254_v3, 0.0 }
 0x574   :  { %v3646_v32 = vmax.f32 %v7258_v27, 0.0  ;;  %v4301_v54 = vpack.c.bf16 %v3638_v44, %v3637_v56  ;;  %v3647_v15 = vmax.f32 %v7262_v1, 0.0  ;;  %v3648_v29 = vmax.f32 %v7266_v13, 0.0  ;;  %4287 = vst [vmem:[%s7576_s4] sm:$0xff] %v4286_v10  }
 0x575   :  { %v3649_v34 = vmax.f32 %v7270_v9, 0.0  ;;  %v4306_v41 = vpack.c.bf16 %v3640_v25, %v3639_v57  ;;  %v3650_v20 = vmax.f32 %v7274_v6, 0.0  ;;  %v3693_v31 = vmax.f32 %v3629_v24, 0.0  ;;  %4443 = vst [vmem:[%s7576_s4 + $0x8] sm:$0xff] %v4291_v46   ;;  %v8407_v24 = vld [vmem:[#allocation34_spill] sm:$0xff] }
 0x576   :  { %v3694_v36 = vmax.f32 %v7192_v51, 0.0  ;;  %v4311_v22 = vpack.c.bf16 %v3642_v40, %v3641_v55  ;;  %v7402_v59 = vadd.f32 %v7129_v38, %v7145_v63  ;;  %v3651_v3 = vmax.f32 %v7278_v37, 0.0  ;;  %4444 = vst [vmem:[%s7576_s4 + $0x10] sm:$0xff] %v4296_v35   ;;  %v8408_v40 = vld [vmem:[#allocation40_spill] sm:$0xff] }
 0x577   :  { %v3652_v27 = vmax.f32 %v7282_v45, 0.0  ;;  %v4316_v1 = vpack.c.bf16 %v3644_v16, %v3643_v60  ;;  %v7411_v51 = vadd.f32 %v7129_v38, %v7149_v52  ;;  %v3653_v13 = vmax.f32 %v7286_v19, 0.0  ;;  %4445 = vst [vmem:[%s7576_s4 + $0x18] sm:$0xff] %v4301_v54   ;;  %v8410_v10 = vld [vmem:[#allocation70_spill] sm:$0xff] }
 0x578   :  { %v3654_v9 = vmax.f32 %v7290_v21, 0.0  ;;  %v4321_v63 = vpack.c.bf16 %v3646_v32, %v3645_v2  ;;  %v7420_v6 = vadd.f32 %v7129_v38, %v7153_v5  ;;  %v3655_v37 = vmax.f32 %v7294_v33, 0.0  ;;  %4446 = vst [vmem:[%s7576_s4 + $0x20] sm:$0xff] %v4306_v41   ;;  %v8411_v2 = vld [vmem:[#allocation18_spill] sm:$0xff] }
 0x579   :  { %v3656_v45 = vmax.f32 %v7298_v43, 0.0  ;;  %v4326_v52 = vpack.c.bf16 %v3648_v29, %v3647_v15  ;;  %v3657_v19 = vmax.f32 %v7302_v23, 0.0  ;;  %v3658_v21 = vmax.f32 %v7306_v4, 0.0  ;;  %4447 = vst [vmem:[%s7576_s4 + $0x28] sm:$0xff] %v4311_v22  }
 0x57a   :  { %v4331_v62 = vpack.c.bf16 %v3650_v20, %v3649_v34  ;;  %v7432_v5 = vpack.c.bf16 %v3694_v36, %v3693_v31  ;;  %v7436_v33 = vadd.f32 %v7129_v38, %v7157_v7  ;;  %v3659_v43 = vmax.f32 %v7310_v53, 0.0  ;;  %4448 = vst [vmem:[%s7576_s4 + $0x30] sm:$0xff] %v4316_v1  }
 0x57b   :  { %v3660_v44 = vmax.f32 %v7314_v48, 0.0  ;;  %v4336_v23 = vpack.c.bf16 %v3652_v27, %v3651_v3  ;;  %v7445_v4 = vadd.f32 %v7129_v38, %v7161_v50  ;;  %v3661_v30 = vmax.f32 %v7318_v18, 0.0  ;;  %4449 = vst [vmem:[%s7576_s4 + $0x38] sm:$0xff] %v4321_v63  }
 0x57c   :  { %v3662_v56 = vmax.f32 %v7322_v49, 0.0  ;;  %v4341_v7 = vpack.c.bf16 %v3654_v9, %v3653_v13  ;;  %v7454_v53 = vadd.f32 %v7129_v38, %v7165_v17  ;;  %v3663_v48 = vmax.f32 %v7326_v39, 0.0  ;;  %4450 = vst [vmem:[%s7576_s4 + $0x40] sm:$0xff] %v4326_v52   ;;  %v8406_v39 = vld [vmem:[#allocation2_spill] sm:$0xff] }
 0x57d   :  { %v3664_v57 = vmax.f32 %v7330_v61, 0.0  ;;  %v4346_v50 = vpack.c.bf16 %v3656_v45, %v3655_v37  ;;  %v7463_v18 = vadd.f32 %v7129_v38, %v7169_v47  ;;  %v3665_v49 = vmax.f32 %v7334_v42, 0.0  ;;  %4451 = vst [vmem:[%s7576_s4 + $0x48] sm:$0xff] %v4331_v62   ;;  %v8409_v42 = vld [vmem:[#allocation20_spill] sm:$0xff] }
 0x57e   :  { %v3666_v25 = vmax.f32 %v7338_v12, 0.0  ;;  %v4351_v17 = vpack.c.bf16 %v3658_v21, %v3657_v19  ;;  %v3620_v61 = vadd.f32 %v7129_v38, %v8406_v39  ;;  %v3667_v55 = vmax.f32 %v8407_v24, 0.0  ;;  %4452 = vst [vmem:[%s7576_s4 + $0x50] sm:$0xff] %v4336_v23  }
 0x57f   :  { %v3668_v60 = vmax.f32 %v8408_v40, 0.0  ;;  %v4356_v47 = vpack.c.bf16 %v3660_v44, %v3659_v43  ;;  %v3621_v12 = vadd.f32 %v7129_v38, %v8409_v42  ;;  %v3669_v16 = vmax.f32 %v7350_v26, 0.0  ;;  %4453 = vst [vmem:[%s7576_s4 + $0x58] sm:$0xff] %v4341_v7   ;;  %v8412_v26 = vld [vmem:[#allocation6_spill] sm:$0xff] }
 0x580   :  { %v3670_v46 = vmax.f32 %v8410_v10, 0.0  ;;  %v4361_v35 = vpack.c.bf16 %v3662_v56, %v3661_v30  ;;  %v3622_v32 = vadd.f32 %v7129_v38, %v8411_v2  ;;  %v3671_v54 = vmax.f32 %v7358_v0, 0.0  ;;  %4454 = vst [vmem:[%s7576_s4 + $0x60] sm:$0xff] %v4346_v50   ;;  %v8413_v0 = vld [vmem:[#allocation11_spill] sm:$0xff] }
 0x581   :  { %v3672_v15 = vmax.f32 %v7362_v11, 0.0  ;;  %v4366_v29 = vpack.c.bf16 %v3664_v57, %v3663_v48  ;;  %v3623_v34 = vadd.f32 %v7129_v38, %v8412_v26  ;;  %v3673_v41 = vmax.f32 %v7366_v14, 0.0  ;;  %4455 = vst [vmem:[%s7576_s4 + $0x68] sm:$0xff] %v4351_v17   ;;  %v8414_v14 = vld [vmem:[#allocation14_spill] sm:$0xff] }
 0x582   :  { %v3674_v20 = vmax.f32 %v7370_v58, 0.0  ;;  %v4371_v31 = vpack.c.bf16 %v3666_v25, %v3665_v49  ;;  %v3624_v11 = vadd.f32 %v7129_v38, %v8413_v0  ;;  %v3675_v36 = vmax.f32 %v7374_v8, 0.0  ;;  %4456 = vst [vmem:[%s7576_s4 + $0x70] sm:$0xff] %v4356_v47   ;;  %v8415_v8 = vld [vmem:[#allocation23_spill] sm:$0xff] }
 0x583   :  { %v3676_v22 = vmax.f32 %v7385_v28, 0.0  ;;  %v4376_v3 = vpack.c.bf16 %v3668_v60, %v3667_v55  ;;  %v3625_v58 = vadd.f32 %v7129_v38, %v8414_v14  ;;  %v3677_v27 = vmax.f32 %v7402_v59, 0.0  ;;  %4457 = vst [vmem:[%s7576_s4 + $0x78] sm:$0xff] %v4361_v35   ;;  %v8416_v59 = vld [vmem:[#allocation27_spill] sm:$0xff] }
 0x584   :  { %v3678_v1 = vmax.f32 %v7411_v51, 0.0  ;;  %v4381_v13 = vpack.c.bf16 %v3670_v46, %v3669_v16  ;;  %v3626_v28 = vadd.f32 %v7129_v38, %v8415_v8  ;;  %v3679_v9 = vmax.f32 %v7420_v6, 0.0  ;;  %4458 = vst [vmem:[%s7576_s4 + $0x80] sm:$0xff] %v4366_v29   ;;  %v8417_v6 = vld [vmem:[#allocation31_spill] sm:$0xff] }
 0x585   :  { %v3680_v63 = vmax.f32 %v7436_v33, 0.0  ;;  %v4386_v37 = vpack.c.bf16 %v3672_v15, %v3671_v54  ;;  %v3627_v51 = vadd.f32 %v7129_v38, %v8416_v59  ;;  %v3681_v45 = vmax.f32 %v7445_v4, 0.0  ;;  %4459 = vst [vmem:[%s7576_s4 + $0x88] sm:$0xff] %v4371_v31  }
 0x586   :  { %v3682_v52 = vmax.f32 %v7454_v53, 0.0  ;;  %v4391_v19 = vpack.c.bf16 %v3674_v20, %v3673_v41  ;;  %v3628_v21 = vadd.f32 %v7129_v38, %v8417_v6  ;;  %v3683_v62 = vmax.f32 %v7463_v18, 0.0  ;;  %4460 = vst [vmem:[%s7576_s4 + $0x90] sm:$0xff] %v4376_v3  }
 0x587   :  { %v3684_v33 = vmax.f32 %v3620_v61, 0.0  ;;  %v4396_v43 = vpack.c.bf16 %v3676_v22, %v3675_v36  ;;  %v3685_v44 = vmax.f32 %v3621_v12, 0.0  ;;  %v3686_v23 = vmax.f32 %v3622_v32, 0.0  ;;  %4461 = vst [vmem:[%s7576_s4 + $0x98] sm:$0xff] %v4381_v13  }
 0x588   :  { %v4401_v4 = vpack.c.bf16 %v3678_v1, %v3677_v27  ;;  %v3687_v30 = vmax.f32 %v3623_v34, 0.0  ;;  %v3688_v56 = vmax.f32 %v3624_v11, 0.0  ;;  %4462 = vst [vmem:[%s7576_s4 + $0xa0] sm:$0xff] %v4386_v37   ;;  %v4406_v38 = vpack.c.bf16 %v3680_v63, %v3679_v9 }
 0x589   :  { %v3689_v7 = vmax.f32 %v3625_v58, 0.0  ;;  %v3690_v53 = vmax.f32 %v3626_v28, 0.0  ;;  %4463 = vst [vmem:[%s7576_s4 + $0xa8] sm:$0xff] %v4391_v19   ;;  %v4411_v48 = vpack.c.bf16 %v3682_v52, %v3681_v45  ;;  %v3691_v57 = vmax.f32 %v3627_v51, 0.0 }
 0x58a   :  { %v3692_v50 = vmax.f32 %v3628_v21, 0.0  ;;  %4464 = vst [vmem:[%s7576_s4 + $0xb0] sm:$0xff] %v4396_v43   ;;  %v4416_v18 = vpack.c.bf16 %v3684_v33, %v3683_v62  ;;  %v4421_v49 = vpack.c.bf16 %v3686_v23, %v3685_v44  ;;  %v4426_v25 = vpack.c.bf16 %v3688_v56, %v3687_v30 }
 0x58b   :  { %4465 = vst [vmem:[%s7576_s4 + $0xb8] sm:$0xff] %v4401_v4   ;;  %v4431_v17 = vpack.c.bf16 %v3690_v53, %v3689_v7 }
 0x58c   :  { %4466 = vst [vmem:[%s7576_s4 + $0xc0] sm:$0xff] %v4406_v38   ;;  %v4436_v39 = vpack.c.bf16 %v3692_v50, %v3691_v57 }
 0x58d   :  { %4467 = vst [vmem:[%s7576_s4 + $0xc8] sm:$0xff] %v4411_v48  }
 0x58e   :  { %4468 = vst [vmem:[%s7576_s4 + $0xd0] sm:$0xff] %v4416_v18  }
 0x58f   :  { %4469 = vst [vmem:[%s7576_s4 + $0xd8] sm:$0xff] %v4421_v49  }
 0x590   :  { %4470 = vst [vmem:[%s7576_s4 + $0xe0] sm:$0xff] %v4426_v25  }
 0x591   :  { %4471 = vst [vmem:[%s7576_s4 + $0xe8] sm:$0xff] %v4431_v17  }
 0x592   :  { %4472 = vst [vmem:[%s7576_s4 + $0xf0] sm:$0xff] %v4436_v39  }
 0x593   :  { %4473 = vst [vmem:[%s7576_s4 + $0xf8] sm:$0xff] %v7432_v5  }

// kernel: resnet_block_forward.3
= control target key start
LH: loop header
LB: loop body
LE: loop exit
PB: predicated region body
PF: predicated region fallthrough
CT: control target
= control target key end

     0   :  { %10 = vsyncpa [#allocation3], 0  ;;  %s4408_s21 = smov [#allocation2]   ;;  %s4409_s23 = smov 64   ;;  %s6997_s0 = inlined_call_operand.vmem [shape: bf16[2,16,16,128], index: 0, kind: input, shape index: {}]   ;;  %s6998_s1 = inlined_call_operand.hbm [shape: bf16[3,384,128], index: 1, kind: input, shape index: {}]   ;;  %s6999_s2 = inlined_call_operand.vmem [shape: f32[1,128], index: 2, kind: input, shape index: {}]   ;;  %s7000_s3 = inlined_call_operand.vmem [shape: f32[1,128], index: 3, kind: input, shape index: {}]   ;;  %s7001_s4 = inlined_call_operand.vmem [shape: f32[2,16,16,128], index: 4, kind: input, shape index: {}, may-alias: {4,5}]   ;;  %s7002_s5 = inlined_call_operand.vmem [shape: f32[2,16,16,128], index: 5, kind: output, shape index: {}, may-alias: {4,5}]  }
   0x1   :  { %s17_s20 = sshll.u32 %s6998_s1, 4  ;;  %s19_s22 = sshll.u32 %s4408_s21, 4  ;;  %s18_s20 = int_to_ptr.hbm [resolvable:$true] %s17_s20  ;;  %s20_s22 = int_to_ptr.vmem [resolvable:$true] %s19_s22 }
   0x2   :  { %s4410_s24 = smov 4  }
   0x3   :  { %25 = dma.hbm_to_vmem [thread:$0]  %s18_s20, 9216, %s20_s22, [#allocation3], %s4409_s23, %s4409_s23, %s4410_s24  }
   0x4   :  { %4406 = dma.done.wait [#allocation3], 9216  }
   0x5   :  { %4407 = vsyncadd [#allocation3], 4294958080  ;;  %v4102_v0 = vld [vmem:[#allocation2 + $0xf8] sm:$0xff]  ;;  %v4101_v1 = vld [vmem:[#allocation2 + $0xf0] sm:$0xff]  ;;  %vm676_vm0 = vcmask 1040384   ;;  %vm999_vm3 = vcmask 1047552  }
   0x6   :  { %1307 = vmatpush.bf16.msra.mxu0 %v4102_v0  ;;  %4302 = vmatpush.bf16.msra.mxu1 %v4102_v0  ;;  %v4100_v2 = vld [vmem:[#allocation2 + $0xe8] sm:$0xff]  ;;  %v4099_v3 = vld [vmem:[#allocation2 + $0xe0] sm:$0xff]  ;;  %v4098_v4 = vld [vmem:[#allocation2 + $0xd8] sm:$0xff]  ;;  %vm677_vm1 = vsmask.f32 256 }
   0x7   :  { %4303 = vmatpush.bf16.msra.mxu2 %v4102_v0  ;;  %4304 = vmatpush.bf16.msra.mxu3 %v4102_v0  ;;  %v4447_v5 = vld [vmem:[%s6997_s0] sm:$0xff]   ;;  %v4097_v11 = vld [vmem:[#allocation2 + $0xd0] sm:$0xff]  ;;  %v4096_v22 = vld [vmem:[#allocation2 + $0xc8] sm:$0xff]  ;;  %vm1000_vm4 = vsmask.f32 7424 }
   0x8   :  { %v4452_v6 = vld [vmem:[%s6997_s0 + $0x40] sm:$0xff]   ;;  %v4145_v9 = vunpack.c.l.b16 %v4447_v5  ;;  %v7041_v10 = vshrl.u32 %v4447_v5, 16  ;;  %v7042_v20 = vshll.u32 %v4447_v5, 16  ;;  %vm4488_vm2 = vmand %vm676_vm0, %vm677_vm1  ;;  %v4118_v41 = vld [vmem:[#allocation2 + $0x178] sm:$0xff]  ;;  %v7242_v36 = vshrl.u32 %v4447_v5, 16 }
   0x9   :  { %v4457_v7 = vld [vmem:[%s6997_s0 + $0x80] sm:$0xff]   ;;  %v4177_v12 = vunpack.c.l.b16 %v4452_v6  ;;  %v7025_v13 = vshrl.u32 %v4452_v6, 16  ;;  %v7026_v21 = vshll.u32 %v4452_v6, 16  ;;  %v4078_v42 = vld [vmem:[#allocation2 + $0x38] sm:$0xff]  ;;  %v4507_v45 = vld [vmem:[%s6997_s0 + $0x8] sm:$0xff]  }
   0xa   :  { %1308 = vmatpush.bf16.msra.mxu0 %v4101_v1  ;;  %4305 = vmatpush.bf16.msra.mxu1 %v4101_v1  ;;  %v4462_v8 = vld [vmem:[%s6997_s0 + $0xc0] sm:$0xff]   ;;  %v4209_v14 = vunpack.c.l.b16 %v4457_v7  ;;  %v7013_v15 = vshrl.u32 %v4457_v7, 16  ;;  %v165_v18 = vpack.c.b16 %v4145_v9, %v4145_v9  ;;  %v430_v19 = vrot.slane %v7041_v10, 7  ;;  %v4512_v46 = vld [vmem:[%s6997_s0 + $0x48] sm:$0xff]   ;;  %v4110_v49 = vld [vmem:[#allocation2 + $0x138] sm:$0xff] }
   0xb   :  { %4306 = vmatpush.bf16.msra.mxu2 %v4101_v1  ;;  %4307 = vmatpush.bf16.msra.mxu3 %v4101_v1  ;;  %7195 = vst [vmem:[#allocation5_spill] sm:$0xff] %v4462_v8  ;;  %v4241_v16 = vunpack.c.l.b16 %v4462_v8  ;;  %v7007_v17 = vshrl.u32 %v4462_v8, 16  ;;  %v172_v23 = vpack.c.b16 %v4177_v12, %v4177_v12  ;;  %v479_v24 = vrot.slane %v7025_v13, 7  ;;  %v4095_v31 = vld [vmem:[#allocation2 + $0xc0] sm:$0xff]  ;;  %v4086_v50 = vld [vmem:[#allocation2 + $0x78] sm:$0xff]  ;;  %v4525_v51 = vld [vmem:[%s6997_s0 + $0x88] sm:$0xff]  }
   0xc   :  { %v181_v25 = vpack.c.b16 %v4209_v14, %v4209_v14  ;;  %v7015_v26 = vshll.u32 %v4457_v7, 16  ;;  %v542_v27 = vrot.slane %v7013_v15, 7  ;;  %v7008_v30 = vshll.u32 %v4462_v8, 16  ;;  %v4530_v52 = vld [vmem:[%s6997_s0 + $0xc8] sm:$0xff]   ;;  %v4117_v53 = vld [vmem:[#allocation2 + $0x170] sm:$0xff]  ;;  %vm4997_vm5 = vmand %vm999_vm3, %vm1000_vm4 }
   0xd   :  { %v188_v28 = vpack.c.b16 %v4241_v16, %v4241_v16  ;;  %v591_v29 = vrot.slane %v7007_v17, 7  ;;  %v200_v32 = vshrl.u32 %v165_v18, 16  ;;  %v433_v33 = vor.u32 %v7042_v20, %v430_v19  ;;  %7199 = vst [vmem:[#allocation7_spill] sm:$0xff] %v4530_v52  ;;  %v4077_v54 = vld [vmem:[#allocation2 + $0x30] sm:$0xff]  ;;  %v4116_v1 = vld [vmem:[#allocation2 + $0x168] sm:$0xff] }
   0xe   :  { %1309 = vmatpush.bf16.msra.mxu0 %v4100_v2  ;;  %4308 = vmatpush.bf16.msra.mxu1 %v4100_v2  ;;  %v221_v34 = vshrl.u32 %v172_v23, 16  ;;  %v482_v35 = vor.u32 %v7026_v21, %v479_v24  ;;  %v248_v37 = vshrl.u32 %v181_v25, 16  ;;  %v545_v38 = vor.u32 %v7015_v26, %v542_v27  ;;  %v4109_v63 = vld [vmem:[#allocation2 + $0x130] sm:$0xff]  ;;  %v4108_v25 = vld [vmem:[#allocation2 + $0x128] sm:$0xff] }
   0xf   :  { %4309 = vmatpush.bf16.msra.mxu2 %v4100_v2  ;;  %4310 = vmatpush.bf16.msra.mxu3 %v4100_v2  ;;  %v269_v39 = vshrl.u32 %v188_v28, 16  ;;  %v594_v40 = vor.u32 %v7008_v30, %v591_v29  ;;  %v4498_v43 = vsel %vm4488_vm2, %v200_v32, %v433_v33  ;;  %v4149_v55 = vunpack.c.l.b16 %v4507_v45  ;;  %v4085_v0 = vld [vmem:[#allocation2 + $0x70] sm:$0xff]  ;;  %v4076_v2 = vld [vmem:[#allocation2 + $0x28] sm:$0xff] }
  0x10   :  { %v4502_v44 = vsel %vm4488_vm2, %v221_v34, %v482_v35  ;;  %v4516_v47 = vsel %vm4488_vm2, %v248_v37, %v545_v38  ;;  %v7039_v56 = vshrl.u32 %v4507_v45, 16  ;;  %v4181_v57 = vunpack.c.l.b16 %v4512_v46  ;;  %v4084_v27 = vld [vmem:[#allocation2 + $0x68] sm:$0xff] }
  0x11   :  { %v4520_v48 = vsel %vm4488_vm2, %v269_v39, %v594_v40  ;;  %v7023_v58 = vshrl.u32 %v4512_v46, 16  ;;  %v4213_v59 = vunpack.c.l.b16 %v4525_v51  ;;  %v7011_v60 = vshrl.u32 %v4525_v51, 16  ;;  %v4575_v40 = vld [vmem:[%s6997_s0 + $0x10] sm:$0xff]  }
  0x12   :  { %1310 = vmatpush.bf16.msra.mxu0 %v4099_v3  ;;  %4311 = vmatpush.bf16.msra.mxu1 %v4099_v3  ;;  %7198 = vst [vmem:[#allocation6_spill] sm:$0xff] %v4520_v48  ;;  %v4245_v61 = vunpack.c.l.b16 %v4530_v52  ;;  %v7005_v62 = vshrl.u32 %v4530_v52, 16  ;;  %v7040_v9 = vshll.u32 %v4507_v45, 16  ;;  %v7024_v14 = vshll.u32 %v4512_v46, 16 }
  0x13   :  { %4312 = vmatpush.bf16.msra.mxu2 %v4099_v3  ;;  %4313 = vmatpush.bf16.msra.mxu3 %v4099_v3  ;;  %v164_v3 = vpack.c.b16 %v4149_v55, %v4149_v55  ;;  %v486_v12 = vrot.slane %v7023_v58, 7  ;;  %v180_v16 = vpack.c.b16 %v4213_v59, %v4213_v59  ;;  %v535_v18 = vrot.slane %v7011_v60, 7 }
  0x14   :  { %v7012_v19 = vshll.u32 %v4525_v51, 16  ;;  %v598_v23 = vrot.slane %v7005_v62, 7  ;;  %v7006_v24 = vshll.u32 %v4530_v52, 16  ;;  %v7037_v55 = vshrl.u32 %v4575_v40, 16 }
  0x15   :  { %v197_v28 = vshrl.u32 %v164_v3, 16  ;;  %v489_v32 = vor.u32 %v7024_v14, %v486_v12  ;;  %v245_v33 = vshrl.u32 %v180_v16, 16 }
  0x16   :  { %1311 = vmatpush.bf16.msra.mxu0 %v4098_v4  ;;  %4314 = vmatpush.bf16.msra.mxu1 %v4098_v4  ;;  %v538_v34 = vor.u32 %v7012_v19, %v535_v18  ;;  %v601_v37 = vor.u32 %v7006_v24, %v598_v23  ;;  %v437_v16 = vrot.slane %v7037_v55, 7  ;;  %v7038_v18 = vshll.u32 %v4575_v40, 16 }
  0x17   :  { %4315 = vmatpush.bf16.msra.mxu2 %v4098_v4  ;;  %4316 = vmatpush.bf16.msra.mxu3 %v4098_v4  ;;  %v423_v4 = vrot.slane %v7039_v56, 7 }
  0x19   :  { %v426_v29 = vor.u32 %v7040_v9, %v423_v4 }
  0x1a   :  { %1312 = vmatpush.bf16.msra.mxu0 %v4097_v11  ;;  %4317 = vmatpush.bf16.msra.mxu1 %v4097_v11 }
  0x1b   :  { %4318 = vmatpush.bf16.msra.mxu2 %v4097_v11  ;;  %4319 = vmatpush.bf16.msra.mxu3 %v4097_v11  ;;  %v173_v11 = vpack.c.b16 %v4181_v57, %v4181_v57  ;;  %v4566_v38 = vsel %vm4488_vm2, %v197_v28, %v426_v29 }
  0x1c   :  { %7200 = vst [vmem:[#allocation8_spill] sm:$0xff] %v4566_v38 }
  0x1e   :  { %1313 = vmatpush.bf16.msra.mxu0 %v4096_v22  ;;  %4320 = vmatpush.bf16.msra.mxu1 %v4096_v22 }
  0x1f   :  { %4321 = vmatpush.bf16.msra.mxu2 %v4096_v22  ;;  %4322 = vmatpush.bf16.msra.mxu3 %v4096_v22  ;;  %v189_v22 = vpack.c.b16 %v4245_v61, %v4245_v61 }
  0x21   :  { %v272_v35 = vshrl.u32 %v189_v22, 16 }
  0x22   :  { %1314 = vmatpush.bf16.msra.mxu0 %v4095_v31  ;;  %4323 = vmatpush.bf16.msra.mxu1 %v4095_v31 }
  0x23   :  { %4324 = vmatpush.bf16.msra.mxu2 %v4095_v31  ;;  %4325 = vmatpush.bf16.msra.mxu3 %v4095_v31  ;;  %v224_v31 = vshrl.u32 %v173_v11, 16  ;;  %v4083_v11 = vld [vmem:[#allocation2 + $0x60] sm:$0xff] }
  0x25   :  { %1315 = vmatmul.bf16.vlgmr.msra.gmra.mxu0 %v4498_v43  ;;  %1355 = vmatmul.bf16.vlgmr.msra.gmra.mxu1 %v4502_v44  ;;  %v4570_v39 = vsel %vm4488_vm2, %v224_v31, %v489_v32 }
  0x26   :  { %1395 = vmatmul.bf16.vlgmr.msra.gmra.mxu2 %v4516_v47  ;;  %1435 = vmatmul.bf16.vlgmr.msra.gmra.mxu3 %v4520_v48 }
  0x27   :  { %1645 = vmatpush.bf16.msrb.mxu2 %v4118_v41  ;;  %1958 = vmatpush.bf16.msrb.mxu3 %v4078_v42  ;;  %v4580_v41 = vld [vmem:[%s6997_s0 + $0x50] sm:$0xff]   ;;  %v4584_v42 = vsel %vm4488_vm2, %v245_v33, %v538_v34 }
  0x28   :  { %1476 = vmatpush.bf16.msrb.mxu1 %v4110_v49  ;;  %2127 = vmatpush.bf16.msrb.mxu0 %v4086_v50  ;;  %v4588_v49 = vsel %vm4488_vm2, %v272_v35, %v601_v37  ;;  %v4593_v50 = vld [vmem:[%s6997_s0 + $0x90] sm:$0xff]   ;;  %v4185_v57 = vunpack.c.l.b16 %v4580_v41  ;;  %v7021_v59 = vshrl.u32 %v4580_v41, 16  ;;  %v440_v35 = vor.u32 %v7038_v18, %v437_v16 }
  0x29   :  { %7201 = vst [vmem:[#allocation9_spill] sm:$0xff] %v4588_v49  ;;  %v4217_v61 = vunpack.c.l.b16 %v4593_v50  ;;  %v7010_v29 = vshll.u32 %v4593_v50, 16 }
  0x2a   :  { %v174_v22 = vpack.c.b16 %v4185_v57, %v4185_v57  ;;  %v493_v23 = vrot.slane %v7021_v59, 7 }
  0x2b   :  { %1646 = vmatpush.bf16.msrb.mxu2 %v4117_v53  ;;  %1959 = vmatpush.bf16.msrb.mxu3 %v4077_v54  ;;  %v4598_v53 = vld [vmem:[%s6997_s0 + $0xd0] sm:$0xff]   ;;  %v4153_v54 = vunpack.c.l.b16 %v4575_v40 }
  0x2c   :  { %1477 = vmatpush.bf16.msrb.mxu1 %v4109_v63  ;;  %2128 = vmatpush.bf16.msrb.mxu0 %v4085_v0  ;;  %7202 = vst [vmem:[#allocation10_spill] sm:$0xff] %v4598_v53  ;;  %v7009_v63 = vshrl.u32 %v4593_v50, 16  ;;  %v4115_v0 = vld [vmem:[#allocation2 + $0x160] sm:$0xff]  ;;  %v4249_v3 = vunpack.c.l.b16 %v4598_v53  ;;  %v7003_v4 = vshrl.u32 %v4598_v53, 16  ;;  %v7004_v33 = vshll.u32 %v4598_v53, 16 }
  0x2d   :  { %v166_v12 = vpack.c.b16 %v4153_v54, %v4153_v54  ;;  %v227_v37 = vshrl.u32 %v174_v22, 16 }
  0x2e   :  { %v549_v28 = vrot.slane %v7009_v63, 7  ;;  %v190_v31 = vpack.c.b16 %v4249_v3, %v4249_v3  ;;  %v605_v32 = vrot.slane %v7003_v4, 7  ;;  %v4082_v4 = vld [vmem:[#allocation2 + $0x58] sm:$0xff] }
  0x2f   :  { %1647 = vmatpush.bf16.msrb.mxu2 %v4116_v1  ;;  %1960 = vmatpush.bf16.msrb.mxu3 %v4076_v2  ;;  %v4075_v1 = vld [vmem:[#allocation2 + $0x20] sm:$0xff]  ;;  %v203_v34 = vshrl.u32 %v166_v12, 16  ;;  %v4648_v12 = vld [vmem:[%s6997_s0 + $0x58] sm:$0xff]  }
  0x30   :  { %1478 = vmatpush.bf16.msrb.mxu1 %v4108_v25  ;;  %2129 = vmatpush.bf16.msrb.mxu0 %v4084_v27  ;;  %v4107_v2 = vld [vmem:[#allocation2 + $0x120] sm:$0xff]  ;;  %v7022_v25 = vshll.u32 %v4580_v41, 16  ;;  %v182_v27 = vpack.c.b16 %v4217_v61, %v4217_v61  ;;  %v552_v61 = vor.u32 %v7010_v29, %v549_v28  ;;  %v7020_v63 = vshll.u32 %v4648_v12, 16 }
  0x32   :  { %v496_v54 = vor.u32 %v7022_v25, %v493_v23  ;;  %v251_v57 = vshrl.u32 %v182_v27, 16  ;;  %v4661_v23 = vld [vmem:[%s6997_s0 + $0x98] sm:$0xff]  }
  0x33   :  { %1648 = vmatpush.bf16.msrb.mxu2 %v4115_v0  ;;  %1961 = vmatpush.bf16.msrb.mxu3 %v4075_v1  ;;  %v275_v0 = vshrl.u32 %v190_v31, 16  ;;  %v608_v1 = vor.u32 %v7004_v33, %v605_v32  ;;  %v4666_v27 = vld [vmem:[%s6997_s0 + $0xd8] sm:$0xff]   ;;  %v4189_v32 = vunpack.c.l.b16 %v4648_v12 }
  0x34   :  { %1479 = vmatpush.bf16.msrb.mxu1 %v4107_v2  ;;  %2130 = vmatpush.bf16.msrb.mxu0 %v4083_v11  ;;  %v4634_v2 = vsel %vm4488_vm2, %v203_v34, %v440_v35  ;;  %v4638_v3 = vsel %vm4488_vm2, %v227_v37, %v496_v54  ;;  %v4643_v11 = vld [vmem:[%s6997_s0 + $0x18] sm:$0xff]   ;;  %v4652_v16 = vsel %vm4488_vm2, %v251_v57, %v552_v61  ;;  %v7019_v34 = vshrl.u32 %v4648_v12, 16 }
  0x35   :  { %1320 = vmatmul.bf16.gmra.mxu0 %v4566_v38  ;;  %1360 = vmatmul.bf16.gmra.mxu1 %v4570_v39  ;;  %7203 = vst [vmem:[#allocation11_spill] sm:$0xff] %v4634_v2  ;;  %v4656_v22 = vsel %vm4488_vm2, %v275_v0, %v608_v1  ;;  %v4157_v28 = vunpack.c.l.b16 %v4643_v11  ;;  %v7027_v31 = vshrl.u32 %v4643_v11, 16  ;;  %v4221_v35 = vunpack.c.l.b16 %v4661_v23  ;;  %v4114_v54 = vld [vmem:[#allocation2 + $0x158] sm:$0xff] }
  0x36   :  { %1400 = vmatmul.bf16.gmra.mxu2 %v4584_v42  ;;  %1440 = vmatmul.bf16.gmra.mxu3 %v4588_v49  ;;  %7204 = vst [vmem:[#allocation12_spill] sm:$0xff] %v4652_v16  ;;  %v7014_v37 = vshrl.u32 %v4661_v23, 16  ;;  %v4074_v57 = vld [vmem:[#allocation2 + $0x18] sm:$0xff]  ;;  %v4253_v0 = vunpack.c.l.b16 %v4666_v27  ;;  %v7016_v1 = vshrl.u32 %v4666_v27, 16  ;;  %v7031_v24 = vshll.u32 %v4643_v11, 16 }
  0x37   :  { %7205 = vst [vmem:[#allocation13_spill] sm:$0xff] %v4656_v22  ;;  %v4106_v61 = vld [vmem:[#allocation2 + $0x118] sm:$0xff]  ;;  %1649 = vmatpush.bf16.msrb.mxu2 %v4114_v54  ;;  %1962 = vmatpush.bf16.msrb.mxu3 %v4074_v57  ;;  %v167_v33 = vpack.c.b16 %v4157_v28, %v4157_v28  ;;  %v444_v62 = vrot.slane %v7027_v31, 7  ;;  %v175_v17 = vpack.c.b16 %v4189_v32, %v4189_v32  ;;  %v500_v30 = vrot.slane %v7019_v34, 7  ;;  %v4081_v34 = vld [vmem:[#allocation2 + $0x50] sm:$0xff] }
  0x38   :  { %7206 = vst [vmem:[#allocation14_spill] sm:$0xff] %v4666_v27  ;;  %1480 = vmatpush.bf16.msrb.mxu1 %v4106_v61  ;;  %2131 = vmatpush.bf16.msrb.mxu0 %v4082_v4  ;;  %v183_v29 = vpack.c.b16 %v4221_v35, %v4221_v35  ;;  %v556_v60 = vrot.slane %v7014_v37, 7  ;;  %v7018_v54 = vshll.u32 %v4661_v23, 16  ;;  %v191_v28 = vpack.c.b16 %v4253_v0, %v4253_v0 }
  0x39   :  { %v612_v57 = vrot.slane %v7016_v1, 7  ;;  %v7017_v19 = vshll.u32 %v4666_v27, 16  ;;  %v206_v32 = vshrl.u32 %v167_v33, 16  ;;  %v447_v4 = vor.u32 %v7031_v24, %v444_v62 }
  0x3a   :  { %v230_v61 = vshrl.u32 %v175_v17, 16  ;;  %v503_v15 = vor.u32 %v7020_v63, %v500_v30  ;;  %v254_v35 = vshrl.u32 %v183_v29, 16  ;;  %v559_v37 = vor.u32 %v7018_v54, %v556_v60  ;;  %v4711_v17 = vld [vmem:[%s6997_s0 + $0x20] sm:$0xff]  }
  0x3b   :  { %v278_v26 = vshrl.u32 %v191_v28, 16  ;;  %v615_v0 = vor.u32 %v7017_v19, %v612_v57  ;;  %v4702_v1 = vsel %vm4488_vm2, %v206_v32, %v447_v4  ;;  %v4716_v30 = vld [vmem:[%s6997_s0 + $0x60] sm:$0xff]   ;;  %v7028_v28 = vshrl.u32 %v4711_v17, 16 }
  0x3c   :  { %7207 = vst [vmem:[#allocation15_spill] sm:$0xff] %v4702_v1  ;;  %v4706_v33 = vsel %vm4488_vm2, %v230_v61, %v503_v15  ;;  %v4720_v60 = vsel %vm4488_vm2, %v254_v35, %v559_v37  ;;  %v4729_v15 = vld [vmem:[%s6997_s0 + $0xa0] sm:$0xff]   ;;  %v4161_v37 = vunpack.c.l.b16 %v4711_v17  ;;  %v7029_v57 = vshrl.u32 %v4716_v30, 16  ;;  %v4113_v61 = vld [vmem:[#allocation2 + $0x150] sm:$0xff]  ;;  %2132 = vmatpush.bf16.msrb.mxu0 %v4081_v34 }
  0x3d   :  { %7208 = vst [vmem:[#allocation16_spill] sm:$0xff] %v4720_v60  ;;  %v4724_v62 = vsel %vm4488_vm2, %v278_v26, %v615_v0  ;;  %v4734_v29 = vld [vmem:[%s6997_s0 + $0xe0] sm:$0xff]   ;;  %v4193_v26 = vunpack.c.l.b16 %v4716_v30  ;;  %v4225_v32 = vunpack.c.l.b16 %v4729_v15  ;;  %v7030_v4 = vshrl.u32 %v4729_v15, 16  ;;  %v4073_v35 = vld [vmem:[#allocation2 + $0x10] sm:$0xff]  ;;  %1650 = vmatpush.bf16.msrb.mxu2 %v4113_v61 }
  0x3e   :  { %7209 = vst [vmem:[#allocation17_spill] sm:$0xff] %v4724_v62  ;;  %v4105_v0 = vld [vmem:[#allocation2 + $0x110] sm:$0xff]  ;;  %v4257_v19 = vunpack.c.l.b16 %v4734_v29  ;;  %v7032_v54 = vshrl.u32 %v4734_v29, 16  ;;  %1963 = vmatpush.bf16.msrb.mxu3 %v4073_v35  ;;  %v168_v63 = vpack.c.b16 %v4161_v37, %v4161_v37  ;;  %v451_v59 = vrot.slane %v7028_v28, 7 }
  0x3f   :  { %7210 = vst [vmem:[#allocation18_spill] sm:$0xff] %v4729_v15  ;;  %v7036_v25 = vshll.u32 %v4711_v17, 16  ;;  %v176_v58 = vpack.c.b16 %v4193_v26, %v4193_v26  ;;  %1481 = vmatpush.bf16.msrb.mxu1 %v4105_v0  ;;  %v507_v14 = vrot.slane %v7029_v57, 7  ;;  %v7035_v13 = vshll.u32 %v4716_v30, 16 }
  0x40   :  { %7211 = vst [vmem:[#allocation19_spill] sm:$0xff] %v4734_v29  ;;  %v184_v21 = vpack.c.b16 %v4225_v32, %v4225_v32  ;;  %v563_v31 = vrot.slane %v7030_v4, 7  ;;  %v7034_v61 = vshll.u32 %v4729_v15, 16  ;;  %v192_v37 = vpack.c.b16 %v4257_v19, %v4257_v19 }
  0x41   :  { %v619_v35 = vrot.slane %v7032_v54, 7  ;;  %v7033_v28 = vshll.u32 %v4734_v29, 16  ;;  %v209_v26 = vshrl.u32 %v168_v63, 16  ;;  %v454_v34 = vor.u32 %v7036_v25, %v451_v59 }
  0x42   :  { %v233_v0 = vshrl.u32 %v176_v58, 16  ;;  %v510_v57 = vor.u32 %v7035_v13, %v507_v14  ;;  %v257_v32 = vshrl.u32 %v184_v21, 16  ;;  %v566_v4 = vor.u32 %v7034_v61, %v563_v31  ;;  %v4779_v58 = vld [vmem:[%s6997_s0 + $0x28] sm:$0xff]  }
  0x43   :  { %v281_v24 = vshrl.u32 %v192_v37, 16  ;;  %v622_v19 = vor.u32 %v7033_v28, %v619_v35  ;;  %v4770_v54 = vsel %vm4488_vm2, %v209_v26, %v454_v34  ;;  %v4784_v21 = vld [vmem:[%s6997_s0 + $0x68] sm:$0xff]   ;;  %v7043_v37 = vshrl.u32 %v4779_v58, 16 }
  0x44   :  { %7212 = vst [vmem:[#allocation20_spill] sm:$0xff] %v4770_v54  ;;  %v4774_v63 = vsel %vm4488_vm2, %v233_v0, %v510_v57  ;;  %v4788_v14 = vsel %vm4488_vm2, %v257_v32, %v566_v4  ;;  %v4797_v31 = vld [vmem:[%s6997_s0 + $0xa8] sm:$0xff]   ;;  %v4165_v4 = vunpack.c.l.b16 %v4779_v58  ;;  %v7046_v35 = vshrl.u32 %v4784_v21, 16 }
  0x45   :  { %1325 = vmatmul.bf16.gmra.mxu0 %v4634_v2  ;;  %1365 = vmatmul.bf16.gmra.mxu1 %v4638_v3  ;;  %7213 = vst [vmem:[#allocation21_spill] sm:$0xff] %v4788_v14  ;;  %v4792_v59 = vsel %vm4488_vm2, %v281_v24, %v622_v19  ;;  %v4802_v57 = vld [vmem:[%s6997_s0 + $0xe8] sm:$0xff]   ;;  %v4197_v24 = vunpack.c.l.b16 %v4784_v21  ;;  %v4229_v26 = vunpack.c.l.b16 %v4797_v31  ;;  %v7047_v34 = vshrl.u32 %v4797_v31, 16 }
  0x46   :  { %1405 = vmatmul.bf16.gmra.mxu2 %v4652_v16  ;;  %1445 = vmatmul.bf16.gmra.mxu3 %v4656_v22  ;;  %7214 = vst [vmem:[#allocation22_spill] sm:$0xff] %v4792_v59  ;;  %v4112_v0 = vld [vmem:[#allocation2 + $0x148] sm:$0xff]  ;;  %v4261_v28 = vunpack.c.l.b16 %v4802_v57  ;;  %v169_v25 = vpack.c.b16 %v4165_v4, %v4165_v4  ;;  %v458_v55 = vrot.slane %v7043_v37, 7  ;;  %v514_v9 = vrot.slane %v7046_v35, 7 }
  0x47   :  { %7215 = vst [vmem:[#allocation23_spill] sm:$0xff] %v4797_v31  ;;  %v4072_v32 = vld [vmem:[#allocation2 + $0x8] sm:$0xff]  ;;  %1651 = vmatpush.bf16.msrb.mxu2 %v4112_v0  ;;  %v177_v56 = vpack.c.b16 %v4197_v24, %v4197_v24  ;;  %v7052_v10 = vshll.u32 %v4784_v21, 16  ;;  %v185_v20 = vpack.c.b16 %v4229_v26, %v4229_v26  ;;  %v570_v61 = vrot.slane %v7047_v34, 7 }
  0x48   :  { %7216 = vst [vmem:[#allocation24_spill] sm:$0xff] %v4802_v57  ;;  %v4104_v19 = vld [vmem:[#allocation2 + $0x108] sm:$0xff]  ;;  %1964 = vmatpush.bf16.msrb.mxu3 %v4072_v32  ;;  %v7051_v0 = vshll.u32 %v4797_v31, 16  ;;  %v193_v4 = vpack.c.b16 %v4261_v28, %v4261_v28  ;;  %v7217_v32 = vshrl.u32 %v4802_v57, 16  ;;  %v7050_v18 = vshll.u32 %v4802_v57, 16 }
  0x49   :  { %v4080_v13 = vld [vmem:[#allocation2 + $0x48] sm:$0xff]  ;;  %1482 = vmatpush.bf16.msrb.mxu1 %v4104_v19  ;;  %v212_v24 = vshrl.u32 %v169_v25, 16  ;;  %v517_v35 = vor.u32 %v7052_v10, %v514_v9  ;;  %v260_v26 = vshrl.u32 %v185_v20, 16  ;;  %v4852_v20 = vld [vmem:[%s6997_s0 + $0x70] sm:$0xff]  }
  0x4a   :  { %2133 = vmatpush.bf16.msrb.mxu0 %v4080_v13  ;;  %v626_v37 = vrot.slane %v7217_v32, 7  ;;  %v7218_v13 = vshll.u32 %v4779_v58, 16  ;;  %v573_v34 = vor.u32 %v7051_v0, %v570_v61  ;;  %v4865_v61 = vld [vmem:[%s6997_s0 + $0xb0] sm:$0xff]   ;;  %v4079_v0 = vld [vmem:[#allocation2 + $0x40] sm:$0xff]  ;;  %v7072_v22 = vshll.u32 %v4852_v20, 16 }
  0x4b   :  { %7222 = vst [vmem:[#allocation28_spill] sm:$0xff] %v4865_v61 }
  0x4c   :  { %v461_v19 = vor.u32 %v7218_v13, %v458_v55  ;;  %v629_v28 = vor.u32 %v7050_v18, %v626_v37  ;;  %v4856_v9 = vsel %vm4488_vm2, %v260_v26, %v573_v34  ;;  %v4111_v13 = vld [vmem:[#allocation2 + $0x140] sm:$0xff]  ;;  %v7225_v18 = vshrl.u32 %v4865_v61, 16 }
  0x4d   :  { %7220 = vst [vmem:[#allocation26_spill] sm:$0xff] %v4856_v9  ;;  %v4103_v26 = vld [vmem:[#allocation2 + $0x100] sm:$0xff]  ;;  %1652 = vmatpush.bf16.msrb.mxu2 %v4111_v13  ;;  %v7071_v13 = vshll.u32 %v4865_v61, 16 }
  0x4e   :  { %v4838_v32 = vsel %vm4488_vm2, %v212_v24, %v461_v19  ;;  %v4071_v19 = vld [vmem:[#allocation2] sm:$0xff]  ;;  %1483 = vmatpush.bf16.msrb.mxu1 %v4103_v26  ;;  %2134 = vmatpush.bf16.msrb.mxu0 %v4079_v0  ;;  %v7224_v24 = vshrl.u32 %v4852_v20, 16  ;;  %v577_v49 = vrot.slane %v7225_v18, 7 }
  0x4f   :  { %7219 = vst [vmem:[#allocation25_spill] sm:$0xff] %v4838_v32  ;;  %1965 = vmatpush.bf16.msrb.mxu3 %v4071_v19 }
  0x50   :  { %v521_v29 = vrot.slane %v7224_v24, 7  ;;  %v580_v18 = vor.u32 %v7071_v13, %v577_v49  ;;  %v4920_v49 = vld [vmem:[%s6997_s0 + $0x78] sm:$0xff]  }
  0x52   :  { %v524_v24 = vor.u32 %v7072_v22, %v521_v29  ;;  %v4915_v29 = vld [vmem:[%s6997_s0 + $0x38] sm:$0xff]  }
  0x55   :  { %1330 = vmatmul.bf16.gmra.mxu0 %v4702_v1  ;;  %1370 = vmatmul.bf16.gmra.mxu1 %v4706_v33 }
  0x56   :  { %1410 = vmatmul.bf16.gmra.mxu2 %v4720_v60  ;;  %1450 = vmatmul.bf16.gmra.mxu3 %v4724_v62  ;;  %v284_v62 = vshrl.u32 %v193_v4, 16  ;;  %v4233_v4 = vunpack.c.l.b16 %v4865_v61  ;;  %v7236_v61 = vshll.u32 %v4920_v49, 16 }
  0x58   :  { %v4860_v55 = vsel %vm4488_vm2, %v284_v62, %v629_v28  ;;  %v4201_v62 = vunpack.c.l.b16 %v4852_v20  ;;  %v186_v27 = vpack.c.b16 %v4233_v4, %v4233_v4 }
  0x59   :  { %7221 = vst [vmem:[#allocation27_spill] sm:$0xff] %v4860_v55 }
  0x5a   :  { %v178_v57 = vpack.c.b16 %v4201_v62, %v4201_v62  ;;  %v263_v4 = vshrl.u32 %v186_v27, 16 }
  0x5c   :  { %v239_v53 = vshrl.u32 %v178_v57, 16  ;;  %v4924_v27 = vsel %vm4488_vm2, %v263_v4, %v580_v18  ;;  %v4134_v4 = vld [vmem:[#allocation2 + $0x1f8] sm:$0xff] }
  0x5d   :  { %7229 = vst [vmem:[#allocation31_spill] sm:$0xff] %v4924_v27  ;;  %2827 = vmatpush.bf16.msra.mxu3 %v4134_v4 }
  0x65   :  { %1335 = vmatmul.bf16.gmra.mxu0 %v4770_v54  ;;  %1375 = vmatmul.bf16.gmra.mxu1 %v4774_v63 }
  0x66   :  { %1415 = vmatmul.bf16.gmra.mxu2 %v4788_v14  ;;  %1455 = vmatmul.bf16.gmra.mxu3 %v4792_v59  ;;  %v236_v59 = vshrl.u32 %v177_v56, 16  ;;  %v4847_v56 = vld [vmem:[%s6997_s0 + $0x30] sm:$0xff]  }
  0x67   :  { %v4169_v37 = vunpack.c.l.b16 %v4847_v56  ;;  %v7227_v0 = vshll.u32 %v4847_v56, 16 }
  0x68   :  { %v4842_v25 = vsel %vm4488_vm2, %v236_v59, %v517_v35  ;;  %v4870_v59 = vld [vmem:[%s6997_s0 + $0xf0] sm:$0xff]   ;;  %v7065_v35 = vshrl.u32 %v4847_v56, 16 }
  0x69   :  { %7223 = vst [vmem:[#allocation29_spill] sm:$0xff] %v4870_v59  ;;  %v4265_v28 = vunpack.c.l.b16 %v4870_v59  ;;  %v170_v10 = vpack.c.b16 %v4169_v37, %v4169_v37  ;;  %v7226_v19 = vshrl.u32 %v4870_v59, 16  ;;  %v7070_v34 = vshll.u32 %v4870_v59, 16 }
  0x6b   :  { %v194_v37 = vpack.c.b16 %v4265_v28, %v4265_v28  ;;  %v215_v62 = vshrl.u32 %v170_v10, 16  ;;  %v4910_v10 = vsel %vm4488_vm2, %v239_v53, %v524_v24  ;;  %v4933_v53 = vld [vmem:[%s6997_s0 + $0xb8] sm:$0xff]  }
  0x6c   :  { %7231 = vst [vmem:[#allocation33_spill] sm:$0xff] %v4933_v53  ;;  %v4126_v24 = vld [vmem:[#allocation2 + $0x1b8] sm:$0xff]  ;;  %v7233_v8 = vshrl.u32 %v4933_v53, 16 }
  0x6d   :  { %v287_v48 = vshrl.u32 %v194_v37, 16  ;;  %v7085_v37 = vshrl.u32 %v4915_v29, 16  ;;  %2658 = vmatpush.bf16.msra.mxu2 %v4126_v24  ;;  %v7094_v24 = vshll.u32 %v4933_v53, 16 }
  0x6f   :  { %v472_v13 = vrot.slane %v7085_v37, 7 }
  0x75   :  { %1340 = vmatmul.bf16.gmra.mxu0 %v4838_v32  ;;  %1380 = vmatmul.bf16.gmra.mxu1 %v4842_v25 }
  0x76   :  { %1420 = vmatmul.bf16.gmra.mxu2 %v4856_v9  ;;  %1460 = vmatmul.bf16.gmra.mxu3 %v4860_v55  ;;  %v465_v55 = vrot.slane %v7065_v35, 7  ;;  %v633_v35 = vrot.slane %v7226_v19, 7  ;;  %v4094_v9 = vld [vmem:[#allocation2 + $0xb8] sm:$0xff] }
  0x77   :  { %2296 = vmatpush.bf16.msra.mxu1 %v4094_v9 }
  0x78   :  { %v468_v26 = vor.u32 %v7227_v0, %v465_v55  ;;  %v636_v28 = vor.u32 %v7070_v34, %v633_v35  ;;  %v4938_v55 = vld [vmem:[%s6997_s0 + $0xf8] sm:$0xff]   ;;  %v4173_v35 = vunpack.c.l.b16 %v4915_v29  ;;  %v4237_v0 = vunpack.c.l.b16 %v4933_v53 }
  0x79   :  { %7232 = vst [vmem:[#allocation34_spill] sm:$0xff] %v4938_v55  ;;  %v4269_v18 = vunpack.c.l.b16 %v4938_v55  ;;  %v7234_v4 = vshrl.u32 %v4938_v55, 16  ;;  %v7093_v22 = vshll.u32 %v4938_v55, 16  ;;  %v4166_v53 = vunpack.c.h.b16 %v4779_v58 }
  0x7a   :  { %v4906_v19 = vsel %vm4488_vm2, %v215_v62, %v468_v26  ;;  %v4928_v57 = vsel %vm4488_vm2, %v287_v48, %v636_v28  ;;  %v4205_v48 = vunpack.c.l.b16 %v4920_v49  ;;  %v7086_v62 = vshrl.u32 %v4920_v49, 16  ;;  %v4142_v28 = vld [vmem:[#allocation2 + $0x238] sm:$0xff] }
  0x7b   :  { %7228 = vst [vmem:[#allocation30_spill] sm:$0xff] %v4906_v19  ;;  %v171_v34 = vpack.c.b16 %v4173_v35, %v4173_v35  ;;  %v187_v52 = vpack.c.b16 %v4237_v0, %v4237_v0  ;;  %v195_v35 = vpack.c.b16 %v4269_v18, %v4269_v18  ;;  %v640_v37 = vrot.slane %v7234_v4, 7  ;;  %2996 = vmatpush.bf16.msra.mxu0 %v4142_v28 }
  0x7c   :  { %7230 = vst [vmem:[#allocation32_spill] sm:$0xff] %v4928_v57  ;;  %v528_v59 = vrot.slane %v7086_v62, 7  ;;  %v7235_v62 = vshll.u32 %v4915_v29, 16 }
  0x7d   :  { %v266_v14 = vshrl.u32 %v187_v52, 16  ;;  %v290_v18 = vshrl.u32 %v195_v35, 16  ;;  %v643_v4 = vor.u32 %v7093_v22, %v640_v37 }
  0x7e   :  { %v475_v26 = vor.u32 %v7235_v62, %v472_v13 }
  0x7f   :  { %v4986_v52 = vsel %vm4488_vm2, %v290_v18, %v643_v4 }
  0x80   :  { %7240 = vst [vmem:[#allocation38_spill] sm:$0xff] %v4986_v52 }
  0x85   :  { %1345 = vmatmul.bf16.gmra.mxu0 %v4906_v19  ;;  %1385 = vmatmul.bf16.gmra.mxu1 %v4910_v10 }
  0x86   :  { %1425 = vmatmul.bf16.gmra.mxu2 %v4924_v27  ;;  %1465 = vmatmul.bf16.gmra.mxu3 %v4928_v57  ;;  %v179_v57 = vpack.c.b16 %v4205_v48, %v4205_v48  ;;  %v584_v27 = vrot.slane %v7233_v8, 7  ;;  %v218_v48 = vshrl.u32 %v171_v34, 16  ;;  %v531_v8 = vor.u32 %v7236_v61, %v528_v59 }
  0x87   :  { %v4146_v61 = vunpack.c.h.b16 %v4447_v5 }
  0x88   :  { %v242_v0 = vshrl.u32 %v179_v57, 16  ;;  %v587_v31 = vor.u32 %v7094_v24, %v584_v27  ;;  %v4974_v9 = vsel %vm4488_vm2, %v218_v48, %v475_v26  ;;  %v7241_v27 = vshll.u32 %v4447_v5, 16 }
  0x89   :  { %7237 = vst [vmem:[#allocation35_spill] sm:$0xff] %v4974_v9  ;;  %v808_v59 = vpack.c.b16 %v4146_v61, %v4146_v61  ;;  %v4150_v48 = vunpack.c.h.b16 %v4507_v45 }
  0x8a   :  { %v4978_v34 = vsel %vm4488_vm2, %v242_v0, %v531_v8  ;;  %v4982_v13 = vsel %vm4488_vm2, %v266_v14, %v587_v31  ;;  %v713_v57 = vrot.slane %v7241_v27, 1 }
  0x8b   :  { %7238 = vst [vmem:[#allocation36_spill] sm:$0xff] %v4978_v34  ;;  %v844_v14 = vshll.u32 %v808_v59, 16  ;;  %v807_v0 = vpack.c.b16 %v4150_v48, %v4150_v48  ;;  %v7248_v59 = vshll.u32 %v4507_v45, 16 }
  0x8c   :  { %7239 = vst [vmem:[#allocation37_spill] sm:$0xff] %v4982_v13  ;;  %v714_v31 = vor.u32 %v713_v57, %v7242_v36 }
  0x8d   :  { %v846_v37 = vrot.slane %v844_v14, 4  ;;  %v711_v27 = vrot.slane %v7248_v59, 1  ;;  %v840_v57 = vshll.u32 %v807_v0, 16  ;;  %v7249_v14 = vshrl.u32 %v4507_v45, 16 }
  0x8f   :  { %v5007_v35 = vsel %vm4997_vm5, %v714_v31, %v846_v37  ;;  %v712_v36 = vor.u32 %v711_v27, %v7249_v14  ;;  %v842_v31 = vrot.slane %v840_v57, 4 }
  0x90   :  { %7245 = vst [vmem:[#allocation39_spill] sm:$0xff] %v5007_v35 }
  0x95   :  { %1350 = vmatmul.bf16.gmra.mxu0 %v4974_v9  ;;  %1390 = vmatmul.bf16.gmra.mxu1 %v4978_v34  ;;  %v4154_v34 = vunpack.c.h.b16 %v4575_v40 }
  0x96   :  { %1430 = vmatmul.bf16.gmra.mxu2 %v4982_v13  ;;  %1470 = vmatmul.bf16.gmra.mxu3 %v4986_v52  ;;  %v5036_v52 = vsel %vm4997_vm5, %v712_v36, %v842_v31  ;;  %v7255_v36 = vshll.u32 %v4575_v40, 16 }
  0x97   :  { %7252 = vst [vmem:[#allocation44_spill] sm:$0xff] %v5036_v52  ;;  %v809_v0 = vpack.c.b16 %v4154_v34, %v4154_v34 }
  0x98   :  { %v715_v31 = vrot.slane %v7255_v36, 1 }
  0xa2   :  { %v5001_v26 = vpop.f32.mrf.mxu0  ;;  %v5003_v28 = vpop.f32.mrf.mxu1 }
  0xa5   :  { %1484 = vmatmul.bf16.vlgmr.msrb.gmra.mxu1 %v4447_v5  ;;  %2135 = vmatmul.bf16.vlgmr.msrb.gmra.mxu0 %v4507_v45 }
  0xa6   :  { %1653 = vmatmul.bf16.vlgmr.msrb.gmra.mxu2 %v5007_v35  ;;  %1966 = vmatmul.bf16.vlgmr.msrb.gmra.mxu3 %v4566_v38  ;;  %v848_v35 = vshll.u32 %v809_v0, 16 }
  0xa9   :  { %v5014_v8 = vpop.f32.mrf.mxu2  ;;  %v5016_v18 = vpop.f32.mrf.mxu3 }
  0xaa   :  { %7246 = vst [vmem:[#allocation40_spill] sm:$0xff] %v5014_v8  ;;  %v5018_v4 = vpop.f32.mrf.mxu0  ;;  %v5020_v61 = vpop.f32.mrf.mxu1 }
  0xab   :  { %7247 = vst [vmem:[#allocation41_spill] sm:$0xff] %v5016_v18  ;;  %v850_v18 = vrot.slane %v848_v35, 4  ;;  %v4133_v35 = vld [vmem:[#allocation2 + $0x1f0] sm:$0xff] }
  0xac   :  { %2828 = vmatpush.bf16.msra.mxu3 %v4133_v35 }
  0xb1   :  { %v5026_v37 = vpop.f32.mrf.mxu2  ;;  %v5028_v22 = vpop.f32.mrf.mxu3 }
  0xb2   :  { %7250 = vst [vmem:[#allocation42_spill] sm:$0xff] %v5026_v37  ;;  %v5030_v48 = vpop.f32.mrf.mxu0  ;;  %v5032_v24 = vpop.f32.mrf.mxu1 }
  0xb3   :  { %7251 = vst [vmem:[#allocation43_spill] sm:$0xff] %v5028_v22  ;;  %v7256_v22 = vshrl.u32 %v4575_v40, 16 }
  0xb5   :  { %1489 = vmatmul.bf16.gmra.mxu1 %v4507_v45  ;;  %2140 = vmatmul.bf16.gmra.mxu0 %v4447_v5  ;;  %v716_v5 = vor.u32 %v715_v31, %v7256_v22  ;;  %v4125_v22 = vld [vmem:[#allocation2 + $0x1b0] sm:$0xff] }
  0xb6   :  { %1658 = vmatmul.bf16.gmra.mxu2 %v5036_v52  ;;  %1971 = vmatmul.bf16.gmra.mxu3 %v4498_v43 }
  0xb7   :  { %2659 = vmatpush.bf16.msra.mxu2 %v4125_v22 }
  0xb9   :  { %v5043_v59 = vpop.f32.mrf.mxu2  ;;  %v5045_v27 = vpop.f32.mrf.mxu3 }
  0xba   :  { %7253 = vst [vmem:[#allocation45_spill] sm:$0xff] %v5043_v59  ;;  %v5047_v57 = vpop.f32.mrf.mxu0  ;;  %v5049_v14 = vpop.f32.mrf.mxu1  ;;  %v4158_v59 = vunpack.c.h.b16 %v4643_v11 }
  0xbb   :  { %7254 = vst [vmem:[#allocation46_spill] sm:$0xff] %v5045_v27  ;;  %v5065_v27 = vsel %vm4997_vm5, %v716_v5, %v850_v18 }
  0xbc   :  { %7259 = vst [vmem:[#allocation49_spill] sm:$0xff] %v5065_v27  ;;  %v810_v0 = vpack.c.b16 %v4158_v59, %v4158_v59  ;;  %v7264_v59 = vshrl.u32 %v4643_v11, 16 }
  0xbe   :  { %v852_v37 = vshll.u32 %v810_v0, 16  ;;  %v4162_v0 = vunpack.c.h.b16 %v4711_v17 }
  0xc0   :  { %v854_v35 = vrot.slane %v852_v37, 4 }
  0xc1   :  { %v5055_v52 = vpop.f32.mrf.mxu2  ;;  %v5057_v43 = vpop.f32.mrf.mxu3 }
  0xc2   :  { %7257 = vst [vmem:[#allocation47_spill] sm:$0xff] %v5055_v52  ;;  %v5059_v34 = vpop.f32.mrf.mxu0  ;;  %v5061_v55 = vpop.f32.mrf.mxu1  ;;  %v4141_v52 = vld [vmem:[#allocation2 + $0x230] sm:$0xff] }
  0xc3   :  { %7258 = vst [vmem:[#allocation48_spill] sm:$0xff] %v5057_v43  ;;  %v4093_v43 = vld [vmem:[#allocation2 + $0xb0] sm:$0xff]  ;;  %2997 = vmatpush.bf16.msra.mxu0 %v4141_v52  ;;  %v811_v52 = vpack.c.b16 %v4162_v0, %v4162_v0 }
  0xc4   :  { %2297 = vmatpush.bf16.msra.mxu1 %v4093_v43 }
  0xc5   :  { %1494 = vmatmul.bf16.gmra.mxu1 %v4575_v40  ;;  %2145 = vmatmul.bf16.gmra.mxu0 %v4507_v45  ;;  %v7263_v45 = vshll.u32 %v4643_v11, 16 }
  0xc6   :  { %1663 = vmatmul.bf16.gmra.mxu2 %v5065_v27  ;;  %1976 = vmatmul.bf16.gmra.mxu3 %v4566_v38 }
  0xc7   :  { %v717_v27 = vrot.slane %v7263_v45, 1 }
  0xc9   :  { %v5072_v36 = vpop.f32.mrf.mxu2  ;;  %v5074_v31 = vpop.f32.mrf.mxu3  ;;  %v718_v22 = vor.u32 %v717_v27, %v7264_v59  ;;  %v7272_v59 = vshll.u32 %v4711_v17, 16 }
  0xca   :  { %7260 = vst [vmem:[#allocation50_spill] sm:$0xff] %v5072_v36  ;;  %v5076_v18 = vpop.f32.mrf.mxu0  ;;  %v5078_v5 = vpop.f32.mrf.mxu1 }
  0xcb   :  { %7261 = vst [vmem:[#allocation51_spill] sm:$0xff] %v5074_v31  ;;  %v5094_v13 = vsel %vm4997_vm5, %v718_v22, %v854_v35  ;;  %v719_v22 = vrot.slane %v7272_v59, 1  ;;  %v856_v35 = vshll.u32 %v811_v52, 16 }
  0xcc   :  { %7262 = vst [vmem:[#allocation52_spill] sm:$0xff] %v5078_v5 }
  0xcd   :  { %7268 = vst [vmem:[#allocation56_spill] sm:$0xff] %v5094_v13 }
  0xd1   :  { %v5084_v38 = vpop.f32.mrf.mxu2  ;;  %v5086_v36 = vpop.f32.mrf.mxu3 }
  0xd2   :  { %7265 = vst [vmem:[#allocation53_spill] sm:$0xff] %v5084_v38  ;;  %v5088_v31 = vpop.f32.mrf.mxu0  ;;  %v5090_v8 = vpop.f32.mrf.mxu1  ;;  %v858_v38 = vrot.slane %v856_v35, 4 }
  0xd3   :  { %7266 = vst [vmem:[#allocation54_spill] sm:$0xff] %v5086_v36  ;;  %v7273_v36 = vshrl.u32 %v4711_v17, 16 }
  0xd4   :  { %7267 = vst [vmem:[#allocation55_spill] sm:$0xff] %v5090_v8 }
  0xd5   :  { %1499 = vmatmul.bf16.gmra.mxu1 %v4643_v11  ;;  %2150 = vmatmul.bf16.gmra.mxu0 %v4575_v40  ;;  %v720_v40 = vor.u32 %v719_v22, %v7273_v36  ;;  %v812_v36 = vpack.c.b16 %v4166_v53, %v4166_v53 }
  0xd6   :  { %1668 = vmatmul.bf16.gmra.mxu2 %v5094_v13  ;;  %1981 = vmatmul.bf16.gmra.mxu3 %v4634_v2 }
  0xd9   :  { %v5101_v37 = vpop.f32.mrf.mxu2  ;;  %v5103_v27 = vpop.f32.mrf.mxu3 }
  0xda   :  { %7269 = vst [vmem:[#allocation57_spill] sm:$0xff] %v5101_v37  ;;  %v5105_v43 = vpop.f32.mrf.mxu0  ;;  %v5107_v45 = vpop.f32.mrf.mxu1 }
  0xdb   :  { %7270 = vst [vmem:[#allocation58_spill] sm:$0xff] %v5103_v27  ;;  %v5123_v27 = vsel %vm4997_vm5, %v720_v40, %v858_v38  ;;  %v7281_v38 = vshll.u32 %v4779_v58, 16 }
  0xdc   :  { %7271 = vst [vmem:[#allocation59_spill] sm:$0xff] %v5107_v45 }
  0xdd   :  { %7277 = vst [vmem:[#allocation63_spill] sm:$0xff] %v5123_v27  ;;  %v721_v40 = vrot.slane %v7281_v38, 1 }
  0xe1   :  { %v5113_v13 = vpop.f32.mrf.mxu2  ;;  %v5115_v2 = vpop.f32.mrf.mxu3 }
  0xe2   :  { %7274 = vst [vmem:[#allocation60_spill] sm:$0xff] %v5113_v13  ;;  %v5117_v0 = vpop.f32.mrf.mxu0  ;;  %v5119_v37 = vpop.f32.mrf.mxu1  ;;  %v7282_v13 = vshrl.u32 %v4779_v58, 16 }
  0xe3   :  { %7275 = vst [vmem:[#allocation61_spill] sm:$0xff] %v5115_v2  ;;  %v860_v2 = vshll.u32 %v812_v36, 16 }
  0xe4   :  { %7276 = vst [vmem:[#allocation62_spill] sm:$0xff] %v5119_v37 }
  0xe5   :  { %1504 = vmatmul.bf16.gmra.mxu1 %v4711_v17  ;;  %2155 = vmatmul.bf16.gmra.mxu0 %v4643_v11  ;;  %v722_v11 = vor.u32 %v721_v40, %v7282_v13  ;;  %v862_v37 = vrot.slane %v860_v2, 4 }
  0xe6   :  { %1673 = vmatmul.bf16.gmra.mxu2 %v5123_v27  ;;  %1986 = vmatmul.bf16.gmra.mxu3 %v4702_v1 }
  0xe9   :  { %v5130_v52 = vpop.f32.mrf.mxu2  ;;  %v5132_v59 = vpop.f32.mrf.mxu3 }
  0xea   :  { %7278 = vst [vmem:[#allocation64_spill] sm:$0xff] %v5130_v52  ;;  %v5134_v22 = vpop.f32.mrf.mxu0  ;;  %v5136_v35 = vpop.f32.mrf.mxu1 }
  0xeb   :  { %7279 = vst [vmem:[#allocation65_spill] sm:$0xff] %v5132_v59  ;;  %v5152_v59 = vsel %vm4997_vm5, %v722_v11, %v862_v37  ;;  %v7290_v37 = vshll.u32 %v4847_v56, 16 }
  0xec   :  { %7280 = vst [vmem:[#allocation66_spill] sm:$0xff] %v5136_v35  ;;  %v4170_v35 = vunpack.c.h.b16 %v4847_v56 }
  0xed   :  { %7286 = vst [vmem:[#allocation70_spill] sm:$0xff] %v5152_v59  ;;  %v723_v11 = vrot.slane %v7290_v37, 1 }
  0xee   :  { %v813_v2 = vpack.c.b16 %v4170_v35, %v4170_v35 }
  0xf1   :  { %v5142_v27 = vpop.f32.mrf.mxu2  ;;  %v5144_v1 = vpop.f32.mrf.mxu3 }
  0xf2   :  { %7283 = vst [vmem:[#allocation67_spill] sm:$0xff] %v5142_v27  ;;  %v5146_v53 = vpop.f32.mrf.mxu0  ;;  %v5148_v52 = vpop.f32.mrf.mxu1  ;;  %v7291_v27 = vshrl.u32 %v4847_v56, 16 }
  0xf3   :  { %7284 = vst [vmem:[#allocation68_spill] sm:$0xff] %v5144_v1  ;;  %v864_v1 = vshll.u32 %v813_v2, 16 }
  0xf4   :  { %7285 = vst [vmem:[#allocation69_spill] sm:$0xff] %v5148_v52 }
  0xf5   :  { %1509 = vmatmul.bf16.gmra.mxu1 %v4779_v58  ;;  %2160 = vmatmul.bf16.gmra.mxu0 %v4711_v17  ;;  %v724_v17 = vor.u32 %v723_v11, %v7291_v27  ;;  %v866_v52 = vrot.slane %v864_v1, 4  ;;  %v4124_v1 = vld [vmem:[#allocation2 + $0x1a8] sm:$0xff] }
  0xf6   :  { %1678 = vmatmul.bf16.gmra.mxu2 %v5152_v59  ;;  %1991 = vmatmul.bf16.gmra.mxu3 %v4770_v54  ;;  %v4132_v27 = vld [vmem:[#allocation2 + $0x1e8] sm:$0xff] }
  0xf7   :  { %2660 = vmatpush.bf16.msra.mxu2 %v4124_v1  ;;  %2829 = vmatpush.bf16.msra.mxu3 %v4132_v27 }
  0xf9   :  { %v5159_v13 = vpop.f32.mrf.mxu2  ;;  %v5161_v36 = vpop.f32.mrf.mxu3 }
  0xfa   :  { %7287 = vst [vmem:[#allocation71_spill] sm:$0xff] %v5159_v13  ;;  %v5163_v38 = vpop.f32.mrf.mxu0  ;;  %v5165_v40 = vpop.f32.mrf.mxu1 }
  0xfb   :  { %7288 = vst [vmem:[#allocation72_spill] sm:$0xff] %v5161_v36  ;;  %v5181_v36 = vsel %vm4997_vm5, %v724_v17, %v866_v52 }
  0xfc   :  { %7289 = vst [vmem:[#allocation73_spill] sm:$0xff] %v5165_v40  ;;  %v4174_v40 = vunpack.c.h.b16 %v4915_v29 }
  0xfd   :  { %7295 = vst [vmem:[#allocation77_spill] sm:$0xff] %v5181_v36 }
  0xfe   :  { %v814_v2 = vpack.c.b16 %v4174_v40, %v4174_v40  ;;  %v7300_v40 = vshrl.u32 %v4915_v29, 16 }
 0x101   :  { %v5171_v59 = vpop.f32.mrf.mxu2  ;;  %v5173_v54 = vpop.f32.mrf.mxu3 }
 0x102   :  { %7292 = vst [vmem:[#allocation74_spill] sm:$0xff] %v5171_v59  ;;  %v5175_v35 = vpop.f32.mrf.mxu0  ;;  %v5177_v13 = vpop.f32.mrf.mxu1  ;;  %v868_v59 = vshll.u32 %v814_v2, 16 }
 0x103   :  { %7293 = vst [vmem:[#allocation75_spill] sm:$0xff] %v5173_v54  ;;  %v7299_v54 = vshll.u32 %v4915_v29, 16 }
 0x104   :  { %7294 = vst [vmem:[#allocation76_spill] sm:$0xff] %v5177_v13  ;;  %v4140_v13 = vld [vmem:[#allocation2 + $0x228] sm:$0xff]  ;;  %v870_v27 = vrot.slane %v868_v59, 4 }
 0x105   :  { %1514 = vmatmul.bf16.gmra.mxu1 %v4847_v56  ;;  %2165 = vmatmul.bf16.gmra.mxu0 %v4779_v58  ;;  %v725_v58 = vrot.slane %v7299_v54, 1 }
 0x106   :  { %1683 = vmatmul.bf16.gmra.mxu2 %v5181_v36  ;;  %1996 = vmatmul.bf16.gmra.mxu3 %v4838_v32  ;;  %v4092_v36 = vld [vmem:[#allocation2 + $0xa8] sm:$0xff] }
 0x107   :  { %2298 = vmatpush.bf16.msra.mxu1 %v4092_v36  ;;  %2998 = vmatpush.bf16.msra.mxu0 %v4140_v13  ;;  %v726_v1 = vor.u32 %v725_v58, %v7300_v40  ;;  %v4331_v13 = vld [vmem:[%s6997_s0 + $0x40] sm:$0xff]  }
 0x108   :  { %v4178_v36 = vunpack.c.h.b16 %v4331_v13 }
 0x109   :  { %v5188_v37 = vpop.f32.mrf.mxu2  ;;  %v5190_v11 = vpop.f32.mrf.mxu3  ;;  %v5210_v54 = vsel %vm4997_vm5, %v726_v1, %v870_v27  ;;  %v7308_v27 = vshll.u32 %v4452_v6, 16 }
 0x10a   :  { %7296 = vst [vmem:[#allocation78_spill] sm:$0xff] %v5188_v37  ;;  %v5192_v52 = vpop.f32.mrf.mxu0  ;;  %v5194_v17 = vpop.f32.mrf.mxu1  ;;  %v815_v59 = vpack.c.b16 %v4178_v36, %v4178_v36 }
 0x10b   :  { %7297 = vst [vmem:[#allocation79_spill] sm:$0xff] %v5190_v11 }
 0x10c   :  { %7298 = vst [vmem:[#allocation80_spill] sm:$0xff] %v5194_v17 }
 0x10d   :  { %7304 = vst [vmem:[#allocation84_spill] sm:$0xff] %v5210_v54 }
 0x111   :  { %v5200_v32 = vpop.f32.mrf.mxu2  ;;  %v5202_v37 = vpop.f32.mrf.mxu3 }
 0x112   :  { %7301 = vst [vmem:[#allocation81_spill] sm:$0xff] %v5200_v32  ;;  %v5204_v11 = vpop.f32.mrf.mxu0  ;;  %v5206_v60 = vpop.f32.mrf.mxu1  ;;  %v872_v32 = vshll.u32 %v815_v59, 16 }
 0x113   :  { %7302 = vst [vmem:[#allocation82_spill] sm:$0xff] %v5202_v37  ;;  %v727_v37 = vrot.slane %v7308_v27, 1 }
 0x114   :  { %7303 = vst [vmem:[#allocation83_spill] sm:$0xff] %v5206_v60  ;;  %v7309_v60 = vshrl.u32 %v4452_v6, 16  ;;  %v874_v17 = vrot.slane %v872_v32, 4 }
 0x115   :  { %1519 = vmatmul.bf16.gmra.mxu1 %v4915_v29  ;;  %2170 = vmatmul.bf16.gmra.mxu0 %v4847_v56 }
 0x116   :  { %1688 = vmatmul.bf16.gmra.mxu2 %v5210_v54  ;;  %2001 = vmatmul.bf16.gmra.mxu3 %v4906_v19  ;;  %v728_v56 = vor.u32 %v727_v37, %v7309_v60 }
 0x119   :  { %v5219_v2 = vpop.f32.mrf.mxu2  ;;  %v5221_v58 = vpop.f32.mrf.mxu3 }
 0x11a   :  { %7305 = vst [vmem:[#allocation85_spill] sm:$0xff] %v5219_v2  ;;  %v5223_v40 = vpop.f32.mrf.mxu0  ;;  %v5225_v1 = vpop.f32.mrf.mxu1 }
 0x11b   :  { %7306 = vst [vmem:[#allocation86_spill] sm:$0xff] %v5221_v58  ;;  %v5237_v58 = vsel %vm4997_vm5, %v728_v56, %v874_v17 }
 0x11c   :  { %7307 = vst [vmem:[#allocation87_spill] sm:$0xff] %v5225_v1  ;;  %v4332_v1 = vld [vmem:[%s6997_s0 + $0x48] sm:$0xff]  }
 0x11d   :  { %7312 = vst [vmem:[#allocation90_spill] sm:$0xff] %v5237_v58  ;;  %v4182_v27 = vunpack.c.h.b16 %v4332_v1 }
 0x11f   :  { %v816_v6 = vpack.c.b16 %v4182_v27, %v4182_v27 }
 0x121   :  { %v5231_v54 = vpop.f32.mrf.mxu2  ;;  %v5233_v19 = vpop.f32.mrf.mxu3  ;;  %v876_v45 = vshll.u32 %v816_v6, 16 }
 0x122   :  { %7310 = vst [vmem:[#allocation88_spill] sm:$0xff] %v5231_v54  ;;  %v1485_v36 = vpop.f32.mrf.mxu1  ;;  %v2136_v2 = vpop.f32.mrf.mxu0 }
 0x123   :  { %7311 = vst [vmem:[#allocation89_spill] sm:$0xff] %v5233_v19  ;;  %v1486_v60 = vadd.f32 %v1485_v36, %v5001_v26  ;;  %v7313_v19 = vshll.u32 %v4512_v46, 16  ;;  %v878_v16 = vrot.slane %v876_v45, 4 }
 0x125   :  { %1524 = vmatmul.bf16.gmra.mxu1 %v4331_v13  ;;  %2175 = vmatmul.bf16.gmra.mxu0 %v4915_v29  ;;  %v729_v54 = vrot.slane %v7313_v19, 1  ;;  %v7314_v29 = vshrl.u32 %v4512_v46, 16  ;;  %v4186_v19 = vunpack.c.h.b16 %v4580_v41 }
 0x126   :  { %1693 = vmatmul.bf16.gmra.mxu2 %v5237_v58  ;;  %2006 = vmatmul.bf16.gmra.mxu3 %v4974_v9 }
 0x127   :  { %v730_v58 = vor.u32 %v729_v54, %v7314_v29  ;;  %v7316_v29 = vshrl.u32 %v4580_v41, 16 }
 0x129   :  { %v1654_v32 = vpop.f32.mrf.mxu2  ;;  %v1967_v37 = vpop.f32.mrf.mxu3 }
 0x12a   :  { %v1655_v59 = vadd.f32 %v1654_v32, %v1486_v60  ;;  %v1487_v17 = vpop.f32.mrf.mxu1  ;;  %v2138_v56 = vpop.f32.mrf.mxu0  ;;  %v5255_v32 = vsel %vm4997_vm5, %v730_v58, %v878_v16  ;;  %v7315_v58 = vshll.u32 %v4580_v41, 16  ;;  %v4333_v41 = vld [vmem:[%s6997_s0 + $0x50] sm:$0xff]  }
 0x12b   :  { %v1488_v27 = vadd.f32 %v1487_v17, %v5018_v4 }
 0x12c   :  { %v1968_v15 = vadd.f32 %v1967_v37, %v1655_v59  ;;  %v731_v37 = vrot.slane %v7315_v58, 1 }
 0x12e   :  { %v5248_v8 = vadd.f32 %v2136_v2, %v1968_v15  ;;  %v817_v15 = vpack.c.b16 %v4186_v19, %v4186_v19 }
 0x130   :  { %v880_v59 = vshll.u32 %v817_v15, 16  ;;  %v4190_v15 = vunpack.c.h.b16 %v4648_v12 }
 0x131   :  { %v1656_v9 = vpop.f32.mrf.mxu2  ;;  %v1969_v26 = vpop.f32.mrf.mxu3 }
 0x132   :  { %v1657_v36 = vadd.f32 %v1656_v9, %v1488_v27  ;;  %v1490_v5 = vpop.f32.mrf.mxu1  ;;  %v2141_v60 = vpop.f32.mrf.mxu0  ;;  %v732_v27 = vor.u32 %v731_v37, %v7316_v29 }
 0x133   :  { %v1491_v9 = vadd.f32 %v1490_v5, %v5030_v48 }
 0x134   :  { %v1970_v6 = vadd.f32 %v1969_v26, %v1657_v36 }
 0x135   :  { %1529 = vmatmul.bf16.gmra.mxu1 %v4332_v1  ;;  %2180 = vmatmul.bf16.gmra.mxu0 %v4331_v13 }
 0x136   :  { %1698 = vmatmul.bf16.gmra.mxu2 %v5255_v32  ;;  %2011 = vmatmul.bf16.gmra.mxu3 %v4502_v44  ;;  %v5260_v46 = vadd.f32 %v2138_v56, %v1970_v6  ;;  %v882_v56 = vrot.slane %v880_v59, 4 }
 0x139   :  { %v1659_v4 = vpop.f32.mrf.mxu2  ;;  %v1972_v45 = vpop.f32.mrf.mxu3 }
 0x13a   :  { %v1660_v54 = vadd.f32 %v1659_v4, %v1491_v9  ;;  %v1492_v2 = vpop.f32.mrf.mxu1  ;;  %v2143_v16 = vpop.f32.mrf.mxu0  ;;  %v5272_v9 = vsel %vm4997_vm5, %v732_v27, %v882_v56 }
 0x13b   :  { %v1493_v26 = vadd.f32 %v1492_v2, %v5047_v57  ;;  %v4123_v57 = vld [vmem:[#allocation2 + $0x1a0] sm:$0xff] }
 0x13c   :  { %v1973_v17 = vadd.f32 %v1972_v45, %v1660_v54  ;;  %v818_v54 = vpack.c.b16 %v4190_v15, %v4190_v15  ;;  %2661 = vmatpush.bf16.msra.mxu2 %v4123_v57 }
 0x13e   :  { %v5265_v13 = vadd.f32 %v2141_v60, %v1973_v17  ;;  %v4131_v60 = vld [vmem:[#allocation2 + $0x1e0] sm:$0xff]  ;;  %v884_v56 = vshll.u32 %v818_v54, 16 }
 0x13f   :  { %2830 = vmatpush.bf16.msra.mxu3 %v4131_v60 }
 0x141   :  { %v1661_v36 = vpop.f32.mrf.mxu2  ;;  %v1974_v48 = vpop.f32.mrf.mxu3 }
 0x142   :  { %v1662_v5 = vadd.f32 %v1661_v36, %v1493_v26  ;;  %v1495_v19 = vpop.f32.mrf.mxu1  ;;  %v2146_v6 = vpop.f32.mrf.mxu0  ;;  %v4091_v36 = vld [vmem:[#allocation2 + $0xa0] sm:$0xff] }
 0x143   :  { %v1496_v2 = vadd.f32 %v1495_v19, %v5059_v34  ;;  %2299 = vmatpush.bf16.msra.mxu1 %v4091_v36  ;;  %v7318_v34 = vshrl.u32 %v4648_v12, 16  ;;  %v886_v19 = vrot.slane %v884_v56, 4 }
 0x144   :  { %v1975_v4 = vadd.f32 %v1974_v48, %v1662_v5  ;;  %v4139_v48 = vld [vmem:[#allocation2 + $0x220] sm:$0xff] }
 0x145   :  { %1534 = vmatmul.bf16.gmra.mxu1 %v4333_v41  ;;  %2185 = vmatmul.bf16.gmra.mxu0 %v4332_v1  ;;  %v7317_v1 = vshll.u32 %v4648_v12, 16  ;;  %v4334_v12 = vld [vmem:[%s6997_s0 + $0x58] sm:$0xff]  }
 0x146   :  { %1703 = vmatmul.bf16.gmra.mxu2 %v5272_v9  ;;  %2016 = vmatmul.bf16.gmra.mxu3 %v4570_v39  ;;  %v5280_v45 = vadd.f32 %v2143_v16, %v1975_v4 }
 0x147   :  { %v733_v27 = vrot.slane %v7317_v1, 1  ;;  %2999 = vmatpush.bf16.msra.mxu0 %v4139_v48  ;;  %v7319_v48 = vshll.u32 %v4716_v30, 16 }
 0x149   :  { %v1664_v58 = vpop.f32.mrf.mxu2  ;;  %v1977_v37 = vpop.f32.mrf.mxu3  ;;  %v734_v5 = vor.u32 %v733_v27, %v7318_v34  ;;  %v735_v34 = vrot.slane %v7319_v48, 1 }
 0x14a   :  { %v1665_v59 = vadd.f32 %v1664_v58, %v1496_v2  ;;  %v1497_v17 = vpop.f32.mrf.mxu1  ;;  %v2148_v29 = vpop.f32.mrf.mxu0 }
 0x14b   :  { %v1498_v15 = vadd.f32 %v1497_v17, %v5076_v18  ;;  %v5292_v54 = vsel %vm4997_vm5, %v734_v5, %v886_v19 }
 0x14c   :  { %v1978_v26 = vadd.f32 %v1977_v37, %v1665_v59  ;;  %v4194_v37 = vunpack.c.h.b16 %v4716_v30 }
 0x14e   :  { %v5285_v16 = vadd.f32 %v2146_v6, %v1978_v26  ;;  %v819_v6 = vpack.c.b16 %v4194_v37, %v4194_v37 }
 0x150   :  { %v888_v5 = vshll.u32 %v819_v6, 16  ;;  %v4198_v6 = vunpack.c.h.b16 %v4784_v21 }
 0x151   :  { %v1666_v4 = vpop.f32.mrf.mxu2  ;;  %v1979_v57 = vpop.f32.mrf.mxu3 }
 0x152   :  { %v1667_v60 = vadd.f32 %v1666_v4, %v1498_v15  ;;  %v1500_v2 = vpop.f32.mrf.mxu1  ;;  %v2151_v58 = vpop.f32.mrf.mxu0  ;;  %v7320_v15 = vshrl.u32 %v4716_v30, 16 }
 0x153   :  { %v1501_v17 = vadd.f32 %v1500_v2, %v5088_v31 }
 0x154   :  { %v1980_v59 = vadd.f32 %v1979_v57, %v1667_v60  ;;  %v736_v4 = vor.u32 %v735_v34, %v7320_v15 }
 0x155   :  { %1539 = vmatmul.bf16.gmra.mxu1 %v4334_v12  ;;  %2190 = vmatmul.bf16.gmra.mxu0 %v4333_v41 }
 0x156   :  { %1708 = vmatmul.bf16.gmra.mxu2 %v5292_v54  ;;  %2021 = vmatmul.bf16.gmra.mxu3 %v4638_v3  ;;  %v5300_v18 = vadd.f32 %v2148_v29, %v1980_v59  ;;  %v890_v29 = vrot.slane %v888_v5, 4 }
 0x159   :  { %v1669_v1 = vpop.f32.mrf.mxu2  ;;  %v1982_v27 = vpop.f32.mrf.mxu3 }
 0x15a   :  { %v1670_v56 = vadd.f32 %v1669_v1, %v1501_v17  ;;  %v1502_v26 = vpop.f32.mrf.mxu1  ;;  %v2153_v36 = vpop.f32.mrf.mxu0  ;;  %v5312_v17 = vsel %vm4997_vm5, %v736_v4, %v890_v29  ;;  %v7322_v29 = vshrl.u32 %v4784_v21, 16 }
 0x15b   :  { %v1503_v57 = vadd.f32 %v1502_v26, %v5105_v43 }
 0x15c   :  { %v1983_v19 = vadd.f32 %v1982_v27, %v1670_v56 }
 0x15e   :  { %v5305_v41 = vadd.f32 %v2151_v58, %v1983_v19  ;;  %v820_v58 = vpack.c.b16 %v4198_v6, %v4198_v6  ;;  %v7321_v19 = vshll.u32 %v4784_v21, 16 }
 0x160   :  { %v737_v15 = vrot.slane %v7321_v19, 1  ;;  %v892_v4 = vshll.u32 %v820_v58, 16  ;;  %v4202_v58 = vunpack.c.h.b16 %v4852_v20 }
 0x161   :  { %v1671_v60 = vpop.f32.mrf.mxu2  ;;  %v1984_v31 = vpop.f32.mrf.mxu3 }
 0x162   :  { %v1672_v2 = vadd.f32 %v1671_v60, %v1503_v57  ;;  %v1505_v37 = vpop.f32.mrf.mxu1  ;;  %v2156_v59 = vpop.f32.mrf.mxu0  ;;  %v738_v57 = vor.u32 %v737_v15, %v7322_v29 }
 0x163   :  { %v1506_v27 = vadd.f32 %v1505_v37, %v5117_v0 }
 0x164   :  { %v1985_v1 = vadd.f32 %v1984_v31, %v1672_v2 }
 0x165   :  { %1544 = vmatmul.bf16.gmra.mxu1 %v4716_v30  ;;  %2195 = vmatmul.bf16.gmra.mxu0 %v4334_v12 }
 0x166   :  { %1713 = vmatmul.bf16.gmra.mxu2 %v5312_v17  ;;  %2026 = vmatmul.bf16.gmra.mxu3 %v4706_v33  ;;  %v5318_v43 = vadd.f32 %v2153_v36, %v1985_v1  ;;  %v894_v36 = vrot.slane %v892_v4, 4 }
 0x168   :  { %v5330_v1 = vsel %vm4997_vm5, %v738_v57, %v894_v36 }
 0x169   :  { %v1674_v56 = vpop.f32.mrf.mxu2  ;;  %v1987_v26 = vpop.f32.mrf.mxu3 }
 0x16a   :  { %v1675_v48 = vadd.f32 %v1674_v56, %v1506_v27  ;;  %v1507_v34 = vpop.f32.mrf.mxu1  ;;  %v2158_v5 = vpop.f32.mrf.mxu0  ;;  %v821_v56 = vpack.c.b16 %v4202_v58, %v4202_v58 }
 0x16b   :  { %v1508_v60 = vadd.f32 %v1507_v34, %v5134_v22 }
 0x16c   :  { %v1988_v30 = vadd.f32 %v1987_v26, %v1675_v48  ;;  %v896_v57 = vshll.u32 %v821_v56, 16  ;;  %v4206_v56 = vunpack.c.h.b16 %v4920_v49 }
 0x16e   :  { %v5323_v12 = vadd.f32 %v2156_v59, %v1988_v30  ;;  %v4335_v59 = vld [vmem:[%s6997_s0 + $0x60] sm:$0xff]   ;;  %v7323_v30 = vshll.u32 %v4852_v20, 16 }
 0x170   :  { %v739_v29 = vrot.slane %v7323_v30, 1 }
 0x171   :  { %v1676_v31 = vpop.f32.mrf.mxu2  ;;  %v1989_v0 = vpop.f32.mrf.mxu3 }
 0x172   :  { %v1677_v2 = vadd.f32 %v1676_v31, %v1508_v60  ;;  %v1510_v37 = vpop.f32.mrf.mxu1  ;;  %v2161_v6 = vpop.f32.mrf.mxu0  ;;  %v7324_v31 = vshrl.u32 %v4852_v20, 16 }
 0x173   :  { %v1511_v26 = vadd.f32 %v1510_v37, %v5146_v53 }
 0x174   :  { %v1990_v27 = vadd.f32 %v1989_v0, %v1677_v2  ;;  %v740_v0 = vor.u32 %v739_v29, %v7324_v31 }
 0x175   :  { %1549 = vmatmul.bf16.gmra.mxu1 %v4784_v21  ;;  %2200 = vmatmul.bf16.gmra.mxu0 %v4335_v59 }
 0x176   :  { %1718 = vmatmul.bf16.gmra.mxu2 %v5330_v1  ;;  %2031 = vmatmul.bf16.gmra.mxu3 %v4774_v63  ;;  %v5339_v22 = vadd.f32 %v2158_v5, %v1990_v27  ;;  %v898_v5 = vrot.slane %v896_v57, 4 }
 0x179   :  { %v1679_v48 = vpop.f32.mrf.mxu2  ;;  %v1992_v34 = vpop.f32.mrf.mxu3 }
 0x17a   :  { %v1680_v19 = vadd.f32 %v1679_v48, %v1511_v26  ;;  %v1512_v15 = vpop.f32.mrf.mxu1  ;;  %v2163_v4 = vpop.f32.mrf.mxu0  ;;  %v5351_v26 = vsel %vm4997_vm5, %v740_v0, %v898_v5 }
 0x17b   :  { %v1513_v2 = vadd.f32 %v1512_v15, %v5163_v38  ;;  %v4122_v38 = vld [vmem:[#allocation2 + $0x198] sm:$0xff] }
 0x17c   :  { %v1993_v36 = vadd.f32 %v1992_v34, %v1680_v19  ;;  %v822_v19 = vpack.c.b16 %v4206_v56, %v4206_v56  ;;  %2662 = vmatpush.bf16.msra.mxu2 %v4122_v38 }
 0x17e   :  { %v5344_v60 = vadd.f32 %v2161_v6, %v1993_v36  ;;  %v4130_v6 = vld [vmem:[#allocation2 + $0x1d8] sm:$0xff]  ;;  %v900_v5 = vshll.u32 %v822_v19, 16 }
 0x17f   :  { %2831 = vmatpush.bf16.msra.mxu3 %v4130_v6 }
 0x181   :  { %v1681_v58 = vpop.f32.mrf.mxu2  ;;  %v1994_v53 = vpop.f32.mrf.mxu3 }
 0x182   :  { %v1682_v37 = vadd.f32 %v1681_v58, %v1513_v2  ;;  %v1515_v27 = vpop.f32.mrf.mxu1  ;;  %v2166_v59 = vpop.f32.mrf.mxu0  ;;  %v4090_v58 = vld [vmem:[#allocation2 + $0x98] sm:$0xff] }
 0x183   :  { %v1516_v15 = vadd.f32 %v1515_v27, %v5175_v35  ;;  %2300 = vmatpush.bf16.msra.mxu1 %v4090_v58  ;;  %v7326_v35 = vshrl.u32 %v4920_v49, 16  ;;  %v902_v27 = vrot.slane %v900_v5, 4 }
 0x184   :  { %v1995_v48 = vadd.f32 %v1994_v53, %v1682_v37  ;;  %v4138_v53 = vld [vmem:[#allocation2 + $0x218] sm:$0xff] }
 0x185   :  { %1554 = vmatmul.bf16.gmra.mxu1 %v4852_v20  ;;  %2205 = vmatmul.bf16.gmra.mxu0 %v4784_v21  ;;  %v7325_v21 = vshll.u32 %v4920_v49, 16 }
 0x186   :  { %1723 = vmatmul.bf16.gmra.mxu2 %v5351_v26  ;;  %2036 = vmatmul.bf16.gmra.mxu3 %v4842_v25  ;;  %v5358_v34 = vadd.f32 %v2163_v4, %v1995_v48 }
 0x187   :  { %v741_v0 = vrot.slane %v7325_v21, 1  ;;  %3000 = vmatpush.bf16.msra.mxu0 %v4138_v53 }
 0x189   :  { %v1684_v30 = vpop.f32.mrf.mxu2  ;;  %v1997_v29 = vpop.f32.mrf.mxu3  ;;  %v742_v37 = vor.u32 %v741_v0, %v7326_v35  ;;  %v7327_v35 = vshll.u32 %v4457_v7, 16 }
 0x18a   :  { %v1685_v57 = vadd.f32 %v1684_v30, %v1516_v15  ;;  %v1517_v36 = vpop.f32.mrf.mxu1  ;;  %v2168_v31 = vpop.f32.mrf.mxu0 }
 0x18b   :  { %v1518_v56 = vadd.f32 %v1517_v36, %v5192_v52  ;;  %v5370_v19 = vsel %vm4997_vm5, %v742_v37, %v902_v27  ;;  %v745_v37 = vrot.slane %v7327_v35, 1 }
 0x18c   :  { %v1998_v2 = vadd.f32 %v1997_v29, %v1685_v57 }
 0x18e   :  { %v5363_v4 = vadd.f32 %v2166_v59, %v1998_v2  ;;  %v4336_v59 = vld [vmem:[%s6997_s0 + $0x80] sm:$0xff]  }
 0x18f   :  { %v4210_v29 = vunpack.c.h.b16 %v4336_v59 }
 0x191   :  { %v1686_v48 = vpop.f32.mrf.mxu2  ;;  %v1999_v38 = vpop.f32.mrf.mxu3  ;;  %v824_v36 = vpack.c.b16 %v4210_v29, %v4210_v29 }
 0x192   :  { %v1687_v6 = vadd.f32 %v1686_v48, %v1518_v56  ;;  %v1520_v15 = vpop.f32.mrf.mxu1  ;;  %v2171_v30 = vpop.f32.mrf.mxu0  ;;  %v7328_v56 = vshrl.u32 %v4457_v7, 16 }
 0x193   :  { %v1521_v21 = vadd.f32 %v1520_v15, %v5204_v11 }
 0x194   :  { %v2000_v57 = vadd.f32 %v1999_v38, %v1687_v6  ;;  %v746_v48 = vor.u32 %v745_v37, %v7328_v56 }
 0x195   :  { %1559 = vmatmul.bf16.gmra.mxu1 %v4920_v49  ;;  %2210 = vmatmul.bf16.gmra.mxu0 %v4852_v20  ;;  %v908_v49 = vshll.u32 %v824_v36, 16 }
 0x196   :  { %1728 = vmatmul.bf16.gmra.mxu2 %v5370_v19  ;;  %2041 = vmatmul.bf16.gmra.mxu3 %v4910_v10  ;;  %v5379_v52 = vadd.f32 %v2168_v31, %v2000_v57 }
 0x197   :  { %v910_v31 = vrot.slane %v908_v49, 4 }
 0x199   :  { %v1689_v0 = vpop.f32.mrf.mxu2  ;;  %v2002_v5 = vpop.f32.mrf.mxu3 }
 0x19a   :  { %v1690_v2 = vadd.f32 %v1689_v0, %v1521_v21  ;;  %v1522_v58 = vpop.f32.mrf.mxu1  ;;  %v2173_v53 = vpop.f32.mrf.mxu0  ;;  %v5391_v21 = vsel %vm4997_vm5, %v746_v48, %v910_v31 }
 0x19b   :  { %v1523_v38 = vadd.f32 %v1522_v58, %v5223_v40 }
 0x19c   :  { %v2003_v27 = vadd.f32 %v2002_v5, %v1690_v2 }
 0x19e   :  { %v5384_v20 = vadd.f32 %v2171_v30, %v2003_v27  ;;  %v4337_v30 = vld [vmem:[%s6997_s0 + $0x88] sm:$0xff]   ;;  %v7329_v27 = vshll.u32 %v4525_v51, 16 }
 0x19f   :  { %v4214_v36 = vunpack.c.h.b16 %v4337_v30 }
 0x1a0   :  { %v743_v56 = vrot.slane %v7329_v27, 1 }
 0x1a1   :  { %v1691_v6 = vpop.f32.mrf.mxu2  ;;  %v2004_v11 = vpop.f32.mrf.mxu3  ;;  %v823_v40 = vpack.c.b16 %v4214_v36, %v4214_v36 }
 0x1a2   :  { %v1692_v15 = vadd.f32 %v1691_v6, %v1523_v38  ;;  %v1525_v29 = vpop.f32.mrf.mxu1  ;;  %v2176_v57 = vpop.f32.mrf.mxu0  ;;  %v7330_v6 = vshrl.u32 %v4525_v51, 16 }
 0x1a3   :  { %v1526_v5 = vadd.f32 %v1525_v29, %v5003_v28  ;;  %v904_v48 = vshll.u32 %v823_v40, 16 }
 0x1a4   :  { %v2005_v0 = vadd.f32 %v2004_v11, %v1692_v15  ;;  %v744_v11 = vor.u32 %v743_v56, %v7330_v6  ;;  %v7331_v6 = vshll.u32 %v4593_v50, 16 }
 0x1a5   :  { %1564 = vmatmul.bf16.gmra.mxu1 %v4336_v59  ;;  %2215 = vmatmul.bf16.gmra.mxu0 %v4337_v30 }
 0x1a6   :  { %1733 = vmatmul.bf16.gmra.mxu2 %v5391_v21  ;;  %2046 = vmatmul.bf16.gmra.mxu3 %v4584_v42  ;;  %v5398_v7 = vadd.f32 %v2173_v53, %v2005_v0  ;;  %v906_v53 = vrot.slane %v904_v48, 4 }
 0x1a9   :  { %v1694_v2 = vpop.f32.mrf.mxu2  ;;  %v2007_v58 = vpop.f32.mrf.mxu3 }
 0x1aa   :  { %v1695_v35 = vadd.f32 %v1694_v2, %v1526_v5  ;;  %v1527_v37 = vpop.f32.mrf.mxu1  ;;  %v2178_v49 = vpop.f32.mrf.mxu0  ;;  %v5410_v2 = vsel %vm4997_vm5, %v744_v11, %v906_v53  ;;  %v747_v11 = vrot.slane %v7331_v6, 1 }
 0x1ab   :  { %v1528_v15 = vadd.f32 %v1527_v37, %v5020_v61 }
 0x1ac   :  { %v2008_v31 = vadd.f32 %v2007_v58, %v1695_v35 }
 0x1ae   :  { %v5403_v38 = vadd.f32 %v2176_v57, %v2008_v31  ;;  %v5415_v57 = vld [vmem:[%s6997_s0 + $0x90] sm:$0xff]  }
 0x1af   :  { %v4218_v51 = vunpack.c.h.b16 %v5415_v57 }
 0x1b1   :  { %v1696_v36 = vpop.f32.mrf.mxu2  ;;  %v2009_v28 = vpop.f32.mrf.mxu3  ;;  %v825_v58 = vpack.c.b16 %v4218_v51, %v4218_v51 }
 0x1b2   :  { %v1697_v29 = vadd.f32 %v1696_v36, %v1528_v15  ;;  %v1530_v0 = vpop.f32.mrf.mxu1  ;;  %v2181_v5 = vpop.f32.mrf.mxu0  ;;  %v7332_v36 = vshrl.u32 %v4593_v50, 16 }
 0x1b3   :  { %v1531_v35 = vadd.f32 %v1530_v0, %v5032_v24  ;;  %v912_v53 = vshll.u32 %v825_v58, 16 }
 0x1b4   :  { %v2010_v40 = vadd.f32 %v2009_v28, %v1697_v29 }
 0x1b5   :  { %1569 = vmatmul.bf16.gmra.mxu1 %v4337_v30  ;;  %2220 = vmatmul.bf16.gmra.mxu0 %v4336_v59 }
 0x1b6   :  { %1738 = vmatmul.bf16.gmra.mxu2 %v5410_v2  ;;  %2051 = vmatmul.bf16.gmra.mxu3 %v4516_v47  ;;  %v5420_v61 = vadd.f32 %v2178_v49, %v2010_v40  ;;  %v748_v47 = vor.u32 %v747_v11, %v7332_v36  ;;  %v914_v49 = vrot.slane %v912_v53, 4 }
 0x1b9   :  { %v1699_v37 = vpop.f32.mrf.mxu2  ;;  %v2012_v27 = vpop.f32.mrf.mxu3 }
 0x1ba   :  { %v1700_v56 = vadd.f32 %v1699_v37, %v1531_v35  ;;  %v1532_v48 = vpop.f32.mrf.mxu1  ;;  %v2183_v31 = vpop.f32.mrf.mxu0  ;;  %v5432_v35 = vsel %vm4997_vm5, %v748_v47, %v914_v49  ;;  %v4129_v37 = vld [vmem:[#allocation2 + $0x1d0] sm:$0xff] }
 0x1bb   :  { %v1533_v28 = vadd.f32 %v1532_v48, %v5049_v14  ;;  %v4121_v14 = vld [vmem:[#allocation2 + $0x190] sm:$0xff]  ;;  %2832 = vmatpush.bf16.msra.mxu3 %v4129_v37 }
 0x1bc   :  { %v2013_v15 = vadd.f32 %v2012_v27, %v1700_v56  ;;  %2663 = vmatpush.bf16.msra.mxu2 %v4121_v14 }
 0x1be   :  { %v5425_v59 = vadd.f32 %v2181_v5, %v2013_v15  ;;  %v5437_v5 = vld [vmem:[%s6997_s0 + $0x98] sm:$0xff]  }
 0x1bf   :  { %v4222_v50 = vunpack.c.h.b16 %v5437_v5 }
 0x1c1   :  { %v1701_v29 = vpop.f32.mrf.mxu2  ;;  %v2014_v24 = vpop.f32.mrf.mxu3  ;;  %v826_v56 = vpack.c.b16 %v4222_v50, %v4222_v50  ;;  %v7337_v50 = vld [vmem:[#allocation52_spill] sm:$0xff] }
 0x1c2   :  { %v1702_v0 = vadd.f32 %v1701_v29, %v1533_v28  ;;  %v1535_v51 = vpop.f32.mrf.mxu1  ;;  %v2186_v40 = vpop.f32.mrf.mxu0  ;;  %v4089_v29 = vld [vmem:[#allocation2 + $0x90] sm:$0xff] }
 0x1c3   :  { %v1536_v48 = vadd.f32 %v1535_v51, %v5061_v55  ;;  %v916_v49 = vshll.u32 %v826_v56, 16  ;;  %2301 = vmatpush.bf16.msra.mxu1 %v4089_v29  ;;  %v7336_v55 = vshrl.u32 %v4661_v23, 16 }
 0x1c4   :  { %v2015_v58 = vadd.f32 %v2014_v24, %v1702_v0  ;;  %v4137_v24 = vld [vmem:[#allocation2 + $0x210] sm:$0xff] }
 0x1c5   :  { %1574 = vmatmul.bf16.gmra.mxu1 %v5415_v57  ;;  %2225 = vmatmul.bf16.gmra.mxu0 %v4337_v30  ;;  %v7334_v30 = vshll.u32 %v4661_v23, 16  ;;  %v918_v51 = vrot.slane %v916_v49, 4  ;;  %v7339_v23 = vld [vmem:[#allocation12_spill] sm:$0xff] }
 0x1c6   :  { %1743 = vmatmul.bf16.gmra.mxu2 %v5432_v35  ;;  %2056 = vmatmul.bf16.gmra.mxu3 %v4584_v42  ;;  %v5443_v27 = vadd.f32 %v2183_v31, %v2015_v58 }
 0x1c7   :  { %v749_v47 = vrot.slane %v7334_v30, 1  ;;  %3001 = vmatpush.bf16.msra.mxu0 %v4137_v24 }
 0x1c8   :  { %7333 = vst [vmem:[#allocation91_spill] sm:$0xff] %v5443_v27 }
 0x1c9   :  { %v1704_v6 = vpop.f32.mrf.mxu2  ;;  %v2017_v11 = vpop.f32.mrf.mxu3  ;;  %v750_v0 = vor.u32 %v749_v47, %v7336_v55  ;;  %v7341_v47 = vld [vmem:[#allocation55_spill] sm:$0xff] }
 0x1ca   :  { %v1705_v53 = vadd.f32 %v1704_v6, %v1536_v48  ;;  %v1537_v15 = vpop.f32.mrf.mxu1  ;;  %v2188_v36 = vpop.f32.mrf.mxu0 }
 0x1cb   :  { %v1538_v58 = vadd.f32 %v1537_v15, %v7337_v50  ;;  %v5455_v56 = vsel %vm4997_vm5, %v750_v0, %v918_v51  ;;  %v7342_v51 = vld [vmem:[#allocation18_spill] sm:$0xff] }
 0x1cc   :  { %v2018_v28 = vadd.f32 %v2017_v11, %v1705_v53  ;;  %7338 = vst [vmem:[#allocation52_spill] sm:$0xff] %v5455_v56  ;;  %v7343_v50 = vshll.u32 %v7342_v51, 16 }
 0x1ce   :  { %v5448_v31 = vadd.f32 %v2186_v40, %v2018_v28  ;;  %v4340_v40 = vld [vmem:[%s6997_s0 + $0xa0] sm:$0xff]  }
 0x1cf   :  { %v4226_v11 = vunpack.c.h.b16 %v4340_v40 }
 0x1d0   :  { %7335 = vst [vmem:[#allocation92_spill] sm:$0xff] %v5448_v31 }
 0x1d1   :  { %v1706_v14 = vpop.f32.mrf.mxu2  ;;  %v2019_v37 = vpop.f32.mrf.mxu3  ;;  %v827_v30 = vpack.c.b16 %v4226_v11, %v4226_v11 }
 0x1d2   :  { %v1707_v48 = vadd.f32 %v1706_v14, %v1538_v58  ;;  %v1540_v6 = vpop.f32.mrf.mxu1  ;;  %v2191_v27 = vpop.f32.mrf.mxu0  ;;  %v751_v58 = vrot.slane %v7343_v50, 1 }
 0x1d3   :  { %v1541_v49 = vadd.f32 %v1540_v6, %v7341_v47  ;;  %v920_v14 = vshll.u32 %v827_v30, 16 }
 0x1d4   :  { %v2020_v53 = vadd.f32 %v2019_v37, %v1707_v48  ;;  %v7345_v48 = vshrl.u32 %v7342_v51, 16  ;;  %v7350_v51 = vld [vmem:[#allocation62_spill] sm:$0xff] }
 0x1d5   :  { %1579 = vmatmul.bf16.gmra.mxu1 %v5437_v5  ;;  %2230 = vmatmul.bf16.gmra.mxu0 %v5415_v57 }
 0x1d6   :  { %1748 = vmatmul.bf16.gmra.mxu2 %v5455_v56  ;;  %2061 = vmatmul.bf16.gmra.mxu3 %v7339_v23  ;;  %v5464_v15 = vadd.f32 %v2188_v36, %v2020_v53  ;;  %v752_v56 = vor.u32 %v751_v58, %v7345_v48  ;;  %v922_v36 = vrot.slane %v920_v14, 4  ;;  %v7346_v53 = vld [vmem:[#allocation59_spill] sm:$0xff] }
 0x1d8   :  { %7340 = vst [vmem:[#allocation93_spill] sm:$0xff] %v5464_v15 }
 0x1d9   :  { %v1709_v28 = vpop.f32.mrf.mxu2  ;;  %v2022_v29 = vpop.f32.mrf.mxu3 }
 0x1da   :  { %v1710_v24 = vadd.f32 %v1709_v28, %v1541_v49  ;;  %v1542_v55 = vpop.f32.mrf.mxu1  ;;  %v2193_v0 = vpop.f32.mrf.mxu0  ;;  %v5476_v28 = vsel %vm4997_vm5, %v752_v56, %v922_v36  ;;  %v7351_v36 = vld [vmem:[#allocation23_spill] sm:$0xff] }
 0x1db   :  { %v1543_v11 = vadd.f32 %v1542_v55, %v7346_v53  ;;  %7347 = vst [vmem:[#allocation18_spill] sm:$0xff] %v5476_v28  ;;  %v7352_v53 = vshll.u32 %v7351_v36, 16 }
 0x1dc   :  { %v2023_v37 = vadd.f32 %v2022_v29, %v1710_v24  ;;  %v7348_v24 = vld [vmem:[#allocation16_spill] sm:$0xff] }
 0x1de   :  { %v5469_v57 = vadd.f32 %v2191_v27, %v2023_v37  ;;  %v4341_v27 = vld [vmem:[%s6997_s0 + $0xa8] sm:$0xff]  }
 0x1df   :  { %v4230_v30 = vunpack.c.h.b16 %v4341_v27 }
 0x1e0   :  { %7344 = vst [vmem:[#allocation55_spill] sm:$0xff] %v5469_v57 }
 0x1e1   :  { %v1711_v15 = vpop.f32.mrf.mxu2  ;;  %v2024_v6 = vpop.f32.mrf.mxu3  ;;  %v828_v55 = vpack.c.b16 %v4230_v30, %v4230_v30 }
 0x1e2   :  { %v1712_v47 = vadd.f32 %v1711_v15, %v1543_v11  ;;  %v1545_v31 = vpop.f32.mrf.mxu1  ;;  %v2196_v49 = vpop.f32.mrf.mxu0  ;;  %v753_v11 = vrot.slane %v7352_v53, 1 }
 0x1e3   :  { %v1546_v50 = vadd.f32 %v1545_v31, %v7350_v51 }
 0x1e4   :  { %v2025_v29 = vadd.f32 %v2024_v6, %v1712_v47  ;;  %v924_v6 = vshll.u32 %v828_v55, 16 }
 0x1e5   :  { %1584 = vmatmul.bf16.gmra.mxu1 %v4340_v40  ;;  %2235 = vmatmul.bf16.gmra.mxu0 %v5437_v5 }
 0x1e6   :  { %1753 = vmatmul.bf16.gmra.mxu2 %v5476_v28  ;;  %2066 = vmatmul.bf16.gmra.mxu3 %v7348_v24  ;;  %v5484_v15 = vadd.f32 %v2193_v0, %v2025_v29  ;;  %v7354_v28 = vshrl.u32 %v7351_v36, 16  ;;  %v926_v0 = vrot.slane %v924_v6, 4  ;;  %v7355_v29 = vld [vmem:[#allocation66_spill] sm:$0xff] }
 0x1e8   :  { %7349 = vst [vmem:[#allocation59_spill] sm:$0xff] %v5484_v15  ;;  %v754_v57 = vor.u32 %v753_v11, %v7354_v28 }
 0x1e9   :  { %v1714_v56 = vpop.f32.mrf.mxu2  ;;  %v2027_v58 = vpop.f32.mrf.mxu3 }
 0x1ea   :  { %v1715_v14 = vadd.f32 %v1714_v56, %v1546_v50  ;;  %v1547_v37 = vpop.f32.mrf.mxu1  ;;  %v2198_v48 = vpop.f32.mrf.mxu0  ;;  %v5496_v56 = vsel %vm4997_vm5, %v754_v57, %v926_v0  ;;  %v7360_v0 = vld [vmem:[#allocation28_spill] sm:$0xff] }
 0x1eb   :  { %v1548_v30 = vadd.f32 %v1547_v37, %v7355_v29  ;;  %7356 = vst [vmem:[#allocation23_spill] sm:$0xff] %v5496_v56  ;;  %v7359_v37 = vld [vmem:[#allocation69_spill] sm:$0xff]  ;;  %v7361_v29 = vshll.u32 %v7360_v0, 16 }
 0x1ec   :  { %v2028_v47 = vadd.f32 %v2027_v58, %v1715_v14  ;;  %v7357_v58 = vld [vmem:[#allocation21_spill] sm:$0xff] }
 0x1ee   :  { %v5489_v5 = vadd.f32 %v2196_v49, %v2028_v47  ;;  %v5501_v49 = vld [vmem:[%s6997_s0 + $0xb0] sm:$0xff]  }
 0x1ef   :  { %v4234_v55 = vunpack.c.h.b16 %v5501_v49 }
 0x1f0   :  { %7353 = vst [vmem:[#allocation62_spill] sm:$0xff] %v5489_v5 }
 0x1f1   :  { %v1716_v15 = vpop.f32.mrf.mxu2  ;;  %v2029_v31 = vpop.f32.mrf.mxu3  ;;  %v829_v14 = vpack.c.b16 %v4234_v55, %v4234_v55 }
 0x1f2   :  { %v1717_v51 = vadd.f32 %v1716_v15, %v1548_v30  ;;  %v1550_v24 = vpop.f32.mrf.mxu1  ;;  %v2201_v50 = vpop.f32.mrf.mxu0  ;;  %v755_v30 = vrot.slane %v7361_v29, 1 }
 0x1f3   :  { %v1551_v57 = vadd.f32 %v1550_v24, %v7359_v37 }
 0x1f4   :  { %v2030_v28 = vadd.f32 %v2029_v31, %v1717_v51  ;;  %v928_v31 = vshll.u32 %v829_v14, 16 }
 0x1f5   :  { %1589 = vmatmul.bf16.gmra.mxu1 %v4341_v27  ;;  %2240 = vmatmul.bf16.gmra.mxu0 %v4340_v40 }
 0x1f6   :  { %1758 = vmatmul.bf16.gmra.mxu2 %v5496_v56  ;;  %2071 = vmatmul.bf16.gmra.mxu3 %v7357_v58  ;;  %v5506_v15 = vadd.f32 %v2198_v48, %v2030_v28  ;;  %v7363_v56 = vshrl.u32 %v7360_v0, 16  ;;  %v930_v48 = vrot.slane %v928_v31, 4  ;;  %v7364_v28 = vld [vmem:[#allocation73_spill] sm:$0xff]  ;;  %v7368_v0 = vld [vmem:[#allocation76_spill] sm:$0xff] }
 0x1f8   :  { %7358 = vst [vmem:[#allocation66_spill] sm:$0xff] %v5506_v15  ;;  %v756_v5 = vor.u32 %v755_v30, %v7363_v56 }
 0x1f9   :  { %v1719_v36 = vpop.f32.mrf.mxu2  ;;  %v2032_v53 = vpop.f32.mrf.mxu3 }
 0x1fa   :  { %v1720_v11 = vadd.f32 %v1719_v36, %v1551_v57  ;;  %v1552_v6 = vpop.f32.mrf.mxu1  ;;  %v2203_v47 = vpop.f32.mrf.mxu0  ;;  %v5518_v36 = vsel %vm4997_vm5, %v756_v5, %v930_v48 }
 0x1fb   :  { %v1553_v55 = vadd.f32 %v1552_v6, %v7364_v28  ;;  %7365 = vst [vmem:[#allocation28_spill] sm:$0xff] %v5518_v36 }
 0x1fc   :  { %v2033_v51 = vadd.f32 %v2032_v53, %v1720_v11  ;;  %v4120_v53 = vld [vmem:[#allocation2 + $0x188] sm:$0xff] }
 0x1fd   :  { %v4128_v11 = vld [vmem:[#allocation2 + $0x1c8] sm:$0xff]  ;;  %2664 = vmatpush.bf16.msra.mxu2 %v4120_v53  ;;  %v7373_v53 = vld [vmem:[#allocation80_spill] sm:$0xff] }
 0x1fe   :  { %v5511_v40 = vadd.f32 %v2201_v50, %v2033_v51  ;;  %v5523_v50 = vld [vmem:[%s6997_s0 + $0xb8] sm:$0xff]   ;;  %2833 = vmatpush.bf16.msra.mxu3 %v4128_v11 }
 0x1ff   :  { %v4238_v14 = vunpack.c.h.b16 %v5523_v50 }
 0x200   :  { %7362 = vst [vmem:[#allocation69_spill] sm:$0xff] %v5511_v40  ;;  %v4088_v40 = vld [vmem:[#allocation2 + $0x88] sm:$0xff] }
 0x201   :  { %v1721_v15 = vpop.f32.mrf.mxu2  ;;  %v2034_v24 = vpop.f32.mrf.mxu3  ;;  %v830_v5 = vpack.c.b16 %v4238_v14, %v4238_v14  ;;  %2302 = vmatpush.bf16.msra.mxu1 %v4088_v40  ;;  %v4344_v40 = vld [vmem:[%s6997_s0 + $0xc0] sm:$0xff]  }
 0x202   :  { %v1722_v37 = vadd.f32 %v1721_v15, %v1553_v55  ;;  %v1555_v58 = vpop.f32.mrf.mxu1  ;;  %v2206_v57 = vpop.f32.mrf.mxu0  ;;  %v7366_v15 = vld [vmem:[#allocation26_spill] sm:$0xff]  ;;  %v7369_v55 = vld [vmem:[#allocation33_spill] sm:$0xff] }
 0x203   :  { %v1556_v29 = vadd.f32 %v1555_v58, %v7368_v0  ;;  %v7372_v58 = vshrl.u32 %v7369_v55, 16 }
 0x204   :  { %v2035_v56 = vadd.f32 %v2034_v24, %v1722_v37  ;;  %v932_v37 = vshll.u32 %v830_v5, 16 }
 0x205   :  { %1594 = vmatmul.bf16.gmra.mxu1 %v5501_v49  ;;  %2245 = vmatmul.bf16.gmra.mxu0 %v4341_v27  ;;  %v7370_v27 = vshll.u32 %v7369_v55, 16 }
 0x206   :  { %1763 = vmatmul.bf16.gmra.mxu2 %v5518_v36  ;;  %2076 = vmatmul.bf16.gmra.mxu3 %v7366_v15  ;;  %v5529_v6 = vadd.f32 %v2203_v47, %v2035_v56  ;;  %v4136_v15 = vld [vmem:[#allocation2 + $0x208] sm:$0xff]  ;;  %v934_v56 = vrot.slane %v932_v37, 4 }
 0x207   :  { %v757_v24 = vrot.slane %v7370_v27, 1  ;;  %3002 = vmatpush.bf16.msra.mxu0 %v4136_v15  ;;  %v7375_v15 = vld [vmem:[#allocation31_spill] sm:$0xff] }
 0x208   :  { %7367 = vst [vmem:[#allocation73_spill] sm:$0xff] %v5529_v6 }
 0x209   :  { %v1724_v30 = vpop.f32.mrf.mxu2  ;;  %v2037_v31 = vpop.f32.mrf.mxu3  ;;  %v758_v14 = vor.u32 %v757_v24, %v7372_v58 }
 0x20a   :  { %v1725_v51 = vadd.f32 %v1724_v30, %v1556_v29  ;;  %v1557_v48 = vpop.f32.mrf.mxu1  ;;  %v2208_v28 = vpop.f32.mrf.mxu0 }
 0x20b   :  { %v1558_v11 = vadd.f32 %v1557_v48, %v7373_v53  ;;  %v5541_v5 = vsel %vm4997_vm5, %v758_v14, %v934_v56  ;;  %v7377_v48 = vld [vmem:[#allocation83_spill] sm:$0xff]  ;;  %v7378_v56 = vld [vmem:[#allocation5_spill] sm:$0xff] }
 0x20c   :  { %v2038_v36 = vadd.f32 %v2037_v31, %v1725_v51  ;;  %7374 = vst [vmem:[#allocation33_spill] sm:$0xff] %v5541_v5  ;;  %v7379_v53 = vshll.u32 %v7378_v56, 16 }
 0x20e   :  { %v5534_v47 = vadd.f32 %v2206_v57, %v2038_v36  ;;  %v4242_v57 = vunpack.c.h.b16 %v4344_v40 }
 0x210   :  { %7371 = vst [vmem:[#allocation76_spill] sm:$0xff] %v5534_v47  ;;  %v831_v51 = vpack.c.b16 %v4242_v57, %v4242_v57 }
 0x211   :  { %v1726_v0 = vpop.f32.mrf.mxu2  ;;  %v2039_v29 = vpop.f32.mrf.mxu3 }
 0x212   :  { %v1727_v30 = vadd.f32 %v1726_v0, %v1558_v11  ;;  %v1560_v6 = vpop.f32.mrf.mxu1  ;;  %v2211_v23 = vpop.f32.mrf.mxu0  ;;  %v759_v11 = vrot.slane %v7379_v53, 1  ;;  %v936_v0 = vshll.u32 %v831_v51, 16 }
 0x213   :  { %v1561_v55 = vadd.f32 %v1560_v6, %v7377_v48 }
 0x214   :  { %v2040_v36 = vadd.f32 %v2039_v29, %v1727_v30  ;;  %v7381_v30 = vshrl.u32 %v7378_v56, 16  ;;  %v7386_v56 = vld [vmem:[#allocation40_spill] sm:$0xff] }
 0x215   :  { %1599 = vmatmul.bf16.gmra.mxu1 %v5523_v50  ;;  %2250 = vmatmul.bf16.gmra.mxu0 %v5501_v49 }
 0x216   :  { %1768 = vmatmul.bf16.gmra.mxu2 %v5541_v5  ;;  %2081 = vmatmul.bf16.gmra.mxu3 %v7375_v15  ;;  %v5550_v31 = vadd.f32 %v2208_v28, %v2040_v36  ;;  %v760_v5 = vor.u32 %v759_v11, %v7381_v30  ;;  %v938_v28 = vrot.slane %v936_v0, 4  ;;  %v7382_v36 = vld [vmem:[#allocation87_spill] sm:$0xff] }
 0x218   :  { %7376 = vst [vmem:[#allocation80_spill] sm:$0xff] %v5550_v31 }
 0x219   :  { %v1729_v27 = vpop.f32.mrf.mxu2  ;;  %v2042_v24 = vpop.f32.mrf.mxu3 }
 0x21a   :  { %v1730_v37 = vadd.f32 %v1729_v27, %v1561_v55  ;;  %v1562_v58 = vpop.f32.mrf.mxu1  ;;  %v2213_v14 = vpop.f32.mrf.mxu0  ;;  %v5562_v27 = vsel %vm4997_vm5, %v760_v5, %v938_v28  ;;  %v7387_v28 = vld [vmem:[#allocation7_spill] sm:$0xff] }
 0x21b   :  { %v1563_v57 = vadd.f32 %v1562_v58, %v7382_v36  ;;  %7383 = vst [vmem:[#allocation5_spill] sm:$0xff] %v5562_v27  ;;  %v7388_v36 = vshll.u32 %v7387_v28, 16 }
 0x21c   :  { %v2043_v29 = vadd.f32 %v2042_v24, %v1730_v37  ;;  %v7384_v37 = vld [vmem:[#allocation37_spill] sm:$0xff] }
 0x21e   :  { %v5555_v49 = vadd.f32 %v2211_v23, %v2043_v29  ;;  %v4345_v23 = vld [vmem:[%s6997_s0 + $0xc8] sm:$0xff]  }
 0x21f   :  { %v4246_v51 = vunpack.c.h.b16 %v4345_v23 }
 0x220   :  { %7380 = vst [vmem:[#allocation83_spill] sm:$0xff] %v5555_v49 }
 0x221   :  { %v1731_v31 = vpop.f32.mrf.mxu2  ;;  %v2044_v6 = vpop.f32.mrf.mxu3  ;;  %v832_v58 = vpack.c.b16 %v4246_v51, %v4246_v51 }
 0x222   :  { %v1732_v48 = vadd.f32 %v1731_v31, %v1563_v57  ;;  %v1565_v47 = vpop.f32.mrf.mxu1  ;;  %v2216_v55 = vpop.f32.mrf.mxu0  ;;  %v761_v57 = vrot.slane %v7388_v36, 1 }
 0x223   :  { %v1566_v53 = vadd.f32 %v1565_v47, %v7386_v56 }
 0x224   :  { %v2045_v24 = vadd.f32 %v2044_v6, %v1732_v48  ;;  %v940_v6 = vshll.u32 %v832_v58, 16 }
 0x225   :  { %1604 = vmatmul.bf16.gmra.mxu1 %v4344_v40  ;;  %2255 = vmatmul.bf16.gmra.mxu0 %v5523_v50 }
 0x226   :  { %1773 = vmatmul.bf16.gmra.mxu2 %v5562_v27  ;;  %2086 = vmatmul.bf16.gmra.mxu3 %v7384_v37  ;;  %v5570_v31 = vadd.f32 %v2213_v14, %v2045_v24  ;;  %v7390_v27 = vshrl.u32 %v7387_v28, 16  ;;  %v942_v14 = vrot.slane %v940_v6, 4  ;;  %v7391_v24 = vld [vmem:[#allocation42_spill] sm:$0xff] }
 0x228   :  { %7385 = vst [vmem:[#allocation87_spill] sm:$0xff] %v5570_v31  ;;  %v762_v49 = vor.u32 %v761_v57, %v7390_v27 }
 0x229   :  { %v1734_v5 = vpop.f32.mrf.mxu2  ;;  %v2047_v11 = vpop.f32.mrf.mxu3 }
 0x22a   :  { %v1735_v0 = vadd.f32 %v1734_v5, %v1566_v53  ;;  %v1567_v29 = vpop.f32.mrf.mxu1  ;;  %v2218_v30 = vpop.f32.mrf.mxu0  ;;  %v5582_v5 = vsel %vm4997_vm5, %v762_v49, %v942_v14  ;;  %v7396_v14 = vld [vmem:[#allocation10_spill] sm:$0xff] }
 0x22b   :  { %v1568_v51 = vadd.f32 %v1567_v29, %v7391_v24  ;;  %7392 = vst [vmem:[#allocation7_spill] sm:$0xff] %v5582_v5  ;;  %v7395_v29 = vld [vmem:[#allocation45_spill] sm:$0xff]  ;;  %v7397_v24 = vshll.u32 %v7396_v14, 16 }
 0x22c   :  { %v2048_v48 = vadd.f32 %v2047_v11, %v1735_v0  ;;  %v7393_v11 = vld [vmem:[#allocation6_spill] sm:$0xff] }
 0x22e   :  { %v5575_v50 = vadd.f32 %v2216_v55, %v2048_v48  ;;  %v5587_v55 = vld [vmem:[%s6997_s0 + $0xd0] sm:$0xff]  }
 0x22f   :  { %v4250_v58 = vunpack.c.h.b16 %v5587_v55 }
 0x230   :  { %7389 = vst [vmem:[#allocation40_spill] sm:$0xff] %v5575_v50 }
 0x231   :  { %v1736_v31 = vpop.f32.mrf.mxu2  ;;  %v2049_v47 = vpop.f32.mrf.mxu3  ;;  %v833_v0 = vpack.c.b16 %v4250_v58, %v4250_v58 }
 0x232   :  { %v1737_v56 = vadd.f32 %v1736_v31, %v1568_v51  ;;  %v1570_v37 = vpop.f32.mrf.mxu1  ;;  %v2221_v53 = vpop.f32.mrf.mxu0  ;;  %v763_v51 = vrot.slane %v7397_v24, 1 }
 0x233   :  { %v1571_v49 = vadd.f32 %v1570_v37, %v7395_v29 }
 0x234   :  { %v2050_v27 = vadd.f32 %v2049_v47, %v1737_v56  ;;  %v944_v47 = vshll.u32 %v833_v0, 16 }
 0x235   :  { %1609 = vmatmul.bf16.gmra.mxu1 %v4345_v23  ;;  %2260 = vmatmul.bf16.gmra.mxu0 %v4344_v40 }
 0x236   :  { %1778 = vmatmul.bf16.gmra.mxu2 %v5582_v5  ;;  %2091 = vmatmul.bf16.gmra.mxu3 %v7393_v11  ;;  %v5592_v31 = vadd.f32 %v2218_v30, %v2050_v27  ;;  %v7399_v5 = vshrl.u32 %v7396_v14, 16  ;;  %v946_v30 = vrot.slane %v944_v47, 4  ;;  %v7400_v27 = vld [vmem:[#allocation47_spill] sm:$0xff]  ;;  %v7404_v14 = vld [vmem:[#allocation50_spill] sm:$0xff] }
 0x238   :  { %7394 = vst [vmem:[#allocation42_spill] sm:$0xff] %v5592_v31  ;;  %v764_v50 = vor.u32 %v763_v51, %v7399_v5 }
 0x239   :  { %v1739_v28 = vpop.f32.mrf.mxu2  ;;  %v2052_v36 = vpop.f32.mrf.mxu3 }
 0x23a   :  { %v1740_v57 = vadd.f32 %v1739_v28, %v1571_v49  ;;  %v1572_v6 = vpop.f32.mrf.mxu1  ;;  %v2223_v48 = vpop.f32.mrf.mxu0  ;;  %v5604_v28 = vsel %vm4997_vm5, %v764_v50, %v946_v30 }
 0x23b   :  { %v1573_v58 = vadd.f32 %v1572_v6, %v7400_v27  ;;  %7401 = vst [vmem:[#allocation10_spill] sm:$0xff] %v5604_v28 }
 0x23c   :  { %v2053_v56 = vadd.f32 %v2052_v36, %v1740_v57  ;;  %v4119_v36 = vld [vmem:[#allocation2 + $0x180] sm:$0xff] }
 0x23d   :  { %v4127_v57 = vld [vmem:[#allocation2 + $0x1c0] sm:$0xff]  ;;  %2665 = vmatpush.bf16.msra.mxu2 %v4119_v36 }
 0x23e   :  { %v5597_v40 = vadd.f32 %v2221_v53, %v2053_v56  ;;  %v5609_v53 = vld [vmem:[%s6997_s0 + $0xd8] sm:$0xff]   ;;  %2834 = vmatpush.bf16.msra.mxu3 %v4127_v57  ;;  %v7409_v36 = vld [vmem:[#allocation53_spill] sm:$0xff] }
 0x23f   :  { %v4254_v0 = vunpack.c.h.b16 %v5609_v53 }
 0x240   :  { %7398 = vst [vmem:[#allocation45_spill] sm:$0xff] %v5597_v40  ;;  %v4087_v40 = vld [vmem:[#allocation2 + $0x80] sm:$0xff] }
 0x241   :  { %v1741_v31 = vpop.f32.mrf.mxu2  ;;  %v2054_v37 = vpop.f32.mrf.mxu3  ;;  %v834_v50 = vpack.c.b16 %v4254_v0, %v4254_v0  ;;  %2303 = vmatpush.bf16.msra.mxu1 %v4087_v40  ;;  %v4348_v40 = vld [vmem:[%s6997_s0 + $0xe0] sm:$0xff]  }
 0x242   :  { %v1742_v29 = vadd.f32 %v1741_v31, %v1573_v58  ;;  %v1575_v11 = vpop.f32.mrf.mxu1  ;;  %v2226_v49 = vpop.f32.mrf.mxu0  ;;  %v7402_v31 = vld [vmem:[#allocation9_spill] sm:$0xff]  ;;  %v7405_v58 = vld [vmem:[#allocation14_spill] sm:$0xff] }
 0x243   :  { %v1576_v24 = vadd.f32 %v1575_v11, %v7404_v14  ;;  %v7408_v11 = vshrl.u32 %v7405_v58, 16 }
 0x244   :  { %v2055_v5 = vadd.f32 %v2054_v37, %v1742_v29  ;;  %v948_v29 = vshll.u32 %v834_v50, 16 }
 0x245   :  { %1614 = vmatmul.bf16.gmra.mxu1 %v5587_v55  ;;  %2265 = vmatmul.bf16.gmra.mxu0 %v4345_v23  ;;  %v7406_v23 = vshll.u32 %v7405_v58, 16 }
 0x246   :  { %1783 = vmatmul.bf16.gmra.mxu2 %v5604_v28  ;;  %2096 = vmatmul.bf16.gmra.mxu3 %v7402_v31  ;;  %v5615_v6 = vadd.f32 %v2223_v48, %v2055_v5  ;;  %v4135_v31 = vld [vmem:[#allocation2 + $0x200] sm:$0xff]  ;;  %v950_v5 = vrot.slane %v948_v29, 4 }
 0x247   :  { %v765_v37 = vrot.slane %v7406_v23, 1  ;;  %3003 = vmatpush.bf16.msra.mxu0 %v4135_v31  ;;  %v7411_v31 = vld [vmem:[#allocation13_spill] sm:$0xff] }
 0x248   :  { %7403 = vst [vmem:[#allocation47_spill] sm:$0xff] %v5615_v6 }
 0x249   :  { %v1744_v51 = vpop.f32.mrf.mxu2  ;;  %v2057_v47 = vpop.f32.mrf.mxu3  ;;  %v766_v0 = vor.u32 %v765_v37, %v7408_v11 }
 0x24a   :  { %v1745_v56 = vadd.f32 %v1744_v51, %v1576_v24  ;;  %v1577_v30 = vpop.f32.mrf.mxu1  ;;  %v2228_v27 = vpop.f32.mrf.mxu0 }
 0x24b   :  { %v1578_v57 = vadd.f32 %v1577_v30, %v7409_v36  ;;  %v5627_v50 = vsel %vm4997_vm5, %v766_v0, %v950_v5  ;;  %v7413_v30 = vld [vmem:[#allocation57_spill] sm:$0xff]  ;;  %v7414_v5 = vld [vmem:[#allocation19_spill] sm:$0xff] }
 0x24c   :  { %v2058_v28 = vadd.f32 %v2057_v47, %v1745_v56  ;;  %7410 = vst [vmem:[#allocation14_spill] sm:$0xff] %v5627_v50  ;;  %v7415_v36 = vshll.u32 %v7414_v5, 16 }
 0x24e   :  { %v5620_v48 = vadd.f32 %v2226_v49, %v2058_v28  ;;  %v4258_v49 = vunpack.c.h.b16 %v4348_v40 }
 0x250   :  { %7407 = vst [vmem:[#allocation50_spill] sm:$0xff] %v5620_v48  ;;  %v835_v56 = vpack.c.b16 %v4258_v49, %v4258_v49 }
 0x251   :  { %v1746_v14 = vpop.f32.mrf.mxu2  ;;  %v2059_v24 = vpop.f32.mrf.mxu3 }
 0x252   :  { %v1747_v51 = vadd.f32 %v1746_v14, %v1578_v57  ;;  %v1580_v6 = vpop.f32.mrf.mxu1  ;;  %v2231_v15 = vpop.f32.mrf.mxu0  ;;  %v767_v57 = vrot.slane %v7415_v36, 1  ;;  %v952_v14 = vshll.u32 %v835_v56, 16 }
 0x253   :  { %v1581_v58 = vadd.f32 %v1580_v6, %v7413_v30 }
 0x254   :  { %v2060_v28 = vadd.f32 %v2059_v24, %v1747_v51  ;;  %v7417_v51 = vshrl.u32 %v7414_v5, 16  ;;  %v7422_v5 = vld [vmem:[#allocation64_spill] sm:$0xff] }
 0x255   :  { %1619 = vmatmul.bf16.gmra.mxu1 %v5609_v53  ;;  %2270 = vmatmul.bf16.gmra.mxu0 %v5587_v55 }
 0x256   :  { %1788 = vmatmul.bf16.gmra.mxu2 %v5627_v50  ;;  %2101 = vmatmul.bf16.gmra.mxu3 %v7411_v31  ;;  %v5636_v47 = vadd.f32 %v2228_v27, %v2060_v28  ;;  %v768_v50 = vor.u32 %v767_v57, %v7417_v51  ;;  %v954_v27 = vrot.slane %v952_v14, 4  ;;  %v7418_v28 = vld [vmem:[#allocation60_spill] sm:$0xff] }
 0x258   :  { %7412 = vst [vmem:[#allocation53_spill] sm:$0xff] %v5636_v47 }
 0x259   :  { %v1749_v23 = vpop.f32.mrf.mxu2  ;;  %v2062_v37 = vpop.f32.mrf.mxu3 }
 0x25a   :  { %v1750_v29 = vadd.f32 %v1749_v23, %v1581_v58  ;;  %v1582_v11 = vpop.f32.mrf.mxu1  ;;  %v2233_v0 = vpop.f32.mrf.mxu0  ;;  %v5648_v23 = vsel %vm4997_vm5, %v768_v50, %v954_v27  ;;  %v7423_v27 = vld [vmem:[#allocation24_spill] sm:$0xff] }
 0x25b   :  { %v1583_v49 = vadd.f32 %v1582_v11, %v7418_v28  ;;  %7419 = vst [vmem:[#allocation57_spill] sm:$0xff] %v5648_v23  ;;  %v7424_v28 = vshll.u32 %v7423_v27, 16 }
 0x25c   :  { %v2063_v24 = vadd.f32 %v2062_v37, %v1750_v29  ;;  %v7420_v29 = vld [vmem:[#allocation17_spill] sm:$0xff] }
 0x25e   :  { %v5641_v55 = vadd.f32 %v2231_v15, %v2063_v24  ;;  %v4349_v15 = vld [vmem:[%s6997_s0 + $0xe8] sm:$0xff]  }
 0x25f   :  { %v4262_v56 = vunpack.c.h.b16 %v4349_v15 }
 0x260   :  { %7416 = vst [vmem:[#allocation13_spill] sm:$0xff] %v5641_v55 }
 0x261   :  { %v1751_v47 = vpop.f32.mrf.mxu2  ;;  %v2064_v6 = vpop.f32.mrf.mxu3  ;;  %v836_v11 = vpack.c.b16 %v4262_v56, %v4262_v56 }
 0x262   :  { %v1752_v30 = vadd.f32 %v1751_v47, %v1583_v49  ;;  %v1585_v48 = vpop.f32.mrf.mxu1  ;;  %v2236_v58 = vpop.f32.mrf.mxu0  ;;  %v769_v49 = vrot.slane %v7424_v28, 1 }
 0x263   :  { %v1586_v36 = vadd.f32 %v1585_v48, %v7422_v5 }
 0x264   :  { %v2065_v37 = vadd.f32 %v2064_v6, %v1752_v30  ;;  %v956_v6 = vshll.u32 %v836_v11, 16 }
 0x265   :  { %1624 = vmatmul.bf16.gmra.mxu1 %v4348_v40  ;;  %2275 = vmatmul.bf16.gmra.mxu0 %v5609_v53 }
 0x266   :  { %1793 = vmatmul.bf16.gmra.mxu2 %v5648_v23  ;;  %2106 = vmatmul.bf16.gmra.mxu3 %v7420_v29  ;;  %v5656_v47 = vadd.f32 %v2233_v0, %v2065_v37  ;;  %v7426_v23 = vshrl.u32 %v7423_v27, 16  ;;  %v958_v0 = vrot.slane %v956_v6, 4  ;;  %v7427_v37 = vld [vmem:[#allocation67_spill] sm:$0xff] }
 0x268   :  { %7421 = vst [vmem:[#allocation19_spill] sm:$0xff] %v5656_v47  ;;  %v770_v55 = vor.u32 %v769_v49, %v7426_v23  ;;  %v7429_v23 = vld [vmem:[#allocation22_spill] sm:$0xff] }
 0x269   :  { %v1754_v50 = vpop.f32.mrf.mxu2  ;;  %v2067_v57 = vpop.f32.mrf.mxu3 }
 0x26a   :  { %v1755_v14 = vadd.f32 %v1754_v50, %v1586_v36  ;;  %v1587_v24 = vpop.f32.mrf.mxu1  ;;  %v2238_v51 = vpop.f32.mrf.mxu0  ;;  %v5668_v50 = vsel %vm4997_vm5, %v770_v55, %v958_v0  ;;  %v7432_v0 = vld [vmem:[#allocation29_spill] sm:$0xff] }
 0x26b   :  { %v1588_v56 = vadd.f32 %v1587_v24, %v7427_v37  ;;  %7428 = vst [vmem:[#allocation64_spill] sm:$0xff] %v5668_v50  ;;  %v7431_v24 = vld [vmem:[#allocation71_spill] sm:$0xff]  ;;  %v7433_v37 = vshll.u32 %v7432_v0, 16 }
 0x26c   :  { %v2068_v30 = vadd.f32 %v2067_v57, %v1755_v14 }
 0x26e   :  { %v5661_v53 = vadd.f32 %v2236_v58, %v2068_v30  ;;  %v4350_v58 = vld [vmem:[%s6997_s0 + $0xf0] sm:$0xff]  }
 0x26f   :  { %v4266_v11 = vunpack.c.h.b16 %v4350_v58 }
 0x270   :  { %7425 = vst [vmem:[#allocation60_spill] sm:$0xff] %v5661_v53 }
 0x271   :  { %v1756_v47 = vpop.f32.mrf.mxu2  ;;  %v2069_v48 = vpop.f32.mrf.mxu3 }
 0x272   :  { %v1757_v5 = vadd.f32 %v1756_v47, %v1588_v56  ;;  %v1590_v29 = vpop.f32.mrf.mxu1  ;;  %v2241_v36 = vpop.f32.mrf.mxu0  ;;  %v837_v47 = vpack.c.b16 %v4266_v11, %v4266_v11  ;;  %v771_v56 = vrot.slane %v7433_v37, 1 }
 0x273   :  { %v1591_v27 = vadd.f32 %v1590_v29, %v7431_v24 }
 0x274   :  { %v2070_v57 = vadd.f32 %v2069_v48, %v1757_v5  ;;  %v960_v48 = vshll.u32 %v837_v47, 16 }
 0x275   :  { %1629 = vmatmul.bf16.gmra.mxu1 %v4349_v15  ;;  %2280 = vmatmul.bf16.gmra.mxu0 %v4348_v40 }
 0x276   :  { %1798 = vmatmul.bf16.gmra.mxu2 %v5668_v50  ;;  %2111 = vmatmul.bf16.gmra.mxu3 %v7429_v23  ;;  %v5675_v14 = vadd.f32 %v2238_v51, %v2070_v57  ;;  %v7435_v50 = vshrl.u32 %v7432_v0, 16  ;;  %v962_v51 = vrot.slane %v960_v48, 4  ;;  %v7436_v57 = vld [vmem:[#allocation74_spill] sm:$0xff] }
 0x278   :  { %7430 = vst [vmem:[#allocation24_spill] sm:$0xff] %v5675_v14  ;;  %v772_v53 = vor.u32 %v771_v56, %v7435_v50  ;;  %v7438_v50 = vld [vmem:[#allocation27_spill] sm:$0xff] }
 0x279   :  { %v1759_v28 = vpop.f32.mrf.mxu2  ;;  %v2072_v55 = vpop.f32.mrf.mxu3 }
 0x27a   :  { %v1760_v49 = vadd.f32 %v1759_v28, %v1591_v27  ;;  %v1592_v6 = vpop.f32.mrf.mxu1  ;;  %v2243_v30 = vpop.f32.mrf.mxu0  ;;  %v5687_v28 = vsel %vm4997_vm5, %v772_v53, %v962_v51  ;;  %v7441_v51 = vld [vmem:[#allocation34_spill] sm:$0xff] }
 0x27b   :  { %v1593_v11 = vadd.f32 %v1592_v6, %v7436_v57  ;;  %7437 = vst [vmem:[#allocation71_spill] sm:$0xff] %v5687_v28  ;;  %v7440_v6 = vld [vmem:[#allocation78_spill] sm:$0xff]  ;;  %v7442_v57 = vshll.u32 %v7441_v51, 16 }
 0x27c   :  { %v2073_v5 = vadd.f32 %v2072_v55, %v1760_v49 }
 0x27e   :  { %v5680_v40 = vadd.f32 %v2241_v36, %v2073_v5  ;;  %v4351_v36 = vld [vmem:[%s6997_s0 + $0xf8] sm:$0xff]  }
 0x27f   :  { %v4270_v47 = vunpack.c.h.b16 %v4351_v36 }
 0x280   :  { %7434 = vst [vmem:[#allocation67_spill] sm:$0xff] %v5680_v40 }
 0x281   :  { %v1761_v14 = vpop.f32.mrf.mxu2  ;;  %v2074_v29 = vpop.f32.mrf.mxu3 }
 0x282   :  { %v1762_v24 = vadd.f32 %v1761_v14, %v1593_v11  ;;  %v1595_v23 = vpop.f32.mrf.mxu1  ;;  %v2246_v27 = vpop.f32.mrf.mxu0  ;;  %v838_v14 = vpack.c.b16 %v4270_v47, %v4270_v47  ;;  %v773_v11 = vrot.slane %v7442_v57, 1 }
 0x283   :  { %v1596_v0 = vadd.f32 %v1595_v23, %v7440_v6 }
 0x284   :  { %v2075_v55 = vadd.f32 %v2074_v29, %v1762_v24  ;;  %v964_v29 = vshll.u32 %v838_v14, 16  ;;  %v7448_v14 = vld [vmem:[#allocation85_spill] sm:$0xff] }
 0x285   :  { %1634 = vmatmul.bf16.gmra.mxu1 %v4350_v58  ;;  %2285 = vmatmul.bf16.gmra.mxu0 %v4349_v15 }
 0x286   :  { %1803 = vmatmul.bf16.gmra.mxu2 %v5687_v28  ;;  %2116 = vmatmul.bf16.gmra.mxu3 %v7438_v50  ;;  %v5694_v49 = vadd.f32 %v2243_v30, %v2075_v55  ;;  %v7443_v28 = vshrl.u32 %v7441_v51, 16  ;;  %v966_v30 = vrot.slane %v964_v29, 4  ;;  %v7444_v55 = vld [vmem:[#allocation81_spill] sm:$0xff] }
 0x288   :  { %7439 = vst [vmem:[#allocation29_spill] sm:$0xff] %v5694_v49  ;;  %v774_v40 = vor.u32 %v773_v11, %v7443_v28 }
 0x289   :  { %v1764_v37 = vpop.f32.mrf.mxu2  ;;  %v2077_v53 = vpop.f32.mrf.mxu3 }
 0x28a   :  { %v1765_v56 = vadd.f32 %v1764_v37, %v1596_v0  ;;  %v1597_v48 = vpop.f32.mrf.mxu1  ;;  %v2248_v5 = vpop.f32.mrf.mxu0  ;;  %v5706_v37 = vsel %vm4997_vm5, %v774_v40, %v966_v30  ;;  %v7450_v40 = vld [vmem:[#allocation88_spill] sm:$0xff] }
 0x28b   :  { %v1598_v47 = vadd.f32 %v1597_v48, %v7444_v55  ;;  %7445 = vst [vmem:[#allocation74_spill] sm:$0xff] %v5706_v37 }
 0x28c   :  { %v2078_v24 = vadd.f32 %v2077_v53, %v1765_v56 }
 0x28e   :  { %v5699_v15 = vadd.f32 %v2246_v27, %v2078_v24  ;;  %v7446_v27 = vld [vmem:[#allocation32_spill] sm:$0xff] }
 0x291   :  { %v1766_v49 = vpop.f32.mrf.mxu2  ;;  %v2079_v23 = vpop.f32.mrf.mxu3 }
 0x292   :  { %v1767_v6 = vadd.f32 %v1766_v49, %v1598_v47  ;;  %v1600_v50 = vpop.f32.mrf.mxu1  ;;  %v2251_v0 = vpop.f32.mrf.mxu0 }
 0x293   :  { %v1601_v53 = vadd.f32 %v1600_v50, %v7448_v14  ;;  %v7452_v50 = vld [vmem:[#allocation8_spill] sm:$0xff] }
 0x294   :  { %v2080_v57 = vadd.f32 %v2079_v23, %v1767_v6  ;;  %v4352_v6 = vld [vmem:[%s6997_s0 + $0x8] sm:$0xff]  }
 0x295   :  { %1639 = vmatmul.bf16.gmra.mxu1 %v4351_v36  ;;  %2290 = vmatmul.bf16.gmra.mxu0 %v4350_v58 }
 0x296   :  { %1808 = vmatmul.bf16.gmra.mxu2 %v5706_v37  ;;  %2121 = vmatmul.bf16.gmra.mxu3 %v7446_v27  ;;  %v5710_v28 = vadd.f32 %v2248_v5, %v2080_v57  ;;  %v7451_v5 = vld [vmem:[#allocation44_spill] sm:$0xff]  ;;  %v7454_v57 = vld [vmem:[#allocation41_spill] sm:$0xff] }
 0x298   :  { %7447 = vst [vmem:[#allocation78_spill] sm:$0xff] %v5710_v28 }
 0x299   :  { %v1769_v56 = vpop.f32.mrf.mxu2  ;;  %v2082_v48 = vpop.f32.mrf.mxu3 }
 0x29a   :  { %v1770_v49 = vadd.f32 %v1769_v56, %v1601_v53  ;;  %v1602_v51 = vpop.f32.mrf.mxu1  ;;  %v2253_v11 = vpop.f32.mrf.mxu0 }
 0x29b   :  { %v1603_v24 = vadd.f32 %v1602_v51, %v7450_v40 }
 0x29c   :  { %v2083_v29 = vadd.f32 %v2082_v48, %v1770_v49 }
 0x29e   :  { %v5713_v62 = vadd.f32 %v2251_v0, %v2083_v29 }
 0x2a0   :  { %7449 = vst [vmem:[#allocation34_spill] sm:$0xff] %v5713_v62 }
 0x2a1   :  { %v1771_v36 = vpop.f32.mrf.mxu2  ;;  %v2084_v58 = vpop.f32.mrf.mxu3 }
 0x2a2   :  { %v1772_v30 = vadd.f32 %v1771_v36, %v1603_v24  ;;  %v1605_v55 = vpop.f32.mrf.mxu1  ;;  %v2256_v47 = vpop.f32.mrf.mxu0  ;;  %v7456_v24 = vld [vmem:[#allocation43_spill] sm:$0xff] }
 0x2a3   :  { %v1606_v14 = vadd.f32 %v1605_v55, %v7454_v57  ;;  %v7459_v55 = vld [vmem:[#allocation11_spill] sm:$0xff] }
 0x2a4   :  { %v2085_v23 = vadd.f32 %v2084_v58, %v1772_v30  ;;  %v4353_v57 = vld [vmem:[%s6997_s0 + $0x10] sm:$0xff]  }
 0x2a5   :  { %2304 = vmatmul.bf16.vlgmr.msra.gmra.mxu1 %v7451_v5  ;;  %3004 = vmatmul.bf16.vlgmr.msra.gmra.mxu0 %v7451_v5 }
 0x2a6   :  { %2666 = vmatmul.bf16.vlgmr.msra.gmra.mxu2 %v7452_v50  ;;  %2835 = vmatmul.bf16.vlgmr.msra.gmra.mxu3 %v4352_v6  ;;  %v5722_v0 = vadd.f32 %v2253_v11, %v2085_v23  ;;  %v7457_v11 = vld [vmem:[#allocation39_spill] sm:$0xff]  ;;  %v7458_v23 = vld [vmem:[#allocation49_spill] sm:$0xff] }
 0x2a8   :  { %7453 = vst [vmem:[#allocation81_spill] sm:$0xff] %v5722_v0 }
 0x2a9   :  { %v1774_v53 = vpop.f32.mrf.mxu2  ;;  %v2087_v56 = vpop.f32.mrf.mxu3 }
 0x2aa   :  { %v1775_v48 = vadd.f32 %v1774_v53, %v1606_v14  ;;  %v1607_v49 = vpop.f32.mrf.mxu1  ;;  %v2258_v51 = vpop.f32.mrf.mxu0  ;;  %v7461_v14 = vld [vmem:[#allocation46_spill] sm:$0xff] }
 0x2ab   :  { %v1608_v36 = vadd.f32 %v1607_v49, %v7456_v24 }
 0x2ac   :  { %v2088_v29 = vadd.f32 %v2087_v56, %v1775_v48 }
 0x2ae   :  { %v5725_v40 = vadd.f32 %v2256_v47, %v2088_v29 }
 0x2b0   :  { %7455 = vst [vmem:[#allocation32_spill] sm:$0xff] %v5725_v40 }
 0x2b1   :  { %v1776_v58 = vpop.f32.mrf.mxu2  ;;  %v2089_v30 = vpop.f32.mrf.mxu3 }
 0x2b2   :  { %v1777_v50 = vadd.f32 %v1776_v58, %v1608_v36  ;;  %v1610_v62 = vpop.f32.mrf.mxu1  ;;  %v2261_v28 = vpop.f32.mrf.mxu0 }
 0x2b3   :  { %v1611_v53 = vadd.f32 %v1610_v62, %v7461_v14  ;;  %v7465_v62 = vld [vmem:[#allocation15_spill] sm:$0xff] }
 0x2b4   :  { %v2090_v6 = vadd.f32 %v2089_v30, %v1777_v50  ;;  %v7463_v30 = vld [vmem:[#allocation48_spill] sm:$0xff]  ;;  %v7467_v14 = vld [vmem:[#allocation51_spill] sm:$0xff] }
 0x2b5   :  { %2309 = vmatmul.bf16.gmra.mxu1 %v7457_v11  ;;  %3009 = vmatmul.bf16.gmra.mxu0 %v7458_v23 }
 0x2b6   :  { %2671 = vmatmul.bf16.gmra.mxu2 %v7459_v55  ;;  %2840 = vmatmul.bf16.gmra.mxu3 %v4353_v57  ;;  %v5734_v47 = vadd.f32 %v2258_v51, %v2090_v6  ;;  %v7464_v51 = vld [vmem:[#allocation56_spill] sm:$0xff] }
 0x2b7   :  { %v4354_v6 = vld [vmem:[%s6997_s0 + $0x18] sm:$0xff]  }
 0x2b8   :  { %7460 = vst [vmem:[#allocation85_spill] sm:$0xff] %v5734_v47 }
 0x2b9   :  { %v1779_v56 = vpop.f32.mrf.mxu2  ;;  %v2092_v48 = vpop.f32.mrf.mxu3 }
 0x2ba   :  { %v1780_v49 = vadd.f32 %v1779_v56, %v1611_v53  ;;  %v1612_v29 = vpop.f32.mrf.mxu1  ;;  %v2263_v24 = vpop.f32.mrf.mxu0 }
 0x2bb   :  { %v1613_v50 = vadd.f32 %v1612_v29, %v7463_v30  ;;  %v7469_v30 = vld [vmem:[#allocation54_spill] sm:$0xff] }
 0x2bc   :  { %v2093_v36 = vadd.f32 %v2092_v48, %v1780_v49 }
 0x2be   :  { %v5737_v58 = vadd.f32 %v2261_v28, %v2093_v36 }
 0x2c0   :  { %7462 = vst [vmem:[#allocation88_spill] sm:$0xff] %v5737_v58 }
 0x2c1   :  { %v1781_v11 = vpop.f32.mrf.mxu2  ;;  %v2094_v55 = vpop.f32.mrf.mxu3 }
 0x2c2   :  { %v1782_v40 = vadd.f32 %v1781_v11, %v1613_v50  ;;  %v1615_v0 = vpop.f32.mrf.mxu1  ;;  %v2266_v37 = vpop.f32.mrf.mxu0 }
 0x2c3   :  { %v1616_v53 = vadd.f32 %v1615_v0, %v7467_v14  ;;  %v7471_v0 = vld [vmem:[#allocation20_spill] sm:$0xff]  ;;  %v7473_v14 = vld [vmem:[#allocation58_spill] sm:$0xff] }
 0x2c4   :  { %v2095_v57 = vadd.f32 %v2094_v55, %v1782_v40 }
 0x2c5   :  { %2314 = vmatmul.bf16.gmra.mxu1 %v7451_v5  ;;  %3014 = vmatmul.bf16.gmra.mxu0 %v7464_v51 }
 0x2c6   :  { %2676 = vmatmul.bf16.gmra.mxu2 %v7465_v62  ;;  %2845 = vmatmul.bf16.gmra.mxu3 %v4354_v6  ;;  %v5746_v28 = vadd.f32 %v2263_v24, %v2095_v57  ;;  %v7470_v24 = vld [vmem:[#allocation63_spill] sm:$0xff]  ;;  %v4355_v57 = vld [vmem:[%s6997_s0 + $0x20] sm:$0xff]  }
 0x2c8   :  { %7466 = vst [vmem:[#allocation44_spill] sm:$0xff] %v5746_v28 }
 0x2c9   :  { %v1784_v56 = vpop.f32.mrf.mxu2  ;;  %v2097_v48 = vpop.f32.mrf.mxu3 }
 0x2ca   :  { %v1785_v49 = vadd.f32 %v1784_v56, %v1616_v53  ;;  %v1617_v29 = vpop.f32.mrf.mxu1  ;;  %v2268_v40 = vpop.f32.mrf.mxu0 }
 0x2cb   :  { %v1618_v50 = vadd.f32 %v1617_v29, %v7469_v30 }
 0x2cc   :  { %v2098_v36 = vadd.f32 %v2097_v48, %v1785_v49 }
 0x2ce   :  { %v5749_v5 = vadd.f32 %v2266_v37, %v2098_v36 }
 0x2d0   :  { %7468 = vst [vmem:[#allocation8_spill] sm:$0xff] %v5749_v5 }
 0x2d1   :  { %v1786_v11 = vpop.f32.mrf.mxu2  ;;  %v2099_v55 = vpop.f32.mrf.mxu3 }
 0x2d2   :  { %v1787_v62 = vadd.f32 %v1786_v11, %v1618_v50  ;;  %v1620_v58 = vpop.f32.mrf.mxu1  ;;  %v2271_v47 = vpop.f32.mrf.mxu0  ;;  %v7475_v50 = vld [vmem:[#allocation61_spill] sm:$0xff] }
 0x2d3   :  { %v1621_v53 = vadd.f32 %v1620_v58, %v7473_v14  ;;  %v7477_v58 = vld [vmem:[#allocation25_spill] sm:$0xff] }
 0x2d4   :  { %v2100_v6 = vadd.f32 %v2099_v55, %v1787_v62  ;;  %v7479_v14 = vld [vmem:[#allocation65_spill] sm:$0xff] }
 0x2d5   :  { %2319 = vmatmul.bf16.gmra.mxu1 %v7458_v23  ;;  %3019 = vmatmul.bf16.gmra.mxu0 %v7470_v24 }
 0x2d6   :  { %2681 = vmatmul.bf16.gmra.mxu2 %v7471_v0  ;;  %2850 = vmatmul.bf16.gmra.mxu3 %v4355_v57  ;;  %v5758_v37 = vadd.f32 %v2268_v40, %v2100_v6  ;;  %v7476_v40 = vld [vmem:[#allocation70_spill] sm:$0xff] }
 0x2d7   :  { %v4356_v6 = vld [vmem:[%s6997_s0 + $0x28] sm:$0xff]  }
 0x2d8   :  { %7472 = vst [vmem:[#allocation41_spill] sm:$0xff] %v5758_v37 }
 0x2d9   :  { %v1789_v56 = vpop.f32.mrf.mxu2  ;;  %v2102_v48 = vpop.f32.mrf.mxu3 }
 0x2da   :  { %v1790_v49 = vadd.f32 %v1789_v56, %v1621_v53  ;;  %v1622_v29 = vpop.f32.mrf.mxu1  ;;  %v2273_v36 = vpop.f32.mrf.mxu0 }
 0x2db   :  { %v1623_v11 = vadd.f32 %v1622_v29, %v7475_v50 }
 0x2dc   :  { %v2103_v30 = vadd.f32 %v2102_v48, %v1790_v49 }
 0x2de   :  { %v5761_v23 = vadd.f32 %v2271_v47, %v2103_v30 }
 0x2e0   :  { %7474 = vst [vmem:[#allocation43_spill] sm:$0xff] %v5761_v23 }
 0x2e1   :  { %v1791_v55 = vpop.f32.mrf.mxu2  ;;  %v2104_v62 = vpop.f32.mrf.mxu3 }
 0x2e2   :  { %v1792_v0 = vadd.f32 %v1791_v55, %v1623_v11  ;;  %v1625_v5 = vpop.f32.mrf.mxu1  ;;  %v2276_v28 = vpop.f32.mrf.mxu0  ;;  %v7481_v11 = vld [vmem:[#allocation68_spill] sm:$0xff] }
 0x2e3   :  { %v1626_v53 = vadd.f32 %v1625_v5, %v7479_v14  ;;  %v7483_v5 = vld [vmem:[#allocation30_spill] sm:$0xff]  ;;  %v7485_v14 = vld [vmem:[#allocation72_spill] sm:$0xff] }
 0x2e4   :  { %v2105_v57 = vadd.f32 %v2104_v62, %v1792_v0 }
 0x2e5   :  { %2324 = vmatmul.bf16.gmra.mxu1 %v7464_v51  ;;  %3024 = vmatmul.bf16.gmra.mxu0 %v7476_v40 }
 0x2e6   :  { %2686 = vmatmul.bf16.gmra.mxu2 %v7477_v58  ;;  %2855 = vmatmul.bf16.gmra.mxu3 %v4356_v6  ;;  %v5770_v47 = vadd.f32 %v2273_v36, %v2105_v57  ;;  %v7482_v36 = vld [vmem:[#allocation77_spill] sm:$0xff]  ;;  %v4357_v57 = vld [vmem:[%s6997_s0 + $0x30] sm:$0xff]  }
 0x2e8   :  { %7478 = vst [vmem:[#allocation39_spill] sm:$0xff] %v5770_v47 }
 0x2e9   :  { %v1794_v56 = vpop.f32.mrf.mxu2  ;;  %v2107_v48 = vpop.f32.mrf.mxu3 }
 0x2ea   :  { %v1795_v49 = vadd.f32 %v1794_v56, %v1626_v53  ;;  %v1627_v29 = vpop.f32.mrf.mxu1  ;;  %v2278_v30 = vpop.f32.mrf.mxu0 }
 0x2eb   :  { %v1628_v55 = vadd.f32 %v1627_v29, %v7481_v11 }
 0x2ec   :  { %v2108_v50 = vadd.f32 %v2107_v48, %v1795_v49 }
 0x2ee   :  { %v5773_v51 = vadd.f32 %v2276_v28, %v2108_v50 }
 0x2f0   :  { %7480 = vst [vmem:[#allocation49_spill] sm:$0xff] %v5773_v51 }
 0x2f1   :  { %v1796_v62 = vpop.f32.mrf.mxu2  ;;  %v2109_v0 = vpop.f32.mrf.mxu3 }
 0x2f2   :  { %v1797_v58 = vadd.f32 %v1796_v62, %v1628_v55  ;;  %v1630_v23 = vpop.f32.mrf.mxu1  ;;  %v2281_v37 = vpop.f32.mrf.mxu0  ;;  %v7487_v55 = vld [vmem:[#allocation75_spill] sm:$0xff] }
 0x2f3   :  { %v1631_v53 = vadd.f32 %v1630_v23, %v7485_v14  ;;  %v7489_v23 = vld [vmem:[#allocation35_spill] sm:$0xff] }
 0x2f4   :  { %v2110_v6 = vadd.f32 %v2109_v0, %v1797_v58  ;;  %v7491_v14 = vld [vmem:[#allocation79_spill] sm:$0xff] }
 0x2f5   :  { %2329 = vmatmul.bf16.gmra.mxu1 %v7470_v24  ;;  %3029 = vmatmul.bf16.gmra.mxu0 %v7482_v36 }
 0x2f6   :  { %2691 = vmatmul.bf16.gmra.mxu2 %v7483_v5  ;;  %2860 = vmatmul.bf16.gmra.mxu3 %v4357_v57  ;;  %v5782_v28 = vadd.f32 %v2278_v30, %v2110_v6  ;;  %v7488_v30 = vld [vmem:[#allocation84_spill] sm:$0xff] }
 0x2f7   :  { %v4358_v6 = vld [vmem:[%s6997_s0 + $0x38] sm:$0xff]  }
 0x2f8   :  { %7484 = vst [vmem:[#allocation11_spill] sm:$0xff] %v5782_v28 }
 0x2f9   :  { %v1799_v56 = vpop.f32.mrf.mxu2  ;;  %v2112_v48 = vpop.f32.mrf.mxu3 }
 0x2fa   :  { %v1800_v49 = vadd.f32 %v1799_v56, %v1631_v53  ;;  %v1632_v29 = vpop.f32.mrf.mxu1  ;;  %v2283_v50 = vpop.f32.mrf.mxu0 }
 0x2fb   :  { %v1633_v62 = vadd.f32 %v1632_v29, %v7487_v55 }
 0x2fc   :  { %v2113_v11 = vadd.f32 %v2112_v48, %v1800_v49 }
 0x2fe   :  { %v5785_v24 = vadd.f32 %v2281_v37, %v2113_v11 }
 0x300   :  { %7486 = vst [vmem:[#allocation46_spill] sm:$0xff] %v5785_v24 }
 0x301   :  { %v1801_v0 = vpop.f32.mrf.mxu2  ;;  %v2114_v58 = vpop.f32.mrf.mxu3 }
 0x302   :  { %v1802_v5 = vadd.f32 %v1801_v0, %v1633_v62  ;;  %v1635_v51 = vpop.f32.mrf.mxu1  ;;  %v2286_v47 = vpop.f32.mrf.mxu0  ;;  %v7493_v62 = vld [vmem:[#allocation82_spill] sm:$0xff] }
 0x303   :  { %v1636_v53 = vadd.f32 %v1635_v51, %v7491_v14  ;;  %v4359_v51 = vld [vmem:[%s6997_s0 + $0x40] sm:$0xff]  }
 0x304   :  { %v2115_v57 = vadd.f32 %v2114_v58, %v1802_v5 }
 0x305   :  { %2334 = vmatmul.bf16.gmra.mxu1 %v7476_v40  ;;  %3034 = vmatmul.bf16.gmra.mxu0 %v7488_v30 }
 0x306   :  { %2696 = vmatmul.bf16.gmra.mxu2 %v7489_v23  ;;  %2865 = vmatmul.bf16.gmra.mxu3 %v4358_v6  ;;  %v5794_v37 = vadd.f32 %v2283_v50, %v2115_v57  ;;  %v7494_v50 = vld [vmem:[#allocation90_spill] sm:$0xff] }
 0x307   :  { %v7496_v57 = vld [vmem:[#allocation86_spill] sm:$0xff] }
 0x308   :  { %7490 = vst [vmem:[#allocation48_spill] sm:$0xff] %v5794_v37 }
 0x309   :  { %v1804_v56 = vpop.f32.mrf.mxu2  ;;  %v2117_v48 = vpop.f32.mrf.mxu3 }
 0x30a   :  { %v1805_v49 = vadd.f32 %v1804_v56, %v1636_v53  ;;  %v1637_v29 = vpop.f32.mrf.mxu1  ;;  %v2288_v11 = vpop.f32.mrf.mxu0 }
 0x30b   :  { %v1638_v0 = vadd.f32 %v1637_v29, %v7493_v62  ;;  %v7498_v62 = vld [vmem:[#allocation89_spill] sm:$0xff] }
 0x30c   :  { %v2118_v55 = vadd.f32 %v2117_v48, %v1805_v49 }
 0x30e   :  { %v5797_v40 = vadd.f32 %v2286_v47, %v2118_v55 }
 0x310   :  { %7492 = vst [vmem:[#allocation56_spill] sm:$0xff] %v5797_v40 }
 0x311   :  { %v1806_v58 = vpop.f32.mrf.mxu2  ;;  %v2119_v5 = vpop.f32.mrf.mxu3 }
 0x312   :  { %v1807_v23 = vadd.f32 %v1806_v58, %v1638_v0  ;;  %v1640_v24 = vpop.f32.mrf.mxu1  ;;  %v2291_v28 = vpop.f32.mrf.mxu0 }
 0x313   :  { %v1641_v14 = vadd.f32 %v1640_v24, %v7496_v57 }
 0x314   :  { %v2120_v6 = vadd.f32 %v2119_v5, %v1807_v23 }
 0x315   :  { %2339 = vmatmul.bf16.gmra.mxu1 %v7482_v36  ;;  %3039 = vmatmul.bf16.gmra.mxu0 %v7494_v50 }
 0x316   :  { %2701 = vmatmul.bf16.gmra.mxu2 %v4502_v44  ;;  %2870 = vmatmul.bf16.gmra.mxu3 %v4359_v51  ;;  %v5806_v47 = vadd.f32 %v2288_v11, %v2120_v6 }
 0x318   :  { %7495 = vst [vmem:[#allocation15_spill] sm:$0xff] %v5806_v47 }
 0x319   :  { %v1809_v53 = vpop.f32.mrf.mxu2  ;;  %v2122_v56 = vpop.f32.mrf.mxu3 }
 0x31a   :  { %v1810_v48 = vadd.f32 %v1809_v53, %v1641_v14  ;;  %v1642_v49 = vpop.f32.mrf.mxu1  ;;  %v2293_v29 = vpop.f32.mrf.mxu0 }
 0x31b   :  { %v1643_v0 = vadd.f32 %v1642_v49, %v7498_v62 }
 0x31c   :  { %v2123_v55 = vadd.f32 %v2122_v56, %v1810_v48 }
 0x31e   :  { %v5809_v36 = vadd.f32 %v2291_v28, %v2123_v55  ;;  %v4360_v28 = vld [vmem:[%s6997_s0 + $0x48] sm:$0xff]  }
 0x320   :  { %7497 = vst [vmem:[#allocation51_spill] sm:$0xff] %v5809_v36 }
 0x321   :  { %v1811_v44 = vpop.f32.mrf.mxu2  ;;  %v2124_v58 = vpop.f32.mrf.mxu3 }
 0x322   :  { %v1812_v5 = vadd.f32 %v1811_v44, %v1643_v0  ;;  %v2305_v23 = vpop.f32.mrf.mxu1  ;;  %v3005_v40 = vpop.f32.mrf.mxu0 }
 0x323   :  { %v2306_v11 = vadd.f32 %v2305_v23, %v5248_v8 }
 0x324   :  { %v2125_v6 = vadd.f32 %v2124_v58, %v1812_v5 }
 0x325   :  { %2344 = vmatmul.bf16.gmra.mxu1 %v7488_v30  ;;  %3044 = vmatmul.bf16.gmra.mxu0 %v5255_v32 }
 0x326   :  { %2706 = vmatmul.bf16.gmra.mxu2 %v4570_v39  ;;  %2875 = vmatmul.bf16.gmra.mxu3 %v4360_v28  ;;  %v5819_v24 = vadd.f32 %v2293_v29, %v2125_v6 }
 0x328   :  { %7499 = vst [vmem:[#allocation54_spill] sm:$0xff] %v5819_v24 }
 0x329   :  { %v2667_v51 = vpop.f32.mrf.mxu2  ;;  %v2836_v57 = vpop.f32.mrf.mxu3 }
 0x32a   :  { %v2837_v14 = vadd.f32 %v2836_v57, %v2667_v51  ;;  %v2307_v53 = vpop.f32.mrf.mxu1  ;;  %v3007_v56 = vpop.f32.mrf.mxu0 }
 0x32b   :  { %v2308_v8 = vadd.f32 %v2307_v53, %v5260_v46  ;;  %v4361_v46 = vld [vmem:[%s6997_s0 + $0x50] sm:$0xff]  }
 0x32c   :  { %v3006_v48 = vadd.f32 %v3005_v40, %v2837_v14 }
 0x32e   :  { %v5822_v30 = vadd.f32 %v3006_v48, %v2306_v11 }
 0x331   :  { %v2669_v49 = vpop.f32.mrf.mxu2  ;;  %v2838_v55 = vpop.f32.mrf.mxu3 }
 0x332   :  { %v2839_v39 = vadd.f32 %v2838_v55, %v2669_v49  ;;  %v2310_v62 = vpop.f32.mrf.mxu1  ;;  %v3010_v0 = vpop.f32.mrf.mxu0 }
 0x333   :  { %v2311_v44 = vadd.f32 %v2310_v62, %v5265_v13 }
 0x334   :  { %v3008_v58 = vadd.f32 %v3007_v56, %v2839_v39 }
 0x335   :  { %2349 = vmatmul.bf16.gmra.mxu1 %v7494_v50  ;;  %3049 = vmatmul.bf16.gmra.mxu0 %v5272_v9 }
 0x336   :  { %v5827_v29 = vadd.f32 %v3008_v58, %v2308_v8  ;;  %2711 = vmatmul.bf16.gmra.mxu2 %v4638_v3  ;;  %2880 = vmatmul.bf16.gmra.mxu3 %v4361_v46 }
 0x338   :  { %7500 = vst [vmem:[#allocation63_spill] sm:$0xff] %v5827_v29 }
 0x339   :  { %v2672_v40 = vpop.f32.mrf.mxu2  ;;  %v2841_v5 = vpop.f32.mrf.mxu3 }
 0x33a   :  { %v2842_v23 = vadd.f32 %v2841_v5, %v2672_v40  ;;  %v2312_v11 = vpop.f32.mrf.mxu1  ;;  %v3012_v6 = vpop.f32.mrf.mxu0 }
 0x33b   :  { %v2313_v13 = vadd.f32 %v2312_v11, %v5280_v45  ;;  %v4362_v45 = vld [vmem:[%s6997_s0 + $0x58] sm:$0xff]  }
 0x33c   :  { %v3011_v28 = vadd.f32 %v3010_v0, %v2842_v23 }
 0x33e   :  { %v5834_v50 = vadd.f32 %v3011_v28, %v2311_v44 }
 0x341   :  { %v2674_v51 = vpop.f32.mrf.mxu2  ;;  %v2843_v57 = vpop.f32.mrf.mxu3 }
 0x342   :  { %v2844_v14 = vadd.f32 %v2843_v57, %v2674_v51  ;;  %v2315_v53 = vpop.f32.mrf.mxu1  ;;  %v3015_v3 = vpop.f32.mrf.mxu0 }
 0x343   :  { %v2316_v56 = vadd.f32 %v2315_v53, %v5285_v16 }
 0x344   :  { %v3013_v8 = vadd.f32 %v3012_v6, %v2844_v14 }
 0x345   :  { %2354 = vmatmul.bf16.gmra.mxu1 %v5255_v32  ;;  %3054 = vmatmul.bf16.gmra.mxu0 %v5292_v54 }
 0x346   :  { %v5839_v48 = vadd.f32 %v3013_v8, %v2313_v13  ;;  %2716 = vmatmul.bf16.gmra.mxu2 %v4706_v33  ;;  %2885 = vmatmul.bf16.gmra.mxu3 %v4362_v45 }
 0x349   :  { %v2677_v49 = vpop.f32.mrf.mxu2  ;;  %v2846_v55 = vpop.f32.mrf.mxu3 }
 0x34a   :  { %v2847_v39 = vadd.f32 %v2846_v55, %v2677_v49  ;;  %v2317_v62 = vpop.f32.mrf.mxu1  ;;  %v3017_v0 = vpop.f32.mrf.mxu0 }
 0x34b   :  { %v2318_v16 = vadd.f32 %v2317_v62, %v5300_v18  ;;  %v4363_v18 = vld [vmem:[%s6997_s0 + $0x60] sm:$0xff]  }
 0x34c   :  { %v3016_v44 = vadd.f32 %v3015_v3, %v2847_v39 }
 0x34e   :  { %v5846_v32 = vadd.f32 %v3016_v44, %v2316_v56 }
 0x350   :  { %7501 = vst [vmem:[#allocation20_spill] sm:$0xff] %v5846_v32 }
 0x351   :  { %v2679_v58 = vpop.f32.mrf.mxu2  ;;  %v2848_v46 = vpop.f32.mrf.mxu3 }
 0x352   :  { %v2849_v40 = vadd.f32 %v2848_v46, %v2679_v58  ;;  %v2320_v5 = vpop.f32.mrf.mxu1  ;;  %v3020_v33 = vpop.f32.mrf.mxu0 }
 0x353   :  { %v2321_v23 = vadd.f32 %v2320_v5, %v5305_v41 }
 0x354   :  { %v3018_v11 = vadd.f32 %v3017_v0, %v2849_v40 }
 0x355   :  { %2359 = vmatmul.bf16.gmra.mxu1 %v5272_v9  ;;  %3059 = vmatmul.bf16.gmra.mxu0 %v5312_v17 }
 0x356   :  { %v5851_v6 = vadd.f32 %v3018_v11, %v2318_v16  ;;  %2721 = vmatmul.bf16.gmra.mxu2 %v4774_v63  ;;  %2890 = vmatmul.bf16.gmra.mxu3 %v4363_v18 }
 0x359   :  { %v2682_v13 = vpop.f32.mrf.mxu2  ;;  %v2851_v28 = vpop.f32.mrf.mxu3 }
 0x35a   :  { %v2852_v51 = vadd.f32 %v2851_v28, %v2682_v13  ;;  %v2322_v57 = vpop.f32.mrf.mxu1  ;;  %v3022_v14 = vpop.f32.mrf.mxu0 }
 0x35b   :  { %v2323_v41 = vadd.f32 %v2322_v57, %v5318_v43  ;;  %v4364_v43 = vld [vmem:[%s6997_s0 + $0x68] sm:$0xff]  }
 0x35c   :  { %v3021_v53 = vadd.f32 %v3020_v33, %v2852_v51 }
 0x35e   :  { %v5858_v9 = vadd.f32 %v3021_v53, %v2321_v23 }
 0x361   :  { %v2684_v3 = vpop.f32.mrf.mxu2  ;;  %v2853_v56 = vpop.f32.mrf.mxu3 }
 0x362   :  { %v2854_v8 = vadd.f32 %v2853_v56, %v2684_v3  ;;  %v2325_v45 = vpop.f32.mrf.mxu1  ;;  %v3025_v63 = vpop.f32.mrf.mxu0 }
 0x363   :  { %v2326_v49 = vadd.f32 %v2325_v45, %v5323_v12 }
 0x364   :  { %v3023_v55 = vadd.f32 %v3022_v14, %v2854_v8 }
 0x365   :  { %2364 = vmatmul.bf16.gmra.mxu1 %v5292_v54  ;;  %3064 = vmatmul.bf16.gmra.mxu0 %v5330_v1 }
 0x366   :  { %v5863_v39 = vadd.f32 %v3023_v55, %v2323_v41  ;;  %2726 = vmatmul.bf16.gmra.mxu2 %v4842_v25  ;;  %2895 = vmatmul.bf16.gmra.mxu3 %v4364_v43 }
 0x369   :  { %v2687_v62 = vpop.f32.mrf.mxu2  ;;  %v2856_v0 = vpop.f32.mrf.mxu3 }
 0x36a   :  { %v2857_v16 = vadd.f32 %v2856_v0, %v2687_v62  ;;  %v2327_v44 = vpop.f32.mrf.mxu1  ;;  %v3027_v58 = vpop.f32.mrf.mxu0  ;;  %v7503_v62 = vld [vmem:[#allocation36_spill] sm:$0xff] }
 0x36b   :  { %v2328_v12 = vadd.f32 %v2327_v44, %v5339_v22  ;;  %v4365_v22 = vld [vmem:[%s6997_s0 + $0x70] sm:$0xff]  }
 0x36c   :  { %v3026_v46 = vadd.f32 %v3025_v63, %v2857_v16 }
 0x36e   :  { %v5870_v54 = vadd.f32 %v3026_v46, %v2326_v49 }
 0x370   :  { %7502 = vst [vmem:[#allocation58_spill] sm:$0xff] %v5870_v54 }
 0x371   :  { %v2689_v40 = vpop.f32.mrf.mxu2  ;;  %v2858_v5 = vpop.f32.mrf.mxu3 }
 0x372   :  { %v2859_v33 = vadd.f32 %v2858_v5, %v2689_v40  ;;  %v2330_v23 = vpop.f32.mrf.mxu1  ;;  %v3030_v25 = vpop.f32.mrf.mxu0 }
 0x373   :  { %v2331_v11 = vadd.f32 %v2330_v23, %v5344_v60 }
 0x374   :  { %v3028_v18 = vadd.f32 %v3027_v58, %v2859_v33 }
 0x375   :  { %2369 = vmatmul.bf16.gmra.mxu1 %v5312_v17  ;;  %3069 = vmatmul.bf16.gmra.mxu0 %v5351_v26 }
 0x376   :  { %v5875_v13 = vadd.f32 %v3028_v18, %v2328_v12  ;;  %2731 = vmatmul.bf16.gmra.mxu2 %v4910_v10  ;;  %2900 = vmatmul.bf16.gmra.mxu3 %v4365_v22 }
 0x379   :  { %v2692_v28 = vpop.f32.mrf.mxu2  ;;  %v2861_v51 = vpop.f32.mrf.mxu3 }
 0x37a   :  { %v2862_v57 = vadd.f32 %v2861_v51, %v2692_v28  ;;  %v2332_v14 = vpop.f32.mrf.mxu1  ;;  %v3032_v41 = vpop.f32.mrf.mxu0 }
 0x37b   :  { %v2333_v60 = vadd.f32 %v2332_v14, %v5358_v34  ;;  %v4366_v34 = vld [vmem:[%s6997_s0 + $0x78] sm:$0xff]  }
 0x37c   :  { %v3031_v53 = vadd.f32 %v3030_v25, %v2862_v57 }
 0x37e   :  { %v5882_v17 = vadd.f32 %v3031_v53, %v2331_v11 }
 0x381   :  { %v2694_v3 = vpop.f32.mrf.mxu2  ;;  %v2863_v56 = vpop.f32.mrf.mxu3 }
 0x382   :  { %v2864_v8 = vadd.f32 %v2863_v56, %v2694_v3  ;;  %v2335_v45 = vpop.f32.mrf.mxu1  ;;  %v3035_v63 = vpop.f32.mrf.mxu0 }
 0x383   :  { %v2336_v49 = vadd.f32 %v2335_v45, %v5363_v4 }
 0x384   :  { %v3033_v55 = vadd.f32 %v3032_v41, %v2864_v8 }
 0x385   :  { %2374 = vmatmul.bf16.gmra.mxu1 %v5330_v1  ;;  %3074 = vmatmul.bf16.gmra.mxu0 %v5370_v19 }
 0x386   :  { %v5887_v43 = vadd.f32 %v3033_v55, %v2333_v60  ;;  %2736 = vmatmul.bf16.gmra.mxu2 %v7503_v62  ;;  %2905 = vmatmul.bf16.gmra.mxu3 %v4366_v34 }
 0x389   :  { %v2697_v0 = vpop.f32.mrf.mxu2  ;;  %v2866_v16 = vpop.f32.mrf.mxu3 }
 0x38a   :  { %v2867_v44 = vadd.f32 %v2866_v16, %v2697_v0  ;;  %v2337_v58 = vpop.f32.mrf.mxu1  ;;  %v3037_v12 = vpop.f32.mrf.mxu0 }
 0x38b   :  { %v2338_v4 = vadd.f32 %v2337_v58, %v5379_v52 }
 0x38c   :  { %v3036_v46 = vadd.f32 %v3035_v63, %v2867_v44 }
 0x38e   :  { %v5894_v1 = vadd.f32 %v3036_v46, %v2336_v49 }
 0x390   :  { %7504 = vst [vmem:[#allocation61_spill] sm:$0xff] %v5894_v1 }
 0x391   :  { %v2699_v19 = vpop.f32.mrf.mxu2  ;;  %v2868_v40 = vpop.f32.mrf.mxu3 }
 0x392   :  { %v2869_v5 = vadd.f32 %v2868_v40, %v2699_v19  ;;  %v2340_v33 = vpop.f32.mrf.mxu1  ;;  %v3040_v23 = vpop.f32.mrf.mxu0 }
 0x393   :  { %v2341_v25 = vadd.f32 %v2340_v33, %v5384_v20 }
 0x394   :  { %v3038_v11 = vadd.f32 %v3037_v12, %v2869_v5  ;;  %v7507_v5 = vld [vmem:[#allocation12_spill] sm:$0xff] }
 0x395   :  { %2379 = vmatmul.bf16.gmra.mxu1 %v5351_v26  ;;  %3079 = vmatmul.bf16.gmra.mxu0 %v5351_v26 }
 0x396   :  { %v5899_v18 = vadd.f32 %v3038_v11, %v2338_v4  ;;  %2741 = vmatmul.bf16.gmra.mxu2 %v4910_v10  ;;  %2910 = vmatmul.bf16.gmra.mxu3 %v4365_v22 }
 0x399   :  { %v2702_v52 = vpop.f32.mrf.mxu2  ;;  %v2871_v28 = vpop.f32.mrf.mxu3 }
 0x39a   :  { %v2872_v51 = vadd.f32 %v2871_v28, %v2702_v52  ;;  %v2342_v57 = vpop.f32.mrf.mxu1  ;;  %v3042_v14 = vpop.f32.mrf.mxu0 }
 0x39b   :  { %v2343_v41 = vadd.f32 %v2342_v57, %v5398_v7  ;;  %v4367_v7 = vld [vmem:[%s6997_s0 + $0x88] sm:$0xff]  }
 0x39c   :  { %v3041_v60 = vadd.f32 %v3040_v23, %v2872_v51 }
 0x39e   :  { %v5903_v53 = vadd.f32 %v3041_v60, %v2341_v25 }
 0x3a1   :  { %v2704_v20 = vpop.f32.mrf.mxu2  ;;  %v2873_v3 = vpop.f32.mrf.mxu3 }
 0x3a2   :  { %v2874_v56 = vadd.f32 %v2873_v3, %v2704_v20  ;;  %v2345_v8 = vpop.f32.mrf.mxu1  ;;  %v3045_v26 = vpop.f32.mrf.mxu0  ;;  %v7510_v3 = vld [vmem:[#allocation92_spill] sm:$0xff] }
 0x3a3   :  { %v2346_v45 = vadd.f32 %v2345_v8, %v5403_v38 }
 0x3a4   :  { %v3043_v63 = vadd.f32 %v3042_v14, %v2874_v56 }
 0x3a5   :  { %2384 = vmatmul.bf16.gmra.mxu1 %v5410_v2  ;;  %3084 = vmatmul.bf16.gmra.mxu0 %v5410_v2 }
 0x3a6   :  { %v5908_v10 = vadd.f32 %v3043_v63, %v2343_v41  ;;  %2746 = vmatmul.bf16.gmra.mxu2 %v4584_v42  ;;  %2915 = vmatmul.bf16.gmra.mxu3 %v4367_v7  ;;  %v7513_v63 = vld [vmem:[#allocation16_spill] sm:$0xff] }
 0x3a7   :  { %v4369_v7 = vld [vmem:[%s6997_s0 + $0x98] sm:$0xff]  }
 0x3a9   :  { %v2707_v22 = vpop.f32.mrf.mxu2  ;;  %v2876_v49 = vpop.f32.mrf.mxu3 }
 0x3aa   :  { %v2877_v55 = vadd.f32 %v2876_v49, %v2707_v22  ;;  %v2347_v62 = vpop.f32.mrf.mxu1  ;;  %v3047_v34 = vpop.f32.mrf.mxu0 }
 0x3ab   :  { %v2348_v38 = vadd.f32 %v2347_v62, %v5420_v61  ;;  %v4368_v61 = vld [vmem:[%s6997_s0 + $0x90] sm:$0xff]  }
 0x3ac   :  { %v3046_v0 = vadd.f32 %v3045_v26, %v2877_v55  ;;  %v7511_v26 = vld [vmem:[#allocation52_spill] sm:$0xff] }
 0x3ae   :  { %v5915_v16 = vadd.f32 %v3046_v0, %v2346_v45 }
 0x3b0   :  { %7505 = vst [vmem:[#allocation70_spill] sm:$0xff] %v5915_v16 }
 0x3b1   :  { %v2709_v44 = vpop.f32.mrf.mxu2  ;;  %v2878_v58 = vpop.f32.mrf.mxu3 }
 0x3b2   :  { %v2879_v12 = vadd.f32 %v2878_v58, %v2709_v44  ;;  %v2350_v4 = vpop.f32.mrf.mxu1  ;;  %v3050_v42 = vpop.f32.mrf.mxu0 }
 0x3b3   :  { %v2351_v46 = vadd.f32 %v2350_v4, %v5425_v59  ;;  %v7508_v59 = vld [vmem:[#allocation91_spill] sm:$0xff] }
 0x3b4   :  { %v3048_v19 = vadd.f32 %v3047_v34, %v2879_v12 }
 0x3b5   :  { %2389 = vmatmul.bf16.gmra.mxu1 %v5391_v21  ;;  %3089 = vmatmul.bf16.gmra.mxu0 %v5432_v35 }
 0x3b6   :  { %v5920_v40 = vadd.f32 %v3048_v19, %v2348_v38  ;;  %2751 = vmatmul.bf16.gmra.mxu2 %v7507_v5  ;;  %2920 = vmatmul.bf16.gmra.mxu3 %v4368_v61  ;;  %v7514_v38 = vld [vmem:[#allocation93_spill] sm:$0xff]  ;;  %v7516_v19 = vld [vmem:[#allocation55_spill] sm:$0xff] }
 0x3b8   :  { %7506 = vst [vmem:[#allocation25_spill] sm:$0xff] %v5920_v40 }
 0x3b9   :  { %v2712_v33 = vpop.f32.mrf.mxu2  ;;  %v2881_v23 = vpop.f32.mrf.mxu3 }
 0x3ba   :  { %v2882_v25 = vadd.f32 %v2881_v23, %v2712_v33  ;;  %v2352_v11 = vpop.f32.mrf.mxu1  ;;  %v3052_v52 = vpop.f32.mrf.mxu0  ;;  %v7517_v33 = vld [vmem:[#allocation18_spill] sm:$0xff] }
 0x3bb   :  { %v2353_v28 = vadd.f32 %v2352_v11, %v7508_v59  ;;  %v4370_v11 = vld [vmem:[%s6997_s0 + $0xa0] sm:$0xff]  }
 0x3bc   :  { %v3051_v51 = vadd.f32 %v3050_v42, %v2882_v25  ;;  %v7519_v25 = vld [vmem:[#allocation21_spill] sm:$0xff] }
 0x3be   :  { %v5927_v21 = vadd.f32 %v3051_v51, %v2351_v46 }
 0x3c0   :  { %7509 = vst [vmem:[#allocation65_spill] sm:$0xff] %v5927_v21 }
 0x3c1   :  { %v2714_v57 = vpop.f32.mrf.mxu2  ;;  %v2883_v14 = vpop.f32.mrf.mxu3 }
 0x3c2   :  { %v2884_v41 = vadd.f32 %v2883_v14, %v2714_v57  ;;  %v2355_v60 = vpop.f32.mrf.mxu1  ;;  %v3055_v20 = vpop.f32.mrf.mxu0  ;;  %v7520_v14 = vld [vmem:[#allocation59_spill] sm:$0xff] }
 0x3c3   :  { %v2356_v56 = vadd.f32 %v2355_v60, %v7510_v3 }
 0x3c4   :  { %v3053_v8 = vadd.f32 %v3052_v52, %v2884_v41 }
 0x3c5   :  { %2394 = vmatmul.bf16.gmra.mxu1 %v5410_v2  ;;  %3094 = vmatmul.bf16.gmra.mxu0 %v7511_v26 }
 0x3c6   :  { %v5932_v45 = vadd.f32 %v3053_v8, %v2353_v28  ;;  %2756 = vmatmul.bf16.gmra.mxu2 %v7513_v63  ;;  %2925 = vmatmul.bf16.gmra.mxu3 %v4369_v7  ;;  %v7522_v7 = vld [vmem:[#allocation62_spill] sm:$0xff] }
 0x3c8   :  { %7512 = vst [vmem:[#allocation68_spill] sm:$0xff] %v5932_v45 }
 0x3c9   :  { %v2717_v22 = vpop.f32.mrf.mxu2  ;;  %v2886_v49 = vpop.f32.mrf.mxu3 }
 0x3ca   :  { %v2887_v55 = vadd.f32 %v2886_v49, %v2717_v22  ;;  %v2357_v62 = vpop.f32.mrf.mxu1  ;;  %v3057_v34 = vpop.f32.mrf.mxu0 }
 0x3cb   :  { %v2358_v0 = vadd.f32 %v2357_v62, %v7514_v38  ;;  %v4371_v38 = vld [vmem:[%s6997_s0 + $0xa8] sm:$0xff]  }
 0x3cc   :  { %v3056_v44 = vadd.f32 %v3055_v20, %v2887_v55  ;;  %v7523_v55 = vld [vmem:[#allocation23_spill] sm:$0xff] }
 0x3ce   :  { %v5939_v2 = vadd.f32 %v3056_v44, %v2356_v56 }
 0x3d0   :  { %7515 = vst [vmem:[#allocation77_spill] sm:$0xff] %v5939_v2 }
 0x3d1   :  { %v2719_v58 = vpop.f32.mrf.mxu2  ;;  %v2888_v12 = vpop.f32.mrf.mxu3 }
 0x3d2   :  { %v2889_v4 = vadd.f32 %v2888_v12, %v2719_v58  ;;  %v2360_v42 = vpop.f32.mrf.mxu1  ;;  %v3060_v46 = vpop.f32.mrf.mxu0 }
 0x3d3   :  { %v2361_v5 = vadd.f32 %v2360_v42, %v7516_v19  ;;  %v7526_v42 = vld [vmem:[#allocation66_spill] sm:$0xff] }
 0x3d4   :  { %v3058_v61 = vadd.f32 %v3057_v34, %v2889_v4  ;;  %v7525_v34 = vld [vmem:[#allocation26_spill] sm:$0xff] }
 0x3d5   :  { %2399 = vmatmul.bf16.gmra.mxu1 %v5432_v35  ;;  %3099 = vmatmul.bf16.gmra.mxu0 %v7517_v33 }
 0x3d6   :  { %v5944_v23 = vadd.f32 %v3058_v61, %v2358_v0  ;;  %2761 = vmatmul.bf16.gmra.mxu2 %v7519_v25  ;;  %2930 = vmatmul.bf16.gmra.mxu3 %v4370_v11 }
 0x3d8   :  { %7518 = vst [vmem:[#allocation30_spill] sm:$0xff] %v5944_v23 }
 0x3d9   :  { %v2722_v52 = vpop.f32.mrf.mxu2  ;;  %v2891_v59 = vpop.f32.mrf.mxu3 }
 0x3da   :  { %v2892_v28 = vadd.f32 %v2891_v59, %v2722_v52  ;;  %v2362_v51 = vpop.f32.mrf.mxu1  ;;  %v3062_v57 = vpop.f32.mrf.mxu0  ;;  %v7528_v59 = vld [vmem:[#allocation69_spill] sm:$0xff] }
 0x3db   :  { %v2363_v41 = vadd.f32 %v2362_v51, %v7520_v14 }
 0x3dc   :  { %v3061_v60 = vadd.f32 %v3060_v46, %v2892_v28 }
 0x3de   :  { %v5951_v35 = vadd.f32 %v3061_v60, %v2361_v5  ;;  %v4372_v60 = vld [vmem:[%s6997_s0 + $0xb0] sm:$0xff]  }
 0x3e0   :  { %7521 = vst [vmem:[#allocation72_spill] sm:$0xff] %v5951_v35 }
 0x3e1   :  { %v2724_v20 = vpop.f32.mrf.mxu2  ;;  %v2893_v3 = vpop.f32.mrf.mxu3 }
 0x3e2   :  { %v2894_v56 = vadd.f32 %v2893_v3, %v2724_v20  ;;  %v2365_v8 = vpop.f32.mrf.mxu1  ;;  %v3065_v63 = vpop.f32.mrf.mxu0 }
 0x3e3   :  { %v2366_v22 = vadd.f32 %v2365_v8, %v7522_v7  ;;  %v7532_v7 = vld [vmem:[#allocation73_spill] sm:$0xff] }
 0x3e4   :  { %v3063_v49 = vadd.f32 %v3062_v57, %v2894_v56  ;;  %v7529_v57 = vld [vmem:[#allocation28_spill] sm:$0xff] }
 0x3e5   :  { %2404 = vmatmul.bf16.gmra.mxu1 %v7511_v26  ;;  %3104 = vmatmul.bf16.gmra.mxu0 %v7523_v55 }
 0x3e6   :  { %v5956_v62 = vadd.f32 %v3063_v49, %v2363_v41  ;;  %2766 = vmatmul.bf16.gmra.mxu2 %v7525_v34  ;;  %2935 = vmatmul.bf16.gmra.mxu3 %v4371_v38  ;;  %v7531_v41 = vld [vmem:[#allocation31_spill] sm:$0xff] }
 0x3e8   :  { %7524 = vst [vmem:[#allocation75_spill] sm:$0xff] %v5956_v62 }
 0x3e9   :  { %v2727_v0 = vpop.f32.mrf.mxu2  ;;  %v2896_v44 = vpop.f32.mrf.mxu3 }
 0x3ea   :  { %v2897_v58 = vadd.f32 %v2896_v44, %v2727_v0  ;;  %v2367_v12 = vpop.f32.mrf.mxu1  ;;  %v3067_v4 = vpop.f32.mrf.mxu0 }
 0x3eb   :  { %v2368_v46 = vadd.f32 %v2367_v12, %v7526_v42  ;;  %v7534_v12 = vld [vmem:[#allocation76_spill] sm:$0xff] }
 0x3ec   :  { %v3066_v19 = vadd.f32 %v3065_v63, %v2897_v58 }
 0x3ee   :  { %v5963_v26 = vadd.f32 %v3066_v19, %v2366_v22 }
 0x3f0   :  { %7527 = vst [vmem:[#allocation84_spill] sm:$0xff] %v5963_v26 }
 0x3f1   :  { %v2729_v5 = vpop.f32.mrf.mxu2  ;;  %v2898_v61 = vpop.f32.mrf.mxu3 }
 0x3f2   :  { %v2899_v25 = vadd.f32 %v2898_v61, %v2729_v5  ;;  %v2370_v11 = vpop.f32.mrf.mxu1  ;;  %v3070_v52 = vpop.f32.mrf.mxu0  ;;  %v7537_v5 = vld [vmem:[#allocation37_spill] sm:$0xff]  ;;  %v4373_v61 = vld [vmem:[%s6997_s0 + $0xb8] sm:$0xff]  }
 0x3f3   :  { %v2371_v28 = vadd.f32 %v2370_v11, %v7528_v59 }
 0x3f4   :  { %v3068_v51 = vadd.f32 %v3067_v4, %v2899_v25 }
 0x3f5   :  { %2409 = vmatmul.bf16.gmra.mxu1 %v7517_v33  ;;  %3109 = vmatmul.bf16.gmra.mxu0 %v7529_v57 }
 0x3f6   :  { %v5968_v14 = vadd.f32 %v3068_v51, %v2368_v46  ;;  %2771 = vmatmul.bf16.gmra.mxu2 %v7531_v41  ;;  %2940 = vmatmul.bf16.gmra.mxu3 %v4372_v60  ;;  %v7535_v46 = vld [vmem:[#allocation33_spill] sm:$0xff]  ;;  %v7538_v51 = vld [vmem:[#allocation80_spill] sm:$0xff] }
 0x3f8   :  { %7530 = vst [vmem:[#allocation35_spill] sm:$0xff] %v5968_v14 }
 0x3f9   :  { %v2732_v20 = vpop.f32.mrf.mxu2  ;;  %v2901_v3 = vpop.f32.mrf.mxu3 }
 0x3fa   :  { %v2902_v56 = vadd.f32 %v2901_v3, %v2732_v20  ;;  %v2372_v8 = vpop.f32.mrf.mxu1  ;;  %v3072_v63 = vpop.f32.mrf.mxu0 }
 0x3fb   :  { %v2373_v22 = vadd.f32 %v2372_v8, %v7532_v7  ;;  %v7540_v7 = vld [vmem:[#allocation83_spill] sm:$0xff] }
 0x3fc   :  { %v3071_v49 = vadd.f32 %v3070_v52, %v2902_v56 }
 0x3fe   :  { %v5975_v33 = vadd.f32 %v3071_v49, %v2371_v28 }
 0x400   :  { %7533 = vst [vmem:[#allocation79_spill] sm:$0xff] %v5975_v33 }
 0x401   :  { %v2734_v34 = vpop.f32.mrf.mxu2  ;;  %v2903_v38 = vpop.f32.mrf.mxu3 }
 0x402   :  { %v2904_v0 = vadd.f32 %v2903_v38, %v2734_v34  ;;  %v2375_v44 = vpop.f32.mrf.mxu1  ;;  %v3075_v58 = vpop.f32.mrf.mxu0  ;;  %v7541_v34 = vld [vmem:[#allocation5_spill] sm:$0xff] }
 0x403   :  { %v2376_v4 = vadd.f32 %v2375_v44, %v7534_v12  ;;  %v4374_v44 = vld [vmem:[%s6997_s0 + $0xc0] sm:$0xff]  }
 0x404   :  { %v3073_v42 = vadd.f32 %v3072_v63, %v2904_v0  ;;  %v7543_v0 = vld [vmem:[#allocation6_spill] sm:$0xff] }
 0x405   :  { %2414 = vmatmul.bf16.gmra.mxu1 %v7523_v55  ;;  %3114 = vmatmul.bf16.gmra.mxu0 %v7535_v46 }
 0x406   :  { %v5980_v19 = vadd.f32 %v3073_v42, %v2373_v22  ;;  %2776 = vmatmul.bf16.gmra.mxu2 %v7537_v5  ;;  %2945 = vmatmul.bf16.gmra.mxu3 %v4373_v61  ;;  %v7544_v61 = vld [vmem:[#allocation87_spill] sm:$0xff] }
 0x408   :  { %7536 = vst [vmem:[#allocation82_spill] sm:$0xff] %v5980_v19 }
 0x409   :  { %v2737_v25 = vpop.f32.mrf.mxu2  ;;  %v2906_v11 = vpop.f32.mrf.mxu3 }
 0x40a   :  { %v2907_v52 = vadd.f32 %v2906_v11, %v2737_v25  ;;  %v2377_v59 = vpop.f32.mrf.mxu1  ;;  %v3077_v28 = vpop.f32.mrf.mxu0 }
 0x40b   :  { %v2378_v41 = vadd.f32 %v2377_v59, %v7538_v51 }
 0x40c   :  { %v3076_v60 = vadd.f32 %v3075_v58, %v2907_v52 }
 0x40e   :  { %v5987_v55 = vadd.f32 %v3076_v60, %v2376_v4  ;;  %v7546_v60 = vld [vmem:[#allocation40_spill] sm:$0xff] }
 0x410   :  { %7539 = vst [vmem:[#allocation90_spill] sm:$0xff] %v5987_v55 }
 0x411   :  { %v2739_v20 = vpop.f32.mrf.mxu2  ;;  %v2908_v3 = vpop.f32.mrf.mxu3 }
 0x412   :  { %v2909_v56 = vadd.f32 %v2908_v3, %v2739_v20  ;;  %v2380_v8 = vpop.f32.mrf.mxu1  ;;  %v3080_v63 = vpop.f32.mrf.mxu0 }
 0x413   :  { %v2381_v22 = vadd.f32 %v2380_v8, %v7540_v7  ;;  %v7549_v7 = vld [vmem:[#allocation9_spill] sm:$0xff] }
 0x414   :  { %v3078_v49 = vadd.f32 %v3077_v28, %v2909_v56  ;;  %v7547_v56 = vld [vmem:[#allocation7_spill] sm:$0xff] }
 0x415   :  { %2419 = vmatmul.bf16.gmra.mxu1 %v7529_v57  ;;  %3119 = vmatmul.bf16.gmra.mxu0 %v7541_v34 }
 0x416   :  { %v5992_v38 = vadd.f32 %v3078_v49, %v2378_v41  ;;  %2781 = vmatmul.bf16.gmra.mxu2 %v7543_v0  ;;  %2950 = vmatmul.bf16.gmra.mxu3 %v4374_v44 }
 0x418   :  { %7542 = vst [vmem:[#allocation86_spill] sm:$0xff] %v5992_v38 }
 0x419   :  { %v2742_v58 = vpop.f32.mrf.mxu2  ;;  %v2911_v12 = vpop.f32.mrf.mxu3 }
 0x41a   :  { %v2912_v4 = vadd.f32 %v2911_v12, %v2742_v58  ;;  %v2382_v42 = vpop.f32.mrf.mxu1  ;;  %v3082_v5 = vpop.f32.mrf.mxu0  ;;  %v7550_v12 = vld [vmem:[#allocation42_spill] sm:$0xff] }
 0x41b   :  { %v2383_v25 = vadd.f32 %v2382_v42, %v7544_v61 }
 0x41c   :  { %v3081_v11 = vadd.f32 %v3080_v63, %v2912_v4  ;;  %v4375_v63 = vld [vmem:[%s6997_s0 + $0xc8] sm:$0xff]  }
 0x41e   :  { %v5999_v57 = vadd.f32 %v3081_v11, %v2381_v22 }
 0x420   :  { %7545 = vst [vmem:[#allocation89_spill] sm:$0xff] %v5999_v57 }
 0x421   :  { %v2744_v52 = vpop.f32.mrf.mxu2  ;;  %v2913_v59 = vpop.f32.mrf.mxu3 }
 0x422   :  { %v2914_v28 = vadd.f32 %v2913_v59, %v2744_v52  ;;  %v2385_v51 = vpop.f32.mrf.mxu1  ;;  %v3085_v41 = vpop.f32.mrf.mxu0  ;;  %v7552_v59 = vld [vmem:[#allocation45_spill] sm:$0xff] }
 0x423   :  { %v2386_v20 = vadd.f32 %v2385_v51, %v7546_v60  ;;  %v7553_v60 = vld [vmem:[#allocation10_spill] sm:$0xff] }
 0x424   :  { %v3083_v3 = vadd.f32 %v3082_v5, %v2914_v28 }
 0x425   :  { %2424 = vmatmul.bf16.gmra.mxu1 %v7535_v46  ;;  %3124 = vmatmul.bf16.gmra.mxu0 %v7547_v56 }
 0x426   :  { %v6004_v8 = vadd.f32 %v3083_v3, %v2383_v25  ;;  %2786 = vmatmul.bf16.gmra.mxu2 %v7549_v7  ;;  %2955 = vmatmul.bf16.gmra.mxu3 %v4375_v63 }
 0x428   :  { %7548 = vst [vmem:[#allocation36_spill] sm:$0xff] %v6004_v8 }
 0x429   :  { %v2747_v22 = vpop.f32.mrf.mxu2  ;;  %v2916_v49 = vpop.f32.mrf.mxu3 }
 0x42a   :  { %v2917_v0 = vadd.f32 %v2916_v49, %v2747_v22  ;;  %v2387_v44 = vpop.f32.mrf.mxu1  ;;  %v3087_v58 = vpop.f32.mrf.mxu0 }
 0x42b   :  { %v2388_v4 = vadd.f32 %v2387_v44, %v7550_v12 }
 0x42c   :  { %v3086_v42 = vadd.f32 %v3085_v41, %v2917_v0  ;;  %v4376_v41 = vld [vmem:[%s6997_s0 + $0xd0] sm:$0xff]  }
 0x42d   :  { %v7555_v0 = vld [vmem:[#allocation47_spill] sm:$0xff] }
 0x42e   :  { %v6011_v46 = vadd.f32 %v3086_v42, %v2386_v20 }
 0x430   :  { %7551 = vst [vmem:[#allocation12_spill] sm:$0xff] %v6011_v46 }
 0x431   :  { %v2749_v5 = vpop.f32.mrf.mxu2  ;;  %v2918_v61 = vpop.f32.mrf.mxu3 }
 0x432   :  { %v2919_v25 = vadd.f32 %v2918_v61, %v2749_v5  ;;  %v2390_v11 = vpop.f32.mrf.mxu1  ;;  %v3090_v52 = vpop.f32.mrf.mxu0  ;;  %v7557_v61 = vld [vmem:[#allocation50_spill] sm:$0xff] }
 0x433   :  { %v2391_v28 = vadd.f32 %v2390_v11, %v7552_v59  ;;  %v7558_v59 = vld [vmem:[#allocation14_spill] sm:$0xff] }
 0x434   :  { %v3088_v51 = vadd.f32 %v3087_v58, %v2919_v25 }
 0x435   :  { %2429 = vmatmul.bf16.gmra.mxu1 %v7541_v34  ;;  %3129 = vmatmul.bf16.gmra.mxu0 %v7553_v60 }
 0x436   :  { %v6016_v3 = vadd.f32 %v3088_v51, %v2388_v4  ;;  %2791 = vmatmul.bf16.gmra.mxu2 %v7411_v31  ;;  %2960 = vmatmul.bf16.gmra.mxu3 %v4376_v41  ;;  %v7560_v41 = vld [vmem:[#allocation17_spill] sm:$0xff] }
 0x438   :  { %7554 = vst [vmem:[#allocation91_spill] sm:$0xff] %v6016_v3 }
 0x439   :  { %v2752_v20 = vpop.f32.mrf.mxu2  ;;  %v2921_v7 = vpop.f32.mrf.mxu3 }
 0x43a   :  { %v2922_v63 = vadd.f32 %v2921_v7, %v2752_v20  ;;  %v2392_v22 = vpop.f32.mrf.mxu1  ;;  %v3092_v49 = vpop.f32.mrf.mxu0 }
 0x43b   :  { %v2393_v44 = vadd.f32 %v2392_v22, %v7555_v0  ;;  %v7561_v0 = vld [vmem:[#allocation53_spill] sm:$0xff] }
 0x43c   :  { %v3091_v58 = vadd.f32 %v3090_v52, %v2922_v63  ;;  %v4377_v52 = vld [vmem:[%s6997_s0 + $0xd8] sm:$0xff]  }
 0x43e   :  { %v6023_v34 = vadd.f32 %v3091_v58, %v2391_v28 }
 0x440   :  { %7556 = vst [vmem:[#allocation92_spill] sm:$0xff] %v6023_v34 }
 0x441   :  { %v2754_v12 = vpop.f32.mrf.mxu2  ;;  %v2923_v4 = vpop.f32.mrf.mxu3 }
 0x442   :  { %v2924_v42 = vadd.f32 %v2923_v4, %v2754_v12  ;;  %v2395_v5 = vpop.f32.mrf.mxu1  ;;  %v3095_v31 = vpop.f32.mrf.mxu0 }
 0x443   :  { %v2396_v25 = vadd.f32 %v2395_v5, %v7557_v61  ;;  %v7563_v61 = vld [vmem:[#allocation13_spill] sm:$0xff] }
 0x444   :  { %v3093_v11 = vadd.f32 %v3092_v49, %v2924_v42 }
 0x445   :  { %2434 = vmatmul.bf16.gmra.mxu1 %v7547_v56  ;;  %3134 = vmatmul.bf16.gmra.mxu0 %v7558_v59 }
 0x446   :  { %v6028_v51 = vadd.f32 %v3093_v11, %v2393_v44  ;;  %2796 = vmatmul.bf16.gmra.mxu2 %v7560_v41  ;;  %2965 = vmatmul.bf16.gmra.mxu3 %v4377_v52  ;;  %v7564_v52 = vld [vmem:[#allocation57_spill] sm:$0xff] }
 0x448   :  { %7559 = vst [vmem:[#allocation52_spill] sm:$0xff] %v6028_v51 }
 0x449   :  { %v2757_v28 = vpop.f32.mrf.mxu2  ;;  %v2926_v20 = vpop.f32.mrf.mxu3 }
 0x44a   :  { %v2927_v7 = vadd.f32 %v2926_v20, %v2757_v28  ;;  %v2397_v63 = vpop.f32.mrf.mxu1  ;;  %v3097_v22 = vpop.f32.mrf.mxu0  ;;  %v7566_v20 = vld [vmem:[#allocation22_spill] sm:$0xff] }
 0x44b   :  { %v2398_v49 = vadd.f32 %v2397_v63, %v7561_v0 }
 0x44c   :  { %v3096_v58 = vadd.f32 %v3095_v31, %v2927_v7  ;;  %v4378_v31 = vld [vmem:[%s6997_s0 + $0xe0] sm:$0xff]  }
 0x44e   :  { %v6035_v56 = vadd.f32 %v3096_v58, %v2396_v25 }
 0x450   :  { %7562 = vst [vmem:[#allocation16_spill] sm:$0xff] %v6035_v56 }
 0x451   :  { %v2759_v12 = vpop.f32.mrf.mxu2  ;;  %v2928_v44 = vpop.f32.mrf.mxu3 }
 0x452   :  { %v2929_v4 = vadd.f32 %v2928_v44, %v2759_v12  ;;  %v2400_v42 = vpop.f32.mrf.mxu1  ;;  %v3100_v5 = vpop.f32.mrf.mxu0  ;;  %v7567_v12 = vld [vmem:[#allocation19_spill] sm:$0xff] }
 0x453   :  { %v2401_v11 = vadd.f32 %v2400_v42, %v7563_v61 }
 0x454   :  { %v3098_v41 = vadd.f32 %v3097_v22, %v2929_v4 }
 0x455   :  { %2439 = vmatmul.bf16.gmra.mxu1 %v7553_v60  ;;  %3139 = vmatmul.bf16.gmra.mxu0 %v7564_v52 }
 0x456   :  { %v6040_v28 = vadd.f32 %v3098_v41, %v2398_v49  ;;  %2801 = vmatmul.bf16.gmra.mxu2 %v7566_v20  ;;  %2970 = vmatmul.bf16.gmra.mxu3 %v4378_v31  ;;  %v7569_v20 = vld [vmem:[#allocation60_spill] sm:$0xff] }
 0x457   :  { %v7570_v31 = vld [vmem:[#allocation64_spill] sm:$0xff] }
 0x458   :  { %7565 = vst [vmem:[#allocation93_spill] sm:$0xff] %v6040_v28 }
 0x459   :  { %v2762_v25 = vpop.f32.mrf.mxu2  ;;  %v2931_v7 = vpop.f32.mrf.mxu3 }
 0x45a   :  { %v2932_v63 = vadd.f32 %v2931_v7, %v2762_v25  ;;  %v2402_v0 = vpop.f32.mrf.mxu1  ;;  %v3102_v58 = vpop.f32.mrf.mxu0  ;;  %v7572_v7 = vld [vmem:[#allocation27_spill] sm:$0xff] }
 0x45b   :  { %v2403_v22 = vadd.f32 %v2402_v0, %v7567_v12 }
 0x45c   :  { %v3101_v44 = vadd.f32 %v3100_v5, %v2932_v63  ;;  %v4379_v5 = vld [vmem:[%s6997_s0 + $0xe8] sm:$0xff]  }
 0x45e   :  { %v6047_v60 = vadd.f32 %v3101_v44, %v2401_v11 }
 0x460   :  { %7568 = vst [vmem:[#allocation55_spill] sm:$0xff] %v6047_v60 }
 0x461   :  { %v2764_v4 = vpop.f32.mrf.mxu2  ;;  %v2933_v49 = vpop.f32.mrf.mxu3 }
 0x462   :  { %v2934_v42 = vadd.f32 %v2933_v49, %v2764_v4  ;;  %v2405_v61 = vpop.f32.mrf.mxu1  ;;  %v3105_v41 = vpop.f32.mrf.mxu0  ;;  %v7573_v4 = vld [vmem:[#allocation24_spill] sm:$0xff] }
 0x463   :  { %v2406_v24 = vadd.f32 %v2405_v61, %v7569_v20 }
 0x464   :  { %v3103_v36 = vadd.f32 %v3102_v58, %v2934_v42 }
 0x465   :  { %2444 = vmatmul.bf16.gmra.mxu1 %v7558_v59  ;;  %3144 = vmatmul.bf16.gmra.mxu0 %v7570_v31 }
 0x466   :  { %v6052_v25 = vadd.f32 %v3103_v36, %v2403_v22  ;;  %2806 = vmatmul.bf16.gmra.mxu2 %v7572_v7  ;;  %2975 = vmatmul.bf16.gmra.mxu3 %v4379_v5  ;;  %v7575_v7 = vld [vmem:[#allocation67_spill] sm:$0xff] }
 0x467   :  { %v7576_v5 = vld [vmem:[#allocation71_spill] sm:$0xff] }
 0x468   :  { %7571 = vst [vmem:[#allocation18_spill] sm:$0xff] %v6052_v25 }
 0x469   :  { %v2767_v11 = vpop.f32.mrf.mxu2  ;;  %v2936_v63 = vpop.f32.mrf.mxu3 }
 0x46a   :  { %v2937_v0 = vadd.f32 %v2936_v63, %v2767_v11  ;;  %v2407_v12 = vpop.f32.mrf.mxu1  ;;  %v3107_v44 = vpop.f32.mrf.mxu0 }
 0x46b   :  { %v2408_v58 = vadd.f32 %v2407_v12, %v7573_v4 }
 0x46c   :  { %v3106_v49 = vadd.f32 %v3105_v41, %v2937_v0 }
 0x46e   :  { %v6059_v59 = vadd.f32 %v3106_v49, %v2406_v24  ;;  %v4380_v24 = vld [vmem:[%s6997_s0 + $0xf0] sm:$0xff]   ;;  %v7578_v49 = vld [vmem:[#allocation29_spill] sm:$0xff] }
 0x470   :  { %7574 = vst [vmem:[#allocation21_spill] sm:$0xff] %v6059_v59  ;;  %v7579_v59 = vld [vmem:[#allocation74_spill] sm:$0xff] }
 0x471   :  { %v2769_v42 = vpop.f32.mrf.mxu2  ;;  %v2938_v36 = vpop.f32.mrf.mxu3 }
 0x472   :  { %v2939_v22 = vadd.f32 %v2938_v36, %v2769_v42  ;;  %v2410_v61 = vpop.f32.mrf.mxu1  ;;  %v3110_v20 = vpop.f32.mrf.mxu0 }
 0x473   :  { %v2411_v47 = vadd.f32 %v2410_v61, %v7575_v7 }
 0x474   :  { %v3108_v37 = vadd.f32 %v3107_v44, %v2939_v22 }
 0x475   :  { %2449 = vmatmul.bf16.gmra.mxu1 %v7564_v52  ;;  %3149 = vmatmul.bf16.gmra.mxu0 %v7576_v5 }
 0x476   :  { %v6064_v11 = vadd.f32 %v3108_v37, %v2408_v58  ;;  %2811 = vmatmul.bf16.gmra.mxu2 %v7446_v27  ;;  %2980 = vmatmul.bf16.gmra.mxu3 %v4380_v24 }
 0x478   :  { %7577 = vst [vmem:[#allocation59_spill] sm:$0xff] %v6064_v11 }
 0x479   :  { %v2772_v41 = vpop.f32.mrf.mxu2  ;;  %v2941_v63 = vpop.f32.mrf.mxu3 }
 0x47a   :  { %v2942_v0 = vadd.f32 %v2941_v63, %v2772_v41  ;;  %v2412_v12 = vpop.f32.mrf.mxu1  ;;  %v3112_v4 = vpop.f32.mrf.mxu0  ;;  %v7581_v63 = vld [vmem:[#allocation38_spill] sm:$0xff] }
 0x47b   :  { %v2413_v44 = vadd.f32 %v2412_v12, %v7578_v49 }
 0x47c   :  { %v3111_v42 = vadd.f32 %v3110_v20, %v2942_v0 }
 0x47e   :  { %v6071_v52 = vadd.f32 %v3111_v42, %v2411_v47  ;;  %v4381_v47 = vld [vmem:[%s6997_s0 + $0xf8] sm:$0xff]  }
 0x481   :  { %v2774_v36 = vpop.f32.mrf.mxu2  ;;  %v2943_v37 = vpop.f32.mrf.mxu3 }
 0x482   :  { %v2944_v58 = vadd.f32 %v2943_v37, %v2774_v36  ;;  %v2415_v22 = vpop.f32.mrf.mxu1  ;;  %v3115_v61 = vpop.f32.mrf.mxu0 }
 0x483   :  { %v2416_v7 = vadd.f32 %v2415_v22, %v5699_v15  ;;  %v7582_v15 = vld [vmem:[#allocation78_spill] sm:$0xff] }
 0x484   :  { %v3113_v11 = vadd.f32 %v3112_v4, %v2944_v58  ;;  %v7584_v22 = vld [vmem:[#allocation34_spill] sm:$0xff] }
 0x485   :  { %2454 = vmatmul.bf16.gmra.mxu1 %v7570_v31  ;;  %3154 = vmatmul.bf16.gmra.mxu0 %v7579_v59 }
 0x486   :  { %v6076_v41 = vadd.f32 %v3113_v11, %v2413_v44  ;;  %2816 = vmatmul.bf16.gmra.mxu2 %v7581_v63  ;;  %2985 = vmatmul.bf16.gmra.mxu3 %v4381_v47 }
 0x488   :  { %7580 = vst [vmem:[#allocation62_spill] sm:$0xff] %v6076_v41 }
 0x489   :  { %v2777_v20 = vpop.f32.mrf.mxu2  ;;  %v2946_v0 = vpop.f32.mrf.mxu3 }
 0x48a   :  { %v2947_v12 = vadd.f32 %v2946_v0, %v2777_v20  ;;  %v2417_v49 = vpop.f32.mrf.mxu1  ;;  %v3117_v42 = vpop.f32.mrf.mxu0 }
 0x48b   :  { %v2418_v4 = vadd.f32 %v2417_v49, %v7582_v15  ;;  %v7586_v49 = vld [vmem:[#allocation81_spill] sm:$0xff] }
 0x48c   :  { %v3116_v36 = vadd.f32 %v3115_v61, %v2947_v12 }
 0x48e   :  { %v6083_v31 = vadd.f32 %v3116_v36, %v2416_v7 }
 0x490   :  { %7583 = vst [vmem:[#allocation23_spill] sm:$0xff] %v6083_v31 }
 0x491   :  { %v2779_v59 = vpop.f32.mrf.mxu2  ;;  %v2948_v11 = vpop.f32.mrf.mxu3 }
 0x492   :  { %v2949_v44 = vadd.f32 %v2948_v11, %v2779_v59  ;;  %v2420_v37 = vpop.f32.mrf.mxu1  ;;  %v3120_v58 = vpop.f32.mrf.mxu0 }
 0x493   :  { %v2421_v63 = vadd.f32 %v2420_v37, %v7584_v22 }
 0x494   :  { %v3118_v41 = vadd.f32 %v3117_v42, %v2949_v44 }
 0x495   :  { %2459 = vmatmul.bf16.gmra.mxu1 %v7576_v5  ;;  %3159 = vmatmul.bf16.gmra.mxu0 %v7576_v5 }
 0x496   :  { %v6088_v47 = vadd.f32 %v3118_v41, %v2418_v4  ;;  %2821 = vmatmul.bf16.gmra.mxu2 %v7446_v27  ;;  %2990 = vmatmul.bf16.gmra.mxu3 %v4380_v24  ;;  %v7588_v41 = vld [vmem:[#allocation32_spill] sm:$0xff]  ;;  %v3299_v24 = vmul.f32 %v5827_v29, %v5827_v29 }
 0x498   :  { %7585 = vst [vmem:[#allocation26_spill] sm:$0xff] %v6088_v47 }
 0x499   :  { %v2782_v61 = vpop.f32.mrf.mxu2  ;;  %v2951_v7 = vpop.f32.mrf.mxu3 }
 0x49a   :  { %v2952_v20 = vadd.f32 %v2951_v7, %v2782_v61  ;;  %v2422_v0 = vpop.f32.mrf.mxu1  ;;  %v3122_v12 = vpop.f32.mrf.mxu0 }
 0x49b   :  { %v2423_v15 = vadd.f32 %v2422_v0, %v7586_v49 }
 0x49c   :  { %v3121_v36 = vadd.f32 %v3120_v58, %v2952_v20  ;;  %v3298_v58 = vmul.f32 %v5822_v30, %v5822_v30 }
 0x49e   :  { %v6092_v59 = vadd.f32 %v3121_v36, %v2421_v63  ;;  %v3300_v63 = vmul.f32 %v5834_v50, %v5834_v50  ;;  %v3229_v36 = vadd.f32 %v5827_v29, %v5822_v30  ;;  %v3303_v29 = vmul.f32 %v5851_v6, %v5851_v6 }
 0x4a0   :  { %7587 = vst [vmem:[#allocation66_spill] sm:$0xff] %v6092_v59 }
 0x4a1   :  { %v2784_v42 = vpop.f32.mrf.mxu2  ;;  %v2953_v11 = vpop.f32.mrf.mxu3 }
 0x4a2   :  { %v2954_v44 = vadd.f32 %v2953_v11, %v2784_v42  ;;  %v2425_v37 = vpop.f32.mrf.mxu1  ;;  %v3125_v5 = vpop.f32.mrf.mxu0  ;;  %v3362_v42 = vadd.f32 %v3299_v24, %v3298_v58  ;;  %v3301_v11 = vmul.f32 %v5839_v48, %v5839_v48 }
 0x4a3   :  { %v2426_v4 = vadd.f32 %v2425_v37, %v7588_v41  ;;  %v3230_v37 = vadd.f32 %v3229_v36, %v5834_v50 }
 0x4a4   :  { %v3123_v22 = vadd.f32 %v3122_v12, %v2954_v44  ;;  %v7590_v12 = vld [vmem:[#allocation85_spill] sm:$0xff]  ;;  %v3363_v41 = vadd.f32 %v3362_v42, %v3300_v63  ;;  %v7591_v42 = vld [vmem:[#allocation88_spill] sm:$0xff] }
 0x4a6   :  { %v6095_v27 = vadd.f32 %v3123_v22, %v2423_v15  ;;  %v3302_v22 = vmul.f32 %v5846_v32, %v5846_v32 }
 0x4a8   :  { %7589 = vst [vmem:[#allocation69_spill] sm:$0xff] %v6095_v27 }
 0x4a9   :  { %v2787_v61 = vpop.f32.mrf.mxu2  ;;  %v2956_v7 = vpop.f32.mrf.mxu3 }
 0x4aa   :  { %v2957_v20 = vadd.f32 %v2956_v7, %v2787_v61  ;;  %v2427_v0 = vpop.f32.mrf.mxu1  ;;  %v3127_v49 = vpop.f32.mrf.mxu0  ;;  %v3231_v61 = vadd.f32 %v3230_v37, %v5839_v48  ;;  %v3364_v7 = vadd.f32 %v3363_v41, %v3301_v11  ;;  %v3305_v11 = vmul.f32 %v5863_v39, %v5863_v39 }
 0x4ab   :  { %v2428_v15 = vadd.f32 %v2427_v0, %v7590_v12 }
 0x4ac   :  { %v3126_v44 = vadd.f32 %v3125_v5, %v2957_v20  ;;  %v3232_v24 = vadd.f32 %v3231_v61, %v5846_v32  ;;  %v3365_v12 = vadd.f32 %v3364_v7, %v3302_v22  ;;  %v3304_v5 = vmul.f32 %v5858_v9, %v5858_v9 }
 0x4ad   :  { %v3306_v22 = vmul.f32 %v5870_v54, %v5870_v54 }
 0x4ae   :  { %v6111_v27 = vadd.f32 %v3126_v44, %v2426_v4  ;;  %v3233_v4 = vadd.f32 %v3232_v24, %v5851_v6  ;;  %v3366_v37 = vadd.f32 %v3365_v12, %v3303_v29  ;;  %v3307_v24 = vmul.f32 %v5875_v13, %v5875_v13 }
 0x4b0   :  { %v3234_v61 = vadd.f32 %v3233_v4, %v5858_v9  ;;  %v3367_v32 = vadd.f32 %v3366_v37, %v3304_v5  ;;  %v7592_v37 = vld [vmem:[#allocation44_spill] sm:$0xff] }
 0x4b1   :  { %v2789_v58 = vpop.f32.mrf.mxu2  ;;  %v2958_v0 = vpop.f32.mrf.mxu3 }
 0x4b2   :  { %v2959_v63 = vadd.f32 %v2958_v0, %v2789_v58  ;;  %v2430_v20 = vpop.f32.mrf.mxu1  ;;  %v3130_v36 = vpop.f32.mrf.mxu0  ;;  %v3235_v58 = vadd.f32 %v3234_v61, %v5863_v39  ;;  %v3368_v0 = vadd.f32 %v3367_v32, %v3305_v11  ;;  %v3309_v32 = vmul.f32 %v5887_v43, %v5887_v43 }
 0x4b3   :  { %v2431_v44 = vadd.f32 %v2430_v20, %v7591_v42 }
 0x4b4   :  { %v3128_v41 = vadd.f32 %v3127_v49, %v2959_v63  ;;  %v3236_v29 = vadd.f32 %v3235_v58, %v5870_v54  ;;  %v3369_v42 = vadd.f32 %v3368_v0, %v3306_v22  ;;  %v3308_v49 = vmul.f32 %v5882_v17, %v5882_v17 }
 0x4b5   :  { %v3310_v22 = vmul.f32 %v5894_v1, %v5894_v1 }
 0x4b6   :  { %v6126_v7 = vadd.f32 %v3128_v41, %v2428_v15  ;;  %v3237_v15 = vadd.f32 %v3236_v29, %v5875_v13  ;;  %v3370_v61 = vadd.f32 %v3369_v42, %v3307_v24  ;;  %v3311_v29 = vmul.f32 %v5899_v18, %v5899_v18 }
 0x4b8   :  { %v3238_v58 = vadd.f32 %v3237_v15, %v5882_v17  ;;  %v3371_v54 = vadd.f32 %v3370_v61, %v3308_v49  ;;  %v7593_v61 = vld [vmem:[#allocation8_spill] sm:$0xff] }
 0x4b9   :  { %v2792_v12 = vpop.f32.mrf.mxu2  ;;  %v2961_v20 = vpop.f32.mrf.mxu3 }
 0x4ba   :  { %v2962_v5 = vadd.f32 %v2961_v20, %v2792_v12  ;;  %v2432_v63 = vpop.f32.mrf.mxu1  ;;  %v3132_v4 = vpop.f32.mrf.mxu0  ;;  %v3239_v12 = vadd.f32 %v3238_v58, %v5887_v43  ;;  %v3372_v20 = vadd.f32 %v3371_v54, %v3309_v32  ;;  %v3313_v54 = vmul.f32 %v5908_v10, %v5908_v10 }
 0x4bb   :  { %v2433_v41 = vadd.f32 %v2432_v63, %v7592_v37 }
 0x4bc   :  { %v3131_v11 = vadd.f32 %v3130_v36, %v2962_v5  ;;  %v3240_v24 = vadd.f32 %v3239_v12, %v5894_v1  ;;  %v3373_v37 = vadd.f32 %v3372_v20, %v3310_v22  ;;  %v3312_v36 = vmul.f32 %v5903_v53, %v5903_v53 }
 0x4bd   :  { %v3314_v22 = vmul.f32 %v5915_v16, %v5915_v16 }
 0x4be   :  { %v6141_v0 = vadd.f32 %v3131_v11, %v2431_v44  ;;  %v3241_v44 = vadd.f32 %v3240_v24, %v5899_v18  ;;  %v3374_v58 = vadd.f32 %v3373_v37, %v3311_v29  ;;  %v3315_v24 = vmul.f32 %v5920_v40, %v5920_v40 }
 0x4c0   :  { %v3242_v12 = vadd.f32 %v3241_v44, %v5903_v53  ;;  %v3375_v1 = vadd.f32 %v3374_v58, %v3312_v36 }
 0x4c1   :  { %v2794_v42 = vpop.f32.mrf.mxu2  ;;  %v2963_v63 = vpop.f32.mrf.mxu3 }
 0x4c2   :  { %v2964_v49 = vadd.f32 %v2963_v63, %v2794_v42  ;;  %v2435_v5 = vpop.f32.mrf.mxu1  ;;  %v3135_v15 = vpop.f32.mrf.mxu0  ;;  %v3243_v42 = vadd.f32 %v3242_v12, %v5908_v10  ;;  %v3376_v63 = vadd.f32 %v3375_v1, %v3313_v54  ;;  %v3317_v1 = vmul.f32 %v5932_v45, %v5932_v45 }
 0x4c3   :  { %v2436_v11 = vadd.f32 %v2435_v5, %v7593_v61 }
 0x4c4   :  { %v3133_v32 = vadd.f32 %v3132_v4, %v2964_v49  ;;  %v3244_v29 = vadd.f32 %v3243_v42, %v5915_v16  ;;  %v3377_v61 = vadd.f32 %v3376_v63, %v3314_v22  ;;  %v3316_v4 = vmul.f32 %v5927_v21, %v5927_v21 }
 0x4c5   :  { %v3318_v22 = vmul.f32 %v5939_v2, %v5939_v2 }
 0x4c6   :  { %v6156_v20 = vadd.f32 %v3133_v32, %v2433_v41  ;;  %v3245_v41 = vadd.f32 %v3244_v29, %v5920_v40  ;;  %v3378_v58 = vadd.f32 %v3377_v61, %v3315_v24 }
 0x4c8   :  { %v3246_v32 = vadd.f32 %v3245_v41, %v5927_v21  ;;  %v3379_v12 = vadd.f32 %v3378_v58, %v3316_v4  ;;  %v3320_v4 = vmul.f32 %v5951_v35, %v5951_v35 }
 0x4c9   :  { %v2797_v37 = vpop.f32.mrf.mxu2  ;;  %v2966_v5 = vpop.f32.mrf.mxu3 }
 0x4ca   :  { %v2967_v36 = vadd.f32 %v2966_v5, %v2797_v37  ;;  %v6164_v49 = vpop.f32.mrf.mxu1  ;;  %v6166_v44 = vpop.f32.mrf.mxu0  ;;  %v3247_v63 = vadd.f32 %v3246_v32, %v5932_v45  ;;  %v3380_v37 = vadd.f32 %v3379_v12, %v3317_v1  ;;  %v3319_v5 = vmul.f32 %v5944_v23, %v5944_v23 }
 0x4cb   :  { %v3321_v1 = vmul.f32 %v5956_v62, %v5956_v62  ;;  %v3322_v12 = vmul.f32 %v5963_v26, %v5963_v26 }
 0x4cc   :  { %v3136_v54 = vadd.f32 %v3135_v15, %v2967_v36  ;;  %v3248_v24 = vadd.f32 %v3247_v63, %v5939_v2  ;;  %v3381_v15 = vadd.f32 %v3380_v37, %v3318_v22  ;;  %v3323_v37 = vmul.f32 %v5968_v14, %v5968_v14 }
 0x4ce   :  { %v6174_v42 = vadd.f32 %v3136_v54, %v2436_v11  ;;  %v3249_v41 = vadd.f32 %v3248_v24, %v5944_v23  ;;  %v3382_v58 = vadd.f32 %v3381_v15, %v3319_v5  ;;  %v3324_v15 = vmul.f32 %v5975_v33, %v5975_v33 }
 0x4d0   :  { %v3250_v54 = vadd.f32 %v3249_v41, %v5951_v35  ;;  %v3383_v32 = vadd.f32 %v3382_v58, %v3320_v4 }
 0x4d1   :  { %v6180_v29 = vpop.f32.mrf.mxu2  ;;  %v6182_v61 = vpop.f32.mrf.mxu3 }
 0x4d2   :  { %v6186_v36 = vpop.f32.mrf.mxu1  ;;  %v6188_v11 = vpop.f32.mrf.mxu0  ;;  %v3251_v22 = vadd.f32 %v3250_v54, %v5956_v62  ;;  %v3384_v63 = vadd.f32 %v3383_v32, %v3321_v1  ;;  %v3325_v54 = vmul.f32 %v5980_v19, %v5980_v19  ;;  %v3327_v62 = vmul.f32 %v5992_v38, %v5992_v38 }
 0x4d4   :  { %v3252_v2 = vadd.f32 %v3251_v22, %v5963_v26  ;;  %v3385_v24 = vadd.f32 %v3384_v63, %v3322_v12  ;;  %v3326_v26 = vmul.f32 %v5987_v55, %v5987_v55 }
 0x4d6   :  { %v3253_v58 = vadd.f32 %v3252_v2, %v5968_v14  ;;  %v3386_v1 = vadd.f32 %v3385_v24, %v3323_v37  ;;  %v3328_v24 = vmul.f32 %v5999_v57, %v5999_v57 }
 0x4d8   :  { %v3254_v32 = vadd.f32 %v3253_v58, %v5975_v33  ;;  %v3387_v22 = vadd.f32 %v3386_v1, %v3324_v15 }
 0x4d9   :  { %v6200_v45 = vpop.f32.mrf.mxu2  ;;  %v6202_v5 = vpop.f32.mrf.mxu3 }
 0x4da   :  { %v6206_v4 = vpop.f32.mrf.mxu1  ;;  %v6208_v41 = vpop.f32.mrf.mxu0  ;;  %v3255_v12 = vadd.f32 %v3254_v32, %v5980_v19  ;;  %v3388_v63 = vadd.f32 %v3387_v22, %v3325_v54  ;;  %v3329_v32 = vmul.f32 %v6004_v8, %v6004_v8  ;;  %v3331_v19 = vmul.f32 %v6016_v3, %v6016_v3 }
 0x4dc   :  { %v3256_v35 = vadd.f32 %v3255_v12, %v5987_v55  ;;  %v3389_v37 = vadd.f32 %v3388_v63, %v3326_v26  ;;  %v3330_v55 = vmul.f32 %v6011_v46, %v6011_v46 }
 0x4de   :  { %v3257_v1 = vadd.f32 %v3256_v35, %v5992_v38  ;;  %v3390_v54 = vadd.f32 %v3389_v37, %v3327_v62  ;;  %v3332_v37 = vmul.f32 %v6023_v34, %v6023_v34 }
 0x4e0   :  { %v3258_v22 = vadd.f32 %v3257_v1, %v5999_v57  ;;  %v3391_v12 = vadd.f32 %v3390_v54, %v3328_v24 }
 0x4e1   :  { %v6220_v23 = vpop.f32.mrf.mxu2  ;;  %v6222_v2 = vpop.f32.mrf.mxu3 }
 0x4e2   :  { %v6226_v15 = vpop.f32.mrf.mxu1  ;;  %v6228_v58 = vpop.f32.mrf.mxu0  ;;  %v3259_v26 = vadd.f32 %v3258_v22, %v6004_v8  ;;  %v3392_v63 = vadd.f32 %v3391_v12, %v3329_v32  ;;  %v3333_v22 = vmul.f32 %v6028_v51, %v6028_v51  ;;  %v3335_v8 = vmul.f32 %v6040_v28, %v6040_v28 }
 0x4e4   :  { %v3260_v33 = vadd.f32 %v3259_v26, %v6011_v46  ;;  %v3393_v62 = vadd.f32 %v3392_v63, %v3330_v55  ;;  %v3334_v46 = vmul.f32 %v6035_v56, %v6035_v56 }
 0x4e6   :  { %v3261_v54 = vadd.f32 %v3260_v33, %v6016_v3  ;;  %v3394_v32 = vadd.f32 %v3393_v62, %v3331_v19  ;;  %v3336_v62 = vmul.f32 %v6047_v60, %v6047_v60 }
 0x4e8   :  { %v3262_v12 = vadd.f32 %v3261_v54, %v6023_v34  ;;  %v3395_v26 = vadd.f32 %v3394_v32, %v3332_v37  ;;  %v7595_v34 = vld [vmem:[#allocation59_spill] sm:$0xff] }
 0x4e9   :  { %v6240_v14 = vpop.f32.mrf.mxu2  ;;  %v6242_v35 = vpop.f32.mrf.mxu3  ;;  %v3339_v3 = vmul.f32 %v7595_v34, %v7595_v34 }
 0x4ea   :  { %v6246_v24 = vpop.f32.mrf.mxu1  ;;  %v6248_v1 = vpop.f32.mrf.mxu0  ;;  %v3263_v55 = vadd.f32 %v3262_v12, %v6028_v51  ;;  %v3396_v63 = vadd.f32 %v3395_v26, %v3333_v22  ;;  %v3337_v12 = vmul.f32 %v6052_v25, %v6052_v25 }
 0x4ec   :  { %v3264_v57 = vadd.f32 %v3263_v55, %v6035_v56  ;;  %v3397_v19 = vadd.f32 %v3396_v63, %v3334_v46  ;;  %v7594_v56 = vld [vmem:[#allocation21_spill] sm:$0xff] }
 0x4ed   :  { %v3338_v51 = vmul.f32 %v7594_v56, %v7594_v56 }
 0x4ee   :  { %v3265_v32 = vadd.f32 %v3264_v57, %v6040_v28  ;;  %v3398_v22 = vadd.f32 %v3397_v19, %v3335_v8  ;;  %v3340_v19 = vmul.f32 %v6071_v52, %v6071_v52 }
 0x4f0   :  { %v3266_v26 = vadd.f32 %v3265_v32, %v6047_v60  ;;  %v3399_v55 = vadd.f32 %v3398_v22, %v3336_v62 }
 0x4f1   :  { %v6260_v38 = vpop.f32.mrf.mxu2  ;;  %v6262_v33 = vpop.f32.mrf.mxu3 }
 0x4f2   :  { %v6266_v37 = vpop.f32.mrf.mxu1  ;;  %v6268_v54 = vpop.f32.mrf.mxu0  ;;  %v3267_v46 = vadd.f32 %v3266_v26, %v6052_v25  ;;  %v3400_v63 = vadd.f32 %v3399_v55, %v3337_v12  ;;  %v7596_v26 = vld [vmem:[#allocation62_spill] sm:$0xff] }
 0x4f3   :  { %v3341_v12 = vmul.f32 %v7596_v26, %v7596_v26 }
 0x4f4   :  { %v3268_v21 = vadd.f32 %v3267_v46, %v7594_v56  ;;  %v3401_v8 = vadd.f32 %v3400_v63, %v3338_v51  ;;  %v3342_v46 = vmul.f32 %v6083_v31, %v6083_v31  ;;  %v3343_v56 = vmul.f32 %v6088_v47, %v6088_v47 }
 0x4f6   :  { %v3269_v32 = vadd.f32 %v3268_v21, %v7595_v34  ;;  %v3402_v22 = vadd.f32 %v3401_v8, %v3339_v3  ;;  %v3344_v8 = vmul.f32 %v6092_v59, %v6092_v59 }
 0x4f8   :  { %v3270_v55 = vadd.f32 %v3269_v32, %v6071_v52  ;;  %v3403_v25 = vadd.f32 %v3402_v22, %v3340_v19  ;;  %v7597_v22 = vld [vmem:[#allocation69_spill] sm:$0xff] }
 0x4f9   :  { %v2812_v40 = vpop.f32.mrf.mxu2  ;;  %v2981_v57 = vpop.f32.mrf.mxu3 }
 0x4fa   :  { %v6282_v28 = vpop.f32.mrf.mxu1  ;;  %v6284_v62 = vpop.f32.mrf.mxu0  ;;  %v3271_v51 = vadd.f32 %v3270_v55, %v7596_v26  ;;  %v3404_v63 = vadd.f32 %v3403_v25, %v3341_v12  ;;  %v3345_v55 = vmul.f32 %v7597_v22, %v7597_v22  ;;  %v2969_v25 = vadd.f32 %v6182_v61, %v6180_v29 }
 0x4fb   :  { %v2974_v61 = vadd.f32 %v6222_v2, %v6220_v23  ;;  %v3349_v23 = vmul.f32 %v6156_v20, %v6156_v20 }
 0x4fc   :  { %v3272_v60 = vadd.f32 %v3271_v51, %v6083_v31  ;;  %v3405_v3 = vadd.f32 %v3404_v63, %v3342_v46  ;;  %v3346_v46 = vmul.f32 %v6111_v27, %v6111_v27  ;;  %v2972_v63 = vadd.f32 %v6202_v5, %v6200_v45  ;;  %v7598_v45 = vld [vmem:[#allocation41_spill] sm:$0xff] }
 0x4fd   :  { %v2438_v5 = vadd.f32 %v6164_v49, %v7598_v45  ;;  %v2979_v49 = vadd.f32 %v6262_v33, %v6260_v38 }
 0x4fe   :  { %v3273_v19 = vadd.f32 %v3272_v60, %v6088_v47  ;;  %v3406_v32 = vadd.f32 %v3405_v3, %v3343_v56  ;;  %v3347_v3 = vmul.f32 %v6126_v7, %v6126_v7  ;;  %v3138_v47 = vadd.f32 %v6166_v44, %v2969_v25 }
 0x4ff   :  { %v2977_v44 = vadd.f32 %v6242_v35, %v6240_v14  ;;  %v3350_v14 = vmul.f32 %v6174_v42, %v6174_v42 }
 0x500   :  { %v3274_v51 = vadd.f32 %v3273_v19, %v6092_v59  ;;  %v3407_v31 = vadd.f32 %v3406_v32, %v3344_v8  ;;  %v3348_v59 = vmul.f32 %v6141_v0, %v6141_v0  ;;  %v6329_v2 = vadd.f32 %v3138_v47, %v2438_v5  ;;  %v7600_v47 = vld [vmem:[#allocation39_spill] sm:$0xff] }
 0x501   :  { %v2814_v16 = vpop.f32.mrf.mxu2  ;;  %v2983_v21 = vpop.f32.mrf.mxu3  ;;  %v3148_v5 = vadd.f32 %v6248_v1, %v2979_v49 }
 0x502   :  { %v6298_v34 = vpop.f32.mrf.mxu1  ;;  %v6305_v12 = vpop.f32.mrf.mxu0  ;;  %v3275_v60 = vadd.f32 %v3274_v51, %v7597_v22  ;;  %v3408_v56 = vadd.f32 %v3407_v31, %v3345_v55  ;;  %v3141_v31 = vadd.f32 %v6188_v11, %v2972_v63  ;;  %v7599_v51 = vld [vmem:[#allocation43_spill] sm:$0xff]  ;;  %v3351_v38 = vmul.f32 %v6329_v2, %v6329_v2 }
 0x504   :  { %v3276_v29 = vadd.f32 %v3275_v60, %v6111_v27  ;;  %v3409_v32 = vadd.f32 %v3408_v56, %v3346_v46  ;;  %v2441_v46 = vadd.f32 %v6186_v36, %v7599_v51  ;;  %v3143_v56 = vadd.f32 %v6208_v41, %v2974_v61 }
 0x505   :  { %v3146_v36 = vadd.f32 %v6228_v58, %v2977_v44  ;;  %v7602_v44 = vld [vmem:[#allocation11_spill] sm:$0xff] }
 0x506   :  { %v3277_v55 = vadd.f32 %v3276_v29, %v6126_v7  ;;  %v3410_v25 = vadd.f32 %v3409_v32, %v3347_v3  ;;  %v6339_v35 = vadd.f32 %v3141_v31, %v2441_v46  ;;  %v2443_v29 = vadd.f32 %v6206_v4, %v7600_v47 }
 0x507   :  { %v2982_v32 = vadd.f32 %v2981_v57, %v2812_v40  ;;  %v2984_v31 = vadd.f32 %v2983_v21, %v2814_v16 }
 0x508   :  { %v3278_v11 = vadd.f32 %v3277_v55, %v6141_v0  ;;  %v3411_v63 = vadd.f32 %v3410_v25, %v3348_v59  ;;  %v6347_v33 = vadd.f32 %v3143_v56, %v2443_v29  ;;  %v7601_v59 = vld [vmem:[#allocation49_spill] sm:$0xff]  ;;  %v3352_v40 = vmul.f32 %v6339_v35, %v6339_v35  ;;  %v7603_v56 = vld [vmem:[#allocation46_spill] sm:$0xff] }
 0x509   :  { %v2817_v8 = vpop.f32.mrf.mxu2  ;;  %v2986_v19 = vpop.f32.mrf.mxu3  ;;  %v2446_v45 = vadd.f32 %v6226_v15, %v7601_v59  ;;  %v3151_v51 = vadd.f32 %v6268_v54, %v2982_v32  ;;  %v2451_v49 = vadd.f32 %v6266_v37, %v7603_v56 }
 0x50a   :  { %v2457_v60 = vpop.f32.mrf.mxu1  ;;  %v3157_v3 = vpop.f32.mrf.mxu0  ;;  %v3279_v41 = vadd.f32 %v3278_v11, %v6156_v20  ;;  %v3412_v61 = vadd.f32 %v3411_v63, %v3349_v23  ;;  %v2448_v23 = vadd.f32 %v6246_v24, %v7602_v44  ;;  %v2987_v46 = vadd.f32 %v2986_v19, %v2817_v8  ;;  %v7604_v19 = vld [vmem:[#allocation48_spill] sm:$0xff] }
 0x50b   :  { %v6355_v57 = vadd.f32 %v3146_v36, %v2446_v45  ;;  %v3353_v16 = vmul.f32 %v6347_v33, %v6347_v33  ;;  %v3153_v11 = vadd.f32 %v6284_v62, %v2984_v31  ;;  %v6371_v8 = vadd.f32 %v3151_v51, %v2451_v49 }
 0x50c   :  { %v3280_v4 = vadd.f32 %v3279_v41, %v6174_v42  ;;  %v3413_v58 = vadd.f32 %v3412_v61, %v3350_v14  ;;  %v6363_v21 = vadd.f32 %v3148_v5, %v2448_v23  ;;  %v2453_v29 = vadd.f32 %v6282_v28, %v7604_v19 }
 0x50d   :  { %v3354_v54 = vmul.f32 %v6355_v57, %v6355_v57  ;;  %v3156_v36 = vadd.f32 %v6305_v12, %v2987_v46  ;;  %v3356_v12 = vmul.f32 %v6371_v8, %v6371_v8 }
 0x50e   :  { %v3281_v15 = vadd.f32 %v3280_v4, %v6329_v2  ;;  %v3414_v1 = vadd.f32 %v3413_v58, %v3351_v38  ;;  %v3355_v62 = vmul.f32 %v6363_v21, %v6363_v21  ;;  %v6379_v61 = vadd.f32 %v3153_v11, %v2453_v29  ;;  %v7605_v38 = vld [vmem:[#allocation56_spill] sm:$0xff] }
 0x50f   :  { %v2456_v59 = vadd.f32 %v6298_v34, %v7605_v38 }
 0x510   :  { %v3282_v63 = vadd.f32 %v3281_v15, %v6339_v35  ;;  %v3415_v14 = vadd.f32 %v3414_v1, %v3352_v40  ;;  %v7606_v40 = vld [vmem:[#allocation15_spill] sm:$0xff]  ;;  %v3357_v34 = vmul.f32 %v6379_v61, %v6379_v61 }
 0x511   :  { %v2819_v55 = vpop.f32.mrf.mxu2  ;;  %v2988_v25 = vpop.f32.mrf.mxu3  ;;  %v6386_v4 = vadd.f32 %v3156_v36, %v2456_v59  ;;  %v2458_v44 = vadd.f32 %v2457_v60, %v7606_v40 }
 0x512   :  { %v2989_v24 = vadd.f32 %v2988_v25, %v2819_v55  ;;  %v2460_v47 = vpop.f32.mrf.mxu1  ;;  %v3283_v32 = vadd.f32 %v3282_v63, %v6347_v33  ;;  %v3160_v37 = vpop.f32.mrf.mxu0  ;;  %v3416_v41 = vadd.f32 %v3415_v14, %v3353_v16 }
 0x513   :  { %v3358_v56 = vmul.f32 %v6386_v4, %v6386_v4 }
 0x514   :  { %v3284_v31 = vadd.f32 %v3283_v32, %v6355_v57  ;;  %v3158_v55 = vadd.f32 %v3157_v3, %v2989_v24  ;;  %v3417_v25 = vadd.f32 %v3416_v41, %v3354_v54  ;;  %v7607_v3 = vld [vmem:[#allocation51_spill] sm:$0xff]  ;;  %v7608_v41 = vld [vmem:[#allocation54_spill] sm:$0xff] }
 0x515   :  { %v2461_v1 = vadd.f32 %v2460_v47, %v7607_v3 }
 0x516   :  { %v3285_v58 = vadd.f32 %v3284_v31, %v6363_v21  ;;  %v3418_v51 = vadd.f32 %v3417_v25, %v3355_v62  ;;  %v6393_v15 = vadd.f32 %v3158_v55, %v2458_v44 }
 0x518   :  { %v3286_v46 = vadd.f32 %v3285_v58, %v6371_v8  ;;  %v3419_v16 = vadd.f32 %v3418_v51, %v3356_v12  ;;  %v3359_v19 = vmul.f32 %v6393_v15, %v6393_v15 }
 0x519   :  { %v2822_v45 = vpop.f32.mrf.mxu2  ;;  %v2991_v5 = vpop.f32.mrf.mxu3 }
 0x51a   :  { %v2992_v28 = vadd.f32 %v2991_v5, %v2822_v45  ;;  %v3287_v49 = vadd.f32 %v3286_v46, %v6379_v61  ;;  %v2462_v60 = vpop.f32.mrf.mxu1  ;;  %v3420_v63 = vadd.f32 %v3419_v16, %v3357_v34  ;;  %v3162_v47 = vpop.f32.mrf.mxu0 }
 0x51b   :  { %v2463_v62 = vadd.f32 %v2462_v60, %v7608_v41  ;;  %v3436_v41 = vld [vmem:[%s6999_s2] sm:$0x1] }
 0x51c   :  { %v3161_v23 = vadd.f32 %v3160_v37, %v2992_v28  ;;  %v3288_v54 = vadd.f32 %v3287_v49, %v6386_v4  ;;  %v3421_v36 = vadd.f32 %v3420_v63, %v3358_v56 }
 0x51e   :  { %v6399_v11 = vadd.f32 %v3161_v23, %v2461_v1  ;;  %v3289_v32 = vadd.f32 %v3288_v54, %v6393_v15  ;;  %v3422_v59 = vadd.f32 %v3421_v36, %v3359_v19 }
 0x520   :  { %v3360_v37 = vmul.f32 %v6399_v11, %v6399_v11  ;;  %v3290_v45 = vadd.f32 %v3289_v32, %v6399_v11 }
 0x521   :  { %v2824_v14 = vpop.f32.mrf.mxu2  ;;  %v2993_v24 = vpop.f32.mrf.mxu3 }
 0x522   :  { %v2994_v29 = vadd.f32 %v2993_v24, %v2824_v14  ;;  %v3423_v31 = vadd.f32 %v3422_v59, %v3360_v37 }
 0x524   :  { %v3163_v38 = vadd.f32 %v3162_v47, %v2994_v29 }
 0x526   :  { %v3228_v5 = vadd.f32 %v3163_v38, %v2463_v62 }
 0x528   :  { %v3291_v55 = vadd.f32 %v3290_v45, %v3228_v5  ;;  %v3361_v28 = vmul.f32 %v3228_v5, %v3228_v5 }
 0x52a   :  { %v3292_v25 = vrot.slane %v3291_v55, 4  ;;  %v3424_v12 = vadd.f32 %v3423_v31, %v3361_v28 }
 0x52c   :  { %v3293_v58 = vadd.f32 %v3292_v25, %v3291_v55  ;;  %v3425_v40 = vrot.slane %v3424_v12, 4  ;;  %v3449_v55 = vld [vmem:[%s7000_s3] sm:$0x1] }
 0x52e   :  { %v3294_v44 = vrot.slane %v3293_v58, 2  ;;  %v3426_v23 = vadd.f32 %v3425_v40, %v3424_v12 }
 0x530   :  { %v3295_v51 = vadd.f32 %v3294_v44, %v3293_v58  ;;  %v3427_v34 = vrot.slane %v3426_v23, 2  ;;  %v7609_v58 = vld [vmem:[#allocation63_spill] sm:$0xff] }
 0x532   :  { %v3296_v46 = vrot.slane %v3295_v51, 1  ;;  %v3428_v3 = vadd.f32 %v3427_v34, %v3426_v23  ;;  %v7610_v23 = vld [vmem:[#allocation20_spill] sm:$0xff] }
 0x534   :  { %v3297_v1 = vadd.f32 %v3296_v46, %v3295_v51  ;;  %v3429_v16 = vrot.slane %v3428_v3, 1 }
 0x536   :  { %v3430_v56 = vadd.f32 %v3429_v16, %v3428_v3  ;;  %v3431_v49 = vmul.f32 0.001953125, %v3297_v1  ;;  %v3588_v16 = vld [vmem:[%s7001_s4 + $0x10] sm:$0xff] }
 0x538   :  { %v3432_v60 = vmul.f32 0.001953125, %v3430_v56  ;;  %v3433_v63 = vmul.f32 %v3431_v49, %v3431_v49 }
 0x53a   :  { %v3434_v14 = vsub.f32 %v3432_v60, %v3433_v63  ;;  %v7611_v63 = vld [vmem:[#allocation58_spill] sm:$0xff] }
 0x53c   :  { %v3435_v24 = vmax.f32 %v3434_v14, 0.0 }
 0x53e   :  { %v3437_v54 = vadd.f32 1e-05, %v3435_v24 }
 0x540   :  { %4329 = vrsqrt.f32 %v3437_v54  ;;  %vm3444_vm7 = vweird.f32 %v3437_v54 }
 0x546   :  { %v4330_v19 = vpop.eup %4329 }
 0x547   :  { %v3439_v29 = vmul.f32 %v4330_v19, %v3437_v54  ;;  %vm3445_vm6 = vweird.f32 %v4330_v19 }
 0x548   :  { %vm3446_vm8 = vmor %vm3444_vm7, %vm3445_vm6 }
 0x549   :  { %v3440_v36 = vmul.f32 %v4330_v19, %v3439_v29  ;;  %v3591_v29 = vld [vmem:[%s7001_s4 + $0x28] sm:$0xff] }
 0x54b   :  { %v3441_v47 = vmul.f32 0.5, %v3440_v36 }
 0x54d   :  { %v3442_v32 = vsub.f32 1.5, %v3441_v47 }
 0x54f   :  { %v3443_v37 = vmul.f32 %v4330_v19, %v3442_v32 }
 0x551   :  { %v3447_v62 = vsel %vm3446_vm8, %v4330_v19, %v3443_v37 }
 0x552   :  { %v3448_v38 = vmul.f32 %v3447_v62, %v3436_v41  ;;  %v3592_v41 = vld [vmem:[%s7001_s4 + $0x30] sm:$0xff] }
 0x554   :  { %v6412_v59 = vperm.slane %v3448_v38, 0  ;;  %v3450_v31 = vmul.f32 %v3448_v38, %v3431_v49 }
 0x556   :  { %v3518_v45 = vmul.f32 %v6412_v59, %v3228_v5  ;;  %v3451_v28 = vsub.f32 %v3449_v55, %v3450_v31  ;;  %v3455_v12 = vmul.f32 %v6412_v59, %v5822_v30  ;;  %v3456_v40 = vmul.f32 %v6412_v59, %v7609_v58  ;;  %v3593_v31 = vld [vmem:[%s7001_s4 + $0x38] sm:$0xff]  ;;  %v7612_v58 = vld [vmem:[#allocation61_spill] sm:$0xff] }
 0x557   :  { %v3457_v44 = vmul.f32 %v6412_v59, %v5834_v50  ;;  %v3458_v5 = vmul.f32 %v6412_v59, %v5839_v48  ;;  %v3459_v51 = vmul.f32 %v6412_v59, %v7610_v23  ;;  %v3460_v30 = vmul.f32 %v6412_v59, %v5851_v6  ;;  %v3586_v50 = vld [vmem:[%s7001_s4] sm:$0xff]  ;;  %v3587_v48 = vld [vmem:[%s7001_s4 + $0x8] sm:$0xff]  ;;  %v3589_v6 = vld [vmem:[%s7001_s4 + $0x18] sm:$0xff] }
 0x558   :  { %v6418_v25 = vperm.slane %v3451_v28, 0  ;;  %v3461_v56 = vmul.f32 %v6412_v59, %v5858_v9  ;;  %v3462_v60 = vmul.f32 %v6412_v59, %v5863_v39  ;;  %v3463_v14 = vmul.f32 %v6412_v59, %v7611_v63  ;;  %v3590_v9 = vld [vmem:[%s7001_s4 + $0x20] sm:$0xff] }
 0x559   :  { %v3464_v32 = vmul.f32 %v6412_v59, %v5875_v13  ;;  %v3465_v38 = vmul.f32 %v6412_v59, %v5882_v17  ;;  %v3466_v13 = vmul.f32 %v6412_v59, %v5887_v43  ;;  %v3468_v23 = vmul.f32 %v6412_v59, %v5899_v18  ;;  %v7614_v63 = vld [vmem:[#allocation25_spill] sm:$0xff] }
 0x55a   :  { %v3522_v34 = vadd.f32 %v6418_v25, %v3455_v12  ;;  %v3523_v46 = vadd.f32 %v6418_v25, %v3456_v40  ;;  %v3524_v3 = vadd.f32 %v6418_v25, %v3457_v44  ;;  %v3525_v1 = vadd.f32 %v6418_v25, %v3458_v5 }
 0x55b   :  { %v3526_v49 = vadd.f32 %v6418_v25, %v3459_v51  ;;  %v3527_v24 = vadd.f32 %v6418_v25, %v3460_v30  ;;  %v6457_v54 = vadd.f32 %v6418_v25, %v3518_v45  ;;  %v3528_v19 = vadd.f32 %v6418_v25, %v3461_v56  ;;  %v7613_v56 = vld [vmem:[#allocation70_spill] sm:$0xff] }
 0x55c   :  { %v3650_v36 = vadd.f32 %v3586_v50, %v3522_v34  ;;  %v3651_v39 = vadd.f32 %v3587_v48, %v3523_v46  ;;  %v3652_v47 = vadd.f32 %v3588_v16, %v3524_v3  ;;  %v3529_v37 = vadd.f32 %v6418_v25, %v3462_v60 }
 0x55d   :  { %v3653_v62 = vadd.f32 %v3589_v6, %v3525_v1  ;;  %v3530_v45 = vadd.f32 %v6418_v25, %v3463_v14  ;;  %v3654_v55 = vadd.f32 %v3590_v9, %v3526_v49  ;;  %v3531_v28 = vadd.f32 %v6418_v25, %v3464_v32 }
 0x55e   :  { %3714 = vst [vmem:[%s7002_s5] sm:$0xff] %v3650_v36  ;;  %v3655_v12 = vadd.f32 %v3591_v29, %v3527_v24  ;;  %v3467_v40 = vmul.f32 %v6412_v59, %v7612_v58  ;;  %v3532_v44 = vadd.f32 %v6418_v25, %v3465_v38  ;;  %v3656_v5 = vadd.f32 %v3592_v41, %v3528_v19  ;;  %v7615_v29 = vld [vmem:[#allocation65_spill] sm:$0xff] }
 0x55f   :  { %v3533_v51 = vadd.f32 %v6418_v25, %v3466_v13  ;;  %v3657_v46 = vadd.f32 %v3593_v31, %v3529_v37  ;;  %v3469_v3 = vmul.f32 %v6412_v59, %v5903_v53  ;;  %v3470_v50 = vmul.f32 %v6412_v59, %v5908_v10  ;;  %v7616_v37 = vld [vmem:[#allocation68_spill] sm:$0xff]  ;;  %v7617_v31 = vld [vmem:[#allocation77_spill] sm:$0xff] }
 0x560   :  { %v3534_v30 = vadd.f32 %v6418_v25, %v3467_v40  ;;  %v3535_v48 = vadd.f32 %v6418_v25, %v3468_v23  ;;  %v3471_v49 = vmul.f32 %v6412_v59, %v7613_v56  ;;  %v3472_v14 = vmul.f32 %v6412_v59, %v7614_v63 }
 0x561   :  { %v3536_v6 = vadd.f32 %v6418_v25, %v3469_v3  ;;  %v3537_v24 = vadd.f32 %v6418_v25, %v3470_v50  ;;  %v3473_v36 = vmul.f32 %v6412_v59, %v7615_v29  ;;  %v3474_v41 = vmul.f32 %v6412_v59, %v7616_v37  ;;  %v7620_v3 = vld [vmem:[#allocation75_spill] sm:$0xff] }
 0x563   :  { %v3540_v13 = vadd.f32 %v6418_v25, %v3473_v36  ;;  %v3541_v40 = vadd.f32 %v6418_v25, %v3474_v41 }
 0x565   :  { %v3594_v17 = vld [vmem:[%s7001_s4 + $0x40] sm:$0xff] }
 0x566   :  { %3715 = vst [vmem:[%s7002_s5 + $0x8] sm:$0xff] %v3651_v39  ;;  %v3658_v1 = vadd.f32 %v3594_v17, %v3530_v45  ;;  %v3538_v39 = vadd.f32 %v6418_v25, %v3471_v49 }
 0x56d   :  { %v3595_v43 = vld [vmem:[%s7001_s4 + $0x48] sm:$0xff] }
 0x56e   :  { %3716 = vst [vmem:[%s7002_s5 + $0x10] sm:$0xff] %v3652_v47  ;;  %v3659_v16 = vadd.f32 %v3595_v43, %v3531_v28 }
 0x575   :  { %v3596_v34 = vld [vmem:[%s7001_s4 + $0x50] sm:$0xff] }
 0x576   :  { %3717 = vst [vmem:[%s7002_s5 + $0x18] sm:$0xff] %v3653_v62  ;;  %v3660_v60 = vadd.f32 %v3596_v34, %v3532_v44  ;;  %v3539_v62 = vadd.f32 %v6418_v25, %v3472_v14 }
 0x57d   :  { %v3597_v18 = vld [vmem:[%s7001_s4 + $0x58] sm:$0xff] }
 0x57e   :  { %3718 = vst [vmem:[%s7002_s5 + $0x20] sm:$0xff] %v3654_v55  ;;  %v3661_v19 = vadd.f32 %v3597_v18, %v3533_v51  ;;  %v3475_v55 = vmul.f32 %v6412_v59, %v7617_v31 }
 0x580   :  { %v3542_v51 = vadd.f32 %v6418_v25, %v3475_v55 }
 0x585   :  { %v3598_v53 = vld [vmem:[%s7001_s4 + $0x60] sm:$0xff] }
 0x586   :  { %3719 = vst [vmem:[%s7002_s5 + $0x28] sm:$0xff] %v3655_v12  ;;  %v3662_v32 = vadd.f32 %v3598_v53, %v3534_v30  ;;  %v7618_v12 = vld [vmem:[#allocation30_spill] sm:$0xff]  ;;  %v3478_v30 = vmul.f32 %v6412_v59, %v7620_v3 }
 0x587   :  { %v3476_v58 = vmul.f32 %v6412_v59, %v7618_v12 }
 0x589   :  { %v3543_v18 = vadd.f32 %v6418_v25, %v3476_v58 }
 0x58d   :  { %v3599_v10 = vld [vmem:[%s7001_s4 + $0x68] sm:$0xff] }
 0x58e   :  { %3720 = vst [vmem:[%s7002_s5 + $0x30] sm:$0xff] %v3656_v5  ;;  %v3663_v45 = vadd.f32 %v3599_v10, %v3535_v48  ;;  %v7619_v5 = vld [vmem:[#allocation72_spill] sm:$0xff] }
 0x58f   :  { %v3477_v23 = vmul.f32 %v6412_v59, %v7619_v5  ;;  %v7621_v48 = vld [vmem:[#allocation84_spill] sm:$0xff] }
 0x590   :  { %v3479_v53 = vmul.f32 %v6412_v59, %v7621_v48 }
 0x595   :  { %v3600_v9 = vld [vmem:[%s7001_s4 + $0x70] sm:$0xff] }
 0x596   :  { %3721 = vst [vmem:[%s7002_s5 + $0x38] sm:$0xff] %v3657_v46  ;;  %v3664_v17 = vadd.f32 %v3600_v9, %v3536_v6  ;;  %v7622_v6 = vld [vmem:[#allocation35_spill] sm:$0xff] }
 0x597   :  { %v3480_v10 = vmul.f32 %v6412_v59, %v7622_v6 }
 0x59d   :  { %v3601_v47 = vld [vmem:[%s7001_s4 + $0x78] sm:$0xff] }
 0x59e   :  { %3722 = vst [vmem:[%s7002_s5 + $0x40] sm:$0xff] %v3658_v1  ;;  %v3665_v43 = vadd.f32 %v3601_v47, %v3537_v24  ;;  %v7623_v24 = vld [vmem:[#allocation79_spill] sm:$0xff] }
 0x59f   :  { %v3481_v9 = vmul.f32 %v6412_v59, %v7623_v24 }
 0x5a5   :  { %v3602_v38 = vld [vmem:[%s7001_s4 + $0x80] sm:$0xff] }
 0x5a6   :  { %3723 = vst [vmem:[%s7002_s5 + $0x48] sm:$0xff] %v3659_v16  ;;  %v3666_v46 = vadd.f32 %v3602_v38, %v3538_v39  ;;  %v3544_v16 = vadd.f32 %v6418_v25, %v3477_v23  ;;  %v7624_v39 = vld [vmem:[#allocation82_spill] sm:$0xff] }
 0x5a7   :  { %v3482_v47 = vmul.f32 %v6412_v59, %v7624_v39 }
 0x5ad   :  { %v3603_v28 = vld [vmem:[%s7001_s4 + $0x88] sm:$0xff] }
 0x5ae   :  { %3724 = vst [vmem:[%s7002_s5 + $0x50] sm:$0xff] %v3660_v60  ;;  %v3667_v50 = vadd.f32 %v3603_v28, %v3539_v62  ;;  %v3545_v60 = vadd.f32 %v6418_v25, %v3478_v30  ;;  %v7625_v62 = vld [vmem:[#allocation90_spill] sm:$0xff] }
 0x5af   :  { %v3483_v38 = vmul.f32 %v6412_v59, %v7625_v62 }
 0x5b5   :  { %v3604_v44 = vld [vmem:[%s7001_s4 + $0x90] sm:$0xff] }
 0x5b6   :  { %3725 = vst [vmem:[%s7002_s5 + $0x58] sm:$0xff] %v3661_v19  ;;  %v3668_v49 = vadd.f32 %v3604_v44, %v3540_v13  ;;  %v3546_v19 = vadd.f32 %v6418_v25, %v3479_v53  ;;  %v7626_v13 = vld [vmem:[#allocation86_spill] sm:$0xff] }
 0x5b7   :  { %v3484_v28 = vmul.f32 %v6412_v59, %v7626_v13 }
 0x5bd   :  { %v3605_v34 = vld [vmem:[%s7001_s4 + $0x98] sm:$0xff] }
 0x5be   :  { %3726 = vst [vmem:[%s7002_s5 + $0x60] sm:$0xff] %v3662_v32  ;;  %v3669_v14 = vadd.f32 %v3605_v34, %v3541_v40  ;;  %v3547_v32 = vadd.f32 %v6418_v25, %v3480_v10  ;;  %v7627_v40 = vld [vmem:[#allocation89_spill] sm:$0xff] }
 0x5bf   :  { %v3485_v44 = vmul.f32 %v6412_v59, %v7627_v40 }
 0x5c5   :  { %v3606_v1 = vld [vmem:[%s7001_s4 + $0xa0] sm:$0xff] }
 0x5c6   :  { %3727 = vst [vmem:[%s7002_s5 + $0x68] sm:$0xff] %v3663_v45  ;;  %v3670_v36 = vadd.f32 %v3606_v1, %v3542_v51  ;;  %v3548_v45 = vadd.f32 %v6418_v25, %v3481_v9  ;;  %v7628_v51 = vld [vmem:[#allocation36_spill] sm:$0xff] }
 0x5c7   :  { %v3486_v34 = vmul.f32 %v6412_v59, %v7628_v51 }
 0x5cd   :  { %v3607_v56 = vld [vmem:[%s7001_s4 + $0xa8] sm:$0xff] }
 0x5ce   :  { %3728 = vst [vmem:[%s7002_s5 + $0x70] sm:$0xff] %v3664_v17  ;;  %v3671_v41 = vadd.f32 %v3607_v56, %v3543_v18  ;;  %v3549_v17 = vadd.f32 %v6418_v25, %v3482_v47  ;;  %v7629_v18 = vld [vmem:[#allocation12_spill] sm:$0xff] }
 0x5cf   :  { %v3487_v1 = vmul.f32 %v6412_v59, %v7629_v18 }
 0x5d5   :  { %v3608_v63 = vld [vmem:[%s7001_s4 + $0xb0] sm:$0xff] }
 0x5d6   :  { %3729 = vst [vmem:[%s7002_s5 + $0x78] sm:$0xff] %v3665_v43  ;;  %v3672_v55 = vadd.f32 %v3608_v63, %v3544_v16  ;;  %v3550_v43 = vadd.f32 %v6418_v25, %v3483_v38  ;;  %v7630_v16 = vld [vmem:[#allocation91_spill] sm:$0xff] }
 0x5d7   :  { %v3488_v56 = vmul.f32 %v6412_v59, %v7630_v16 }
 0x5dd   :  { %v3609_v29 = vld [vmem:[%s7001_s4 + $0xb8] sm:$0xff] }
 0x5de   :  { %3730 = vst [vmem:[%s7002_s5 + $0x80] sm:$0xff] %v3666_v46  ;;  %v3673_v58 = vadd.f32 %v3609_v29, %v3545_v60  ;;  %v3551_v46 = vadd.f32 %v6418_v25, %v3484_v28  ;;  %v7631_v60 = vld [vmem:[#allocation92_spill] sm:$0xff] }
 0x5df   :  { %v3489_v63 = vmul.f32 %v6412_v59, %v7631_v60 }
 0x5e5   :  { %v3610_v37 = vld [vmem:[%s7001_s4 + $0xc0] sm:$0xff] }
 0x5e6   :  { %3731 = vst [vmem:[%s7002_s5 + $0x88] sm:$0xff] %v3667_v50  ;;  %v3674_v23 = vadd.f32 %v3610_v37, %v3546_v19  ;;  %v3552_v50 = vadd.f32 %v6418_v25, %v3485_v44  ;;  %v7632_v19 = vld [vmem:[#allocation52_spill] sm:$0xff] }
 0x5e7   :  { %v3490_v29 = vmul.f32 %v6412_v59, %v7632_v19 }
 0x5ed   :  { %v3611_v31 = vld [vmem:[%s7001_s4 + $0xc8] sm:$0xff] }
 0x5ee   :  { %3732 = vst [vmem:[%s7002_s5 + $0x90] sm:$0xff] %v3668_v49  ;;  %v3675_v30 = vadd.f32 %v3611_v31, %v3547_v32  ;;  %v3553_v49 = vadd.f32 %v6418_v25, %v3486_v34  ;;  %v7633_v32 = vld [vmem:[#allocation16_spill] sm:$0xff] }
 0x5ef   :  { %v3491_v37 = vmul.f32 %v6412_v59, %v7633_v32 }
 0x5f5   :  { %v3612_v12 = vld [vmem:[%s7001_s4 + $0xd0] sm:$0xff] }
 0x5f6   :  { %3733 = vst [vmem:[%s7002_s5 + $0x98] sm:$0xff] %v3669_v14  ;;  %v3676_v53 = vadd.f32 %v3612_v12, %v3548_v45  ;;  %v3554_v14 = vadd.f32 %v6418_v25, %v3487_v1  ;;  %v7634_v45 = vld [vmem:[#allocation93_spill] sm:$0xff] }
 0x5f7   :  { %v3492_v31 = vmul.f32 %v6412_v59, %v7634_v45 }
 0x5fd   :  { %v3613_v5 = vld [vmem:[%s7001_s4 + $0xd8] sm:$0xff] }
 0x5fe   :  { %3734 = vst [vmem:[%s7002_s5 + $0xa0] sm:$0xff] %v3670_v36  ;;  %v3677_v10 = vadd.f32 %v3613_v5, %v3549_v17  ;;  %v3555_v36 = vadd.f32 %v6418_v25, %v3488_v56  ;;  %v7635_v17 = vld [vmem:[#allocation55_spill] sm:$0xff] }
 0x5ff   :  { %v3493_v12 = vmul.f32 %v6412_v59, %v7635_v17 }
 0x605   :  { %v3614_v3 = vld [vmem:[%s7001_s4 + $0xe0] sm:$0xff] }
 0x606   :  { %3735 = vst [vmem:[%s7002_s5 + $0xa8] sm:$0xff] %v3671_v41  ;;  %v3678_v9 = vadd.f32 %v3614_v3, %v3550_v43  ;;  %v3556_v41 = vadd.f32 %v6418_v25, %v3489_v63  ;;  %v7636_v43 = vld [vmem:[#allocation18_spill] sm:$0xff]  ;;  %v3498_v63 = vmul.f32 %v6412_v59, %v7596_v26 }
 0x607   :  { %v3494_v5 = vmul.f32 %v6412_v59, %v7636_v43  ;;  %v3504_v43 = vmul.f32 %v6412_v59, %v6126_v7 }
 0x608   :  { %v3565_v32 = vadd.f32 %v6418_v25, %v3498_v63 }
 0x60d   :  { %v3615_v48 = vld [vmem:[%s7001_s4 + $0xe8] sm:$0xff] }
 0x60e   :  { %3736 = vst [vmem:[%s7002_s5 + $0xb0] sm:$0xff] %v3672_v55  ;;  %v3679_v47 = vadd.f32 %v3615_v48, %v3551_v46  ;;  %v3557_v55 = vadd.f32 %v6418_v25, %v3490_v29  ;;  %v7637_v46 = vld [vmem:[#allocation21_spill] sm:$0xff] }
 0x60f   :  { %v3495_v3 = vmul.f32 %v6412_v59, %v7637_v46 }
 0x615   :  { %v3616_v6 = vld [vmem:[%s7001_s4 + $0xf0] sm:$0xff] }
 0x616   :  { %3737 = vst [vmem:[%s7002_s5 + $0xb8] sm:$0xff] %v3673_v58  ;;  %v3680_v38 = vadd.f32 %v3616_v6, %v3552_v50  ;;  %v3558_v58 = vadd.f32 %v6418_v25, %v3491_v37  ;;  %v7638_v50 = vld [vmem:[#allocation59_spill] sm:$0xff]  ;;  %v3562_v6 = vadd.f32 %v6418_v25, %v3495_v3  ;;  %v3506_v3 = vmul.f32 %v6412_v59, %v6156_v20 }
 0x617   :  { %v3496_v48 = vmul.f32 %v6412_v59, %v7638_v50 }
 0x61d   :  { %v3617_v24 = vld [vmem:[%s7001_s4 + $0xf8] sm:$0xff] }
 0x61e   :  { %3738 = vst [vmem:[%s7002_s5 + $0xc0] sm:$0xff] %v3674_v23  ;;  %v3681_v28 = vadd.f32 %v3617_v24, %v3553_v49  ;;  %v3559_v23 = vadd.f32 %v6418_v25, %v3492_v31  ;;  %v3497_v49 = vmul.f32 %v6412_v59, %v6071_v52 }
 0x620   :  { %v3564_v29 = vadd.f32 %v6418_v25, %v3497_v49  ;;  %v3509_v49 = vmul.f32 %v6412_v59, %v6339_v35 }
 0x625   :  { %v3618_v39 = vld [vmem:[%s7001_s4 + $0x100] sm:$0xff] }
 0x626   :  { %3739 = vst [vmem:[%s7002_s5 + $0xc8] sm:$0xff] %v3675_v30  ;;  %v3682_v44 = vadd.f32 %v3618_v39, %v3554_v14  ;;  %v3560_v30 = vadd.f32 %v6418_v25, %v3493_v12  ;;  %v3563_v14 = vadd.f32 %v6418_v25, %v3496_v48  ;;  %v7640_v39 = vld [vmem:[#allocation26_spill] sm:$0xff] }
 0x62d   :  { %v3619_v62 = vld [vmem:[%s7001_s4 + $0x108] sm:$0xff] }
 0x62e   :  { %3740 = vst [vmem:[%s7002_s5 + $0xd0] sm:$0xff] %v3676_v53  ;;  %v3683_v34 = vadd.f32 %v3619_v62, %v3555_v36  ;;  %v3561_v53 = vadd.f32 %v6418_v25, %v3494_v5  ;;  %v7641_v62 = vld [vmem:[#allocation66_spill] sm:$0xff] }
 0x635   :  { %v3620_v13 = vld [vmem:[%s7001_s4 + $0x110] sm:$0xff] }
 0x636   :  { %3741 = vst [vmem:[%s7002_s5 + $0xd8] sm:$0xff] %v3677_v10  ;;  %v3684_v1 = vadd.f32 %v3620_v13, %v3556_v41  ;;  %v3502_v13 = vmul.f32 %v6412_v59, %v7597_v22 }
 0x638   :  { %v3569_v5 = vadd.f32 %v6418_v25, %v3502_v13 }
 0x63d   :  { %v3621_v40 = vld [vmem:[%s7001_s4 + $0x118] sm:$0xff] }
 0x63e   :  { %3742 = vst [vmem:[%s7002_s5 + $0xe0] sm:$0xff] %v3678_v9  ;;  %v3685_v56 = vadd.f32 %v3621_v40, %v3557_v55  ;;  %v7639_v9 = vld [vmem:[#allocation23_spill] sm:$0xff] }
 0x63f   :  { %v3499_v19 = vmul.f32 %v6412_v59, %v7639_v9 }
 0x641   :  { %v3566_v45 = vadd.f32 %v6418_v25, %v3499_v19  ;;  %v3512_v19 = vmul.f32 %v6412_v59, %v6363_v21 }
 0x645   :  { %v3622_v51 = vld [vmem:[%s7001_s4 + $0x120] sm:$0xff] }
 0x646   :  { %3743 = vst [vmem:[%s7002_s5 + $0xe8] sm:$0xff] %v3679_v47  ;;  %v3686_v60 = vadd.f32 %v3622_v51, %v3558_v58  ;;  %v3500_v47 = vmul.f32 %v6412_v59, %v7640_v39  ;;  %v3503_v58 = vmul.f32 %v6412_v59, %v6111_v27  ;;  %v3505_v51 = vmul.f32 %v6412_v59, %v6141_v0 }
 0x648   :  { %v3572_v50 = vadd.f32 %v6418_v25, %v3505_v51 }
 0x64d   :  { %v3623_v18 = vld [vmem:[%s7001_s4 + $0x128] sm:$0xff] }
 0x64e   :  { %3744 = vst [vmem:[%s7002_s5 + $0xf0] sm:$0xff] %v3680_v38  ;;  %v3687_v24 = vadd.f32 %v3623_v18, %v3559_v23  ;;  %v3501_v38 = vmul.f32 %v6412_v59, %v7641_v62  ;;  %v3515_v62 = vmul.f32 %v6412_v59, %v6386_v4 }
 0x650   :  { %v3568_v40 = vadd.f32 %v6418_v25, %v3501_v38 }
 0x655   :  { %v3624_v16 = vld [vmem:[%s7001_s4 + $0x130] sm:$0xff] }
 0x656   :  { %3745 = vst [vmem:[%s7002_s5 + $0xf8] sm:$0xff] %v3681_v28  ;;  %v3688_v36 = vadd.f32 %v3624_v16, %v3560_v30  ;;  %v3567_v28 = vadd.f32 %v6418_v25, %v3500_v47  ;;  %v3571_v30 = vadd.f32 %v6418_v25, %v3504_v43  ;;  %v3573_v16 = vadd.f32 %v6418_v25, %v3506_v3 }
 0x65d   :  { %v3625_v10 = vld [vmem:[%s7001_s4 + $0x138] sm:$0xff] }
 0x65e   :  { %3746 = vst [vmem:[%s7002_s5 + $0x100] sm:$0xff] %v3682_v44  ;;  %v3689_v41 = vadd.f32 %v3625_v10, %v3561_v53  ;;  %v3508_v53 = vmul.f32 %v6412_v59, %v6329_v2 }
 0x660   :  { %v3575_v63 = vadd.f32 %v6418_v25, %v3508_v53 }
 0x665   :  { %v3626_v52 = vld [vmem:[%s7001_s4 + $0x140] sm:$0xff] }
 0x666   :  { %3747 = vst [vmem:[%s7002_s5 + $0x108] sm:$0xff] %v3683_v34  ;;  %v3690_v55 = vadd.f32 %v3626_v52, %v3562_v6  ;;  %v3570_v34 = vadd.f32 %v6418_v25, %v3503_v58  ;;  %v3511_v52 = vmul.f32 %v6412_v59, %v6355_v57 }
 0x668   :  { %v3578_v39 = vadd.f32 %v6418_v25, %v3511_v52 }
 0x66d   :  { %v3627_v26 = vld [vmem:[%s7001_s4 + $0x148] sm:$0xff] }
 0x66e   :  { %3748 = vst [vmem:[%s7002_s5 + $0x110] sm:$0xff] %v3684_v1  ;;  %v3691_v12 = vadd.f32 %v3627_v26, %v3563_v14  ;;  %v3507_v1 = vmul.f32 %v6412_v59, %v6174_v42 }
 0x670   :  { %v3574_v6 = vadd.f32 %v6418_v25, %v3507_v1 }
 0x675   :  { %v3628_v37 = vld [vmem:[%s7001_s4 + $0x150] sm:$0xff] }
 0x676   :  { %3749 = vst [vmem:[%s7002_s5 + $0x118] sm:$0xff] %v3685_v56  ;;  %v3692_v44 = vadd.f32 %v3628_v37, %v3564_v29  ;;  %v3579_v37 = vadd.f32 %v6418_v25, %v3512_v19 }
 0x67d   :  { %v3629_v31 = vld [vmem:[%s7001_s4 + $0x158] sm:$0xff] }
 0x67e   :  { %3750 = vst [vmem:[%s7002_s5 + $0x120] sm:$0xff] %v3686_v60  ;;  %v3693_v23 = vadd.f32 %v3629_v31, %v3565_v32  ;;  %v3510_v60 = vmul.f32 %v6412_v59, %v6347_v33  ;;  %v3514_v32 = vmul.f32 %v6412_v59, %v6379_v61  ;;  %v3516_v31 = vmul.f32 %v6412_v59, %v6393_v15 }
 0x680   :  { %v3577_v29 = vadd.f32 %v6418_v25, %v3510_v60  ;;  %v3583_v58 = vadd.f32 %v6418_v25, %v3516_v31 }
 0x685   :  { %v3630_v17 = vld [vmem:[%s7001_s4 + $0x160] sm:$0xff] }
 0x686   :  { %3751 = vst [vmem:[%s7002_s5 + $0x128] sm:$0xff] %v3687_v24  ;;  %v3694_v46 = vadd.f32 %v3630_v17, %v3566_v45  ;;  %v3576_v24 = vadd.f32 %v6418_v25, %v3509_v49  ;;  %v3582_v17 = vadd.f32 %v6418_v25, %v3515_v62 }
 0x68d   :  { %v3631_v22 = vld [vmem:[%s7001_s4 + $0x168] sm:$0xff] }
 0x68e   :  { %3752 = vst [vmem:[%s7002_s5 + $0x130] sm:$0xff] %v3688_v36  ;;  %v3695_v18 = vadd.f32 %v3631_v22, %v3567_v28  ;;  %v3513_v36 = vmul.f32 %v6412_v59, %v6371_v8  ;;  %v3517_v28 = vmul.f32 %v6412_v59, %v6399_v11 }
 0x690   :  { %v3580_v38 = vadd.f32 %v6418_v25, %v3513_v36  ;;  %v3584_v11 = vadd.f32 %v6418_v25, %v3517_v28 }
 0x695   :  { %v3632_v27 = vld [vmem:[%s7001_s4 + $0x170] sm:$0xff] }
 0x696   :  { %3753 = vst [vmem:[%s7002_s5 + $0x138] sm:$0xff] %v3689_v41  ;;  %v3696_v48 = vadd.f32 %v3632_v27, %v3568_v40 }
 0x69d   :  { %v3633_v7 = vld [vmem:[%s7001_s4 + $0x178] sm:$0xff] }
 0x69e   :  { %3754 = vst [vmem:[%s7002_s5 + $0x140] sm:$0xff] %v3690_v55  ;;  %v3697_v56 = vadd.f32 %v3633_v7, %v3569_v5  ;;  %v3581_v55 = vadd.f32 %v6418_v25, %v3514_v32 }
 0x6a5   :  { %v3634_v0 = vld [vmem:[%s7001_s4 + $0x180] sm:$0xff] }
 0x6a6   :  { %3755 = vst [vmem:[%s7002_s5 + $0x148] sm:$0xff] %v3691_v12  ;;  %v3698_v10 = vadd.f32 %v3634_v0, %v3570_v34 }
 0x6ad   :  { %v3635_v20 = vld [vmem:[%s7001_s4 + $0x188] sm:$0xff] }
 0x6ae   :  { %3756 = vst [vmem:[%s7002_s5 + $0x150] sm:$0xff] %v3692_v44  ;;  %v3699_v14 = vadd.f32 %v3635_v20, %v3571_v30 }
 0x6b5   :  { %v3636_v42 = vld [vmem:[%s7001_s4 + $0x190] sm:$0xff] }
 0x6b6   :  { %3757 = vst [vmem:[%s7002_s5 + $0x158] sm:$0xff] %v3693_v23  ;;  %v3700_v9 = vadd.f32 %v3636_v42, %v3572_v50 }
 0x6bd   :  { %v3637_v2 = vld [vmem:[%s7001_s4 + $0x198] sm:$0xff] }
 0x6be   :  { %3758 = vst [vmem:[%s7002_s5 + $0x160] sm:$0xff] %v3694_v46  ;;  %v3701_v26 = vadd.f32 %v3637_v2, %v3573_v16 }
 0x6c5   :  { %v3638_v35 = vld [vmem:[%s7001_s4 + $0x1a0] sm:$0xff] }
 0x6c6   :  { %3759 = vst [vmem:[%s7002_s5 + $0x168] sm:$0xff] %v3695_v18  ;;  %v3702_v47 = vadd.f32 %v3638_v35, %v3574_v6 }
 0x6cd   :  { %v3639_v33 = vld [vmem:[%s7001_s4 + $0x1a8] sm:$0xff] }
 0x6ce   :  { %3760 = vst [vmem:[%s7002_s5 + $0x170] sm:$0xff] %v3696_v48  ;;  %v3703_v41 = vadd.f32 %v3639_v33, %v3575_v63 }
 0x6d5   :  { %v3640_v57 = vld [vmem:[%s7001_s4 + $0x1b0] sm:$0xff] }
 0x6d6   :  { %3761 = vst [vmem:[%s7002_s5 + $0x178] sm:$0xff] %v3697_v56  ;;  %v3704_v45 = vadd.f32 %v3640_v57, %v3576_v24 }
 0x6dd   :  { %v3641_v21 = vld [vmem:[%s7001_s4 + $0x1b8] sm:$0xff] }
 0x6de   :  { %3762 = vst [vmem:[%s7002_s5 + $0x180] sm:$0xff] %v3698_v10  ;;  %v3705_v13 = vadd.f32 %v3641_v21, %v3577_v29 }
 0x6e5   :  { %v3642_v8 = vld [vmem:[%s7001_s4 + $0x1c0] sm:$0xff] }
 0x6e6   :  { %3763 = vst [vmem:[%s7002_s5 + $0x188] sm:$0xff] %v3699_v14  ;;  %v3706_v12 = vadd.f32 %v3642_v8, %v3578_v39 }
 0x6ed   :  { %v3643_v61 = vld [vmem:[%s7001_s4 + $0x1c8] sm:$0xff] }
 0x6ee   :  { %3764 = vst [vmem:[%s7002_s5 + $0x190] sm:$0xff] %v3700_v9  ;;  %v3707_v22 = vadd.f32 %v3643_v61, %v3579_v37 }
 0x6f5   :  { %v3644_v4 = vld [vmem:[%s7001_s4 + $0x1d0] sm:$0xff] }
 0x6f6   :  { %3765 = vst [vmem:[%s7002_s5 + $0x198] sm:$0xff] %v3701_v26  ;;  %v3708_v44 = vadd.f32 %v3644_v4, %v3580_v38 }
 0x6fd   :  { %v3645_v15 = vld [vmem:[%s7001_s4 + $0x1d8] sm:$0xff] }
 0x6fe   :  { %3766 = vst [vmem:[%s7002_s5 + $0x1a0] sm:$0xff] %v3702_v47  ;;  %v3709_v5 = vadd.f32 %v3645_v15, %v3581_v55 }
 0x705   :  { %v3646_v40 = vld [vmem:[%s7001_s4 + $0x1e0] sm:$0xff] }
 0x706   :  { %3767 = vst [vmem:[%s7002_s5 + $0x1a8] sm:$0xff] %v3703_v41  ;;  %v3710_v27 = vadd.f32 %v3646_v40, %v3582_v17 }
 0x70d   :  { %v3647_v59 = vld [vmem:[%s7001_s4 + $0x1e8] sm:$0xff] }
 0x70e   :  { %3768 = vst [vmem:[%s7002_s5 + $0x1b0] sm:$0xff] %v3704_v45  ;;  %v3711_v23 = vadd.f32 %v3647_v59, %v3583_v58 }
 0x715   :  { %v3648_v43 = vld [vmem:[%s7001_s4 + $0x1f0] sm:$0xff] }
 0x716   :  { %3769 = vst [vmem:[%s7002_s5 + $0x1b8] sm:$0xff] %v3705_v13  ;;  %v3712_v51 = vadd.f32 %v3648_v43, %v3584_v11 }
 0x71d   :  { %v3649_v25 = vld [vmem:[%s7001_s4 + $0x1f8] sm:$0xff] }
 0x71e   :  { %3770 = vst [vmem:[%s7002_s5 + $0x1c0] sm:$0xff] %v3706_v12  ;;  %v3713_v34 = vadd.f32 %v3649_v25, %v6457_v54 }
 0x71f   :  { %3771 = vst [vmem:[%s7002_s5 + $0x1c8] sm:$0xff] %v3707_v22 }
 0x720   :  { %3772 = vst [vmem:[%s7002_s5 + $0x1d0] sm:$0xff] %v3708_v44 }
 0x721   :  { %3773 = vst [vmem:[%s7002_s5 + $0x1d8] sm:$0xff] %v3709_v5 }
 0x722   :  { %3774 = vst [vmem:[%s7002_s5 + $0x1e0] sm:$0xff] %v3710_v27 }
 0x723   :  { %3775 = vst [vmem:[%s7002_s5 + $0x1e8] sm:$0xff] %v3711_v23 }
 0x724   :  { %3776 = vst [vmem:[%s7002_s5 + $0x1f0] sm:$0xff] %v3712_v51 }
 0x725   :  { %3777 = vst [vmem:[%s7002_s5 + $0x1f8] sm:$0xff] %v3713_v34 }
 0x726   :  { %3782 = vsyncpa [#allocation3], 1 }

</bundles_post_ra>
